<compile_context>
chip_gen: v7x
topology: tpu7x:2x2x1
jax: 0.10.0
libtpu: 0.0.40
codegen_flags: <defaults>
</compile_context>

<pallas_src>
import functools

import jax
import jax.numpy as jnp
from jax.experimental import pallas as pl
from jax.experimental.pallas import tpu as pltpu


N_IMAGES = 27  # fixed 3x3x3 periodic-image enumeration


def _periodic_conv_kernel(geo_a_ref, geo_b_ref, shifts_ref, feat_ref, wproj_ref, out_ref, *,
                          zb, A, Cin, Cout_p, r2, matmul_dtype):
    f32 = jnp.float32

    geo_a = geo_a_ref[...].astype(f32)     # [zb, A, 3]       query atoms (a on sublanes)
    geo_b = geo_b_ref[...].astype(f32)     # [zb, 3, A]       neighbour atoms (b on lanes)
    shifts = shifts_ref[...].astype(f32)   # [3, 27, 1]       cartesian image shifts
    feat = feat_ref[...]                   # [zb, A, Cin]
    wproj = wproj_ref[...]                 # [Cin, 4*Cout_p]  stacked [Wx;Wy;Wz;B], pre-scaled

    # --- Pair displacements per coordinate (largest live tensors stay rank-4, b on lanes) ---
    # rel_x[z, a, m, b] = (r_b[x] + S[m, x]) - r_a[x]   (association matches the reference)
    rel = []
    for x in range(3):
        pos_x = geo_b[:, x, :][:, None, :] + shifts[x][None, :, :]           # [zb, 27, A]
        rel.append(pos_x[:, None, :, :] - geo_a[:, :, x][:, :, None, None])  # [zb, A, 27, A]
    dist2 = rel[0] * rel[0] + rel[1] * rel[1] + rel[2] * rel[2]              # [zb, A, 27, A]
    mask = (dist2 <= r2).astype(f32)                                         # radius cutoff
    # NOTE: the reference zeroes rel where ||rel|| < 1e-10; the only such pair is the exact
    # self pair whose rel is already exactly 0, so its moment contribution is 0 without an
    # explicit `where` (the mask still counts it, feeding the bias term as in the reference).

    # --- Reduce over the 27 periodic images BEFORE touching the features (VPU sums) ---
    cnt = jnp.sum(mask, axis=2)                                              # [zb, A, A]
    moms = [jnp.sum(mask * r, axis=2) for r in rel]                          # 3 x [zb, A, A]
    # Lane-dense contraction slab, K index = x'*A + b with x' in {dx, dy, dz, bias}:
    mom = jnp.concatenate(moms + [cnt], axis=-1)                             # [zb, A, 4*A]

    # --- Feature projection: batch folded into M, weights shared across z, N = 4*Cout_p ---
    fp = jnp.dot(feat.reshape(zb * A, Cin).astype(matmul_dtype),
                 wproj.astype(matmul_dtype),
                 preferred_element_type=f32)                                 # [zb*A, 4*Cout_p]
    # Re-chunk (128-aligned lane slices) so rows match mom's K ordering x'*A + b:
    fp = jnp.concatenate(
        [fp[:, x * Cout_p:(x + 1) * Cout_p].reshape(zb, A, Cout_p) for x in range(4)],
        axis=1)                                                              # [zb, 4*A, Cout_p]

    # --- Final contraction over (x', b); N = Cout_p >= 128 lanes, written straight out ---
    out = jnp.einsum('zak,zki->zai',
                     mom.astype(matmul_dtype), fp.astype(matmul_dtype),
                     preferred_element_type=f32)                             # [zb, A, Cout_p]
    out_ref[...] = out.astype(out_ref.dtype)


def periodic_convolution(features, geometry, lattice, W, B, *, max_radius, n_norm=None,
                         zb=4, matmul_dtype=jnp.float32,
                         vmem_limit_bytes=32 * 1024 * 1024):
    """features [Z, A, Cin], geometry [Z, A, 3] (cartesian), lattice [3, 3] (rows = a1,a2,a3),
    W [Cout, 3, Cin], B [Cout, Cin]  ->  [Z, A, Cout].

    zb: batch rows per grid step.  Intermediates scale as ~5 * zb*A*27*A*4 bytes plus the
        double-buffered blocks; keep well under VMEM (64 MiB physical on v7x, 128 MiB on
        v5e/v6e) and keep grid = Z/zb >= 2 so both v7x TensorCores get work.  On v5e/v6e,
        grow zb and raise vmem_limit_bytes (toward 64-100 MiB) to amortize per-step overhead.
    matmul_dtype: jnp.bfloat16 on v6e/v7x doubles MXU throughput (f32 accumulation kept).
    """
    Z, A, Cin = features.shape
    assert geometry.shape[:2] == features.shape[:2], "features/geometry size mismatch"
    Cout = W.shape[0]
    assert W.shape == (Cout, 3, Cin) and B.shape == (Cout, Cin)
    assert Z % zb == 0, "batch must be divisible by the per-step batch block"

    f32 = jnp.float32
    features = features.astype(f32)
    geometry = geometry.astype(f32)
    lattice = lattice.astype(f32)

    # The fixed 3x3x3 image set is exhaustive only if the cutoff sphere fits inside the cell.
    try:
        import numpy as np
        L = np.asarray(lattice, dtype=np.float64)
        vol = abs(float(np.linalg.det(L)))
        heights = [vol / float(np.linalg.norm(np.cross(L[(i + 1) % 3], L[(i + 2) % 3])))
                   for i in range(3)]
        assert float(max_radius) <= min(heights) + 1e-6, (
            f"max_radius={max_radius} exceeds the smallest lattice extent {min(heights):.4f}; "
            "the fixed 3x3x3 periodic-image set would drop neighbours")
    except AssertionError:
        raise
    except Exception:
        pass  # lattice is traced/abstract at this point; skip the static geometric check

    # 3x3x3 periodic image shifts (cartesian), laid out [3(coord), 27(image), 1] so each
    # coordinate row broadcasts across images/lanes in-kernel without relayouts.
    offs = jnp.array([-1.0, 0.0, 1.0], dtype=f32)
    cells = jnp.stack(jnp.meshgrid(offs, offs, offs, indexing="ij"), axis=-1).reshape(-1, 3)
    shifts = (cells @ lattice).T[:, :, None]                                 # [3, 27, 1]

    # Geometry is passed in both roles' preferred layouts (tiny arrays, wrapper-side plumbing):
    # [Z, A, 3] for the query-atom (a) side, [Z, 3, A] with atoms on lanes for the neighbour
    # (b) side, from which image positions are rebuilt in-kernel.
    geometry_t = jnp.transpose(geometry, (0, 2, 1))                          # [Z, 3, A]

    # Stacked, padded, pre-scaled kernel parameters:
    #   Wproj[j, x*Cout_p + i] = scale * W[i, x, j]  (x < 3),   scale * B[i, j]  (x == 3)
    # Cout is padded to a multiple of 128 so the second matmul N-dim and the output stores are
    # lane-dense; the 1/sqrt(n_norm) scale is folded in here (weight-side constant fold).
    Cout_p = ((Cout + 127) // 128) * 128
    scale = 1.0 / float(n_norm) ** 0.5 if n_norm else 1.0
    wb = jnp.concatenate([jnp.transpose(W, (1, 2, 0)),                       # [3, Cin, Cout]
                          B.T[None]], axis=0).astype(f32) * scale            # [4, Cin, Cout]
    wproj = jnp.zeros((4, Cin, Cout_p), f32).at[:, :, :Cout].set(wb)
    wproj = jnp.transpose(wproj, (1, 0, 2)).reshape(Cin, 4 * Cout_p)         # [Cin, 4*Cout_p]

    kernel = functools.partial(_periodic_conv_kernel, zb=zb, A=A, Cin=Cin, Cout_p=Cout_p,
                               r2=float(max_radius) ** 2, matmul_dtype=matmul_dtype)

    out_padded = pl.pallas_call(
        kernel,
        out_shape=jax.ShapeDtypeStruct((Z, A, Cout_p), f32),
        grid=(Z // zb,),
        in_specs=[
            pl.BlockSpec((zb, A, 3), lambda z: (z, 0, 0)),                   # geometry (a role)
            pl.BlockSpec((zb, 3, A), lambda z: (z, 0, 0)),                   # geometry (b role)
            pl.BlockSpec((3, N_IMAGES, 1), lambda z: (0, 0, 0)),             # image shift table
            pl.BlockSpec((zb, A, Cin), lambda z: (z, 0, 0)),                 # features
            pl.BlockSpec((Cin, 4 * Cout_p), lambda z: (0, 0)),               # stacked [W; B]
        ],
        out_specs=pl.BlockSpec((zb, A, Cout_p), lambda z: (z, 0, 0)),
        compiler_params=pltpu.CompilerParams(
            dimension_semantics=("parallel",),
            vmem_limit_bytes=vmem_limit_bytes,
        ),
    )(geometry, geometry_t, shifts, features, wproj)

    return out_padded[..., :Cout]


def periodic_convolution_reference(features, geometry, lattice, W, B, *, max_radius, n_norm=None):
    """Pure-JAX mirror of the (simplified) PyTorch forward, for validation."""
    f32 = jnp.float32
    offs = jnp.array([-1.0, 0.0, 1.0], dtype=f32)
    cells = jnp.stack(jnp.meshgrid(offs, offs, offs, indexing="ij"), axis=-1).reshape(-1, 3)
    shifts = cells @ lattice.astype(f32)                                     # [27, 3]
    # rel[z, a, s, b, x] = (r_b + S_s) - r_a
    rel = (geometry[:, None, None, :, :] + shifts[None, None, :, None, :]
           - geometry[:, :, None, None, :])
    dist2 = jnp.sum(rel * rel, axis=-1)
    mask = (dist2 <= max_radius ** 2).astype(f32)
    rel = jnp.where(dist2[..., None] < 1e-20, 0.0, rel)
    k = jnp.einsum('zasbx,ixj->zasbij', rel, W) + B[None, None, None, None, :, :]
    k = k * mask[..., None, None]
    out = jnp.einsum('zasbij,zbj->zai', k, features)
    if n_norm:
        out = out / n_norm ** 0.5
    return out


if __name__ == "__main__":
    Z, A, Cin, Cout = 8, 8, 4, 4
    cell = 4.0
    max_radius = 2.2       # < cell length, so the 3x3x3 image set is exhaustive
    n_norm = 4.0

    key = jax.random.PRNGKey(0)
    kf, kg, kw, kb = jax.random.split(key, 4)
    features = jax.random.normal(kf, (Z, A, Cin), dtype=jnp.float32)
    geometry = jax.random.uniform(kg, (Z, A, 3), dtype=jnp.float32) * cell
    lattice = cell * jnp.eye(3, dtype=jnp.float32)
    # Deterministic synthetic parameters for the (linearized) Kernel(Rs_in, Rs_out).
    W = jax.random.normal(kw, (Cout, 3, Cin), dtype=jnp.float32) / jnp.sqrt(3.0 * Cin)
    B = jax.random.normal(kb, (Cout, Cin), dtype=jnp.float32) / jnp.sqrt(float(Cin))

    out = periodic_convolution(features, geometry, lattice, W, B,
                               max_radius=max_radius, n_norm=n_norm, zb=4)
    out = jax.block_until_ready(out)

    ref = periodic_convolution_reference(features, geometry, lattice, W, B,
                                         max_radius=max_radius, n_norm=n_norm)
    assert out.shape == (Z, A, Cout), out.shape
    max_err = float(jnp.max(jnp.abs(out - ref)))
    tol = 1e-2 * (1.0 + float(jnp.max(jnp.abs(ref))))
    assert max_err < tol, f"max abs error vs reference: {max_err} (tol {tol})"

    print("KERNEL_OK")
</pallas_src>

<mosaic_0001>
module attributes {stable_mosaic.version = 11 : i64} {
  func.func @_periodic_conv_kernel(%arg0: i32, %arg1: memref<4x8x3xf32, #tpu.memory_space<vmem>>, %arg2: memref<4x3x8xf32, #tpu.memory_space<vmem>>, %arg3: memref<3x27x1xf32, #tpu.memory_space<vmem>>, %arg4: memref<4x8x4xf32, #tpu.memory_space<vmem>>, %arg5: memref<4x512xf32, #tpu.memory_space<vmem>>, %arg6: memref<4x8x128xf32, #tpu.memory_space<vmem>>) attributes {dimension_semantics = [#tpu.dimension_semantics<parallel>], iteration_bounds = array<i64: 2>, scalar_prefetch = 0 : i64, scratch_operands = 0 : i64, tpu.core_type = #tpu.core_type<tc>, window_params = [{transform_indices = @transform_0, window_bounds = array<i64: 4, 8, 3>}, {transform_indices = @transform_1, window_bounds = array<i64: 4, 3, 8>}, {pipeline_mode = #tpu.pipeline_mode<synchronous>, transform_indices = @transform_2, window_bounds = array<i64: 3, 27, 1>}, {transform_indices = @transform_3, window_bounds = array<i64: 4, 8, 4>}, {pipeline_mode = #tpu.pipeline_mode<synchronous>, transform_indices = @transform_4, window_bounds = array<i64: 4, 512>}, {transform_indices = @transform_5, window_bounds = array<i64: 4, 8, 128>}]} {
    %c0 = arith.constant 0 : index
    %c0_0 = arith.constant 0 : index
    %c0_1 = arith.constant 0 : index
    %0 = vector.load %arg1[%c0, %c0_0, %c0_1] : memref<4x8x3xf32, #tpu.memory_space<vmem>>, vector<4x8x3xf32>
    %c0_2 = arith.constant 0 : index
    %c0_3 = arith.constant 0 : index
    %c0_4 = arith.constant 0 : index
    %1 = vector.load %arg2[%c0_2, %c0_3, %c0_4] : memref<4x3x8xf32, #tpu.memory_space<vmem>>, vector<4x3x8xf32>
    %c0_5 = arith.constant 0 : index
    %c0_6 = arith.constant 0 : index
    %c0_7 = arith.constant 0 : index
    %2 = vector.load %arg3[%c0_5, %c0_6, %c0_7] : memref<3x27x1xf32, #tpu.memory_space<vmem>>, vector<3x27x1xf32>
    %c0_8 = arith.constant 0 : index
    %c0_9 = arith.constant 0 : index
    %c0_10 = arith.constant 0 : index
    %3 = vector.load %arg4[%c0_8, %c0_9, %c0_10] : memref<4x8x4xf32, #tpu.memory_space<vmem>>, vector<4x8x4xf32>
    %c0_11 = arith.constant 0 : index
    %c0_12 = arith.constant 0 : index
    %4 = vector.load %arg5[%c0_11, %c0_12] : memref<4x512xf32, #tpu.memory_space<vmem>>, vector<4x512xf32>
    %5 = vector.extract_strided_slice %1 {offsets = [0, 0, 0], sizes = [4, 1, 8], strides = [1, 1, 1]} : vector<4x3x8xf32> to vector<4x1x8xf32>
    %6 = vector.shape_cast %5 : vector<4x1x8xf32> to vector<4x8xf32>
    %7 = vector.shape_cast %6 : vector<4x8xf32> to vector<4x1x8xf32>
    %8 = vector.extract_strided_slice %2 {offsets = [0, 0, 0], sizes = [1, 27, 1], strides = [1, 1, 1]} : vector<3x27x1xf32> to vector<1x27x1xf32>
    %9 = vector.shape_cast %8 : vector<1x27x1xf32> to vector<27x1xf32>
    %10 = vector.shape_cast %9 : vector<27x1xf32> to vector<1x27x1xf32>
    %11 = vector.broadcast %7 : vector<4x1x8xf32> to vector<4x27x8xf32>
    %12 = vector.broadcast %10 : vector<1x27x1xf32> to vector<4x27x8xf32>
    %13 = arith.addf %11, %12 : vector<4x27x8xf32>
    %14 = vector.shape_cast %13 : vector<4x27x8xf32> to vector<4x1x27x8xf32>
    %15 = vector.extract_strided_slice %0 {offsets = [0, 0, 0], sizes = [4, 8, 1], strides = [1, 1, 1]} : vector<4x8x3xf32> to vector<4x8x1xf32>
    %16 = vector.shape_cast %15 : vector<4x8x1xf32> to vector<4x8xf32>
    %17 = vector.shape_cast %16 : vector<4x8xf32> to vector<4x8x1x1xf32>
    %18 = vector.broadcast %14 : vector<4x1x27x8xf32> to vector<4x8x27x8xf32>
    %19 = vector.broadcast %17 : vector<4x8x1x1xf32> to vector<4x8x27x8xf32>
    %20 = arith.subf %18, %19 : vector<4x8x27x8xf32>
    %21 = vector.extract_strided_slice %1 {offsets = [0, 1, 0], sizes = [4, 1, 8], strides = [1, 1, 1]} : vector<4x3x8xf32> to vector<4x1x8xf32>
    %22 = vector.shape_cast %21 : vector<4x1x8xf32> to vector<4x8xf32>
    %23 = vector.shape_cast %22 : vector<4x8xf32> to vector<4x1x8xf32>
    %24 = vector.extract_strided_slice %2 {offsets = [1, 0, 0], sizes = [1, 27, 1], strides = [1, 1, 1]} : vector<3x27x1xf32> to vector<1x27x1xf32>
    %25 = vector.shape_cast %24 : vector<1x27x1xf32> to vector<27x1xf32>
    %26 = vector.shape_cast %25 : vector<27x1xf32> to vector<1x27x1xf32>
    %27 = vector.broadcast %23 : vector<4x1x8xf32> to vector<4x27x8xf32>
    %28 = vector.broadcast %26 : vector<1x27x1xf32> to vector<4x27x8xf32>
    %29 = arith.addf %27, %28 : vector<4x27x8xf32>
    %30 = vector.shape_cast %29 : vector<4x27x8xf32> to vector<4x1x27x8xf32>
    %31 = vector.extract_strided_slice %0 {offsets = [0, 0, 1], sizes = [4, 8, 1], strides = [1, 1, 1]} : vector<4x8x3xf32> to vector<4x8x1xf32>
    %32 = vector.shape_cast %31 : vector<4x8x1xf32> to vector<4x8xf32>
    %33 = vector.shape_cast %32 : vector<4x8xf32> to vector<4x8x1x1xf32>
    %34 = vector.broadcast %30 : vector<4x1x27x8xf32> to vector<4x8x27x8xf32>
    %35 = vector.broadcast %33 : vector<4x8x1x1xf32> to vector<4x8x27x8xf32>
    %36 = arith.subf %34, %35 : vector<4x8x27x8xf32>
    %37 = vector.extract_strided_slice %1 {offsets = [0, 2, 0], sizes = [4, 1, 8], strides = [1, 1, 1]} : vector<4x3x8xf32> to vector<4x1x8xf32>
    %38 = vector.shape_cast %37 : vector<4x1x8xf32> to vector<4x8xf32>
    %39 = vector.shape_cast %38 : vector<4x8xf32> to vector<4x1x8xf32>
    %40 = vector.extract_strided_slice %2 {offsets = [2, 0, 0], sizes = [1, 27, 1], strides = [1, 1, 1]} : vector<3x27x1xf32> to vector<1x27x1xf32>
    %41 = vector.shape_cast %40 : vector<1x27x1xf32> to vector<27x1xf32>
    %42 = vector.shape_cast %41 : vector<27x1xf32> to vector<1x27x1xf32>
    %43 = vector.broadcast %39 : vector<4x1x8xf32> to vector<4x27x8xf32>
    %44 = vector.broadcast %42 : vector<1x27x1xf32> to vector<4x27x8xf32>
    %45 = arith.addf %43, %44 : vector<4x27x8xf32>
    %46 = vector.shape_cast %45 : vector<4x27x8xf32> to vector<4x1x27x8xf32>
    %47 = vector.extract_strided_slice %0 {offsets = [0, 0, 2], sizes = [4, 8, 1], strides = [1, 1, 1]} : vector<4x8x3xf32> to vector<4x8x1xf32>
    %48 = vector.shape_cast %47 : vector<4x8x1xf32> to vector<4x8xf32>
    %49 = vector.shape_cast %48 : vector<4x8xf32> to vector<4x8x1x1xf32>
    %50 = vector.broadcast %46 : vector<4x1x27x8xf32> to vector<4x8x27x8xf32>
    %51 = vector.broadcast %49 : vector<4x8x1x1xf32> to vector<4x8x27x8xf32>
    %52 = arith.subf %50, %51 : vector<4x8x27x8xf32>
    %53 = arith.mulf %20, %20 : vector<4x8x27x8xf32>
    %54 = arith.mulf %36, %36 : vector<4x8x27x8xf32>
    %55 = arith.addf %53, %54 : vector<4x8x27x8xf32>
    %56 = arith.mulf %52, %52 : vector<4x8x27x8xf32>
    %57 = arith.addf %55, %56 : vector<4x8x27x8xf32>
    %cst = arith.constant 4.840000e+00 : f32
    %58 = vector.broadcast %cst : f32 to vector<4x8x27x8xf32>
    %59 = arith.cmpf ole, %57, %58 : vector<4x8x27x8xf32>
    %60 = arith.extui %59 : vector<4x8x27x8xi1> to vector<4x8x27x8xi32>
    %61 = arith.sitofp %60 : vector<4x8x27x8xi32> to vector<4x8x27x8xf32>
    %cst_13 = arith.constant dense<0.000000e+00> : vector<4x8x8xf32>
    %62 = vector.multi_reduction <add>, %61, %cst_13 [2] : vector<4x8x27x8xf32> to vector<4x8x8xf32>
    %63 = arith.mulf %61, %20 : vector<4x8x27x8xf32>
    %cst_14 = arith.constant dense<0.000000e+00> : vector<4x8x8xf32>
    %64 = vector.multi_reduction <add>, %63, %cst_14 [2] : vector<4x8x27x8xf32> to vector<4x8x8xf32>
    %65 = arith.mulf %61, %36 : vector<4x8x27x8xf32>
    %cst_15 = arith.constant dense<0.000000e+00> : vector<4x8x8xf32>
    %66 = vector.multi_reduction <add>, %65, %cst_15 [2] : vector<4x8x27x8xf32> to vector<4x8x8xf32>
    %67 = arith.mulf %61, %52 : vector<4x8x27x8xf32>
    %cst_16 = arith.constant dense<0.000000e+00> : vector<4x8x8xf32>
    %68 = vector.multi_reduction <add>, %67, %cst_16 [2] : vector<4x8x27x8xf32> to vector<4x8x8xf32>
    %69 = tpu.concatenate %64, %66, %68, %62 in 2 : vector<4x8x8xf32>, vector<4x8x8xf32>, vector<4x8x8xf32>, vector<4x8x8xf32> -> vector<4x8x32xf32>
    %70 = vector.shape_cast %3 : vector<4x8x4xf32> to vector<32x4xf32>
    %cst_17 = arith.constant dense<0.000000e+00> : vector<32x512xf32>
    %71 = tpu.matmul %70, %4, %cst_17 {dimension_numbers = #tpu.dot_dimension_numbers<[1], [0], [0], [1], [0, 0, 1, 1], [], []>} : vector<32x4xf32>, vector<4x512xf32>, vector<32x512xf32> -> vector<32x512xf32>
    %72 = vector.extract_strided_slice %71 {offsets = [0, 0], sizes = [32, 128], strides = [1, 1]} : vector<32x512xf32> to vector<32x128xf32>
    %73 = vector.shape_cast %72 : vector<32x128xf32> to vector<4x8x128xf32>
    %74 = vector.extract_strided_slice %71 {offsets = [0, 128], sizes = [32, 128], strides = [1, 1]} : vector<32x512xf32> to vector<32x128xf32>
    %75 = vector.shape_cast %74 : vector<32x128xf32> to vector<4x8x128xf32>
    %76 = vector.extract_strided_slice %71 {offsets = [0, 256], sizes = [32, 128], strides = [1, 1]} : vector<32x512xf32> to vector<32x128xf32>
    %77 = vector.shape_cast %76 : vector<32x128xf32> to vector<4x8x128xf32>
    %78 = vector.extract_strided_slice %71 {offsets = [0, 384], sizes = [32, 128], strides = [1, 1]} : vector<32x512xf32> to vector<32x128xf32>
    %79 = vector.shape_cast %78 : vector<32x128xf32> to vector<4x8x128xf32>
    %80 = tpu.concatenate %73, %75, %77, %79 in 1 : vector<4x8x128xf32>, vector<4x8x128xf32>, vector<4x8x128xf32>, vector<4x8x128xf32> -> vector<4x32x128xf32>
    "tpu.trace_start"() <{level = 10 : i32, message = "zak,zki->zai"}> : () -> ()
    %cst_18 = arith.constant dense<0.000000e+00> : vector<4x8x128xf32>
    %81 = tpu.matmul %69, %80, %cst_18 {dimension_numbers = #tpu.dot_dimension_numbers<[2], [1], [1], [2], [0, 0, 0, 1, 1, 2], [0], [0]>} : vector<4x8x32xf32>, vector<4x32x128xf32>, vector<4x8x128xf32> -> vector<4x8x128xf32>
    "tpu.trace_stop"() : () -> ()
    %c0_19 = arith.constant 0 : index
    %c0_20 = arith.constant 0 : index
    %c0_21 = arith.constant 0 : index
    %82 = vector.load %arg6[%c0_19, %c0_20, %c0_21] : memref<4x8x128xf32, #tpu.memory_space<vmem>>, vector<4x8x128xf32>
    tpu.vector_store %arg6[%c0_19, %c0_20, %c0_21], %81 {strides = array<i32>} : memref<4x8x128xf32, #tpu.memory_space<vmem>>, vector<4x8x128xf32>,
    return
  }
  func.func @transform_0(%arg0: i32) -> (i32, i32, i32) {
    %c0_i32 = arith.constant 0 : i32
    %c0_i32_0 = arith.constant 0 : i32
    %c0_i32_1 = arith.constant 0 : i32
    return %arg0, %c0_i32, %c0_i32_0 : i32, i32, i32
  }
  func.func @transform_1(%arg0: i32) -> (i32, i32, i32) {
    %c0_i32 = arith.constant 0 : i32
    %c0_i32_0 = arith.constant 0 : i32
    %c0_i32_1 = arith.constant 0 : i32
    return %arg0, %c0_i32, %c0_i32_0 : i32, i32, i32
  }
  func.func @transform_2(%arg0: i32) -> (i32, i32, i32) {
    %c0_i32 = arith.constant 0 : i32
    %c0_i32_0 = arith.constant 0 : i32
    %c0_i32_1 = arith.constant 0 : i32
    %c0_i32_2 = arith.constant 0 : i32
    return %c0_i32, %c0_i32_0, %c0_i32_1 : i32, i32, i32
  }
  func.func @transform_3(%arg0: i32) -> (i32, i32, i32) {
    %c0_i32 = arith.constant 0 : i32
    %c0_i32_0 = arith.constant 0 : i32
    %c0_i32_1 = arith.constant 0 : i32
    return %arg0, %c0_i32, %c0_i32_0 : i32, i32, i32
  }
  func.func @transform_4(%arg0: i32) -> (i32, i32) {
    %c0_i32 = arith.constant 0 : i32
    %c0_i32_0 = arith.constant 0 : i32
    %c0_i32_1 = arith.constant 0 : i32
    return %c0_i32, %c0_i32_0 : i32, i32
  }
  func.func @transform_5(%arg0: i32) -> (i32, i32, i32) {
    %c0_i32 = arith.constant 0 : i32
    %c0_i32_0 = arith.constant 0 : i32
    %c0_i32_1 = arith.constant 0 : i32
    return %arg0, %c0_i32, %c0_i32_0 : i32, i32, i32
  }
}

</mosaic_0001>

<bundles_post_ra>
// kernel: tpu_custom_call.1
= control target key start
LH: loop header
LB: loop body
LE: loop exit
PB: predicated region body
PF: predicated region fallthrough
CT: control target
= control target key end

     0   :  { %10 = vsyncpa [#allocation3], 0  ;;  %s11071_s0 = inlined_call_operand.vmem [shape: f32[8,8,3], index: 0, kind: input, shape index: {}]   ;;  %s11072_s1 = inlined_call_operand.vmem [shape: f32[8,3,8], index: 1, kind: input, shape index: {}]   ;;  %s11073_s2 = inlined_call_operand.vmem [shape: f32[3,27,1], index: 2, kind: input, shape index: {}]   ;;  %s11074_s3 = inlined_call_operand.vmem [shape: f32[8,8,4], index: 3, kind: input, shape index: {}]   ;;  %s11075_s4 = inlined_call_operand.vmem [shape: f32[4,512], index: 4, kind: input, shape index: {}]   ;;  %s11076_s5 = inlined_call_operand.hbm [shape: f32[8,8,128], index: 5, kind: output, shape index: {}]  }
   0x1   :  { %12 = vsyncpa [#allocation3 + $0x1], 0  ;;  %s5975_s18 = smov 0   ;;  %s5977_s19 = smov 0  }
   0x2   :  { %s5979_s20 = smov 0   ;;  %s5981_s21 = smov 0  }
   0x3 LB: > { %s5996_s22 = sadd.s32 4294967295, %s5931_s21   ;;  %s5524_s23 = sadd.s32 4294967294, %s5931_s21   ;;  %s5931_s21 = sphi %s5981_s21, %s12785_s21   ;;  %s5927_s20 = sphi %s5979_s20, %s12784_s20   ;;  %s5923_s19 = sphi %s5977_s19, %s12783_s19   ;;  %s5919_s18 = sphi %s5975_s18, %s12782_s18  }
   0x4   : > { %s6000_s24 = sadd.s32 1, %s5931_s21   ;;  %s145_s25 = sadd.s32 1, %s5927_s20 }
   0x5   : > { %s142_s26 = ssub.s32 %s5931_s21, %s6000_s24  ;;  %p155_p0 = scmp.ne.s32.totalorder %s5927_s20, %s5923_s19 }
   0x6   : > { %p143_p1 = scmp.eq.s32.totalorder %s142_s26, 0  ;;  %p156_p2 = scmp.eq.s32.totalorder %s5996_s22, 1 }
   0x7   : > { %p161_p3 = scmp.ne.s32.totalorder %s5923_s19, %s5919_s18  ;;  %p162_p4 = scmp.eq.s32.totalorder %s5524_s23, 1 }
   0x8   : > { %s6011_s27 = scalar_select %p143_p1, %s5927_s20, %s145_s25  }
   0x9   : > { %p6013_p5 = por %p156_p2, %p155_p0  ;;  %p6017_p6 = por %p162_p4, %p161_p3 }
   0xa   : > { %p5527_p7 = scmp.ge.s32.totalorder %s5931_s21, 1  ;;  %p213_p8 = scmp.lt.s32.totalorder %s5931_s21, 3 }
   0xc   : > { %p214_p9 = pnand %p5527_p7, %p213_p8 }
   0xe   : > { %217 = sbr.rel (%p214_p9) target bundleno = 1428 (0x594), region = 40 }
  0x15   : > { %v280_v0 = vld [vmem:[%s11073_s2 + $0x10] sm:$0xff]  ;;  %v278_v1 = vld [vmem:[%s11073_s2] sm:$0xff]  ;;  %s5529_s9 = sshll.u32 %s5996_s22, 2  ;;  %v296_v2 = vlaneseq  ;;  %v11085_v3 = vmov 0   ;;  %v5934_v5 = vmov 1966171168  }
  0x16   : > { %5824 = vset.pattern.permute.xlu1 %v11085_v3  ;;  %5823 = vset.pattern.permute.xlu0 %v11085_v3  ;;  %p252_p10 = scmp.lt.s32.totalorder %s5529_s9, 7  ;;  %v354_v6 = vunpack.c.l.s4 %v5934_v5  ;;  %v281_v7 = vld [vmem:[%s11073_s2 + $0x18] sm:$0x7]  ;;  %v279_v8 = vld [vmem:[%s11073_s2 + $0x8] sm:$0xff]  ;;  %vm4940_vm0 = vcmask 1043456   ;;  %vm4927_vm1 = vcmask 31744  }
  0x17   : > { %324 = vperm.xlu1 %5824, %v280_v0   ;;  %314 = vperm.xlu0 %5823, %v278_v1   ;;  %v6032_v4 = vshrl.u32 %v296_v2, 7  ;;  %vm2572_vm2 = vcmask 64512   ;;  %vm2578_vm3 = vcmask 59392   ;;  %s5684_s6 = sshll.u32 %s5996_s22, 9  ;;  %s5943_s22 = smov [#allocation2]  }
  0x18   : > { %s12787_s9 = smov (!%p252_p10, %s5529_s9), 7  ;;  %v355_v9 = vunpack.c.0.s8 %v354_v6  ;;  %s11027_s10 = scalar_lea.hbm %s11076_s5, %s5684_s6 }
  0x19   : > { %s5530_s14 = sshll.u32 %s12787_s9, 3  ;;  %v6052_v12 = vsub.s32 0, %v6032_v4  ;;  %s5532_s23 = sshll.u32 %s12787_s9, 2 }
  0x1a   : > { %s255_s17 = scalar_lea.vmem %s11071_s0, %s5530_s14  ;;  %v6049_v10 = vsub.s32 %v355_v9, %v6032_v4  ;;  %s261_s30 = scalar_lea.vmem %s11072_s1, %s5532_s23 }
  0x1b   : > { %329 = vperm.xlu1 %5824, %v281_v7   ;;  %319 = vperm.xlu0 %5823, %v279_v8   ;;  %v270_v11 = vld [vmem:[%s255_s17] sm:$0xff]  ;;  %v273_v15 = vld [vmem:[%s255_s17 + $0x18] sm:$0xff]  ;;  %v271_v23 = vld [vmem:[%s255_s17 + $0x8] sm:$0xff]  ;;  %s6317_s13 = scalar_lea.vmem %s11074_s3, %s5530_s14  ;;  %s5938_s9 = smov 8  }
  0x1c   : > { %v359_v13 = vrot.slane %v270_v11, %v6049_v10  ;;  %v352_v14 = vcombine.high %v270_v11, %v270_v11  ;;  %v506_v16 = vrot.slane %v273_v15, %v6049_v10  ;;  %v408_v29 = vrot.slane %v271_v23, %v6049_v10  ;;  %v6072_v30 = vld [vmem:[%s255_s17 + $0x10] sm:$0xff]  ;;  %v6097_v44 = vld [vmem:[%s261_s30] sm:$0x7]  ;;  %v6106_v48 = vld [vmem:[%s261_s30 + $0x4] sm:$0x7]  ;;  %s5939_s14 = smov 16  }
  0x1d   : > { %v6088_v35 = vrot.slane %v6072_v30, %v6049_v10  ;;  %v401_v38 = vcombine.high %v271_v23, %v271_v23  ;;  %v499_v42 = vcombine.high %v273_v15, %v273_v15  ;;  %v6108_v49 = vld [vmem:[%s261_s30 + $0x8] sm:$0x7]  ;;  %v6118_v54 = vld [vmem:[%s261_s30 + $0xc] sm:$0x7]  ;;  %v6130_v58 = vrot.slane %v6097_v44, %v6052_v12  ;;  %s5940_s17 = smov 24   ;;  %s248_s23 = sand.u32 1, %s5923_s19  }
  0x1e   : > { %v375_v17 = vrot.slane %v359_v13, %v6049_v10  ;;  %v367_v18 = vcombine.high %v359_v13, %v359_v13  ;;  %v366_v19 = vrot.slane %v352_v14, %v6049_v10  ;;  %v424_v36 = vrot.slane %v408_v29, %v6049_v10  ;;  %s5528_s25 = sshll.u32 %s248_s23, 5  ;;  %s11029_s11 = scalar_lea.sflag [#allocation3], %s248_s23 }
  0x1f   : > { %v416_v37 = vcombine.high %v408_v29, %v408_v29  ;;  %v473_v41 = vrot.slane %v6088_v35, %v6049_v10  ;;  %v514_v43 = vcombine.high %v506_v16, %v506_v16  ;;  %v415_v52 = vrot.slane %v401_v38, %v6049_v10  ;;  %s250_s26 = scalar_lea.vmem [#allocation2], %s5528_s25 }
  0x20   : > { %v6059_v20 = vrot.slane %v375_v17, %v6052_v12  ;;  %v389_v21 = vrot.slane %v367_v18, %v6049_v10  ;;  %v397_v22 = vcombine.high %v375_v17, %v375_v17  ;;  %v368_v24 = vcombine.high %v366_v19, %v366_v19  ;;  %s5438_s30 = sshll.u32 %s250_s26, 4  ;;  %s11022_s30 = int_to_ptr.vmem [resolvable:$true] %s5438_s30 }
  0x21   : > { %v382_v28 = vrot.slane %v366_v19, %v6049_v10  ;;  %v6104_v46 = vrot.slane %v473_v41, %v6052_v12  ;;  %v495_v47 = vcombine.high %v473_v41, %v473_v41  ;;  %v6111_v50 = vrot.slane %v424_v36, %v6052_v12  ;;  %s5869_s12 = scalar_lea.vmem %s11022_s30, 512 }
  0x22   : > { %677 = vperm.xlu0 %5823, %v6059_v20   ;;  %v6064_v25 = vrot.slane %v389_v21, %v6052_v12  ;;  %v6067_v26 = vrot.slane %v397_v22, %v6052_v12  ;;  %v399_v27 = vcombine.high %v389_v21, %v389_v21  ;;  %v396_v32 = vrot.slane %v368_v24, %v6049_v10  ;;  %p5870_p11 = scmp.ne.s32.totalorder %s11022_s30, %s5869_s12 }
  0x23   : > { %v6084_v33 = vrot.slane %v382_v28, %v6052_v12  ;;  %v398_v34 = vcombine.high %v382_v28, %v382_v28  ;;  %11512 = vst [vmem:[#allocation5_spill] sm:$0xff] %v6104_v46  ;;  %v438_v51 = vrot.slane %v416_v37, %v6049_v10  ;;  %v6116_v53 = vrot.slane %v514_v43, %v6049_v10  ;;  %v283_v28 = vld [vmem:[%s11073_s2 + $0x28] sm:$0xff]  ;;  %v289_v43 = vld [vmem:[%s11073_s2 + $0x58] sm:$0x7] }
  0x24   : > { %681 = vperm.xlu1 %5824, %v6064_v25   ;;  %v6076_v31 = vrot.slane %v399_v27, %v6052_v12  ;;  %v6093_v39 = vrot.slane %v396_v32, %v6052_v12  ;;  %v400_v40 = vcombine.high %v396_v32, %v396_v32  ;;  %v6125_v56 = vrot.slane %v495_v47, %v6052_v12  ;;  %v282_v27 = vld [vmem:[%s11073_s2 + $0x20] sm:$0xff]  ;;  %v284_v32 = vld [vmem:[%s11073_s2 + $0x30] sm:$0xff]  ;;  %p5871_p12 = pnand %p5870_p11, %p6013_p5 }
  0x25   : > { %v6101_v45 = vrot.slane %v398_v34, %v6052_v12  ;;  %v513_v57 = vrot.slane %v499_v42, %v6049_v10  ;;  %v446_v59 = vcombine.high %v424_v36, %v424_v36  ;;  %v6134_v60 = vrot.slane %v6116_v53, %v6052_v12 }
  0x26   : > { %685 = vperm.xlu0 %5823, %v6067_v26   ;;  %v6122_v55 = vrot.slane %v400_v40, %v6052_v12  ;;  %v6138_v61 = vrot.slane %v6106_v48, %v6052_v12  ;;  %v6142_v62 = vrot.slane %v6108_v49, %v6052_v12  ;;  %v6148_v0 = vrot.slane %v6118_v54, %v6052_v12  ;;  %v286_v40 = vld [vmem:[%s11073_s2 + $0x40] sm:$0xff]  ;;  %p5872_p13 = pneg %p5871_p12 }
  0x27   : > { %11514 = vst [vmem:[#allocation7_spill] sm:$0xff] %v6134_v60  ;;  %v529_v63 = vrot.slane %v513_v57, %v6049_v10  ;;  %v515_v1 = vcombine.high %v513_v57, %v513_v57  ;;  %v522_v2 = vrot.slane %v506_v16, %v6049_v10  ;;  %v6152_v5 = vrot.slane %v438_v51, %v6052_v12 }
  0x28   : > { %689 = vperm.xlu1 %5824, %v6076_v31   ;;  %11513 = vst [vmem:[#allocation6_spill] sm:$0xff] %v6122_v55  ;;  %v448_v6 = vcombine.high %v438_v51, %v438_v51  ;;  %v417_v7 = vcombine.high %v415_v52, %v415_v52  ;;  %v6163_v14 = vrot.slane %v446_v59, %v6052_v12  ;;  %v934_v29 = vsub.s32 1, %v6032_v4 }
  0x29   : > { %v6156_v8 = vrot.slane %v529_v63, %v6052_v12  ;;  %v543_v9 = vrot.slane %v515_v1, %v6049_v10  ;;  %v545_v11 = vcombine.high %v529_v63, %v529_v63  ;;  %v6160_v13 = vrot.slane %v522_v2, %v6052_v12 }
  0x2a   : > { %693 = vperm.xlu0 %5823, %v6084_v33   ;;  %v431_v15 = vrot.slane %v415_v52, %v6049_v10  ;;  %v6175_v19 = vrot.slane %v448_v6, %v6052_v12  ;;  %v445_v21 = vrot.slane %v417_v7, %v6049_v10  ;;  %v6202_v34 = vrot.slane %v6097_v44, %v934_v29  ;;  %v287_v6 = vld [vmem:[%s11073_s2 + $0x48] sm:$0xff] }
  0x2b   : > { %11515 = vst [vmem:[#allocation8_spill] sm:$0xff] %v6156_v8  ;;  %v6168_v16 = vrot.slane %v543_v9, %v6052_v12  ;;  %v6171_v17 = vrot.slane %v545_v11, %v6052_v12  ;;  %v547_v18 = vcombine.high %v543_v9, %v543_v9  ;;  %v6205_v36 = vrot.slane %v6106_v48, %v934_v29 }
  0x2c   : > { %697 = vperm.xlu1 %5824, %v6093_v39   ;;  %v6183_v23 = vrot.slane %v431_v15, %v6052_v12  ;;  %v6187_v24 = vrot.slane %v445_v21, %v6052_v12  ;;  %v6208_v37 = vrot.slane %v6108_v49, %v934_v29  ;;  %v6211_v38 = vrot.slane %v6118_v54, %v934_v29 }
  0x2d   : > { %11516 = vst [vmem:[#allocation9_spill] sm:$0xff] %v6168_v16  ;;  %11517 = vst [vmem:[#allocation10_spill] sm:$0xff] %v6171_v17  ;;  %v6179_v22 = vrot.slane %v547_v18, %v6052_v12  ;;  %v11079_v41 = vmov 1   ;;  %v447_v42 = vcombine.high %v431_v15, %v431_v15  ;;  %v1242_v47 = vsub.s32 2, %v6032_v4  ;;  %v285_v18 = vld [vmem:[%s11073_s2 + $0x38] sm:$0x7] }
  0x2e   : > { %701 = vperm.xlu0 %5823, %v6101_v45   ;;  %v450_v51 = vcombine.high %v6072_v30, %v6072_v30  ;;  %v544_v52 = vcombine.high %v522_v2, %v522_v2  ;;  %v449_v30 = vcombine.high %v445_v21, %v445_v21  ;;  %v465_v2 = vcombine.high %v6088_v35, %v6088_v35 }
  0x2f   : > { %11518 = vst [vmem:[#allocation11_spill] sm:$0xff] %v6179_v22  ;;  %v6226_v57 = vrot.slane %v6097_v44, %v1242_v47  ;;  %v6229_v59 = vrot.slane %v6106_v48, %v1242_v47  ;;  %v6232_v63 = vrot.slane %v6108_v49, %v1242_v47  ;;  %v6235_v1 = vrot.slane %v6118_v54, %v1242_v47 }
  0x30   : > { %705 = vperm.xlu1 %5824, %v6122_v55   ;;  %v6238_v4 = vrot.slane %v447_v42, %v6052_v12  ;;  %v6243_v44 = vrot.slane %v544_v52, %v6052_v12  ;;  %v6248_v48 = vrot.slane %v449_v30, %v6052_v12  ;;  %v6251_v49 = vrot.slane %v465_v2, %v6049_v10  ;;  %v294_v42 = vld [vmem:[%s11075_s4] sm:$0xff]  ;;  %v295_v52 = vld [vmem:[%s11075_s4 + $0x8] sm:$0xff] }
  0x31   : > { %v464_v54 = vrot.slane %v450_v51, %v6049_v10  ;;  %v11081_v47 = vmov 2   ;;  %v11077_v51 = vmov 0.0   ;;  %v4926_v30 = vcombine.high %v295_v52, %v295_v52 }
  0x32   : > { %709 = vperm.xlu0 %5823, %v6111_v50   ;;  %11519 = vst [vmem:[#allocation12_spill] sm:$0xff] %v6243_v44  ;;  %v6261_v35 = vrot.slane %v6251_v49, %v6052_v12  ;;  %5013 = vmatprep.mubr.f32.mxu0 %v11077_v51 }
  0x33   : > { %v480_v7 = vrot.slane %v464_v54, %v6049_v10  ;;  %v466_v9 = vcombine.high %v464_v54, %v464_v54  ;;  %5102 = vmatprep.mubr.f32.mxu1 %v11077_v51  ;;  %5669 = vmatprep.subr.msk.mxu1 %vm4940_vm0, %v4926_v30 }
  0x34   : > { %713 = vperm.xlu1 %5824, %v6152_v5   ;;  %5670 = vmatpush1.msk.msra.mxu1 %vm4940_vm0, %v295_v52 }
  0x35   : > { %v6267_v11 = vrot.slane %v480_v7, %v6052_v12  ;;  %v494_v15 = vrot.slane %v466_v9, %v6049_v10 }
  0x36   : > { %717 = vperm.xlu0 %5823, %v6163_v14  }
  0x37   : > { %11520 = vst [vmem:[#allocation13_spill] sm:$0xff] %v6267_v11  ;;  %v6276_v21 = vrot.slane %v494_v15, %v6052_v12 }
  0x38   : > { %721 = vperm.xlu1 %5824, %v6175_v19  }
  0x39   : > { %11521 = vst [vmem:[#allocation14_spill] sm:$0xff] %v6276_v21 }
  0x3a   : > { %725 = vperm.xlu0 %5823, %v6183_v23  }
  0x3c   : > { %729 = vperm.xlu1 %5824, %v6187_v24  }
  0x3e   : > { %950 = vperm.xlu0 %5823, %v282_v27   ;;  %v496_v27 = vcombine.high %v480_v7, %v480_v7 }
  0x40   : > { %955 = vperm.xlu1 %5824, %v283_v28   ;;  %v546_v28 = vcombine.high %v6116_v53, %v6116_v53  ;;  %v6286_v29 = vrot.slane %v496_v27, %v6052_v12  ;;  %v288_v53 = vld [vmem:[%s11073_s2 + $0x50] sm:$0xff] }
  0x42   : > { %960 = vperm.xlu0 %5823, %v284_v32   ;;  %v6282_v10 = vrot.slane %v546_v28, %v6052_v12  ;;  %11523 = vst [vmem:[#allocation16_spill] sm:$0xff] %v6286_v29  ;;  %v498_v32 = vcombine.high %v494_v15, %v494_v15 }
  0x44   : > { %5825 = vset.pattern.permute.xlu1 %v11079_v41  ;;  %11522 = vst [vmem:[#allocation15_spill] sm:$0xff] %v6282_v10 }
  0x45   : > { %985 = vperm.xlu1 %5825, %v6059_v20  }
  0x46   : > { %1258 = vperm.xlu0 %5823, %v286_v40   ;;  %v6292_v40 = vrot.slane %v498_v32, %v6052_v12 }
  0x48   : > { %11524 = vst [vmem:[#allocation17_spill] sm:$0xff] %v6292_v40 }
  0x49   : > { %1017 = vperm.xlu1 %5825, %v6111_v50  }
  0x4a   : > { %1273 = vperm.xlu0 %5823, %v289_v43   ;;  %v4925_v43 = vcombine.high %v294_v42, %v294_v42 }
  0x4c   : > { %5663 = vmatprep.subr.msk.mxu0 %vm4940_vm0, %v4925_v43 }
  0x4d   : > { %1021 = vperm.xlu1 %5825, %v6152_v5   ;;  %5664 = vmatpush1.msk.msra.mxu0 %vm4940_vm0, %v294_v42 }
  0x4e   : > { %733 = vperm.xlu0 %5823, %v6238_v4  }
  0x51   : > { %5826 = vset.pattern.permute.xlu1 %v11085_v3 }
  0x52   : > { %737 = vperm.xlu0 %5823, %v6248_v48   ;;  %1263 = vperm.xlu1 %5826, %v287_v6  }
  0x56   : > { %745 = vperm.xlu0 %5823, %v6261_v35   ;;  %5827 = vset.pattern.permute.xlu1 %v11079_v41 }
  0x57   : > { %993 = vperm.xlu1 %5827, %v6067_v26  }
  0x5a   : > { %757 = vperm.xlu0 %5823, %v6267_v11  }
  0x5b   : > { %5828 = vset.pattern.permute.xlu1 %v11085_v3 }
  0x5c   : > { %965 = vperm.xlu1 %5828, %v285_v18  }
  0x5e   : > { %761 = vperm.xlu0 %5823, %v6276_v21  }
  0x60   : > { %5829 = vset.pattern.permute.xlu1 %v11079_v41 }
  0x61   : > { %997 = vperm.xlu1 %5829, %v6076_v31  }
  0x62   : > { %765 = vperm.xlu0 %5823, %v6286_v29  }
  0x65   : > { %5830 = vset.pattern.permute.xlu1 %v11085_v3 }
  0x66   : > { %769 = vperm.xlu0 %5823, %v6292_v40   ;;  %1268 = vperm.xlu1 %5830, %v288_v53  }
  0x6a   : > { %5858 = vset.pattern.permute.xlu0 %v11079_v41  ;;  %5831 = vset.pattern.permute.xlu1 %v11081_v47 }
  0x6b   : > { %989 = vperm.xlu0 %5858, %v6064_v25   ;;  %1297 = vperm.xlu1 %5831, %v6064_v25   ;;  %v290_v25 = vld [vmem:[%s6317_s13] sm:$0xff] }
  0x6c   : > { %5665 = vmatmul.mubr.msk.f32.vlgmr.msra.gmra.mrb[0].mxu0 %vm4927_vm1, %v290_v25  ;;  %5671 = vmatmul.mubr.msk.f32.vlgmr.msra.gmra.mrb[0].mxu1 %vm4927_vm1, %v290_v25 }
  0x6d   : > { %5019 = vmatprep.mubr.f32.mxu0 %v11077_v51  ;;  %5108 = vmatprep.mubr.f32.mxu1 %v11077_v51 }
  0x6f   : > { %1025 = vperm.xlu0 %5858, %v6163_v14   ;;  %1325 = vperm.xlu1 %5831, %v6111_v50   ;;  %v291_v50 = vld [vmem:[%s6317_s13 + $0x8] sm:$0xff] }
  0x70   : > { %5666 = vmatmul.mubr.msk.f32.gmra.mrb[2].mxu0 %vm4927_vm1, %v291_v50  ;;  %5672 = vmatmul.mubr.msk.f32.gmra.mrb[2].mxu1 %vm4927_vm1, %v291_v50 }
  0x71   : > { %5025 = vmatprep.mubr.f32.mxu0 %v11077_v51  ;;  %5114 = vmatprep.mubr.f32.mxu1 %v11077_v51 }
  0x73   : > { %1029 = vperm.xlu0 %5858, %v6175_v19   ;;  %5832 = vset.pattern.permute.xlu1 %v11079_v41 }
  0x74   : > { %1001 = vperm.xlu1 %5832, %v6084_v33  }
  0x77   : > { %1033 = vperm.xlu0 %5858, %v6183_v23  }
  0x78   : > { %5833 = vset.pattern.permute.xlu1 %v11081_v47 }
  0x79   : > { %1301 = vperm.xlu1 %5833, %v6067_v26   ;;  %v497_v26 = vcombine.high %v6251_v49, %v6251_v49 }
  0x7b   : > { %1005 = vperm.xlu0 %5858, %v6093_v39  }
  0x7d   : > { %1333 = vperm.xlu1 %5833, %v6163_v14   ;;  %v6350_v14 = vrot.slane %v497_v26, %v6052_v12 }
  0x7f   : > { %1041 = vperm.xlu0 %5858, %v6238_v4   ;;  %11525 = vst [vmem:[#allocation18_spill] sm:$0xff] %v6350_v14 }
  0x81   : > { %5834 = vset.pattern.permute.xlu1 %v11079_v41 }
  0x82   : > { %1037 = vperm.xlu1 %5834, %v6187_v24  }
  0x83   : > { %1049 = vperm.xlu0 %5858, %v6104_v46  }
  0x86   : > { %5835 = vset.pattern.permute.xlu1 %v11081_v47 }
  0x87   : > { %1085 = vperm.xlu0 %5858, %v6134_v60   ;;  %1305 = vperm.xlu1 %5835, %v6076_v31  }
  0x8b   : > { %1057 = vperm.xlu0 %5858, %v6125_v56   ;;  %1337 = vperm.xlu1 %5835, %v6175_v19  }
  0x8f   : > { %1061 = vperm.xlu0 %5858, %v6350_v14   ;;  %5836 = vset.pattern.permute.xlu1 %v11079_v41 }
  0x90   : > { %1009 = vperm.xlu1 %5836, %v6101_v45  }
  0x93   : > { %1097 = vperm.xlu0 %5858, %v6156_v8  }
  0x94   : > { %5837 = vset.pattern.permute.xlu1 %v11081_v47 }
  0x95   : > { %1309 = vperm.xlu1 %5837, %v6084_v33  }
  0x96   : > { %v315_v12 = vpop.permute.xlu0 %314  ;;  %v325_v31 = vpop.permute.xlu1 %324 }
  0x97   : > { %1101 = vperm.xlu0 %5858, %v6168_v16   ;;  %v6364_v19 = vadd.f32 %v315_v12, %v6130_v58  ;;  %v6367_v2 = vadd.f32 %v315_v12, %v6138_v61  ;;  %v6370_v49 = vadd.f32 %v315_v12, %v6142_v62  ;;  %v6373_v54 = vadd.f32 %v315_v12, %v6148_v0 }
  0x98   : > { %v6464_v40 = vadd.f32 %v325_v31, %v6148_v0 }
  0x99   : > { %11526 = vst [vmem:[#allocation19_spill] sm:$0xff] %v6370_v49  ;;  %11527 = vst [vmem:[#allocation20_spill] sm:$0xff] %v6373_v54  ;;  %1341 = vperm.xlu1 %5837, %v6183_v23   ;;  %v6393_v23 = vadd.f32 %v325_v31, %v6130_v58  ;;  %v6456_v54 = vadd.f32 %v325_v31, %v6138_v61 }
  0x9a   : > { %v320_v6 = vpop.permute.xlu0 %319  ;;  %v330_v18 = vpop.permute.xlu1 %329  ;;  %11547 = vst [vmem:[#allocation40_spill] sm:$0xff] %v6464_v40 }
  0x9b   : > { %1105 = vperm.xlu0 %5858, %v6171_v17   ;;  %v6378_v33 = vadd.f32 %v320_v6, %v6130_v58  ;;  %v6381_v7 = vadd.f32 %v320_v6, %v6138_v61  ;;  %v6384_v9 = vadd.f32 %v320_v6, %v6142_v62  ;;  %v6387_v15 = vadd.f32 %v320_v6, %v6148_v0 }
  0x9c   : > { %v6396_v27 = vadd.f32 %v330_v18, %v6130_v58  ;;  %v6467_v17 = vadd.f32 %v330_v18, %v6138_v61  ;;  %v6470_v21 = vadd.f32 %v330_v18, %v6142_v62 }
  0x9d   : > { %11528 = vst [vmem:[#allocation21_spill] sm:$0xff] %v6384_v9  ;;  %11529 = vst [vmem:[#allocation22_spill] sm:$0xff] %v6387_v15  ;;  %5838 = vset.pattern.permute.xlu1 %v11079_v41 }
  0x9e   : > { %1013 = vperm.xlu1 %5838, %v6122_v55   ;;  %11548 = vst [vmem:[#allocation41_spill] sm:$0xff] %v6470_v21 }
  0x9f   : > { %1109 = vperm.xlu0 %5858, %v6179_v22  }
  0xa1   : > { %v678_v28 = vpop.permute.xlu0 %677 }
  0xa2   : > { %v6399_v32 = vsub.f32 %v6364_v19, %v678_v28  ;;  %v6402_v53 = vsub.f32 %v6378_v33, %v678_v28  ;;  %v6405_v42 = vsub.f32 %v6393_v23, %v678_v28  ;;  %v6408_v43 = vsub.f32 %v6396_v27, %v678_v28  ;;  %1045 = vperm.xlu1 %5838, %v6248_v48  }
  0xa3   : > { %v682_v25 = vpop.permute.xlu1 %681  ;;  %5861 = vset.pattern.permute.xlu0 %v11081_v47 }
  0xa4   : > { %11530 = vst [vmem:[#allocation23_spill] sm:$0xff] %v6399_v32  ;;  %11531 = vst [vmem:[#allocation24_spill] sm:$0xff] %v6402_v53  ;;  %1293 = vperm.xlu0 %5861, %v6059_v20   ;;  %v6477_v16 = vsub.f32 %v6378_v33, %v682_v25  ;;  %v6480_v11 = vsub.f32 %v6393_v23, %v682_v25  ;;  %v6507_v10 = vmul.f32 %v6402_v53, %v6402_v53 }
  0xa5   : > { %11532 = vst [vmem:[#allocation25_spill] sm:$0xff] %v6405_v42  ;;  %11533 = vst [vmem:[#allocation26_spill] sm:$0xff] %v6408_v43  ;;  %v686_v58 = vpop.permute.xlu0 %685  ;;  %v6511_v14 = vmul.f32 %v6405_v42, %v6405_v42 }
  0xa6   : > { %v6414_v52 = vsub.f32 %v6364_v19, %v686_v58  ;;  %v6417_v30 = vsub.f32 %v6378_v33, %v686_v58  ;;  %v6420_v26 = vsub.f32 %v6393_v23, %v686_v58  ;;  %v6423_v50 = vsub.f32 %v6396_v27, %v686_v58  ;;  %5839 = vset.pattern.permute.xlu1 %v11081_v47 }
  0xa7   : > { %v690_v12 = vpop.permute.xlu1 %689  ;;  %1345 = vperm.xlu1 %5839, %v6187_v24   ;;  %11550 = vst [vmem:[#allocation43_spill] sm:$0xff] %v6477_v16  ;;  %11551 = vst [vmem:[#allocation44_spill] sm:$0xff] %v6480_v11  ;;  %v6535_v53 = vmul.f32 %v6477_v16, %v6477_v16 }
  0xa8   : > { %11534 = vst [vmem:[#allocation27_spill] sm:$0xff] %v6414_v52  ;;  %11535 = vst [vmem:[#allocation28_spill] sm:$0xff] %v6417_v30  ;;  %1329 = vperm.xlu0 %5861, %v6152_v5   ;;  %v6568_v16 = vmul.f32 %v6420_v26, %v6420_v26 }
  0xa9   : > { %11536 = vst [vmem:[#allocation29_spill] sm:$0xff] %v6420_v26  ;;  %11537 = vst [vmem:[#allocation30_spill] sm:$0xff] %v6423_v50  ;;  %v694_v20 = vpop.permute.xlu0 %693 }
  0xaa   : > { %v6429_v6 = vsub.f32 %v6364_v19, %v694_v20  ;;  %v6432_v28 = vsub.f32 %v6378_v33, %v694_v20  ;;  %v6435_v51 = vsub.f32 %v6393_v23, %v694_v20  ;;  %v6438_v58 = vsub.f32 %v6396_v27, %v694_v20  ;;  %11559 = vst [vmem:[#allocation52_spill] sm:$0xff] %v6507_v10 }
  0xab   : > { %v698_v41 = vpop.permute.xlu1 %697  ;;  %5840 = vset.pattern.permute.xlu1 %v11085_v3  ;;  %11560 = vst [vmem:[#allocation53_spill] sm:$0xff] %v6511_v14  ;;  %11566 = vst [vmem:[#allocation59_spill] sm:$0xff] %v6535_v53 }
  0xac   : > { %11538 = vst [vmem:[#allocation31_spill] sm:$0xff] %v6429_v6  ;;  %11539 = vst [vmem:[#allocation32_spill] sm:$0xff] %v6432_v28  ;;  %1313 = vperm.xlu0 %5861, %v6093_v39   ;;  %741 = vperm.xlu1 %5840, %v6104_v46   ;;  %v6461_v39 = vadd.f32 %v325_v31, %v6142_v62  ;;  %v6483_v31 = vsub.f32 %v6396_v27, %v682_v25 }
  0xad   : > { %11540 = vst [vmem:[#allocation33_spill] sm:$0xff] %v6435_v51  ;;  %11541 = vst [vmem:[#allocation34_spill] sm:$0xff] %v6438_v58  ;;  %v702_v5 = vpop.permute.xlu0 %701  ;;  %v6499_v46 = vadd.f32 %v330_v18, %v6148_v0  ;;  %v6520_v0 = vsub.f32 %v6364_v19, %v690_v12  ;;  %v6523_v18 = vsub.f32 %v6378_v33, %v690_v12 }
  0xae   : > { %v6444_v24 = vsub.f32 %v6364_v19, %v702_v5  ;;  %v6447_v47 = vsub.f32 %v6378_v33, %v702_v5  ;;  %v6450_v15 = vsub.f32 %v6393_v23, %v702_v5  ;;  %v6453_v20 = vsub.f32 %v6396_v27, %v702_v5  ;;  %11546 = vst [vmem:[#allocation39_spill] sm:$0xff] %v6461_v39 }
  0xaf   : > { %v6458_v3 = vpop.permute.xlu1 %705  ;;  %v6474_v5 = vsub.f32 %v6364_v19, %v682_v25  ;;  %11552 = vst [vmem:[#allocation45_spill] sm:$0xff] %v6483_v31  ;;  %11557 = vst [vmem:[#allocation50_spill] sm:$0xff] %v6499_v46  ;;  %v6503_v25 = vmul.f32 %v6399_v32, %v6399_v32  ;;  %v6526_v46 = vsub.f32 %v6393_v23, %v690_v12 }
  0xb0   : > { %11542 = vst [vmem:[#allocation35_spill] sm:$0xff] %v6444_v24  ;;  %11543 = vst [vmem:[#allocation36_spill] sm:$0xff] %v6447_v47  ;;  %1349 = vperm.xlu0 %5861, %v6238_v4   ;;  %773 = vperm.xlu1 %5840, %v6160_v13   ;;  %v6543_v32 = vmul.f32 %v6483_v31, %v6483_v31  ;;  %v6564_v31 = vmul.f32 %v6417_v30, %v6417_v30 }
  0xb1   : > { %11544 = vst [vmem:[#allocation37_spill] sm:$0xff] %v6450_v15  ;;  %11545 = vst [vmem:[#allocation38_spill] sm:$0xff] %v6453_v20  ;;  %v710_v61 = vpop.permute.xlu0 %709  ;;  %v6531_v42 = vmul.f32 %v6474_v5, %v6474_v5  ;;  %v6585_v30 = vmul.f32 %v6523_v18, %v6523_v18  ;;  %v6589_v26 = vmul.f32 %v6526_v46, %v6526_v46 }
  0xb2   : > { %11549 = vst [vmem:[#allocation42_spill] sm:$0xff] %v6474_v5  ;;  %v6487_v62 = vsub.f32 %v6367_v2, %v710_v61  ;;  %v6490_v4 = vsub.f32 %v6381_v7, %v710_v61  ;;  %v6493_v40 = vsub.f32 %v6456_v54, %v710_v61  ;;  %v6496_v8 = vsub.f32 %v6467_v17, %v710_v61 }
  0xb3   : > { %11558 = vst [vmem:[#allocation51_spill] sm:$0xff] %v6503_v25  ;;  %v6513_v55 = vpop.permute.xlu1 %713  ;;  %v6517_v61 = vmul.f32 %v6408_v43, %v6408_v43  ;;  %11562 = vst [vmem:[#allocation55_spill] sm:$0xff] %v6520_v0  ;;  %v6539_v43 = vmul.f32 %v6480_v11, %v6480_v11  ;;  %v6560_v11 = vmul.f32 %v6414_v52, %v6414_v52 }
  0xb4   : > { %11553 = vst [vmem:[#allocation46_spill] sm:$0xff] %v6487_v62  ;;  %11554 = vst [vmem:[#allocation47_spill] sm:$0xff] %v6490_v4  ;;  %1353 = vperm.xlu0 %5861, %v6248_v48   ;;  %777 = vperm.xlu1 %5840, %v6134_v60   ;;  %v6571_v5 = vsub.f32 %v6396_v27, %v690_v12  ;;  %v6581_v52 = vmul.f32 %v6520_v0, %v6520_v0 }
  0xb5   : > { %11555 = vst [vmem:[#allocation48_spill] sm:$0xff] %v6493_v40  ;;  %11556 = vst [vmem:[#allocation49_spill] sm:$0xff] %v6496_v8  ;;  %v6593_v12 = vsub.f32 %v6364_v19, %v698_v41  ;;  %v6602_v0 = vsub.f32 %v6396_v27, %v698_v41 }
  0xb6   : > { %11561 = vst [vmem:[#allocation54_spill] sm:$0xff] %v6517_v61  ;;  %11563 = vst [vmem:[#allocation56_spill] sm:$0xff] %v6523_v18  ;;  %v718_v61 = vpop.permute.xlu0 %717  ;;  %v11582_v18 = vmov 1  }
  0xb7   : > { %11564 = vst [vmem:[#allocation57_spill] sm:$0xff] %v6526_v46  ;;  %11565 = vst [vmem:[#allocation58_spill] sm:$0xff] %v6531_v42  ;;  %v6547_v48 = vsub.f32 %v6367_v2, %v718_v61  ;;  %v6550_v14 = vsub.f32 %v6381_v7, %v718_v61  ;;  %v6553_v10 = vsub.f32 %v6456_v54, %v718_v61  ;;  %v6573_v60 = vpop.permute.xlu1 %721 }
  0xb8   : > { %11567 = vst [vmem:[#allocation60_spill] sm:$0xff] %v6539_v43  ;;  %11568 = vst [vmem:[#allocation61_spill] sm:$0xff] %v6543_v32  ;;  %v6556_v25 = vsub.f32 %v6467_v17, %v718_v61  ;;  %v6577_v61 = vmul.f32 %v6423_v50, %v6423_v50  ;;  %1361 = vperm.xlu0 %5861, %v6261_v35   ;;  %v6596_v50 = vsub.f32 %v6378_v33, %v698_v41 }
  0xb9   : > { %11569 = vst [vmem:[#allocation62_spill] sm:$0xff] %v6547_v48  ;;  %11570 = vst [vmem:[#allocation63_spill] sm:$0xff] %v6550_v14  ;;  %v6599_v32 = vsub.f32 %v6393_v23, %v698_v41  ;;  %5841 = vset.pattern.permute.xlu1 %v11582_v18  ;;  %v6620_v41 = vmul.f32 %v6571_v5, %v6571_v5 }
  0xba   : > { %11571 = vst [vmem:[#allocation64_spill] sm:$0xff] %v6553_v10  ;;  %11572 = vst [vmem:[#allocation65_spill] sm:$0xff] %v6556_v25  ;;  %v726_v43 = vpop.permute.xlu0 %725  ;;  %1053 = vperm.xlu1 %5841, %v6261_v35   ;;  %v6638_v35 = vmul.f32 %v6438_v58, %v6438_v58  ;;  %v6659_v58 = vmul.f32 %v6596_v50, %v6596_v50 }
  0xbb   : > { %11573 = vst [vmem:[#allocation66_spill] sm:$0xff] %v6571_v5  ;;  %11574 = vst [vmem:[#allocation67_spill] sm:$0xff] %v6577_v61  ;;  %v6606_v46 = vsub.f32 %v6367_v2, %v726_v43  ;;  %v6609_v53 = vsub.f32 %v6381_v7, %v726_v43  ;;  %v6612_v42 = vsub.f32 %v6456_v54, %v726_v43 }
  0xbc   : > { %11575 = vst [vmem:[#allocation68_spill] sm:$0xff] %v6581_v52  ;;  %11576 = vst [vmem:[#allocation69_spill] sm:$0xff] %v6585_v30  ;;  %v6624_v61 = vmul.f32 %v6429_v6, %v6429_v6  ;;  %v6628_v30 = vmul.f32 %v6432_v28, %v6432_v28  ;;  %v6632_v52 = vmul.f32 %v6435_v51, %v6435_v51  ;;  %1381 = vperm.xlu0 %5861, %v6286_v29  }
  0xbd   : > { %11577 = vst [vmem:[#allocation70_spill] sm:$0xff] %v6589_v26  ;;  %11578 = vst [vmem:[#allocation71_spill] sm:$0xff] %v6593_v12  ;;  %v6615_v26 = vsub.f32 %v6467_v17, %v726_v43  ;;  %v6634_v43 = vpop.permute.xlu1 %729  ;;  %v6642_v5 = vsub.f32 %v6364_v19, %v6458_v3  ;;  %v6646_v6 = vsub.f32 %v6378_v33, %v6458_v3 }
  0xbe   : > { %11579 = vst [vmem:[#allocation72_spill] sm:$0xff] %v6596_v50  ;;  %11580 = vst [vmem:[#allocation73_spill] sm:$0xff] %v6599_v32  ;;  %v6650_v28 = vsub.f32 %v6393_v23, %v6458_v3  ;;  %v6655_v51 = vmul.f32 %v6593_v12, %v6593_v12  ;;  %v6663_v19 = vmul.f32 %v6599_v32, %v6599_v32  ;;  %v951_v23 = vpop.permute.xlu0 %950  ;;  %1081 = vperm.xlu1 %5841, %v6160_v13  }
  0xbf   : > { %11581 = vst [vmem:[#allocation74_spill] sm:$0xff] %v6602_v0  ;;  %11583 = vst [vmem:[#allocation75_spill] sm:$0xff] %v6606_v46  ;;  %v6667_v33 = vmul.f32 %v6602_v0, %v6602_v0  ;;  %v6676_v12 = vadd.f32 %v951_v23, %v6208_v37  ;;  %v6679_v50 = vadd.f32 %v951_v23, %v6211_v38 }
  0xc0   : > { %11584 = vst [vmem:[#allocation76_spill] sm:$0xff] %v6609_v53  ;;  %11585 = vst [vmem:[#allocation77_spill] sm:$0xff] %v6612_v42  ;;  %v6684_v32 = vmul.f32 %v6444_v24, %v6444_v24  ;;  %v6688_v0 = vmul.f32 %v6447_v47, %v6447_v47  ;;  %v6706_v24 = vmul.f32 %v6642_v5, %v6642_v5  ;;  %1417 = vperm.xlu0 %5861, %v6179_v22  }
  0xc1   : > { %11586 = vst [vmem:[#allocation78_spill] sm:$0xff] %v6615_v26  ;;  %11587 = vst [vmem:[#allocation79_spill] sm:$0xff] %v6624_v61  ;;  %v6696_v61 = vsub.f32 %v6396_v27, %v6458_v3  ;;  %v6710_v47 = vmul.f32 %v6646_v6, %v6646_v6  ;;  %v6719_v3 = vsub.f32 %v6367_v2, %v6513_v55 }
  0xc2   : > { %11588 = vst [vmem:[#allocation80_spill] sm:$0xff] %v6628_v30  ;;  %11589 = vst [vmem:[#allocation81_spill] sm:$0xff] %v6632_v52  ;;  %v6673_v52 = vadd.f32 %v951_v23, %v6205_v36  ;;  %v6692_v30 = vmul.f32 %v6450_v15, %v6450_v15  ;;  %v6714_v15 = vmul.f32 %v6650_v28, %v6650_v28 }
  0xc3   : > { %11590 = vst [vmem:[#allocation82_spill] sm:$0xff] %v6638_v35  ;;  %11591 = vst [vmem:[#allocation83_spill] sm:$0xff] %v6642_v5  ;;  %v6670_v35 = vadd.f32 %v951_v23, %v6202_v34  ;;  %v6698_v23 = vpop.permute.xlu1 %955  ;;  %v6723_v27 = vsub.f32 %v6381_v7, %v6513_v55  ;;  %v6727_v5 = vsub.f32 %v6456_v54, %v6513_v55 }
  0xc4   : > { %11592 = vst [vmem:[#allocation84_spill] sm:$0xff] %v6646_v6  ;;  %11593 = vst [vmem:[#allocation85_spill] sm:$0xff] %v6650_v28  ;;  %v6731_v6 = vsub.f32 %v6467_v17, %v6513_v55  ;;  %v961_v28 = vpop.permute.xlu0 %960  ;;  %v6752_v55 = vmul.f32 %v6487_v62, %v6487_v62 }
  0xc5   : > { %11594 = vst [vmem:[#allocation86_spill] sm:$0xff] %v6655_v51  ;;  %11595 = vst [vmem:[#allocation87_spill] sm:$0xff] %v6659_v58 }
  0xc6   : > { %11596 = vst [vmem:[#allocation88_spill] sm:$0xff] %v6663_v19  ;;  %11597 = vst [vmem:[#allocation89_spill] sm:$0xff] %v6667_v33  ;;  %v6791_v33 = vmul.f32 %v6727_v5, %v6727_v5  ;;  %v6795_v19 = vmul.f32 %v6731_v6, %v6731_v6 }
  0xc7   : > { %11598 = vst [vmem:[#allocation90_spill] sm:$0xff] %v6670_v35  ;;  %11599 = vst [vmem:[#allocation91_spill] sm:$0xff] %v6676_v12  ;;  %v6787_v12 = vmul.f32 %v6723_v27, %v6723_v27 }
  0xc8   : > { %11600 = vst [vmem:[#allocation92_spill] sm:$0xff] %v6679_v50  ;;  %11601 = vst [vmem:[#allocation93_spill] sm:$0xff] %v6684_v32  ;;  %v6702_v50 = vmul.f32 %v6453_v20, %v6453_v20  ;;  %v6734_v20 = vadd.f32 %v961_v28, %v6202_v34  ;;  %v6760_v32 = vmul.f32 %v6493_v40, %v6493_v40  ;;  %v1259_v58 = vpop.permute.xlu0 %1258 }
  0xc9   : > { %11602 = vst [vmem:[#allocation94_spill] sm:$0xff] %v6688_v0  ;;  %11603 = vst [vmem:[#allocation95_spill] sm:$0xff] %v6692_v30  ;;  %v6748_v30 = vmul.f32 %v6696_v61, %v6696_v61  ;;  %v6756_v0 = vmul.f32 %v6490_v4, %v6490_v4  ;;  %v6798_v51 = vadd.f32 %v1259_v58, %v6226_v57 }
  0xca   : > { %11604 = vst [vmem:[#allocation96_spill] sm:$0xff] %v6696_v61  ;;  %11605 = vst [vmem:[#allocation97_spill] sm:$0xff] %v6702_v50  ;;  %v11616_v50 = vmov 2   ;;  %v6769_v61 = vsub.f32 %v6367_v2, %v6573_v60  ;;  %v6801_v22 = vadd.f32 %v1259_v58, %v6229_v59  ;;  %v6887_v40 = vmul.f32 %v6612_v42, %v6612_v42 }
  0xcb   : > { %11606 = vst [vmem:[#allocation98_spill] sm:$0xff] %v6706_v24  ;;  %11607 = vst [vmem:[#allocation99_spill] sm:$0xff] %v6710_v47  ;;  %v6740_v47 = vadd.f32 %v961_v28, %v6208_v37  ;;  %v6743_v24 = vadd.f32 %v961_v28, %v6211_v38  ;;  %5842 = vset.pattern.permute.xlu1 %v11616_v50 }
  0xcc   : > { %11608 = vst [vmem:[#allocation100_spill] sm:$0xff] %v6714_v15  ;;  %11609 = vst [vmem:[#allocation101_spill] sm:$0xff] %v6719_v3  ;;  %v6737_v15 = vadd.f32 %v961_v28, %v6205_v36  ;;  %1317 = vperm.xlu1 %5842, %v6101_v45   ;;  %v6765_v28 = vmul.f32 %v6496_v8, %v6496_v8  ;;  %v6783_v45 = vmul.f32 %v6719_v3, %v6719_v3 }
  0xcd   : > { %11610 = vst [vmem:[#allocation102_spill] sm:$0xff] %v6723_v27  ;;  %11611 = vst [vmem:[#allocation103_spill] sm:$0xff] %v6727_v5  ;;  %v6804_v3 = vadd.f32 %v1259_v58, %v6232_v63  ;;  %v6807_v27 = vadd.f32 %v1259_v58, %v6235_v1  ;;  %v6811_v5 = vmul.f32 %v6547_v48, %v6547_v48 }
  0xce   : > { %11612 = vst [vmem:[#allocation104_spill] sm:$0xff] %v6731_v6  ;;  %11613 = vst [vmem:[#allocation105_spill] sm:$0xff] %v6734_v20  ;;  %v6815_v6 = vmul.f32 %v6550_v14, %v6550_v14  ;;  %v6828_v58 = vmul.f32 %v6556_v25, %v6556_v25  ;;  %v6847_v25 = vsub.f32 %v6367_v2, %v6634_v43 }
  0xcf   : > { %11614 = vst [vmem:[#allocation106_spill] sm:$0xff] %v6740_v47  ;;  %11615 = vst [vmem:[#allocation107_spill] sm:$0xff] %v6743_v24  ;;  %v6777_v24 = vsub.f32 %v6456_v54, %v6573_v60  ;;  %v6779_v47 = vpop.permute.xlu1 %985  ;;  %v6883_v8 = vmul.f32 %v6609_v53, %v6609_v53 }
  0xd0   : > { %11617 = vst [vmem:[#allocation108_spill] sm:$0xff] %v6748_v30  ;;  %11618 = vst [vmem:[#allocation109_spill] sm:$0xff] %v6769_v61  ;;  %v6773_v30 = vsub.f32 %v6381_v7, %v6573_v60 }
  0xd1   : > { %11620 = vst [vmem:[#allocation111_spill] sm:$0xff] %v6777_v24  ;;  %11621 = vst [vmem:[#allocation112_spill] sm:$0xff] %v6783_v45  ;;  %v6840_v45 = vmul.f32 %v6777_v24, %v6777_v24  ;;  %v6859_v24 = vadd.f32 %v6698_v23, %v6205_v36 }
  0xd2   : > { %11619 = vst [vmem:[#allocation110_spill] sm:$0xff] %v6773_v30  ;;  %11622 = vst [vmem:[#allocation113_spill] sm:$0xff] %v6787_v12  ;;  %v6836_v12 = vmul.f32 %v6773_v30, %v6773_v30  ;;  %v6855_v30 = vsub.f32 %v6456_v54, %v6634_v43 }
  0xd3   : > { %11623 = vst [vmem:[#allocation114_spill] sm:$0xff] %v6791_v33  ;;  %11624 = vst [vmem:[#allocation115_spill] sm:$0xff] %v6795_v19  ;;  %v6819_v19 = vmul.f32 %v6553_v10, %v6553_v10  ;;  %v6823_v33 = vsub.f32 %v6467_v17, %v6573_v60  ;;  %v6843_v60 = vpop.permute.xlu1 %1017  ;;  %v1274_v10 = vpop.permute.xlu0 %1273 }
  0xd4   : > { %11625 = vst [vmem:[#allocation116_spill] sm:$0xff] %v6804_v3  ;;  %11626 = vst [vmem:[#allocation117_spill] sm:$0xff] %v6807_v27  ;;  %v11629_v3 = vmov 0   ;;  %v6832_v27 = vmul.f32 %v6769_v61, %v6769_v61  ;;  %v6851_v61 = vsub.f32 %v6381_v7, %v6634_v43  ;;  %v6862_v14 = vadd.f32 %v1274_v10, %v6226_v57 }
  0xd5   : > { %11627 = vst [vmem:[#allocation118_spill] sm:$0xff] %v6819_v19  ;;  %11628 = vst [vmem:[#allocation119_spill] sm:$0xff] %v6823_v33  ;;  %5843 = vset.pattern.permute.xlu1 %v11629_v3  ;;  %v6865_v48 = vadd.f32 %v1274_v10, %v6229_v59  ;;  %v6868_v29 = vadd.f32 %v1274_v10, %v6232_v63  ;;  %v6903_v53 = vsub.f32 %v6737_v15, %v6843_v60 }
  0xd6   : > { %11630 = vst [vmem:[#allocation120_spill] sm:$0xff] %v6828_v58  ;;  %11631 = vst [vmem:[#allocation121_spill] sm:$0xff] %v6832_v27  ;;  %749 = vperm.xlu1 %5843, %v6125_v56   ;;  %v6879_v27 = vmul.f32 %v6606_v46, %v6606_v46  ;;  %v6914_v46 = vmul.f32 %v6847_v25, %v6847_v25 }
  0xd7   : > { %11632 = vst [vmem:[#allocation122_spill] sm:$0xff] %v6836_v12  ;;  %11633 = vst [vmem:[#allocation123_spill] sm:$0xff] %v6840_v45  ;;  %v6871_v45 = vadd.f32 %v1274_v10, %v6235_v1  ;;  %v6875_v12 = vmul.f32 %v6823_v33, %v6823_v33  ;;  %v6891_v10 = vmul.f32 %v6615_v26, %v6615_v26  ;;  %v6906_v42 = vpop.permute.xlu1 %1021 }
  0xd8   : > { %11634 = vst [vmem:[#allocation124_spill] sm:$0xff] %v6847_v25  ;;  %11635 = vst [vmem:[#allocation125_spill] sm:$0xff] %v6851_v61  ;;  %v6910_v26 = vsub.f32 %v6467_v17, %v6634_v43  ;;  %v6918_v33 = vmul.f32 %v6851_v61, %v6851_v61  ;;  %v6930_v43 = vsub.f32 %v6670_v35, %v6779_v47 }
  0xd9   : > { %11636 = vst [vmem:[#allocation126_spill] sm:$0xff] %v6855_v30  ;;  %11637 = vst [vmem:[#allocation127_spill] sm:$0xff] %v6862_v14  ;;  %v1710_v4 = vmul.f32 %v6903_v53, %v6903_v53  ;;  %v6960_v62 = vsub.f32 %v6673_v52, %v6906_v42 }
  0xda   : > { %11638 = vst [vmem:[#allocation128_spill] sm:$0xff] %v6865_v48  ;;  %11639 = vst [vmem:[#allocation129_spill] sm:$0xff] %v6868_v29  ;;  %v6899_v29 = vsub.f32 %v6859_v24, %v6843_v60  ;;  %781 = vperm.xlu1 %5843, %v6243_v44   ;;  %v6965_v58 = vmul.f32 %v6910_v26, %v6910_v26 }
  0xdb   : > { %11640 = vst [vmem:[#allocation130_spill] sm:$0xff] %v6871_v45  ;;  %11641 = vst [vmem:[#allocation131_spill] sm:$0xff] %v6875_v12  ;;  %v6895_v45 = vsub.f32 %v6673_v52, %v6843_v60  ;;  %v1264_v48 = vpop.permute.xlu1 %1263 }
  0xdc   : > { %11642 = vst [vmem:[#allocation132_spill] sm:$0xff] %v6879_v27  ;;  %11643 = vst [vmem:[#allocation133_spill] sm:$0xff] %v6883_v8  ;;  %v6926_v8 = vmul.f32 %v6855_v30, %v6855_v30  ;;  %v1709_v12 = vmul.f32 %v6899_v29, %v6899_v29 }
  0xdd   : > { %11644 = vst [vmem:[#allocation134_spill] sm:$0xff] %v6887_v40  ;;  %11645 = vst [vmem:[#allocation135_spill] sm:$0xff] %v6891_v10  ;;  %v6922_v10 = vadd.f32 %v6698_v23, %v6202_v34  ;;  %v734_v40 = vpop.permute.xlu0 %733  ;;  %v1708_v27 = vmul.f32 %v6895_v45, %v6895_v45 }
  0xde   : > { %11646 = vst [vmem:[#allocation136_spill] sm:$0xff] %v6895_v45  ;;  %11647 = vst [vmem:[#allocation137_spill] sm:$0xff] %v6899_v29  ;;  %v6933_v25 = vsub.f32 %v6367_v2, %v734_v40  ;;  %v6947_v30 = vsub.f32 %v6456_v54, %v734_v40  ;;  %5844 = vset.pattern.permute.xlu1 %v11582_v18  ;;  %v6973_v29 = vsub.f32 %v6859_v24, %v6906_v42 }
  0xdf   : > { %11648 = vst [vmem:[#allocation138_spill] sm:$0xff] %v6903_v53  ;;  %11649 = vst [vmem:[#allocation139_spill] sm:$0xff] %v6906_v42  ;;  %v6940_v61 = vsub.f32 %v6922_v10, %v6779_v47  ;;  %v6977_v53 = vsub.f32 %v6737_v15, %v6906_v42  ;;  %1089 = vperm.xlu1 %5844, %v6243_v44   ;;  %v6994_v42 = vadd.f32 %v6698_v23, %v6211_v38 }
  0xe0   : > { %11650 = vst [vmem:[#allocation140_spill] sm:$0xff] %v6910_v26  ;;  %11651 = vst [vmem:[#allocation141_spill] sm:$0xff] %v6914_v46  ;;  %v6936_v46 = vsub.f32 %v6381_v7, %v734_v40  ;;  %v6998_v44 = vmul.f32 %v6930_v43, %v6930_v43 }
  0xe1   : > { %11652 = vst [vmem:[#allocation142_spill] sm:$0xff] %v6918_v33  ;;  %11653 = vst [vmem:[#allocation143_spill] sm:$0xff] %v6922_v10  ;;  %v6944_v33 = vsub.f32 %v6734_v20, %v6779_v47  ;;  %v738_v45 = vpop.permute.xlu0 %737 }
  0xe2   : > { %11654 = vst [vmem:[#allocation144_spill] sm:$0xff] %v6926_v8  ;;  %11655 = vst [vmem:[#allocation145_spill] sm:$0xff] %v6930_v43  ;;  %v6950_v8 = vsub.f32 %v6467_v17, %v734_v40  ;;  %v6969_v40 = vadd.f32 %v6698_v23, %v6208_v37  ;;  %v6981_v19 = vsub.f32 %v6367_v2, %v738_v45 }
  0xe3   : > { %11656 = vst [vmem:[#allocation146_spill] sm:$0xff] %v6933_v25  ;;  %11657 = vst [vmem:[#allocation147_spill] sm:$0xff] %v6936_v46  ;;  %v6984_v26 = vsub.f32 %v6381_v7, %v738_v45  ;;  %v7002_v2 = vmul.f32 %v6940_v61, %v6940_v61  ;;  %v7006_v7 = vmul.f32 %v6944_v33, %v6944_v33  ;;  %5845 = vset.pattern.permute.xlu1 %v11616_v50 }
  0xe4   : > { %11658 = vst [vmem:[#allocation148_spill] sm:$0xff] %v6940_v61  ;;  %11659 = vst [vmem:[#allocation149_spill] sm:$0xff] %v6944_v33  ;;  %v7015_v23 = vadd.f32 %v1710_v4, %v6760_v32  ;;  %v7023_v61 = vmul.f32 %v6973_v29, %v6973_v29  ;;  %v7027_v33 = vmul.f32 %v6977_v53, %v6977_v53 }
  0xe5   : > { %11660 = vst [vmem:[#allocation150_spill] sm:$0xff] %v6947_v30  ;;  %11661 = vst [vmem:[#allocation151_spill] sm:$0xff] %v6950_v8  ;;  %v7035_v32 = vmul.f32 %v6936_v46, %v6936_v46  ;;  %v746_v4 = vpop.permute.xlu0 %745  ;;  %v7053_v46 = vmul.f32 %v6947_v30, %v6947_v30  ;;  %v7075_v30 = vadd.f32 %v1264_v48, %v6232_v63 }
  0xe6   : > { %11662 = vst [vmem:[#allocation152_spill] sm:$0xff] %v6960_v62  ;;  %11663 = vst [vmem:[#allocation153_spill] sm:$0xff] %v6965_v58  ;;  %v6987_v58 = vsub.f32 %v6456_v54, %v738_v45  ;;  %v7009_v54 = vadd.f32 %v1708_v27, %v6752_v55  ;;  %v7031_v27 = vmul.f32 %v6933_v25, %v6933_v25  ;;  %v11684_v25 = vld [vmem:[#allocation6_spill] sm:$0xff] }
  0xe7   : > { %11664 = vst [vmem:[#allocation154_spill] sm:$0xff] %v6969_v40  ;;  %11665 = vst [vmem:[#allocation155_spill] sm:$0xff] %v6973_v29  ;;  %v6990_v40 = vsub.f32 %v6467_v17, %v738_v45  ;;  %v7012_v17 = vadd.f32 %v1709_v12, %v6756_v0  ;;  %v7019_v45 = vmul.f32 %v6960_v62, %v6960_v62  ;;  %1321 = vperm.xlu1 %5845, %v11684_v25   ;;  %v994_v29 = vpop.permute.xlu1 %993 }
  0xe8   : > { %11666 = vst [vmem:[#allocation156_spill] sm:$0xff] %v6977_v53  ;;  %11667 = vst [vmem:[#allocation157_spill] sm:$0xff] %v6981_v19  ;;  %v7039_v0 = vsub.f32 %v6370_v49, %v746_v4  ;;  %v7042_v12 = vsub.f32 %v6384_v9, %v746_v4  ;;  %v7045_v55 = vsub.f32 %v6461_v39, %v746_v4 }
  0xe9   : > { %11668 = vst [vmem:[#allocation158_spill] sm:$0xff] %v6984_v26  ;;  %11669 = vst [vmem:[#allocation159_spill] sm:$0xff] %v6987_v58  ;;  %v7048_v53 = vsub.f32 %v6470_v21, %v746_v4  ;;  %v7056_v62 = vsub.f32 %v6670_v35, %v994_v29  ;;  %v7066_v4 = vmul.f32 %v6950_v8, %v6950_v8 }
  0xea   : > { %11670 = vst [vmem:[#allocation160_spill] sm:$0xff] %v6990_v40  ;;  %11671 = vst [vmem:[#allocation161_spill] sm:$0xff] %v6994_v42  ;;  %v7069_v25 = vadd.f32 %v1264_v48, %v6226_v57  ;;  %v7079_v43 = vmul.f32 %v6981_v19, %v6981_v19 }
  0xeb   : > { %11672 = vst [vmem:[#allocation162_spill] sm:$0xff] %v6998_v44  ;;  %11673 = vst [vmem:[#allocation163_spill] sm:$0xff] %v7002_v2  ;;  %v1684_v8 = vmul.f32 %v7056_v62, %v7056_v62  ;;  %v758_v44 = vpop.permute.xlu0 %757  ;;  %5846 = vset.pattern.permute.xlu1 %v11629_v3 }
  0xec   : > { %11674 = vst [vmem:[#allocation164_spill] sm:$0xff] %v7006_v7  ;;  %11675 = vst [vmem:[#allocation165_spill] sm:$0xff] %v7019_v45  ;;  %v7072_v45 = vadd.f32 %v1264_v48, %v6229_v59  ;;  %v7082_v7 = vadd.f32 %v1264_v48, %v6235_v1  ;;  %v7089_v42 = vsub.f32 %v6370_v49, %v758_v44 }
  0xed   : > { %11676 = vst [vmem:[#allocation166_spill] sm:$0xff] %v7023_v61  ;;  %11677 = vst [vmem:[#allocation167_spill] sm:$0xff] %v7027_v33  ;;  %v7059_v33 = vsub.f32 %v6922_v10, %v994_v29  ;;  %v7062_v61 = vsub.f32 %v6734_v20, %v994_v29  ;;  %v7098_v19 = vsub.f32 %v6470_v21, %v758_v44 }
  0xee   : > { %11678 = vst [vmem:[#allocation168_spill] sm:$0xff] %v7031_v27  ;;  %11679 = vst [vmem:[#allocation169_spill] sm:$0xff] %v7035_v32  ;;  %v7103_v48 = vmul.f32 %v6984_v26, %v6984_v26  ;;  %v11700_v32 = vld [vmem:[#allocation18_spill] sm:$0xff]  ;;  %v7118_v27 = vmul.f32 %v7039_v0, %v7039_v0  ;;  %v7122_v26 = vmul.f32 %v7042_v12, %v7042_v12 }
  0xef   : > { %11680 = vst [vmem:[#allocation170_spill] sm:$0xff] %v7039_v0  ;;  %11681 = vst [vmem:[#allocation171_spill] sm:$0xff] %v7042_v12  ;;  %v1685_v2 = vmul.f32 %v7059_v33, %v7059_v33  ;;  %753 = vperm.xlu1 %5846, %v11700_v32  }
  0xf0   : > { %11682 = vst [vmem:[#allocation172_spill] sm:$0xff] %v7045_v55  ;;  %11683 = vst [vmem:[#allocation173_spill] sm:$0xff] %v7048_v53 }
  0xf1   : > { %11685 = vst [vmem:[#allocation6_spill] sm:$0xff] %v7053_v46  ;;  %11686 = vst [vmem:[#allocation174_spill] sm:$0xff] %v7056_v62  ;;  %v1686_v46 = vmul.f32 %v7062_v61, %v7062_v61 }
  0xf2   : > { %11687 = vst [vmem:[#allocation175_spill] sm:$0xff] %v7059_v33  ;;  %11688 = vst [vmem:[#allocation176_spill] sm:$0xff] %v7062_v61 }
  0xf3   : > { %11689 = vst [vmem:[#allocation177_spill] sm:$0xff] %v7066_v4  ;;  %11690 = vst [vmem:[#allocation178_spill] sm:$0xff] %v7075_v30  ;;  %v7092_v4 = vsub.f32 %v6384_v9, %v758_v44  ;;  %v7095_v30 = vsub.f32 %v6461_v39, %v758_v44  ;;  %v966_v44 = vpop.permute.xlu1 %965 }
  0xf4   : > { %11691 = vst [vmem:[#allocation179_spill] sm:$0xff] %v7079_v43  ;;  %11692 = vst [vmem:[#allocation180_spill] sm:$0xff] %v7082_v7  ;;  %v7107_v7 = vmul.f32 %v6987_v58, %v6987_v58  ;;  %v7111_v43 = vmul.f32 %v6990_v40, %v6990_v40  ;;  %v7126_v58 = vmul.f32 %v7045_v55, %v7045_v55 }
  0xf5   : > { %11693 = vst [vmem:[#allocation181_spill] sm:$0xff] %v7089_v42  ;;  %11694 = vst [vmem:[#allocation182_spill] sm:$0xff] %v7092_v4  ;;  %v7130_v40 = vmul.f32 %v7048_v53, %v7048_v53  ;;  %v7139_v0 = vadd.f32 %v966_v44, %v6202_v34  ;;  %v7142_v12 = vadd.f32 %v966_v44, %v6205_v36 }
  0xf6   : > { %11695 = vst [vmem:[#allocation183_spill] sm:$0xff] %v7095_v30  ;;  %11696 = vst [vmem:[#allocation184_spill] sm:$0xff] %v7098_v19  ;;  %v7161_v34 = vmul.f32 %v7089_v42, %v7089_v42  ;;  %v7165_v36 = vmul.f32 %v7092_v4, %v7092_v4 }
  0xf7   : > { %11697 = vst [vmem:[#allocation185_spill] sm:$0xff] %v7103_v48  ;;  %11698 = vst [vmem:[#allocation186_spill] sm:$0xff] %v7107_v7  ;;  %v7136_v7 = vadd.f32 %v1685_v2, %v6564_v31  ;;  %v7169_v31 = vmul.f32 %v7095_v30, %v7095_v30  ;;  %v11716_v2 = vld [vmem:[#allocation15_spill] sm:$0xff]  ;;  %v7181_v42 = vsub.f32 %v7142_v12, %v6843_v60 }
  0xf8   : > { %11699 = vst [vmem:[#allocation187_spill] sm:$0xff] %v7111_v43  ;;  %11701 = vst [vmem:[#allocation18_spill] sm:$0xff] %v7118_v27  ;;  %v7133_v43 = vadd.f32 %v1684_v8, %v6560_v11  ;;  %v7157_v11 = vadd.f32 %v1686_v46, %v6568_v16  ;;  %785 = vperm.xlu1 %5846, %v11716_v2   ;;  %v7177_v46 = vadd.f32 %v966_v44, %v6208_v37  ;;  %v998_v16 = vpop.permute.xlu1 %997 }
  0xf9   : > { %11702 = vst [vmem:[#allocation188_spill] sm:$0xff] %v7122_v26  ;;  %11703 = vst [vmem:[#allocation189_spill] sm:$0xff] %v7126_v58  ;;  %v762_v26 = vpop.permute.xlu0 %761  ;;  %v7184_v4 = vsub.f32 %v7139_v0, %v994_v29  ;;  %v7187_v30 = vsub.f32 %v6670_v35, %v998_v16  ;;  %v7196_v37 = vsub.f32 %v7139_v0, %v998_v16 }
  0xfa   : > { %11704 = vst [vmem:[#allocation190_spill] sm:$0xff] %v7130_v40  ;;  %11705 = vst [vmem:[#allocation191_spill] sm:$0xff] %v7133_v43  ;;  %v7145_v55 = vsub.f32 %v6370_v49, %v762_v26  ;;  %v7148_v58 = vsub.f32 %v6384_v9, %v762_v26  ;;  %v7151_v53 = vsub.f32 %v6461_v39, %v762_v26 }
  0xfb   : > { %11706 = vst [vmem:[#allocation192_spill] sm:$0xff] %v7136_v7  ;;  %11707 = vst [vmem:[#allocation193_spill] sm:$0xff] %v7139_v0  ;;  %v7154_v8 = vsub.f32 %v6470_v21, %v762_v26  ;;  %v7174_v26 = vmul.f32 %v7098_v19, %v7098_v19  ;;  %v7193_v19 = vsub.f32 %v6734_v20, %v998_v16 }
  0xfc   : > { %11708 = vst [vmem:[#allocation194_spill] sm:$0xff] %v7145_v55  ;;  %11709 = vst [vmem:[#allocation195_spill] sm:$0xff] %v7148_v58  ;;  %v7211_v40 = vadd.f32 %v966_v44, %v6211_v38  ;;  %v7219_v27 = vmul.f32 %v7148_v58, %v7148_v58  ;;  %v1688_v48 = vmul.f32 %v7187_v30, %v7187_v30  ;;  %5847 = vset.pattern.permute.xlu1 %v11582_v18 }
  0xfd   : > { %11710 = vst [vmem:[#allocation196_spill] sm:$0xff] %v7151_v53  ;;  %11711 = vst [vmem:[#allocation197_spill] sm:$0xff] %v7154_v8  ;;  %v7230_v38 = vmul.f32 %v7154_v8, %v7154_v8  ;;  %v1690_v58 = vmul.f32 %v7193_v19, %v7193_v19  ;;  %1093 = vperm.xlu1 %5847, %v11716_v2   ;;  %v1711_v8 = vmul.f32 %v7181_v42, %v7181_v42 }
  0xfe   : > { %11712 = vst [vmem:[#allocation198_spill] sm:$0xff] %v7157_v11  ;;  %11713 = vst [vmem:[#allocation199_spill] sm:$0xff] %v7161_v34 }
  0xff   : > { %11714 = vst [vmem:[#allocation200_spill] sm:$0xff] %v7165_v36  ;;  %11715 = vst [vmem:[#allocation201_spill] sm:$0xff] %v7169_v31  ;;  %v7190_v31 = vsub.f32 %v6922_v10, %v998_v16  ;;  %v7215_v16 = vmul.f32 %v7145_v55, %v7145_v55  ;;  %v7239_v55 = vmul.f32 %v7196_v37, %v7196_v37 }
 0x100   : > { %11717 = vst [vmem:[#allocation15_spill] sm:$0xff] %v7174_v26  ;;  %11718 = vst [vmem:[#allocation202_spill] sm:$0xff] %v7177_v46  ;;  %v766_v26 = vpop.permute.xlu0 %765 }
 0x101   : > { %11719 = vst [vmem:[#allocation203_spill] sm:$0xff] %v7184_v4  ;;  %11720 = vst [vmem:[#allocation204_spill] sm:$0xff] %v7187_v30  ;;  %v7199_v36 = vsub.f32 %v6370_v49, %v766_v26  ;;  %v7202_v60 = vsub.f32 %v6384_v9, %v766_v26  ;;  %v7205_v29 = vsub.f32 %v6461_v39, %v766_v26  ;;  %5848 = vset.pattern.permute.xlu1 %v11616_v50 }
 0x102   : > { %11721 = vst [vmem:[#allocation205_spill] sm:$0xff] %v7190_v31  ;;  %11722 = vst [vmem:[#allocation206_spill] sm:$0xff] %v7193_v19  ;;  %v7208_v34 = vsub.f32 %v6470_v21, %v766_v26  ;;  %v7226_v26 = vmul.f32 %v7151_v53, %v7151_v53  ;;  %v1689_v44 = vmul.f32 %v7190_v31, %v7190_v31 }
 0x103   : > { %11723 = vst [vmem:[#allocation207_spill] sm:$0xff] %v7196_v37  ;;  %11724 = vst [vmem:[#allocation208_spill] sm:$0xff] %v7199_v36  ;;  %v7243_v53 = vmul.f32 %v7199_v36, %v7199_v36  ;;  %v7267_v31 = vmul.f32 %v7205_v29, %v7205_v29 }
 0x104   : > { %11725 = vst [vmem:[#allocation209_spill] sm:$0xff] %v7202_v60  ;;  %11726 = vst [vmem:[#allocation210_spill] sm:$0xff] %v7205_v29  ;;  %v11744_v29 = vld [vmem:[#allocation69_spill] sm:$0xff] }
 0x105   : > { %11727 = vst [vmem:[#allocation211_spill] sm:$0xff] %v7208_v34  ;;  %11728 = vst [vmem:[#allocation212_spill] sm:$0xff] %v7211_v40  ;;  %v11759_v40 = vld [vmem:[#allocation61_spill] sm:$0xff] }
 0x106   : > { %11729 = vst [vmem:[#allocation213_spill] sm:$0xff] %v7215_v16  ;;  %11730 = vst [vmem:[#allocation214_spill] sm:$0xff] %v7219_v27  ;;  %v1269_v27 = vpop.permute.xlu1 %1268 }
 0x107   : > { %11731 = vst [vmem:[#allocation215_spill] sm:$0xff] %v7226_v26  ;;  %11732 = vst [vmem:[#allocation216_spill] sm:$0xff] %v7230_v38  ;;  %v770_v26 = vpop.permute.xlu0 %769  ;;  %v1687_v38 = vmul.f32 %v7184_v4, %v7184_v4 }
 0x108   : > { %11733 = vst [vmem:[#allocation217_spill] sm:$0xff] %v7243_v53  ;;  %v7250_v16 = vsub.f32 %v6370_v49, %v770_v26  ;;  %v7253_v19 = vsub.f32 %v6384_v9, %v770_v26  ;;  %v7256_v37 = vsub.f32 %v6461_v39, %v770_v26  ;;  %v7259_v36 = vsub.f32 %v6470_v21, %v770_v26  ;;  %v11741_v9 = vld [vmem:[#allocation68_spill] sm:$0xff] }
 0x109   : > { %v7263_v53 = vmul.f32 %v7202_v60, %v7202_v60  ;;  %11739 = vst [vmem:[#allocation223_spill] sm:$0xff] %v7267_v31  ;;  %v7271_v49 = vmul.f32 %v7208_v34, %v7208_v34  ;;  %v7274_v30 = vadd.f32 %v1688_v48, %v11741_v9  ;;  %v7277_v39 = vadd.f32 %v1269_v27, %v6226_v57 }
 0x10a   : > { %11734 = vst [vmem:[#allocation218_spill] sm:$0xff] %v7250_v16  ;;  %11735 = vst [vmem:[#allocation219_spill] sm:$0xff] %v7253_v19  ;;  %v7280_v26 = vadd.f32 %v1269_v27, %v6229_v59  ;;  %v7283_v60 = vadd.f32 %v1269_v27, %v6232_v63  ;;  %v7287_v31 = vadd.f32 %v1689_v44, %v11744_v29  ;;  %v11750_v63 = vld [vmem:[#allocation5_spill] sm:$0xff]  ;;  %v1298_v44 = vpop.permute.xlu1 %1297 }
 0x10b   : > { %11736 = vst [vmem:[#allocation220_spill] sm:$0xff] %v7256_v37  ;;  %11737 = vst [vmem:[#allocation221_spill] sm:$0xff] %v7259_v36  ;;  %v7291_v34 = vmul.f32 %v7250_v16, %v7250_v16  ;;  %v7295_v9 = vmul.f32 %v7253_v19, %v7253_v19  ;;  %v7299_v57 = vmul.f32 %v7256_v37, %v7256_v37  ;;  %1357 = vperm.xlu1 %5848, %v11750_v63   ;;  %v990_v29 = vpop.permute.xlu0 %989  ;;  %v11752_v19 = vld [vmem:[#allocation67_spill] sm:$0xff]  ;;  %v11754_v37 = vld [vmem:[#allocation70_spill] sm:$0xff] }
 0x10c   : > { %11738 = vst [vmem:[#allocation222_spill] sm:$0xff] %v7263_v53  ;;  %11740 = vst [vmem:[#allocation224_spill] sm:$0xff] %v7271_v49  ;;  %v7302_v59 = vadd.f32 %v1269_v27, %v6235_v1  ;;  %v7307_v48 = vmul.f32 %v7259_v36, %v7259_v36  ;;  %v7310_v16 = vadd.f32 %v1711_v8, %v6765_v28 }
 0x10d   : > { %11742 = vst [vmem:[#allocation68_spill] sm:$0xff] %v7274_v30  ;;  %11743 = vst [vmem:[#allocation225_spill] sm:$0xff] %v7283_v60  ;;  %v1116_v1 = vsub.f32 %v6670_v35, %v990_v29  ;;  %v1117_v27 = vsub.f32 %v6922_v10, %v990_v29  ;;  %v1118_v63 = vsub.f32 %v6734_v20, %v990_v29  ;;  %v11756_v60 = vld [vmem:[#allocation58_spill] sm:$0xff]  ;;  %v11758_v30 = vld [vmem:[#allocation60_spill] sm:$0xff] }
 0x10e   : > { %11745 = vst [vmem:[#allocation69_spill] sm:$0xff] %v7287_v31  ;;  %11746 = vst [vmem:[#allocation226_spill] sm:$0xff] %v7291_v34  ;;  %v1119_v36 = vsub.f32 %v7139_v0, %v990_v29  ;;  %v7326_v28 = vsub.f32 %v7069_v25, %v1298_v44 }
 0x10f   : > { %11747 = vst [vmem:[#allocation227_spill] sm:$0xff] %v7295_v9  ;;  %11748 = vst [vmem:[#allocation228_spill] sm:$0xff] %v7299_v57  ;;  %v7313_v9 = vadd.f32 %v1687_v38, %v11752_v19  ;;  %v7316_v57 = vadd.f32 %v1690_v58, %v11754_v37  ;;  %v7329_v19 = vsub.f32 %v7277_v39, %v1298_v44  ;;  %1389 = vperm.xlu1 %5848, %v6160_v13  }
 0x110   : > { %11749 = vst [vmem:[#allocation229_spill] sm:$0xff] %v7302_v59  ;;  %11751 = vst [vmem:[#allocation5_spill] sm:$0xff] %v7307_v48  ;;  %v7323_v48 = vsub.f32 %v6798_v51, %v1298_v44  ;;  %v7332_v58 = vsub.f32 %v6862_v14, %v1298_v44  ;;  %v1680_v8 = vmul.f32 %v1116_v1, %v1116_v1  ;;  %v1026_v59 = vpop.permute.xlu0 %1025 }
 0x111   : > { %11753 = vst [vmem:[#allocation67_spill] sm:$0xff] %v7313_v9  ;;  %11755 = vst [vmem:[#allocation70_spill] sm:$0xff] %v7316_v57  ;;  %v1681_v37 = vmul.f32 %v1117_v27, %v1117_v27  ;;  %v1682_v38 = vmul.f32 %v1118_v63, %v1118_v63  ;;  %v1683_v34 = vmul.f32 %v1119_v36, %v1119_v36  ;;  %v11757_v57 = vld [vmem:[#allocation59_spill] sm:$0xff] }
 0x112   : > { %v1936_v29 = vmul.f32 %v7323_v48, %v7323_v48  ;;  %v1937_v49 = vmul.f32 %v7326_v28, %v7326_v28  ;;  %v1938_v53 = vmul.f32 %v7329_v19, %v7329_v19  ;;  %v1939_v44 = vmul.f32 %v7332_v58, %v7332_v58 }
 0x113   : > { %v1808_v21 = vadd.f32 %v1680_v8, %v11756_v60  ;;  %v1809_v31 = vadd.f32 %v1681_v37, %v11757_v57  ;;  %v1810_v13 = vadd.f32 %v1682_v38, %v11758_v30  ;;  %v1811_v46 = vadd.f32 %v1683_v34, %v11759_v40  ;;  %v11764_v37 = vld [vmem:[#allocation7_spill] sm:$0xff] }
 0x114   : > { %v7348_v4 = vsub.f32 %v6673_v52, %v1026_v59  ;;  %v7351_v61 = vsub.f32 %v6859_v24, %v1026_v59  ;;  %v7354_v33 = vsub.f32 %v6737_v15, %v1026_v59  ;;  %v7357_v62 = vsub.f32 %v7142_v12, %v1026_v59  ;;  %1393 = vperm.xlu1 %5848, %v11764_v37   ;;  %v11771_v37 = vld [vmem:[#allocation44_spill] sm:$0xff] }
 0x115   : > { %v2064_v9 = vadd.f32 %v1936_v29, %v1808_v21  ;;  %v2065_v60 = vadd.f32 %v1937_v49, %v1809_v31  ;;  %v2066_v8 = vadd.f32 %v1938_v53, %v1810_v13  ;;  %v2067_v57 = vadd.f32 %v1939_v44, %v1811_v46  ;;  %v11768_v44 = vld [vmem:[#allocation42_spill] sm:$0xff] }
 0x116   : > { %11760 = vst [vmem:[#allocation58_spill] sm:$0xff] %v7348_v4  ;;  %11761 = vst [vmem:[#allocation59_spill] sm:$0xff] %v7351_v61  ;;  %v1716_v30 = vmul.f32 %v7348_v4, %v7348_v4  ;;  %v7364_v40 = vmul.f32 %v7351_v61, %v7351_v61  ;;  %v7368_v34 = vadd.f32 %v7239_v55, %v6620_v41  ;;  %v11767_v49 = vmov 0.0  }
 0x117   : > { %11762 = vst [vmem:[#allocation60_spill] sm:$0xff] %v7354_v33  ;;  %11763 = vst [vmem:[#allocation61_spill] sm:$0xff] %v7357_v62  ;;  %v7372_v59 = vsub.f32 %v7139_v0, %v6779_v47  ;;  %vm2192_vm4 = vcmp.le.f32.partialorder %v2064_v9, 4.84  ;;  %vm2193_vm5 = vcmp.le.f32.partialorder %v2065_v60, 4.84  ;;  %v7376_v21 = vmul.f32 %v7354_v33, %v7354_v33 }
 0x118   : > { %11765 = vst [vmem:[#allocation7_spill] sm:$0xff] %v7368_v34  ;;  %vm2194_vm6 = vcmp.le.f32.partialorder %v2066_v8, 4.84  ;;  %vm2195_vm7 = vcmp.le.f32.partialorder %v2067_v57, 4.84  ;;  %v5539_v53 = vsel %vm2192_vm4, 1.0, %v11767_v49  ;;  %v7386_v9 = vmul.f32 %v7357_v62, %v7357_v62  ;;  %5849 = vset.pattern.permute.xlu1 %v11629_v3 }
 0x119   : > { %11766 = vst [vmem:[#allocation230_spill] sm:$0xff] %v7372_v59  ;;  %v5540_v31 = vsel %vm2193_vm5, 1.0, %v11767_v49  ;;  %v5541_v46 = vsel %vm2194_vm6, 1.0, %v11767_v49  ;;  %v5542_v41 = vsel %vm2195_vm7, 1.0, %v11767_v49  ;;  %v2587_v55 = vsel %vm2572_vm2, %v5539_v53, 0.0  ;;  %v11769_v60 = vld [vmem:[#allocation43_spill] sm:$0xff] }
 0x11a   : > { %v2588_v47 = vsel %vm2572_vm2, %v5540_v31, 0.0  ;;  %v2590_v29 = vsel %vm2572_vm2, %v5541_v46, 0.0  ;;  %v2994_v13 = vmul.f32 %v5539_v53, %v11768_v44  ;;  %v2995_v8 = vmul.f32 %v5540_v31, %v11769_v60  ;;  %v11770_v57 = vld [vmem:[#allocation8_spill] sm:$0xff]  ;;  %v11772_v34 = vld [vmem:[#allocation45_spill] sm:$0xff] }
 0x11b   : > { %v2589_v38 = vadd.f32 %v2588_v47, %v2587_v55  ;;  %789 = vperm.xlu1 %5849, %v11770_v57   ;;  %v2996_v59 = vmul.f32 %v5541_v46, %v11771_v37  ;;  %v2997_v33 = vmul.f32 %v5542_v41, %v11772_v34  ;;  %v3538_v61 = vmul.f32 %v5539_v53, %v1116_v1 }
 0x11c   : > { %v3539_v4 = vmul.f32 %v5540_v31, %v1117_v27  ;;  %v3131_v62 = vsel %vm2572_vm2, %v2994_v13, 0.0  ;;  %v3132_v7 = vsel %vm2572_vm2, %v2995_v8, 0.0  ;;  %v3540_v55 = vmul.f32 %v5541_v46, %v1118_v63  ;;  %v1326_v27 = vpop.permute.xlu1 %1325 }
 0x11d   : > { %v2591_v11 = vadd.f32 %v2590_v29, %v2589_v38  ;;  %v2592_v47 = vsel %vm2578_vm3, %v5542_v41, 0.0  ;;  %v3133_v43 = vadd.f32 %v3132_v7, %v3131_v62  ;;  %v3134_v44 = vsel %vm2572_vm2, %v2996_v59, 0.0  ;;  %v11773_v62 = vld [vmem:[#allocation13_spill] sm:$0xff] }
 0x11e   : > { %v3541_v60 = vmul.f32 %v5542_v41, %v1119_v36  ;;  %v3136_v57 = vsel %vm2578_vm3, %v2997_v33, 0.0  ;;  %v3675_v37 = vsel %vm2572_vm2, %v3538_v61, 0.0  ;;  %v3676_v1 = vsel %vm2572_vm2, %v3539_v4, 0.0 }
 0x11f   : > { %v2593_v14 = vadd.f32 %v2592_v47, %v2591_v11  ;;  %5850 = vset.pattern.permute.xlu1 %v11582_v18  ;;  %v3135_v34 = vadd.f32 %v3134_v44, %v3133_v43  ;;  %v3677_v38 = vadd.f32 %v3676_v1, %v3675_v37  ;;  %v3678_v63 = vsel %vm2572_vm2, %v3540_v55, 0.0  ;;  %v11775_v44 = vld [vmem:[#allocation118_spill] sm:$0xff]  ;;  %v11776_v37 = vld [vmem:[#allocation128_spill] sm:$0xff] }
 0x120   : > { %v4082_v29 = vmul.f32 %v5539_v53, %v7323_v48  ;;  %1065 = vperm.xlu1 %5850, %v11773_v62   ;;  %v4083_v11 = vmul.f32 %v5540_v31, %v7326_v28  ;;  %v4084_v33 = vmul.f32 %v5541_v46, %v7329_v19  ;;  %v4085_v61 = vmul.f32 %v5542_v41, %v7332_v58 }
 0x121   : > { %v2594_v7 = vrot.slane %v2593_v14, 4  ;;  %v3137_v36 = vadd.f32 %v3136_v57, %v3135_v34  ;;  %v3679_v4 = vadd.f32 %v3678_v63, %v3677_v38  ;;  %v7411_v43 = vsub.f32 %v6801_v22, %v1326_v27  ;;  %v11778_v63 = vld [vmem:[#allocation120_spill] sm:$0xff] }
 0x122   : > { %v4219_v59 = vsel %vm2572_vm2, %v4082_v29, 0.0  ;;  %v3680_v8 = vsel %vm2578_vm3, %v3541_v60, 0.0  ;;  %v4220_v48 = vsel %vm2572_vm2, %v4083_v11, 0.0  ;;  %v7416_v53 = vadd.f32 %v1716_v30, %v6811_v5 }
 0x123   : > { %v2595_v13 = vadd.f32 %v2594_v7, %v2593_v14  ;;  %v3138_v28 = vrot.slane %v3137_v36, 4  ;;  %v3681_v31 = vadd.f32 %v3680_v8, %v3679_v4  ;;  %v4221_v19 = vadd.f32 %v4220_v48, %v4219_v59 }
 0x124   : > { %v4222_v58 = vsel %vm2572_vm2, %v4084_v33, 0.0  ;;  %5851 = vset.pattern.permute.xlu1 %v11616_v50  ;;  %v4224_v41 = vsel %vm2578_vm3, %v4085_v61, 0.0  ;;  %v7423_v14 = vadd.f32 %v7364_v40, %v6815_v6  ;;  %v7426_v57 = vsub.f32 %v7072_v45, %v1326_v27  ;;  %v7445_v40 = vpop.permute.xlu0 %1029  ;;  %v11779_v61 = vld [vmem:[#allocation12_spill] sm:$0xff] }
 0x125   : > { %v2596_v46 = vrot.slane %v2595_v13, 2  ;;  %1365 = vperm.xlu1 %5851, %v6125_v56   ;;  %v7429_v5 = vadd.f32 %v3138_v28, %v3137_v36  ;;  %v3682_v30 = vrot.slane %v3681_v31, 4  ;;  %v4223_v55 = vadd.f32 %v4222_v58, %v4221_v19 }
 0x126   : > { %v7432_v47 = vsub.f32 %v7280_v26, %v1326_v27  ;;  %v7436_v60 = vadd.f32 %v7376_v21, %v11775_v44  ;;  %v7439_v1 = vsub.f32 %v11776_v37, %v1326_v27  ;;  %v1964_v6 = vmul.f32 %v7411_v43, %v7411_v43 }
 0x127   : > { %11774 = vst [vmem:[#allocation42_spill] sm:$0xff] %v7429_v5  ;;  %v1965_v56 = vmul.f32 %v7426_v57, %v7426_v57  ;;  %v7447_v34 = vadd.f32 %v2596_v46, %v2595_v13  ;;  %v4225_v38 = vadd.f32 %v4224_v41, %v4223_v55  ;;  %v7451_v29 = vadd.f32 %v7386_v9, %v11778_v63  ;;  %v11784_v41 = vld [vmem:[#allocation9_spill] sm:$0xff]  ;;  %v11785_v55 = vld [vmem:[#allocation46_spill] sm:$0xff] }
 0x128   : > { %v1966_v21 = vmul.f32 %v7432_v47, %v7432_v47  ;;  %v1967_v7 = vmul.f32 %v7439_v1, %v7439_v1  ;;  %v2092_v11 = vadd.f32 %v1964_v6, %v7009_v54  ;;  %v7461_v36 = vadd.f32 %v3682_v30, %v3681_v31  ;;  %v11786_v6 = vld [vmem:[#allocation47_spill] sm:$0xff] }
 0x129   : > { %11777 = vst [vmem:[#allocation43_spill] sm:$0xff] %v7447_v34  ;;  %v2093_v33 = vadd.f32 %v1965_v56, %v7012_v17  ;;  %1397 = vperm.xlu1 %5851, %v11779_v61   ;;  %v4226_v4 = vrot.slane %v4225_v38, 4  ;;  %v7466_v59 = vsub.f32 %v6673_v52, %v7445_v40  ;;  %v7471_v54 = vsub.f32 %v6859_v24, %v7445_v40  ;;  %v11789_v61 = vld [vmem:[#allocation136_spill] sm:$0xff] }
 0x12a   : > { %11780 = vst [vmem:[#allocation44_spill] sm:$0xff] %v7461_v36  ;;  %v2094_v9 = vadd.f32 %v1966_v21, %v7015_v23  ;;  %v2095_v13 = vadd.f32 %v1967_v7, %v7310_v16  ;;  %vm2220_vm8 = vcmp.le.f32.partialorder %v2092_v11, 4.84  ;;  %v7482_v46 = vsub.f32 %v6737_v15, %v7445_v40  ;;  %v11788_v11 = vld [vmem:[#allocation49_spill] sm:$0xff] }
 0x12b   : > { %11781 = vst [vmem:[#allocation45_spill] sm:$0xff] %v7466_v59  ;;  %vm2221_vm9 = vcmp.le.f32.partialorder %v2093_v33, 4.84  ;;  %11782 = vst [vmem:[#allocation13_spill] sm:$0xff] %v7471_v54  ;;  %v4227_v17 = vadd.f32 %v4226_v4, %v4225_v38  ;;  %v5567_v8 = vsel %vm2220_vm8, 1.0, %v11767_v49  ;;  %v11787_v38 = vld [vmem:[#allocation48_spill] sm:$0xff] }
 0x12c   : > { %vm2222_vm10 = vcmp.le.f32.partialorder %v2094_v9, 4.84  ;;  %v5568_v48 = vsel %vm2221_vm9, 1.0, %v11767_v49  ;;  %vm2223_vm11 = vcmp.le.f32.partialorder %v2095_v13, 4.84  ;;  %v2678_v28 = vsel %vm2572_vm2, %v5567_v8, 0.0 }
 0x12d   : > { %v5569_v23 = vsel %vm2222_vm10, 1.0, %v11767_v49  ;;  %v2679_v31 = vsel %vm2572_vm2, %v5568_v48, 0.0  ;;  %5852 = vset.pattern.permute.xlu1 %v11629_v3  ;;  %v4228_v16 = vrot.slane %v4227_v17, 2  ;;  %v5570_v19 = vsel %vm2223_vm11, 1.0, %v11767_v49  ;;  %11783 = vst [vmem:[#allocation118_spill] sm:$0xff] %v7482_v46 }
 0x12e   : > { %v2680_v58 = vadd.f32 %v2679_v31, %v2678_v28  ;;  %793 = vperm.xlu1 %5852, %v11784_v41   ;;  %v2681_v30 = vsel %vm2572_vm2, %v5569_v23, 0.0  ;;  %v3022_v44 = vmul.f32 %v5567_v8, %v11785_v55  ;;  %v3023_v56 = vmul.f32 %v5568_v48, %v11786_v6  ;;  %v11790_v31 = vld [vmem:[#allocation137_spill] sm:$0xff] }
 0x12f   : > { %v3024_v63 = vmul.f32 %v5569_v23, %v11787_v38  ;;  %v4229_v21 = vadd.f32 %v4228_v16, %v4227_v17  ;;  %v3025_v33 = vmul.f32 %v5570_v19, %v11788_v11  ;;  %v3566_v4 = vmul.f32 %v5567_v8, %v11789_v61  ;;  %v11791_v17 = vld [vmem:[#allocation138_spill] sm:$0xff] }
 0x130   : > { %v2682_v7 = vadd.f32 %v2681_v30, %v2680_v58  ;;  %v2683_v9 = vsel %vm2578_vm3, %v5570_v19, 0.0  ;;  %v3222_v13 = vsel %vm2572_vm2, %v3022_v44, 0.0  ;;  %v3223_v28 = vsel %vm2572_vm2, %v3023_v56, 0.0  ;;  %v11792_v44 = vld [vmem:[#allocation14_spill] sm:$0xff] }
 0x131   : > { %v3567_v27 = vmul.f32 %v5568_v48, %v11790_v31  ;;  %v4230_v5 = vrot.slane %v4229_v21, 1  ;;  %v3224_v34 = vadd.f32 %v3223_v28, %v3222_v13  ;;  %v3225_v6 = vsel %vm2572_vm2, %v3024_v63, 0.0 }
 0x132   : > { %v2684_v55 = vadd.f32 %v2683_v9, %v2682_v7  ;;  %5853 = vset.pattern.permute.xlu1 %v11582_v18  ;;  %v3568_v16 = vmul.f32 %v5569_v23, %v11791_v17  ;;  %v3569_v58 = vmul.f32 %v5570_v19, %v7181_v42  ;;  %v3766_v30 = vsel %vm2572_vm2, %v3566_v4, 0.0 }
 0x133   : > { %v3767_v38 = vsel %vm2572_vm2, %v3567_v27, 0.0  ;;  %1069 = vperm.xlu1 %5853, %v11792_v44   ;;  %v3226_v11 = vadd.f32 %v3225_v6, %v3224_v34  ;;  %v3227_v61 = vsel %vm2578_vm3, %v3025_v33, 0.0  ;;  %v4110_v13 = vmul.f32 %v5567_v8, %v7411_v43 }
 0x134   : > { %v2685_v56 = vrot.slane %v2684_v55, 4  ;;  %v3768_v7 = vadd.f32 %v3767_v38, %v3766_v30  ;;  %v3769_v9 = vsel %vm2572_vm2, %v3568_v16, 0.0  ;;  %v3771_v63 = vsel %vm2578_vm3, %v3569_v58, 0.0  ;;  %v11815_v38 = vld [vmem:[#allocation132_spill] sm:$0xff] }
 0x135   : > { %v4111_v28 = vmul.f32 %v5568_v48, %v7426_v57  ;;  %v3228_v4 = vadd.f32 %v3227_v61, %v3226_v11  ;;  %v4112_v27 = vmul.f32 %v5569_v23, %v7432_v47  ;;  %v4113_v17 = vmul.f32 %v5570_v19, %v7439_v1 }
 0x136   : > { %v7507_v42 = vadd.f32 %v2685_v56, %v2684_v55  ;;  %v3770_v31 = vadd.f32 %v3769_v9, %v3768_v7  ;;  %v4310_v34 = vsel %vm2572_vm2, %v4110_v13, 0.0  ;;  %v7515_v6 = vsub.f32 %v7142_v12, %v7445_v40  ;;  %v1002_v55 = vpop.permute.xlu1 %1001  ;;  %v1034_v56 = vpop.permute.xlu0 %1033  ;;  %v11798_v7 = vld [vmem:[#allocation121_spill] sm:$0xff] }
 0x137   : > { %v4311_v33 = vsel %vm2572_vm2, %v4111_v28, 0.0  ;;  %5854 = vset.pattern.permute.xlu1 %v11616_v50  ;;  %v3229_v57 = vrot.slane %v3228_v4, 4  ;;  %v7520_v47 = vadd.f32 %v4230_v5, %v4229_v21  ;;  %v4313_v1 = vsel %vm2572_vm2, %v4112_v27, 0.0 }
 0x138   : > { %11793 = vst [vmem:[#allocation128_spill] sm:$0xff] %v7507_v42  ;;  %11794 = vst [vmem:[#allocation120_spill] sm:$0xff] %v7515_v6  ;;  %v3772_v8 = vadd.f32 %v3771_v63, %v3770_v31  ;;  %v4312_v48 = vadd.f32 %v4311_v33, %v4310_v34  ;;  %1369 = vperm.xlu1 %5854, %v11700_v32   ;;  %v1720_v23 = vmul.f32 %v7466_v59, %v7466_v59  ;;  %v11799_v63 = vld [vmem:[#allocation122_spill] sm:$0xff] }
 0x139   : > { %11795 = vst [vmem:[#allocation12_spill] sm:$0xff] %v7520_v47  ;;  %v1721_v40 = vmul.f32 %v7471_v54, %v7471_v54  ;;  %v7527_v19 = vadd.f32 %v3229_v57, %v3228_v4  ;;  %v1722_v30 = vmul.f32 %v7482_v46, %v7482_v46  ;;  %v4315_v32 = vsel %vm2578_vm3, %v4113_v17, 0.0  ;;  %v11801_v4 = vld [vmem:[#allocation123_spill] sm:$0xff] }
 0x13a   : > { %v3773_v16 = vrot.slane %v3772_v8, 4  ;;  %v4314_v58 = vadd.f32 %v4313_v1, %v4312_v48  ;;  %v1723_v5 = vmul.f32 %v7515_v6, %v7515_v6  ;;  %v7536_v21 = vsub.f32 %v6670_v35, %v1002_v55  ;;  %v11807_v48 = vld [vmem:[#allocation131_spill] sm:$0xff] }
 0x13b   : > { %11796 = vst [vmem:[#allocation9_spill] sm:$0xff] %v7527_v19  ;;  %v7540_v9 = vadd.f32 %v1720_v23, %v11798_v7  ;;  %v7543_v13 = vadd.f32 %v1721_v40, %v11799_v63  ;;  %v7549_v31 = vadd.f32 %v1722_v30, %v11801_v4  ;;  %v7552_v27 = vsub.f32 %v6922_v10, %v1002_v55  ;;  %v1006_v63 = vpop.permute.xlu0 %1005  ;;  %v11813_v4 = vld [vmem:[#allocation10_spill] sm:$0xff]  ;;  %v11817_v47 = vld [vmem:[#allocation127_spill] sm:$0xff] }
 0x13c   : > { %11797 = vst [vmem:[#allocation46_spill] sm:$0xff] %v7536_v21  ;;  %v4316_v61 = vadd.f32 %v4315_v32, %v4314_v58  ;;  %1401 = vperm.xlu1 %5854, %v11716_v2   ;;  %v7546_v28 = vadd.f32 %v3773_v16, %v3772_v8  ;;  %v7555_v17 = vsub.f32 %v6734_v20, %v1002_v55  ;;  %v1302_v8 = vpop.permute.xlu1 %1301 }
 0x13d   : > { %11802 = vst [vmem:[#allocation48_spill] sm:$0xff] %v7552_v27  ;;  %v7558_v33 = vsub.f32 %v7139_v0, %v1002_v55  ;;  %v7561_v57 = vsub.f32 %v6673_v52, %v1034_v56  ;;  %v7564_v2 = vsub.f32 %v6859_v24, %v1034_v56  ;;  %v7567_v1 = vadd.f32 %v1723_v5, %v11807_v48 }
 0x13e   : > { %11800 = vst [vmem:[#allocation47_spill] sm:$0xff] %v7546_v28  ;;  %11803 = vst [vmem:[#allocation49_spill] sm:$0xff] %v7555_v17  ;;  %v4317_v34 = vrot.slane %v4316_v61, 4  ;;  %v7571_v23 = vmul.f32 %v7536_v21, %v7536_v21  ;;  %v7575_v40 = vmul.f32 %v7552_v27, %v7552_v27  ;;  %v7578_v55 = vsub.f32 %v6737_v15, %v1034_v56 }
 0x13f   : > { %11804 = vst [vmem:[#allocation136_spill] sm:$0xff] %v7558_v33  ;;  %11805 = vst [vmem:[#allocation137_spill] sm:$0xff] %v7561_v57  ;;  %v7581_v58 = vsub.f32 %v7142_v12, %v1034_v56  ;;  %v1724_v30 = vmul.f32 %v7561_v57, %v7561_v57  ;;  %v1725_v32 = vmul.f32 %v7564_v2, %v7564_v2  ;;  %v11818_v57 = vld [vmem:[#allocation133_spill] sm:$0xff] }
 0x140   : > { %11806 = vst [vmem:[#allocation138_spill] sm:$0xff] %v7564_v2  ;;  %11808 = vst [vmem:[#allocation14_spill] sm:$0xff] %v7571_v23  ;;  %v4318_v16 = vadd.f32 %v4317_v34, %v4316_v61  ;;  %5855 = vset.pattern.permute.xlu1 %v11629_v3  ;;  %v7590_v5 = vmul.f32 %v7555_v17, %v7555_v17  ;;  %v7593_v7 = vsub.f32 %v6798_v51, %v1302_v8 }
 0x141   : > { %11809 = vst [vmem:[#allocation121_spill] sm:$0xff] %v7575_v40  ;;  %11810 = vst [vmem:[#allocation122_spill] sm:$0xff] %v7578_v55  ;;  %v7596_v61 = vsub.f32 %v7069_v25, %v1302_v8  ;;  %v7599_v56 = vsub.f32 %v7277_v39, %v1302_v8  ;;  %797 = vperm.xlu1 %5855, %v11813_v4   ;;  %v7604_v48 = vmul.f32 %v7558_v33, %v7558_v33 }
 0x142   : > { %11811 = vst [vmem:[#allocation123_spill] sm:$0xff] %v7581_v58  ;;  %11812 = vst [vmem:[#allocation131_spill] sm:$0xff] %v7590_v5  ;;  %v4319_v34 = vrot.slane %v4318_v16, 2  ;;  %v1726_v11 = vmul.f32 %v7578_v55, %v7578_v55  ;;  %v1727_v43 = vmul.f32 %v7581_v58, %v7581_v58  ;;  %v7611_v19 = vadd.f32 %v1724_v30, %v11815_v38  ;;  %v11821_v30 = vld [vmem:[#allocation191_spill] sm:$0xff]  ;;  %v11836_v5 = vld [vmem:[#allocation30_spill] sm:$0xff] }
 0x143   : > { %11814 = vst [vmem:[#allocation10_spill] sm:$0xff] %v7604_v48  ;;  %v1431_v36 = vsub.f32 %v11817_v47, %v1302_v8  ;;  %v1940_v42 = vmul.f32 %v7593_v7, %v7593_v7  ;;  %v1941_v28 = vmul.f32 %v7596_v61, %v7596_v61  ;;  %v7621_v33 = vadd.f32 %v1725_v32, %v11818_v57  ;;  %v11826_v57 = vld [vmem:[#allocation198_spill] sm:$0xff]  ;;  %v11829_v48 = vld [vmem:[#allocation16_spill] sm:$0xff] }
 0x144   : > { %11816 = vst [vmem:[#allocation132_spill] sm:$0xff] %v7611_v19  ;;  %v7618_v2 = vadd.f32 %v4319_v34, %v4318_v16  ;;  %v1942_v55 = vmul.f32 %v7599_v56, %v7599_v56  ;;  %v7626_v58 = vsub.f32 %v6670_v35, %v1006_v63  ;;  %v11822_v19 = vld [vmem:[#allocation192_spill] sm:$0xff]  ;;  %v7631_v27 = vsub.f32 %v6922_v10, %v1006_v63  ;;  %v11824_v16 = vld [vmem:[#allocation134_spill] sm:$0xff] }
 0x145   : > { %11819 = vst [vmem:[#allocation127_spill] sm:$0xff] %v7621_v33  ;;  %v1943_v38 = vmul.f32 %v1431_v36, %v1431_v36  ;;  %v2068_v8 = vadd.f32 %v1940_v42, %v11821_v30  ;;  %v2069_v17 = vadd.f32 %v1941_v28, %v11822_v19  ;;  %5856 = vset.pattern.permute.xlu1 %v11582_v18  ;;  %v11830_v42 = vld [vmem:[#allocation135_spill] sm:$0xff] }
 0x146   : > { %11820 = vst [vmem:[#allocation133_spill] sm:$0xff] %v7626_v58  ;;  %11823 = vst [vmem:[#allocation191_spill] sm:$0xff] %v7631_v27  ;;  %v7635_v34 = vadd.f32 %v1726_v11, %v11824_v16  ;;  %v2070_v32 = vadd.f32 %v1942_v55, %v11826_v57  ;;  %v7639_v33 = vsub.f32 %v6734_v20, %v1006_v63  ;;  %1073 = vperm.xlu1 %5856, %v11829_v48   ;;  %v11832_v28 = vld [vmem:[#allocation67_spill] sm:$0xff] }
 0x147   : > { %v7642_v21 = vsub.f32 %v7139_v0, %v1006_v63  ;;  %v7646_v19 = vadd.f32 %v1727_v43, %v11830_v42  ;;  %v2071_v30 = vadd.f32 %v1943_v38, %v11832_v28  ;;  %vm2196_vm12 = vcmp.le.f32.partialorder %v2068_v8, 4.84  ;;  %v11833_v38 = vld [vmem:[#allocation27_spill] sm:$0xff]  ;;  %v11834_v28 = vld [vmem:[#allocation28_spill] sm:$0xff] }
 0x148   : > { %11825 = vst [vmem:[#allocation192_spill] sm:$0xff] %v7635_v34  ;;  %11827 = vst [vmem:[#allocation134_spill] sm:$0xff] %v7639_v33  ;;  %vm2197_vm13 = vcmp.le.f32.partialorder %v2069_v17, 4.84  ;;  %v4321_v11 = vrot.slane %v7618_v2, 1  ;;  %v5543_v55 = vsel %vm2196_vm12, 1.0, %v11767_v49  ;;  %v1696_v17 = vmul.f32 %v7626_v58, %v7626_v58 }
 0x149   : > { %11828 = vst [vmem:[#allocation198_spill] sm:$0xff] %v7642_v21  ;;  %11831 = vst [vmem:[#allocation16_spill] sm:$0xff] %v7646_v19  ;;  %vm2198_vm14 = vcmp.le.f32.partialorder %v2070_v32, 4.84  ;;  %v5544_v16 = vsel %vm2197_vm13, 1.0, %v11767_v49  ;;  %v2600_v57 = vsel %vm2572_vm2, %v5543_v55, 0.0  ;;  %v2998_v8 = vmul.f32 %v5543_v55, %v11833_v38 }
 0x14a   : > { %vm2199_vm15 = vcmp.le.f32.partialorder %v2071_v30, 4.84  ;;  %v5545_v63 = vsel %vm2198_vm14, 1.0, %v11767_v49  ;;  %v2601_v48 = vsel %vm2572_vm2, %v5544_v16, 0.0  ;;  %5857 = vset.pattern.permute.xlu1 %v11616_v50  ;;  %v2999_v30 = vmul.f32 %v5544_v16, %v11834_v28  ;;  %v11835_v19 = vld [vmem:[#allocation29_spill] sm:$0xff]  ;;  %v11838_v0 = vld [vmem:[#allocation175_spill] sm:$0xff] }
 0x14b   : > { %v5546_v43 = vsel %vm2199_vm15, 1.0, %v11767_v49  ;;  %v2602_v42 = vadd.f32 %v2601_v48, %v2600_v57  ;;  %v2603_v32 = vsel %vm2572_vm2, %v5545_v63, 0.0  ;;  %v3000_v34 = vmul.f32 %v5545_v63, %v11835_v19  ;;  %1373 = vperm.xlu1 %5857, %v11773_v62   ;;  %v11837_v48 = vld [vmem:[#allocation174_spill] sm:$0xff]  ;;  %v11839_v28 = vld [vmem:[#allocation176_spill] sm:$0xff] }
 0x14c   : > { %v3001_v40 = vmul.f32 %v5546_v43, %v11836_v5  ;;  %v3144_v57 = vsel %vm2572_vm2, %v2998_v8, 0.0  ;;  %v3542_v38 = vmul.f32 %v5543_v55, %v11837_v48  ;;  %v3543_v20 = vmul.f32 %v5544_v16, %v11838_v0  ;;  %v11840_v5 = vld [vmem:[#allocation203_spill] sm:$0xff]  ;;  %v11841_v48 = vld [vmem:[#allocation8_spill] sm:$0xff] }
 0x14d   : > { %v2604_v23 = vadd.f32 %v2603_v32, %v2602_v42  ;;  %v2605_v58 = vsel %vm2578_vm3, %v5546_v43, 0.0  ;;  %v3145_v10 = vsel %vm2572_vm2, %v2999_v30, 0.0  ;;  %v3147_v35 = vsel %vm2572_vm2, %v3000_v34, 0.0 }
 0x14e   : > { %v3544_v6 = vmul.f32 %v5545_v63, %v11839_v28  ;;  %v3146_v46 = vadd.f32 %v3145_v10, %v3144_v57  ;;  %v3545_v54 = vmul.f32 %v5546_v43, %v11840_v5  ;;  %v3688_v62 = vsel %vm2572_vm2, %v3542_v38, 0.0  ;;  %v11845_v5 = vld [vmem:[#allocation86_spill] sm:$0xff] }
 0x14f   : > { %v2606_v19 = vadd.f32 %v2605_v58, %v2604_v23  ;;  %v3149_v42 = vsel %vm2578_vm3, %v3001_v40, 0.0  ;;  %v3689_v8 = vsel %vm2572_vm2, %v3543_v20, 0.0  ;;  %v4086_v0 = vmul.f32 %v5543_v55, %v7593_v7  ;;  %1405 = vperm.xlu1 %5857, %v11841_v48  }
 0x150   : > { %v4087_v32 = vmul.f32 %v5544_v16, %v7596_v61  ;;  %v3148_v34 = vadd.f32 %v3147_v35, %v3146_v46  ;;  %v3690_v59 = vadd.f32 %v3689_v8, %v3688_v62  ;;  %v3691_v23 = vsel %vm2572_vm2, %v3544_v6, 0.0 }
 0x151   : > { %v2607_v30 = vrot.slane %v2606_v19, 4  ;;  %v4088_v10 = vmul.f32 %v5545_v63, %v7599_v56  ;;  %v4089_v58 = vmul.f32 %v5546_v43, %v1431_v36  ;;  %v4232_v57 = vsel %vm2572_vm2, %v4086_v0, 0.0  ;;  %v1334_v36 = vpop.permute.xlu1 %1333  ;;  %v11844_v43 = vld [vmem:[#allocation11_spill] sm:$0xff] }
 0x152   : > { %v4233_v40 = vsel %vm2572_vm2, %v4087_v32, 0.0  ;;  %v3150_v20 = vadd.f32 %v3149_v42, %v3148_v34  ;;  %v3692_v7 = vadd.f32 %v3691_v23, %v3690_v59  ;;  %v3693_v61 = vsel %vm2578_vm3, %v3545_v54, 0.0  ;;  %v1042_v32 = vpop.permute.xlu0 %1041  ;;  %v11865_v54 = vld [vmem:[#allocation59_spill] sm:$0xff] }
 0x153   : > { %v7683_v38 = vadd.f32 %v2607_v30, %v2606_v19  ;;  %v4234_v55 = vadd.f32 %v4233_v40, %v4232_v57  ;;  %v4235_v16 = vsel %vm2572_vm2, %v4088_v10, 0.0  ;;  %v1697_v35 = vmul.f32 %v7631_v27, %v7631_v27  ;;  %5859 = vset.pattern.permute.xlu1 %v11629_v3  ;;  %v11847_v3 = vld [vmem:[#allocation87_spill] sm:$0xff] }
 0x154   : > { %v1698_v46 = vmul.f32 %v7639_v33, %v7639_v33  ;;  %v7693_v6 = vadd.f32 %v4321_v11, %v7618_v2  ;;  %v3151_v56 = vrot.slane %v3150_v20, 4  ;;  %v3694_v63 = vadd.f32 %v3693_v61, %v3692_v7  ;;  %801 = vperm.xlu1 %5859, %v11844_v43   ;;  %v11849_v2 = vld [vmem:[#allocation88_spill] sm:$0xff]  ;;  %v11854_v61 = vld [vmem:[#allocation17_spill] sm:$0xff] }
 0x155   : > { %11842 = vst [vmem:[#allocation135_spill] sm:$0xff] %v7683_v38  ;;  %v4236_v59 = vadd.f32 %v4235_v16, %v4234_v55  ;;  %v4237_v28 = vsel %vm2578_vm3, %v4089_v58, 0.0  ;;  %v1699_v19 = vmul.f32 %v7642_v21, %v7642_v21  ;;  %v7701_v62 = vadd.f32 %v1696_v17, %v11845_v5  ;;  %v11866_v38 = vld [vmem:[#allocation60_spill] sm:$0xff]  ;;  %v11918_v21 = vld [vmem:[#allocation7_spill] sm:$0xff] }
 0x156   : > { %11843 = vst [vmem:[#allocation67_spill] sm:$0xff] %v7693_v6  ;;  %v7704_v8 = vadd.f32 %v1697_v35, %v11847_v3  ;;  %v7707_v11 = vadd.f32 %v1698_v46, %v11849_v2  ;;  %v7710_v0 = vsub.f32 %v6801_v22, %v1334_v36  ;;  %v7712_v48 = vadd.f32 %v3151_v56, %v3150_v20  ;;  %v11855_v35 = vld [vmem:[#allocation89_spill] sm:$0xff] }
 0x157   : > { %11846 = vst [vmem:[#allocation27_spill] sm:$0xff] %v7701_v62  ;;  %v4238_v42 = vadd.f32 %v4237_v28, %v4236_v59  ;;  %v7715_v30 = vsub.f32 %v7072_v45, %v1334_v36  ;;  %v7718_v34 = vsub.f32 %v7280_v26, %v1334_v36  ;;  %v7721_v17 = vsub.f32 %v11776_v37, %v1334_v36 }
 0x158   : > { %11848 = vst [vmem:[#allocation28_spill] sm:$0xff] %v7704_v8  ;;  %11850 = vst [vmem:[#allocation29_spill] sm:$0xff] %v7707_v11  ;;  %v3695_v23 = vrot.slane %v3694_v63, 4  ;;  %v1972_v58 = vmul.f32 %v7710_v0, %v7710_v0  ;;  %v7726_v57 = vsub.f32 %v6673_v52, %v1042_v32  ;;  %5860 = vset.pattern.permute.xlu1 %v11582_v18 }
 0x159   : > { %11851 = vst [vmem:[#allocation30_spill] sm:$0xff] %v7712_v48  ;;  %v4239_v10 = vrot.slane %v4238_v42, 4  ;;  %v1973_v40 = vmul.f32 %v7715_v30, %v7715_v30  ;;  %v1974_v20 = vmul.f32 %v7718_v34, %v7718_v34  ;;  %v1975_v7 = vmul.f32 %v7721_v17, %v7721_v17  ;;  %1077 = vperm.xlu1 %5860, %v11854_v61  }
 0x15a   : > { %11852 = vst [vmem:[#allocation174_spill] sm:$0xff] %v7726_v57  ;;  %v7736_v55 = vsub.f32 %v6859_v24, %v1042_v32  ;;  %v7740_v46 = vadd.f32 %v1699_v19, %v11855_v35  ;;  %v2100_v18 = vadd.f32 %v1972_v58, %v7416_v53  ;;  %v7744_v36 = vsub.f32 %v6737_v15, %v1042_v32  ;;  %v11863_v35 = vld [vmem:[#allocation64_spill] sm:$0xff] }
 0x15b   : > { %v4240_v16 = vadd.f32 %v4239_v10, %v4238_v42  ;;  %v2101_v56 = vadd.f32 %v1973_v40, %v7423_v14  ;;  %v2102_v59 = vadd.f32 %v1974_v20, %v7436_v60  ;;  %v2103_v43 = vadd.f32 %v1975_v7, %v7451_v29  ;;  %v11861_v40 = vld [vmem:[#allocation62_spill] sm:$0xff] }
 0x15c   : > { %11853 = vst [vmem:[#allocation175_spill] sm:$0xff] %v7736_v55  ;;  %11856 = vst [vmem:[#allocation176_spill] sm:$0xff] %v7740_v46  ;;  %v7750_v28 = vsub.f32 %v7142_v12, %v1042_v32  ;;  %v7752_v5 = vadd.f32 %v3695_v23, %v3694_v63  ;;  %vm2228_vm0 = vcmp.le.f32.partialorder %v2100_v18, 4.84  ;;  %v1732_v19 = vmul.f32 %v7726_v57, %v7726_v57  ;;  %v11928_v46 = vld [vmem:[#allocation206_spill] sm:$0xff] }
 0x15d   : > { %11857 = vst [vmem:[#allocation203_spill] sm:$0xff] %v7744_v36  ;;  %v4241_v42 = vrot.slane %v4240_v16, 2  ;;  %vm2229_vm4 = vcmp.le.f32.partialorder %v2101_v56, 4.84  ;;  %vm2230_vm5 = vcmp.le.f32.partialorder %v2102_v59, 4.84  ;;  %v1733_v53 = vmul.f32 %v7736_v55, %v7736_v55  ;;  %5862 = vset.pattern.permute.xlu1 %v11616_v50 }
 0x15e   : > { %11858 = vst [vmem:[#allocation8_spill] sm:$0xff] %v7750_v28  ;;  %11859 = vst [vmem:[#allocation11_spill] sm:$0xff] %v7752_v5  ;;  %vm2231_vm6 = vcmp.le.f32.partialorder %v2103_v43, 4.84  ;;  %v5575_v60 = vsel %vm2228_vm0, 1.0, %v11767_v49  ;;  %v5576_v29 = vsel %vm2229_vm4, 1.0, %v11767_v49  ;;  %1377 = vperm.xlu1 %5862, %v11792_v44   ;;  %v1734_v32 = vmul.f32 %v7744_v36, %v7744_v36 }
 0x15f   : > { %v7759_v14 = vadd.f32 %v4241_v42, %v4240_v16  ;;  %v5577_v63 = vsel %vm2230_vm5, 1.0, %v11767_v49  ;;  %v2704_v3 = vsel %vm2572_vm2, %v5575_v60, 0.0  ;;  %v2705_v2 = vsel %vm2572_vm2, %v5576_v29, 0.0  ;;  %v11862_v44 = vld [vmem:[#allocation63_spill] sm:$0xff]  ;;  %v11864_v56 = vld [vmem:[#allocation58_spill] sm:$0xff] }
 0x160   : > { %v1735_v50 = vmul.f32 %v7750_v28, %v7750_v28  ;;  %v5578_v23 = vsel %vm2231_vm6, 1.0, %v11767_v49  ;;  %v2706_v10 = vadd.f32 %v2705_v2, %v2704_v3  ;;  %v2707_v58 = vsel %vm2572_vm2, %v5577_v63, 0.0  ;;  %v11867_v2 = vld [vmem:[#allocation65_spill] sm:$0xff] }
 0x161   : > { %11860 = vst [vmem:[#allocation86_spill] sm:$0xff] %v7759_v14  ;;  %v3030_v20 = vmul.f32 %v5575_v60, %v11861_v40  ;;  %v3031_v16 = vmul.f32 %v5576_v29, %v11862_v44  ;;  %v3032_v18 = vmul.f32 %v5577_v63, %v11863_v35  ;;  %v3574_v59 = vmul.f32 %v5575_v60, %v11864_v56  ;;  %v11868_v44 = vld [vmem:[#allocation61_spill] sm:$0xff] }
 0x162   : > { %v2708_v43 = vadd.f32 %v2707_v58, %v2706_v10  ;;  %v3575_v48 = vmul.f32 %v5576_v29, %v11865_v54  ;;  %v3576_v5 = vmul.f32 %v5577_v63, %v11866_v38  ;;  %1409 = vperm.xlu1 %5862, %v11784_v41   ;;  %v2709_v3 = vsel %vm2578_vm3, %v5578_v23, 0.0 }
 0x163   : > { %v3248_v42 = vsel %vm2572_vm2, %v3030_v20, 0.0  ;;  %v3033_v40 = vmul.f32 %v5578_v23, %v11867_v2  ;;  %v3249_v7 = vsel %vm2572_vm2, %v3031_v16, 0.0  ;;  %v3577_v14 = vmul.f32 %v5578_v23, %v11868_v44  ;;  %v1050_v44 = vpop.permute.xlu0 %1049 }
 0x164   : > { %v2710_v35 = vadd.f32 %v2709_v3, %v2708_v43  ;;  %v3250_v6 = vadd.f32 %v3249_v7, %v3248_v42  ;;  %v3792_v10 = vsel %vm2572_vm2, %v3574_v59, 0.0  ;;  %v3793_v58 = vsel %vm2572_vm2, %v3575_v48, 0.0  ;;  %v1038_v43 = vpop.permute.xlu1 %1037 }
 0x165   : > { %v3251_v54 = vsel %vm2572_vm2, %v3032_v18, 0.0  ;;  %v3794_v20 = vadd.f32 %v3793_v58, %v3792_v10  ;;  %v3795_v38 = vsel %vm2572_vm2, %v3576_v5, 0.0  ;;  %v4118_v41 = vmul.f32 %v5575_v60, %v7710_v0  ;;  %v11869_v60 = vld [vmem:[#allocation168_spill] sm:$0xff]  ;;  %v11878_v58 = vld [vmem:[#allocation177_spill] sm:$0xff] }
 0x166   : > { %v2711_v56 = vrot.slane %v2710_v35, 4  ;;  %v3252_v28 = vadd.f32 %v3251_v54, %v3250_v6  ;;  %v4119_v2 = vmul.f32 %v5576_v29, %v7715_v30  ;;  %v4120_v16 = vmul.f32 %v5577_v63, %v7718_v34  ;;  %1413 = vperm.xlu1 %5862, %v11813_v4  }
 0x167   : > { %v3253_v7 = vsel %vm2578_vm3, %v3033_v40, 0.0  ;;  %v3796_v59 = vadd.f32 %v3795_v38, %v3794_v20  ;;  %v4121_v48 = vmul.f32 %v5578_v23, %v7721_v17  ;;  %v4336_v18 = vsel %vm2572_vm2, %v4118_v41, 0.0  ;;  %v11873_v23 = vld [vmem:[#allocation169_spill] sm:$0xff] }
 0x168   : > { %v3254_v5 = vadd.f32 %v3253_v7, %v3252_v28  ;;  %v3797_v0 = vsel %vm2578_vm3, %v3577_v14, 0.0  ;;  %v4337_v6 = vsel %vm2572_vm2, %v4119_v2, 0.0  ;;  %v7800_v30 = vadd.f32 %v1732_v19, %v11869_v60  ;;  %v11875_v14 = vld [vmem:[#allocation6_spill] sm:$0xff] }
 0x169   : > { %v7802_v34 = vadd.f32 %v2711_v56, %v2710_v35  ;;  %v7804_v29 = vadd.f32 %v3797_v0, %v3796_v59  ;;  %v4338_v4 = vadd.f32 %v4337_v6, %v4336_v18  ;;  %v4339_v63 = vsel %vm2572_vm2, %v4120_v16, 0.0  ;;  %v11883_v16 = vld [vmem:[#allocation154_spill] sm:$0xff]  ;;  %v11886_v18 = vld [vmem:[#allocation141_spill] sm:$0xff] }
 0x16a   : > { %11870 = vst [vmem:[#allocation87_spill] sm:$0xff] %v7800_v30  ;;  %v3255_v42 = vrot.slane %v3254_v5, 4  ;;  %v4341_v17 = vsel %vm2578_vm3, %v4121_v48, 0.0  ;;  %v7809_v3 = vadd.f32 %v1733_v53, %v11873_v23  ;;  %v7812_v28 = vsub.f32 %v6673_v52, %v1038_v43  ;;  %1385 = vperm.xlu1 %5862, %v11854_v61   ;;  %v11881_v61 = vld [vmem:[#allocation91_spill] sm:$0xff]  ;;  %v11887_v6 = vld [vmem:[#allocation142_spill] sm:$0xff] }
 0x16b   : > { %11871 = vst [vmem:[#allocation88_spill] sm:$0xff] %v7802_v34  ;;  %11872 = vst [vmem:[#allocation17_spill] sm:$0xff] %v7804_v29  ;;  %v4340_v19 = vadd.f32 %v4339_v63, %v4338_v4  ;;  %v7816_v40 = vadd.f32 %v1734_v32, %v11875_v14  ;;  %v7819_v35 = vsub.f32 %v6859_v24, %v1038_v43  ;;  %v1086_v32 = vpop.permute.xlu0 %1085  ;;  %v11888_v4 = vld [vmem:[#allocation106_spill] sm:$0xff]  ;;  %v11893_v14 = vld [vmem:[#allocation153_spill] sm:$0xff] }
 0x16c   : > { %11874 = vst [vmem:[#allocation89_spill] sm:$0xff] %v7809_v3  ;;  %v7822_v10 = vsub.f32 %v6737_v15, %v1038_v43  ;;  %v7825_v54 = vadd.f32 %v1735_v50, %v11878_v58  ;;  %v7828_v53 = vsub.f32 %v7142_v12, %v1038_v43  ;;  %v1728_v20 = vmul.f32 %v7812_v28, %v7812_v28 }
 0x16d   : > { %11876 = vst [vmem:[#allocation62_spill] sm:$0xff] %v7816_v40  ;;  %v7833_v38 = vsub.f32 %v11881_v61, %v1050_v44  ;;  %v4342_v41 = vadd.f32 %v4341_v17, %v4340_v19  ;;  %v1729_v56 = vmul.f32 %v7819_v35, %v7819_v35  ;;  %v7840_v50 = vsub.f32 %v11883_v16, %v1050_v44  ;;  %v11890_v17 = vld [vmem:[#allocation202_spill] sm:$0xff] }
 0x16e   : > { %11877 = vst [vmem:[#allocation63_spill] sm:$0xff] %v7822_v10  ;;  %11879 = vst [vmem:[#allocation64_spill] sm:$0xff] %v7825_v54  ;;  %v1730_v2 = vmul.f32 %v7822_v10, %v7822_v10  ;;  %v7842_v7 = vadd.f32 %v3255_v42, %v3254_v5  ;;  %v1731_v48 = vmul.f32 %v7828_v53, %v7828_v53  ;;  %v1306_v5 = vpop.permute.xlu1 %1305  ;;  %v11892_v42 = vld [vmem:[#allocation144_spill] sm:$0xff] }
 0x16f   : > { %11880 = vst [vmem:[#allocation58_spill] sm:$0xff] %v7828_v53  ;;  %11882 = vst [vmem:[#allocation59_spill] sm:$0xff] %v7833_v38  ;;  %v7848_v43 = vadd.f32 %v1728_v20, %v11886_v18  ;;  %v4343_v0 = vrot.slane %v4342_v41, 4  ;;  %v7851_v60 = vadd.f32 %v1729_v56, %v11887_v6  ;;  %v7854_v63 = vsub.f32 %v11888_v4, %v1050_v44  ;;  %v11896_v6 = vld [vmem:[#allocation92_spill] sm:$0xff] }
 0x170   : > { %11884 = vst [vmem:[#allocation60_spill] sm:$0xff] %v7840_v50  ;;  %11885 = vst [vmem:[#allocation65_spill] sm:$0xff] %v7842_v7  ;;  %v7857_v23 = vsub.f32 %v11890_v17, %v1050_v44  ;;  %v7860_v19 = vadd.f32 %v1730_v2, %v11892_v42  ;;  %v7863_v58 = vadd.f32 %v1731_v48, %v11893_v14  ;;  %v11898_v44 = vld [vmem:[#allocation161_spill] sm:$0xff]  ;;  %v11900_v2 = vld [vmem:[#allocation107_spill] sm:$0xff] }
 0x171   : > { %11889 = vst [vmem:[#allocation61_spill] sm:$0xff] %v7854_v63  ;;  %v7867_v20 = vmul.f32 %v7833_v38, %v7833_v38  ;;  %v7871_v56 = vmul.f32 %v7840_v50, %v7840_v50  ;;  %v4344_v18 = vadd.f32 %v4343_v0, %v4342_v41  ;;  %v7874_v59 = vsub.f32 %v11896_v6, %v1086_v32  ;;  %v11902_v48 = vld [vmem:[#allocation212_spill] sm:$0xff]  ;;  %v1058_v41 = vpop.permute.xlu0 %1057 }
 0x172   : > { %11891 = vst [vmem:[#allocation168_spill] sm:$0xff] %v7857_v23  ;;  %v7877_v7 = vsub.f32 %v11898_v44, %v1086_v32  ;;  %v7880_v42 = vsub.f32 %v11900_v2, %v1086_v32  ;;  %v7883_v14 = vsub.f32 %v11902_v48, %v1086_v32  ;;  %v1432_v38 = vsub.f32 %v6798_v51, %v1306_v5 }
 0x173   : > { %11894 = vst [vmem:[#allocation169_spill] sm:$0xff] %v7867_v20  ;;  %11895 = vst [vmem:[#allocation6_spill] sm:$0xff] %v7871_v56  ;;  %v1433_v34 = vsub.f32 %v7069_v25, %v1306_v5  ;;  %v7888_v50 = vsub.f32 %v7277_v39, %v1306_v5  ;;  %v4345_v0 = vrot.slane %v4344_v18, 2  ;;  %v7892_v29 = vmul.f32 %v7854_v63, %v7854_v63 }
 0x174   : > { %11897 = vst [vmem:[#allocation177_spill] sm:$0xff] %v7874_v59  ;;  %11899 = vst [vmem:[#allocation141_spill] sm:$0xff] %v7877_v7  ;;  %v7896_v36 = vmul.f32 %v7857_v23, %v7857_v23  ;;  %v7900_v32 = vmul.f32 %v7874_v59, %v7874_v59  ;;  %v7904_v55 = vmul.f32 %v7877_v7, %v7877_v7 }
 0x175   : > { %11901 = vst [vmem:[#allocation142_spill] sm:$0xff] %v7880_v42  ;;  %11903 = vst [vmem:[#allocation144_spill] sm:$0xff] %v7883_v14  ;;  %v1435_v57 = vsub.f32 %v11817_v47, %v1306_v5  ;;  %v1944_v54 = vmul.f32 %v1432_v38, %v1432_v38  ;;  %v1945_v40 = vmul.f32 %v1433_v34, %v1433_v34 }
 0x176   : > { %11904 = vst [vmem:[#allocation153_spill] sm:$0xff] %v7892_v29  ;;  %11905 = vst [vmem:[#allocation231_spill] sm:$0xff] %v7896_v36  ;;  %v7909_v63 = vmul.f32 %v7880_v42, %v7880_v42  ;;  %v1946_v23 = vmul.f32 %v7888_v50, %v7888_v50  ;;  %v7914_v36 = vsub.f32 %v11881_v61, %v1058_v41  ;;  %v11913_v29 = vld [vmem:[#allocation69_spill] sm:$0xff] }
 0x177   : > { %11906 = vst [vmem:[#allocation232_spill] sm:$0xff] %v7900_v32  ;;  %11907 = vst [vmem:[#allocation233_spill] sm:$0xff] %v7904_v55  ;;  %v7917_v59 = vsub.f32 %v11883_v16, %v1058_v41  ;;  %v7921_v7 = vmul.f32 %v7883_v14, %v7883_v14  ;;  %v1947_v5 = vmul.f32 %v1435_v57, %v1435_v57  ;;  %v11912_v55 = vld [vmem:[#allocation68_spill] sm:$0xff] }
 0x178   : > { %11908 = vst [vmem:[#allocation234_spill] sm:$0xff] %v7909_v63  ;;  %11909 = vst [vmem:[#allocation235_spill] sm:$0xff] %v7914_v36  ;;  %v2072_v32 = vadd.f32 %v1944_v54, %v11912_v55  ;;  %v2073_v3 = vadd.f32 %v1945_v40, %v11913_v29  ;;  %v7925_v42 = vadd.f32 %v4345_v0, %v4344_v18  ;;  %v11915_v63 = vld [vmem:[#allocation70_spill] sm:$0xff]  ;;  %v11921_v18 = vld [vmem:[#allocation55_spill] sm:$0xff] }
 0x179   : > { %11910 = vst [vmem:[#allocation236_spill] sm:$0xff] %v7917_v59  ;;  %11911 = vst [vmem:[#allocation237_spill] sm:$0xff] %v7921_v7  ;;  %v2074_v30 = vadd.f32 %v1946_v23, %v11915_v63  ;;  %v7929_v56 = vsub.f32 %v11888_v4, %v1058_v41  ;;  %v7932_v20 = vsub.f32 %v11890_v17, %v1058_v41  ;;  %v11926_v7 = vld [vmem:[#allocation204_spill] sm:$0xff] }
 0x17a   : > { %11914 = vst [vmem:[#allocation68_spill] sm:$0xff] %v7925_v42  ;;  %v2075_v33 = vadd.f32 %v1947_v5, %v11918_v21  ;;  %vm2200_vm7 = vcmp.le.f32.partialorder %v2072_v32, 4.84  ;;  %vm2201_vm8 = vcmp.le.f32.partialorder %v2073_v3, 4.84  ;;  %v7937_v14 = vmul.f32 %v7914_v36, %v7914_v36  ;;  %v11923_v32 = vld [vmem:[#allocation56_spill] sm:$0xff] }
 0x17b   : > { %11916 = vst [vmem:[#allocation69_spill] sm:$0xff] %v7929_v56  ;;  %11917 = vst [vmem:[#allocation70_spill] sm:$0xff] %v7932_v20  ;;  %vm2202_vm9 = vcmp.le.f32.partialorder %v2074_v30, 4.84  ;;  %v5547_v55 = vsel %vm2200_vm7, 1.0, %v11767_v49  ;;  %v5548_v29 = vsel %vm2201_vm8, 1.0, %v11767_v49  ;;  %v7943_v40 = vmul.f32 %v7917_v59, %v7917_v59 }
 0x17c   : > { %11919 = vst [vmem:[#allocation7_spill] sm:$0xff] %v7937_v14  ;;  %vm2203_vm10 = vcmp.le.f32.partialorder %v2075_v33, 4.84  ;;  %v5549_v54 = vsel %vm2202_vm9, 1.0, %v11767_v49  ;;  %v2613_v21 = vsel %vm2572_vm2, %v5547_v55, 0.0  ;;  %v2614_v3 = vsel %vm2572_vm2, %v5548_v29, 0.0 }
 0x17d   : > { %11920 = vst [vmem:[#allocation238_spill] sm:$0xff] %v7943_v40  ;;  %v5550_v63 = vsel %vm2203_vm10, 1.0, %v11767_v49  ;;  %v2615_v23 = vadd.f32 %v2614_v3, %v2613_v21  ;;  %v3002_v30 = vmul.f32 %v5547_v55, %v11921_v18  ;;  %v7952_v41 = vmul.f32 %v7929_v56, %v7929_v56  ;;  %v11924_v33 = vld [vmem:[#allocation57_spill] sm:$0xff]  ;;  %v11925_v36 = vld [vmem:[#allocation66_spill] sm:$0xff] }
 0x17e   : > { %v2616_v0 = vsel %vm2572_vm2, %v5549_v54, 0.0  ;;  %v3003_v5 = vmul.f32 %v5548_v29, %v11923_v32  ;;  %v3004_v59 = vmul.f32 %v5549_v54, %v11924_v33  ;;  %v3005_v42 = vmul.f32 %v5550_v63, %v11925_v36  ;;  %v11927_v21 = vld [vmem:[#allocation205_spill] sm:$0xff]  ;;  %v11929_v33 = vld [vmem:[#allocation207_spill] sm:$0xff] }
 0x17f   : > { %11922 = vst [vmem:[#allocation55_spill] sm:$0xff] %v7952_v41  ;;  %v2617_v40 = vadd.f32 %v2616_v0, %v2615_v23  ;;  %v3157_v14 = vsel %vm2572_vm2, %v3002_v30, 0.0  ;;  %v3546_v27 = vmul.f32 %v5547_v55, %v11926_v7  ;;  %v3547_v3 = vmul.f32 %v5548_v29, %v11927_v21 }
 0x180   : > { %v2618_v18 = vsel %vm2578_vm3, %v5550_v63, 0.0  ;;  %v3158_v56 = vsel %vm2572_vm2, %v3003_v5, 0.0  ;;  %v3160_v41 = vsel %vm2572_vm2, %v3004_v59, 0.0  ;;  %v3548_v11 = vmul.f32 %v5549_v54, %v11928_v46  ;;  %v1338_v59 = vpop.permute.xlu1 %1337 }
 0x181   : > { %v2619_v32 = vadd.f32 %v2618_v18, %v2617_v40  ;;  %v3159_v8 = vadd.f32 %v3158_v56, %v3157_v14  ;;  %v3549_v62 = vmul.f32 %v5550_v63, %v11929_v33  ;;  %v3701_v36 = vsel %vm2572_vm2, %v3546_v27, 0.0 }
 0x182   : > { %v3162_v23 = vsel %vm2578_vm3, %v3005_v42, 0.0  ;;  %v3702_v7 = vsel %vm2572_vm2, %v3547_v3, 0.0  ;;  %v4090_v30 = vmul.f32 %v5547_v55, %v1432_v38  ;;  %v4091_v0 = vmul.f32 %v5548_v29, %v1433_v34 }
 0x183   : > { %v2620_v21 = vrot.slane %v2619_v32, 4  ;;  %v3161_v53 = vadd.f32 %v3160_v41, %v3159_v8  ;;  %v3703_v10 = vadd.f32 %v3702_v7, %v3701_v36  ;;  %v3704_v5 = vsel %vm2572_vm2, %v3548_v11, 0.0 }
 0x184   : > { %v4092_v46 = vmul.f32 %v5549_v54, %v7888_v50  ;;  %v4093_v40 = vmul.f32 %v5550_v63, %v1435_v57  ;;  %v4245_v56 = vsel %vm2572_vm2, %v4090_v30, 0.0  ;;  %v4246_v14 = vsel %vm2572_vm2, %v4091_v0, 0.0  ;;  %v1062_v0 = vpop.permute.xlu0 %1061 }
 0x185   : > { %v7973_v27 = vadd.f32 %v2620_v21, %v2619_v32  ;;  %v3163_v42 = vadd.f32 %v3162_v23, %v3161_v53  ;;  %v3705_v18 = vadd.f32 %v3704_v5, %v3703_v10  ;;  %v4247_v3 = vadd.f32 %v4246_v14, %v4245_v56 }
 0x186   : > { %v3706_v34 = vsel %vm2578_vm3, %v3549_v62, 0.0  ;;  %v4248_v8 = vsel %vm2572_vm2, %v4092_v46, 0.0  ;;  %v7978_v38 = vsub.f32 %v6801_v22, %v1338_v59  ;;  %v7981_v11 = vsub.f32 %v7072_v45, %v1338_v59 }
 0x187   : > { %11930 = vst [vmem:[#allocation56_spill] sm:$0xff] %v7973_v27  ;;  %v3164_v57 = vrot.slane %v3163_v42, 4  ;;  %v3707_v50 = vadd.f32 %v3706_v34, %v3705_v18  ;;  %v4249_v55 = vadd.f32 %v4248_v8, %v4247_v3  ;;  %v4250_v29 = vsel %vm2578_vm3, %v4093_v40, 0.0 }
 0x188   : > { %v7985_v54 = vsub.f32 %v7280_v26, %v1338_v59  ;;  %v7988_v10 = vsub.f32 %v11776_v37, %v1338_v59  ;;  %v1976_v62 = vmul.f32 %v7978_v38, %v7978_v38  ;;  %v1977_v53 = vmul.f32 %v7981_v11, %v7981_v11 }
 0x189   : > { %v3708_v41 = vrot.slane %v3707_v50, 4  ;;  %v4251_v32 = vadd.f32 %v4250_v29, %v4249_v55  ;;  %v7997_v33 = vmul.f32 %v7932_v20, %v7932_v20  ;;  %v8005_v21 = vadd.f32 %v3164_v57, %v3163_v42  ;;  %v11936_v55 = vld [vmem:[#allocation109_spill] sm:$0xff] }
 0x18a   : > { %v1978_v36 = vmul.f32 %v7985_v54, %v7985_v54  ;;  %v1979_v23 = vmul.f32 %v7988_v10, %v7988_v10  ;;  %v2104_v7 = vadd.f32 %v1976_v62, %v7540_v9  ;;  %v2105_v30 = vadd.f32 %v1977_v53, %v7543_v13  ;;  %v11937_v62 = vld [vmem:[#allocation110_spill] sm:$0xff] }
 0x18b   : > { %11931 = vst [vmem:[#allocation57_spill] sm:$0xff] %v7997_v33  ;;  %11932 = vst [vmem:[#allocation66_spill] sm:$0xff] %v8005_v21  ;;  %v8007_v5 = vadd.f32 %v3708_v41, %v3707_v50  ;;  %v4252_v59 = vrot.slane %v4251_v32, 4  ;;  %v8010_v46 = vsub.f32 %v11881_v61, %v1062_v0  ;;  %v8017_v42 = vsub.f32 %v11883_v16, %v1062_v0 }
 0x18c   : > { %v2106_v40 = vadd.f32 %v1978_v36, %v7549_v31  ;;  %v2107_v56 = vadd.f32 %v1979_v23, %v7567_v1  ;;  %vm2232_vm11 = vcmp.le.f32.partialorder %v2104_v7, 4.84  ;;  %vm2233_vm12 = vcmp.le.f32.partialorder %v2105_v30, 4.84  ;;  %v11938_v36 = vld [vmem:[#allocation111_spill] sm:$0xff] }
 0x18d   : > { %11933 = vst [vmem:[#allocation204_spill] sm:$0xff] %v8007_v5  ;;  %11934 = vst [vmem:[#allocation205_spill] sm:$0xff] %v8010_v46  ;;  %v4253_v14 = vadd.f32 %v4252_v59, %v4251_v32  ;;  %v5579_v9 = vsel %vm2232_vm11, 1.0, %v11767_v49  ;;  %v5580_v13 = vsel %vm2233_vm12, 1.0, %v11767_v49  ;;  %v11939_v7 = vld [vmem:[#allocation119_spill] sm:$0xff]  ;;  %v11979_v5 = vld [vmem:[#allocation80_spill] sm:$0xff] }
 0x18e   : > { %11935 = vst [vmem:[#allocation206_spill] sm:$0xff] %v8017_v42  ;;  %vm2234_vm13 = vcmp.le.f32.partialorder %v2106_v40, 4.84  ;;  %vm2235_vm14 = vcmp.le.f32.partialorder %v2107_v56, 4.84  ;;  %v2717_v18 = vsel %vm2572_vm2, %v5579_v9, 0.0  ;;  %v3034_v29 = vmul.f32 %v5579_v9, %v11936_v55 }
 0x18f   : > { %v2718_v3 = vsel %vm2572_vm2, %v5580_v13, 0.0  ;;  %v4254_v34 = vrot.slane %v4253_v14, 2  ;;  %v5581_v31 = vsel %vm2234_vm13, 1.0, %v11767_v49  ;;  %v5582_v1 = vsel %vm2235_vm14, 1.0, %v11767_v49  ;;  %v11940_v56 = vld [vmem:[#allocation45_spill] sm:$0xff] }
 0x190   : > { %v2719_v8 = vadd.f32 %v2718_v3, %v2717_v18  ;;  %v2720_v57 = vsel %vm2572_vm2, %v5581_v31, 0.0  ;;  %v2722_v50 = vsel %vm2578_vm3, %v5582_v1, 0.0  ;;  %v3035_v53 = vmul.f32 %v5580_v13, %v11937_v62  ;;  %v11941_v3 = vld [vmem:[#allocation13_spill] sm:$0xff] }
 0x191   : > { %v4255_v41 = vadd.f32 %v4254_v34, %v4253_v14  ;;  %v3036_v23 = vmul.f32 %v5581_v31, %v11938_v36  ;;  %v3037_v30 = vmul.f32 %v5582_v1, %v11939_v7  ;;  %v3261_v59 = vsel %vm2572_vm2, %v3034_v29, 0.0  ;;  %v11943_v34 = vld [vmem:[#allocation118_spill] sm:$0xff] }
 0x192   : > { %v2721_v32 = vadd.f32 %v2720_v57, %v2719_v8  ;;  %v3262_v40 = vsel %vm2572_vm2, %v3035_v53, 0.0  ;;  %v3578_v18 = vmul.f32 %v5579_v9, %v11940_v56  ;;  %v3579_v63 = vmul.f32 %v5580_v13, %v11941_v3  ;;  %v11944_v57 = vld [vmem:[#allocation120_spill] sm:$0xff] }
 0x193   : > { %v4256_v21 = vrot.slane %v4255_v41, 1  ;;  %v3263_v27 = vadd.f32 %v3262_v40, %v3261_v59  ;;  %v8034_v55 = vsub.f32 %v11888_v4, %v1062_v0  ;;  %v3264_v14 = vsel %vm2572_vm2, %v3036_v23, 0.0 }
 0x194   : > { %v2723_v20 = vadd.f32 %v2722_v50, %v2721_v32  ;;  %v3580_v8 = vmul.f32 %v5581_v31, %v11943_v34  ;;  %v3581_v62 = vmul.f32 %v5582_v1, %v11944_v57  ;;  %v3805_v29 = vsel %vm2572_vm2, %v3578_v18, 0.0 }
 0x195   : > { %11942 = vst [vmem:[#allocation207_spill] sm:$0xff] %v8034_v55  ;;  %v3265_v53 = vadd.f32 %v3264_v14, %v3263_v27  ;;  %v3806_v7 = vsel %vm2572_vm2, %v3579_v63, 0.0  ;;  %v8042_v56 = vsub.f32 %v11890_v17, %v1062_v0  ;;  %v8044_v50 = vadd.f32 %v4256_v21, %v4255_v41  ;;  %v1010_v41 = vpop.permute.xlu1 %1009 }
 0x196   : > { %v2724_v36 = vrot.slane %v2723_v20, 4  ;;  %v3266_v32 = vsel %vm2578_vm3, %v3037_v30, 0.0  ;;  %v3807_v59 = vadd.f32 %v3806_v7, %v3805_v29  ;;  %v4122_v23 = vmul.f32 %v5579_v9, %v7978_v38  ;;  %v11957_v7 = vld [vmem:[#allocation105_spill] sm:$0xff] }
 0x197   : > { %11945 = vst [vmem:[#allocation109_spill] sm:$0xff] %v8042_v56  ;;  %11946 = vst [vmem:[#allocation110_spill] sm:$0xff] %v8044_v50  ;;  %v3267_v40 = vadd.f32 %v3266_v32, %v3265_v53  ;;  %v3808_v3 = vsel %vm2572_vm2, %v3580_v8, 0.0  ;;  %v4123_v34 = vmul.f32 %v5580_v13, %v7981_v11  ;;  %v4124_v18 = vmul.f32 %v5581_v31, %v7985_v54  ;;  %v1098_v31 = vpop.permute.xlu0 %1097  ;;  %v11952_v8 = vld [vmem:[#allocation90_spill] sm:$0xff] }
 0x198   : > { %v3809_v27 = vadd.f32 %v3808_v3, %v3807_v59  ;;  %v3810_v63 = vsel %vm2578_vm3, %v3581_v62, 0.0  ;;  %v4125_v0 = vmul.f32 %v5582_v1, %v7988_v10  ;;  %v4349_v21 = vsel %vm2572_vm2, %v4122_v23, 0.0  ;;  %v11954_v62 = vld [vmem:[#allocation143_spill] sm:$0xff]  ;;  %v11959_v59 = vld [vmem:[#allocation193_spill] sm:$0xff] }
 0x199   : > { %v8054_v14 = vadd.f32 %v2724_v36, %v2723_v20  ;;  %v3268_v30 = vrot.slane %v3267_v40, 4  ;;  %v4350_v38 = vsel %vm2572_vm2, %v4123_v34, 0.0  ;;  %v8059_v9 = vmul.f32 %v8010_v46, %v8010_v46 }
 0x19a   : > { %v8061_v11 = vadd.f32 %v3810_v63, %v3809_v27  ;;  %v4351_v54 = vadd.f32 %v4350_v38, %v4349_v21  ;;  %v4352_v13 = vsel %vm2572_vm2, %v4124_v18, 0.0  ;;  %v8066_v10 = vmul.f32 %v8017_v42, %v8017_v42  ;;  %v11965_v38 = vld [vmem:[#allocation93_spill] sm:$0xff] }
 0x19b   : > { %11947 = vst [vmem:[#allocation111_spill] sm:$0xff] %v8054_v14  ;;  %11948 = vst [vmem:[#allocation119_spill] sm:$0xff] %v8059_v9  ;;  %v4354_v20 = vsel %vm2578_vm3, %v4125_v0, 0.0  ;;  %v8071_v1 = vmul.f32 %v8034_v55, %v8034_v55  ;;  %v8074_v57 = vsub.f32 %v11952_v8, %v1010_v41  ;;  %v8077_v29 = vsub.f32 %v11954_v62, %v1010_v41  ;;  %v11969_v55 = vld [vmem:[#allocation95_spill] sm:$0xff] }
 0x19c   : > { %11949 = vst [vmem:[#allocation45_spill] sm:$0xff] %v8061_v11  ;;  %11950 = vst [vmem:[#allocation13_spill] sm:$0xff] %v8066_v10  ;;  %v8079_v36 = vadd.f32 %v3268_v30, %v3267_v40  ;;  %v4353_v53 = vadd.f32 %v4352_v13, %v4351_v54  ;;  %v8082_v32 = vsub.f32 %v11957_v7, %v1010_v41  ;;  %v11967_v13 = vld [vmem:[#allocation94_spill] sm:$0xff] }
 0x19d   : > { %11951 = vst [vmem:[#allocation118_spill] sm:$0xff] %v8071_v1  ;;  %11953 = vst [vmem:[#allocation120_spill] sm:$0xff] %v8074_v57  ;;  %v8085_v23 = vsub.f32 %v11959_v59, %v1010_v41  ;;  %v1700_v3 = vmul.f32 %v8074_v57, %v8074_v57  ;;  %v1701_v34 = vmul.f32 %v8077_v29, %v8077_v29  ;;  %v11982_v1 = vld [vmem:[#allocation131_spill] sm:$0xff] }
 0x19e   : > { %11955 = vst [vmem:[#allocation90_spill] sm:$0xff] %v8077_v29  ;;  %11956 = vst [vmem:[#allocation143_spill] sm:$0xff] %v8079_v36  ;;  %v8092_v18 = vsub.f32 %v11896_v6, %v1098_v31  ;;  %v8095_v27 = vsub.f32 %v11898_v44, %v1098_v31  ;;  %v4355_v40 = vadd.f32 %v4354_v20, %v4353_v53  ;;  %v1310_v53 = vpop.permute.xlu1 %1309 }
 0x19f   : > { %11958 = vst [vmem:[#allocation105_spill] sm:$0xff] %v8082_v32  ;;  %11960 = vst [vmem:[#allocation193_spill] sm:$0xff] %v8085_v23  ;;  %v1702_v63 = vmul.f32 %v8082_v32, %v8082_v32  ;;  %v1703_v0 = vmul.f32 %v8085_v23, %v8085_v23  ;;  %v8102_v21 = vsub.f32 %v11900_v2, %v1098_v31 }
 0x1a0   : > { %11961 = vst [vmem:[#allocation239_spill] sm:$0xff] %v8092_v18  ;;  %11962 = vst [vmem:[#allocation240_spill] sm:$0xff] %v8095_v27  ;;  %v8107_v30 = vmul.f32 %v8042_v56, %v8042_v56  ;;  %v8110_v54 = vadd.f32 %v1700_v3, %v11965_v38  ;;  %v8113_v20 = vadd.f32 %v1701_v34, %v11967_v13  ;;  %v4356_v36 = vrot.slane %v4355_v40, 4  ;;  %v11973_v56 = vld [vmem:[#allocation97_spill] sm:$0xff] }
 0x1a1   : > { %11963 = vst [vmem:[#allocation241_spill] sm:$0xff] %v8102_v21  ;;  %v8116_v42 = vadd.f32 %v1702_v63, %v11969_v55  ;;  %v8119_v46 = vsub.f32 %v11902_v48, %v1098_v31  ;;  %v8123_v41 = vmul.f32 %v8092_v18, %v8092_v18  ;;  %v8126_v50 = vadd.f32 %v1703_v0, %v11973_v56  ;;  %v11977_v55 = vld [vmem:[#allocation79_spill] sm:$0xff]  ;;  %v11978_v63 = vld [vmem:[#allocation14_spill] sm:$0xff]  ;;  %v1102_v31 = vpop.permute.xlu0 %1101 }
 0x1a2   : > { %11964 = vst [vmem:[#allocation242_spill] sm:$0xff] %v8107_v30  ;;  %11966 = vst [vmem:[#allocation93_spill] sm:$0xff] %v8110_v54  ;;  %v8130_v3 = vmul.f32 %v8095_v27, %v8095_v27  ;;  %v8134_v34 = vmul.f32 %v8102_v21, %v8102_v21  ;;  %v1820_v38 = vadd.f32 %v11978_v63, %v11977_v55  ;;  %v11980_v30 = vld [vmem:[#allocation121_spill] sm:$0xff]  ;;  %v1342_v23 = vpop.permute.xlu1 %1341 }
 0x1a3   : > { %11968 = vst [vmem:[#allocation94_spill] sm:$0xff] %v8113_v20  ;;  %11970 = vst [vmem:[#allocation95_spill] sm:$0xff] %v8116_v42  ;;  %v4357_v13 = vadd.f32 %v4356_v36, %v4355_v40  ;;  %v1821_v18 = vadd.f32 %v11980_v30, %v11979_v5  ;;  %v1436_v0 = vsub.f32 %v6798_v51, %v1310_v53  ;;  %v11987_v40 = vld [vmem:[#allocation10_spill] sm:$0xff] }
 0x1a4   : > { %11971 = vst [vmem:[#allocation243_spill] sm:$0xff] %v8119_v46  ;;  %11972 = vst [vmem:[#allocation244_spill] sm:$0xff] %v8123_v41  ;;  %v11981_v41 = vld [vmem:[#allocation81_spill] sm:$0xff]  ;;  %v1437_v27 = vsub.f32 %v7069_v25, %v1310_v53  ;;  %v1439_v21 = vsub.f32 %v11817_v47, %v1310_v53  ;;  %v8150_v36 = vsub.f32 %v11898_v44, %v1102_v31 }
 0x1a5   : > { %11974 = vst [vmem:[#allocation97_spill] sm:$0xff] %v8126_v50  ;;  %11975 = vst [vmem:[#allocation245_spill] sm:$0xff] %v8130_v3  ;;  %v1822_v56 = vadd.f32 %v11982_v1, %v11981_v41  ;;  %v1438_v3 = vsub.f32 %v7277_v39, %v1310_v53  ;;  %v4358_v55 = vrot.slane %v4357_v13, 2  ;;  %v1948_v63 = vmul.f32 %v1436_v0, %v1436_v0  ;;  %v11986_v1 = vld [vmem:[#allocation82_spill] sm:$0xff] }
 0x1a6   : > { %11976 = vst [vmem:[#allocation246_spill] sm:$0xff] %v8134_v34  ;;  %v8147_v34 = vsub.f32 %v11896_v6, %v1102_v31  ;;  %11984 = vst [vmem:[#allocation14_spill] sm:$0xff] %v8150_v36  ;;  %v8153_v5 = vsub.f32 %v11900_v2, %v1102_v31  ;;  %v1823_v41 = vadd.f32 %v11987_v40, %v11986_v1 }
 0x1a7   : > { %v1949_v30 = vmul.f32 %v1437_v27, %v1437_v27  ;;  %v1950_v14 = vmul.f32 %v1438_v3, %v1438_v3  ;;  %v1951_v10 = vmul.f32 %v1439_v21, %v1439_v21  ;;  %v8157_v9 = vadd.f32 %v4358_v55, %v4357_v13 }
 0x1a8   : > { %11983 = vst [vmem:[#allocation79_spill] sm:$0xff] %v8147_v34  ;;  %11985 = vst [vmem:[#allocation80_spill] sm:$0xff] %v8153_v5  ;;  %v8161_v53 = vmul.f32 %v8119_v46, %v8119_v46  ;;  %v2076_v11 = vadd.f32 %v1948_v63, %v1820_v38  ;;  %v8164_v33 = vsub.f32 %v11902_v48, %v1102_v31 }
 0x1a9   : > { %11988 = vst [vmem:[#allocation121_spill] sm:$0xff] %v8157_v9  ;;  %v2077_v32 = vadd.f32 %v1949_v30, %v1821_v18  ;;  %v2078_v29 = vadd.f32 %v1950_v14, %v1822_v56  ;;  %v2079_v57 = vadd.f32 %v1951_v10, %v1823_v41  ;;  %v8168_v1 = vmul.f32 %v8147_v34, %v8147_v34  ;;  %v11995_v30 = vld [vmem:[#allocation32_spill] sm:$0xff]  ;;  %v11997_v34 = vld [vmem:[#allocation34_spill] sm:$0xff]  ;;  %v12000_v9 = vld [vmem:[#allocation49_spill] sm:$0xff] }
 0x1aa   : > { %11989 = vst [vmem:[#allocation81_spill] sm:$0xff] %v8161_v53  ;;  %11990 = vst [vmem:[#allocation131_spill] sm:$0xff] %v8164_v33  ;;  %vm2204_vm15 = vcmp.le.f32.partialorder %v2076_v11, 4.84  ;;  %v8173_v13 = vmul.f32 %v8150_v36, %v8150_v36  ;;  %v8177_v38 = vmul.f32 %v8153_v5, %v8153_v5  ;;  %v8180_v14 = vsub.f32 %v6801_v22, %v1342_v23  ;;  %v11996_v5 = vld [vmem:[#allocation33_spill] sm:$0xff] }
 0x1ab   : > { %11991 = vst [vmem:[#allocation82_spill] sm:$0xff] %v8168_v1  ;;  %vm2205_vm0 = vcmp.le.f32.partialorder %v2077_v32, 4.84  ;;  %vm2206_vm4 = vcmp.le.f32.partialorder %v2078_v29, 4.84  ;;  %v5551_v10 = vsel %vm2204_vm15, 1.0, %v11767_v49  ;;  %v8190_v29 = vsub.f32 %v7072_v45, %v1342_v23 }
 0x1ac   : > { %11992 = vst [vmem:[#allocation10_spill] sm:$0xff] %v8173_v13  ;;  %11993 = vst [vmem:[#allocation247_spill] sm:$0xff] %v8177_v38  ;;  %vm2207_vm5 = vcmp.le.f32.partialorder %v2079_v57, 4.84  ;;  %v5552_v18 = vsel %vm2205_vm0, 1.0, %v11767_v49  ;;  %v5553_v11 = vsel %vm2206_vm4, 1.0, %v11767_v49 }
 0x1ad   : > { %v5554_v31 = vsel %vm2207_vm5, 1.0, %v11767_v49  ;;  %v2626_v56 = vsel %vm2572_vm2, %v5551_v10, 0.0  ;;  %v2627_v55 = vsel %vm2572_vm2, %v5552_v18, 0.0  ;;  %v2629_v63 = vsel %vm2572_vm2, %v5553_v11, 0.0  ;;  %v11994_v32 = vld [vmem:[#allocation31_spill] sm:$0xff]  ;;  %v11998_v38 = vld [vmem:[#allocation46_spill] sm:$0xff] }
 0x1ae   : > { %v2628_v57 = vadd.f32 %v2627_v55, %v2626_v56  ;;  %v3006_v41 = vmul.f32 %v5551_v10, %v11994_v32  ;;  %v3007_v40 = vmul.f32 %v5552_v18, %v11995_v30  ;;  %v3008_v36 = vmul.f32 %v5553_v11, %v11996_v5  ;;  %v11999_v1 = vld [vmem:[#allocation48_spill] sm:$0xff] }
 0x1af   : > { %v3009_v46 = vmul.f32 %v5554_v31, %v11997_v34  ;;  %v3550_v13 = vmul.f32 %v5551_v10, %v11998_v38  ;;  %v3551_v53 = vmul.f32 %v5552_v18, %v11999_v1  ;;  %v3552_v50 = vmul.f32 %v5553_v11, %v12000_v9  ;;  %v12001_v30 = vld [vmem:[#allocation136_spill] sm:$0xff] }
 0x1b0   : > { %v2630_v42 = vadd.f32 %v2629_v63, %v2628_v57  ;;  %v2631_v20 = vsel %vm2578_vm3, %v5554_v31, 0.0  ;;  %v3170_v54 = vsel %vm2572_vm2, %v3006_v41, 0.0  ;;  %v3171_v56 = vsel %vm2572_vm2, %v3007_v40, 0.0 }
 0x1b1   : > { %v3172_v55 = vadd.f32 %v3171_v56, %v3170_v54  ;;  %v3173_v32 = vsel %vm2572_vm2, %v3008_v36, 0.0  ;;  %v3553_v5 = vmul.f32 %v5554_v31, %v12001_v30  ;;  %v3714_v34 = vsel %vm2572_vm2, %v3550_v13, 0.0 }
 0x1b2   : > { %v2632_v17 = vadd.f32 %v2631_v20, %v2630_v42  ;;  %v3175_v38 = vsel %vm2578_vm3, %v3009_v46, 0.0  ;;  %v3715_v1 = vsel %vm2572_vm2, %v3551_v53, 0.0  ;;  %v4094_v9 = vmul.f32 %v5551_v10, %v1436_v0 }
 0x1b3   : > { %v3174_v63 = vadd.f32 %v3173_v32, %v3172_v55  ;;  %v3716_v57 = vadd.f32 %v3715_v1, %v3714_v34  ;;  %v3717_v4 = vsel %vm2572_vm2, %v3552_v50, 0.0  ;;  %v4095_v41 = vmul.f32 %v5552_v18, %v1437_v27  ;;  %v1106_v18 = vpop.permute.xlu0 %1105  ;;  %v12006_v55 = vld [vmem:[#allocation132_spill] sm:$0xff] }
 0x1b4   : > { %v2633_v16 = vrot.slane %v2632_v17, 4  ;;  %v4096_v40 = vmul.f32 %v5553_v11, %v1438_v3  ;;  %v4097_v54 = vmul.f32 %v5554_v31, %v1439_v21  ;;  %v4258_v36 = vsel %vm2572_vm2, %v4094_v9, 0.0  ;;  %v12009_v9 = vld [vmem:[#allocation192_spill] sm:$0xff] }
 0x1b5   : > { %v8209_v56 = vadd.f32 %v3175_v38, %v3174_v63  ;;  %v3718_v30 = vadd.f32 %v3717_v4, %v3716_v57  ;;  %v4259_v42 = vsel %vm2572_vm2, %v4095_v41, 0.0  ;;  %v8213_v46 = vsub.f32 %v7280_v26, %v1342_v23  ;;  %v12008_v38 = vld [vmem:[#allocation127_spill] sm:$0xff]  ;;  %v12010_v57 = vld [vmem:[#allocation16_spill] sm:$0xff] }
 0x1b6   : > { %v8215_v20 = vadd.f32 %v2633_v16, %v2632_v17  ;;  %v3719_v0 = vsel %vm2578_vm3, %v3553_v5, 0.0  ;;  %v4260_v53 = vadd.f32 %v4259_v42, %v4258_v36  ;;  %v8220_v50 = vmul.f32 %v8164_v33, %v8164_v33 }
 0x1b7   : > { %12002 = vst [vmem:[#allocation31_spill] sm:$0xff] %v8209_v56  ;;  %v8222_v27 = vadd.f32 %v3719_v0, %v3718_v30  ;;  %v4261_v21 = vsel %vm2572_vm2, %v4096_v40, 0.0  ;;  %v1471_v4 = vsub.f32 %v11776_v37, %v1342_v23  ;;  %v1980_v3 = vmul.f32 %v8180_v14, %v8180_v14  ;;  %v12019_v56 = vld [vmem:[#allocation138_spill] sm:$0xff] }
 0x1b8   : > { %12003 = vst [vmem:[#allocation32_spill] sm:$0xff] %v8215_v20  ;;  %12004 = vst [vmem:[#allocation33_spill] sm:$0xff] %v8220_v50  ;;  %v4262_v13 = vadd.f32 %v4261_v21, %v4260_v53  ;;  %v4263_v16 = vsel %vm2578_vm3, %v4097_v54, 0.0  ;;  %v1981_v17 = vmul.f32 %v8190_v29, %v8190_v29  ;;  %v1982_v10 = vmul.f32 %v8213_v46, %v8213_v46 }
 0x1b9   : > { %12005 = vst [vmem:[#allocation34_spill] sm:$0xff] %v8222_v27  ;;  %v1983_v31 = vmul.f32 %v1471_v4, %v1471_v4  ;;  %v2108_v32 = vadd.f32 %v1980_v3, %v12006_v55  ;;  %v8236_v23 = vsub.f32 %v11896_v6, %v1106_v18  ;;  %v8243_v40 = vsub.f32 %v11898_v44, %v1106_v18 }
 0x1ba   : > { %v4264_v34 = vadd.f32 %v4263_v16, %v4262_v13  ;;  %v2109_v1 = vadd.f32 %v1981_v17, %v12008_v38  ;;  %v2110_v63 = vadd.f32 %v1982_v10, %v12009_v9  ;;  %v8246_v54 = vsub.f32 %v11900_v2, %v1106_v18  ;;  %v12016_v9 = vld [vmem:[#allocation77_spill] sm:$0xff] }
 0x1bb   : > { %12007 = vst [vmem:[#allocation46_spill] sm:$0xff] %v8236_v23  ;;  %v2111_v41 = vadd.f32 %v1983_v31, %v12010_v57  ;;  %vm2236_vm6 = vcmp.le.f32.partialorder %v2108_v32, 4.84  ;;  %12011 = vst [vmem:[#allocation48_spill] sm:$0xff] %v8243_v40  ;;  %v8255_v16 = vsub.f32 %v11902_v48, %v1106_v18  ;;  %v12014_v31 = vld [vmem:[#allocation75_spill] sm:$0xff]  ;;  %v12015_v32 = vld [vmem:[#allocation76_spill] sm:$0xff] }
 0x1bc   : > { %12012 = vst [vmem:[#allocation49_spill] sm:$0xff] %v8246_v54  ;;  %v4265_v36 = vrot.slane %v4264_v34, 4  ;;  %vm2237_vm7 = vcmp.le.f32.partialorder %v2109_v1, 4.84  ;;  %vm2238_vm8 = vcmp.le.f32.partialorder %v2110_v63, 4.84 }
 0x1bd   : > { %v5583_v30 = vsel %vm2236_vm6, 1.0, %v11767_v49  ;;  %vm2239_vm9 = vcmp.le.f32.partialorder %v2111_v41, 4.84  ;;  %v5584_v42 = vsel %vm2237_vm7, 1.0, %v11767_v49  ;;  %v5585_v0 = vsel %vm2238_vm8, 1.0, %v11767_v49  ;;  %12013 = vst [vmem:[#allocation136_spill] sm:$0xff] %v8255_v16 }
 0x1be   : > { %v2730_v53 = vsel %vm2572_vm2, %v5583_v30, 0.0  ;;  %v4266_v21 = vadd.f32 %v4265_v36, %v4264_v34  ;;  %v5586_v3 = vsel %vm2239_vm9, 1.0, %v11767_v49  ;;  %v2731_v13 = vsel %vm2572_vm2, %v5584_v42, 0.0  ;;  %v12017_v57 = vld [vmem:[#allocation78_spill] sm:$0xff]  ;;  %v12018_v34 = vld [vmem:[#allocation137_spill] sm:$0xff] }
 0x1bf   : > { %v2732_v17 = vadd.f32 %v2731_v13, %v2730_v53  ;;  %v2733_v10 = vsel %vm2572_vm2, %v5585_v0, 0.0  ;;  %v3038_v55 = vmul.f32 %v5583_v30, %v12014_v31  ;;  %v3039_v38 = vmul.f32 %v5584_v42, %v12015_v32 }
 0x1c0   : > { %v4267_v1 = vrot.slane %v4266_v21, 2  ;;  %v3040_v63 = vmul.f32 %v5585_v0, %v12016_v9  ;;  %v3041_v41 = vmul.f32 %v5586_v3, %v12017_v57  ;;  %v3582_v36 = vmul.f32 %v5583_v30, %v12018_v34  ;;  %v12022_v57 = vld [vmem:[#allocation122_spill] sm:$0xff] }
 0x1c1   : > { %v2734_v11 = vadd.f32 %v2733_v10, %v2732_v17  ;;  %v3274_v5 = vsel %vm2572_vm2, %v3038_v55, 0.0  ;;  %v3275_v18 = vsel %vm2572_vm2, %v3039_v38, 0.0  ;;  %v3583_v53 = vmul.f32 %v5584_v42, %v12019_v56  ;;  %v12023_v17 = vld [vmem:[#allocation123_spill] sm:$0xff] }
 0x1c2   : > { %v2735_v13 = vsel %vm2578_vm3, %v5586_v3, 0.0  ;;  %v3276_v33 = vadd.f32 %v3275_v18, %v3274_v5  ;;  %v3277_v31 = vsel %vm2572_vm2, %v3040_v63, 0.0  ;;  %v8270_v32 = vmul.f32 %v8236_v23, %v8236_v23 }
 0x1c3   : > { %v8272_v9 = vadd.f32 %v2735_v13, %v2734_v11  ;;  %v3584_v34 = vmul.f32 %v5585_v0, %v12022_v57  ;;  %v3585_v10 = vmul.f32 %v5586_v3, %v12023_v17  ;;  %v3818_v55 = vsel %vm2572_vm2, %v3582_v36, 0.0  ;;  %v1014_v36 = vpop.permute.xlu1 %1013 }
 0x1c4   : > { %12020 = vst [vmem:[#allocation132_spill] sm:$0xff] %v8270_v32  ;;  %v3278_v38 = vadd.f32 %v3277_v31, %v3276_v33  ;;  %v3819_v56 = vsel %vm2572_vm2, %v3583_v53, 0.0  ;;  %v4126_v50 = vmul.f32 %v5583_v30, %v8180_v14  ;;  %v4127_v5 = vmul.f32 %v5584_v42, %v8190_v29  ;;  %v1110_v42 = vpop.permute.xlu0 %1109  ;;  %v12051_v53 = vld [vmem:[#allocation230_spill] sm:$0xff]  ;;  %v12060_v32 = vld [vmem:[#allocation164_spill] sm:$0xff] }
 0x1c5   : > { %12021 = vst [vmem:[#allocation127_spill] sm:$0xff] %v8272_v9  ;;  %v8280_v63 = vadd.f32 %v4267_v1, %v4266_v21  ;;  %v3279_v18 = vsel %vm2578_vm3, %v3041_v41, 0.0  ;;  %v3820_v23 = vadd.f32 %v3819_v56, %v3818_v55  ;;  %v3821_v11 = vsel %vm2572_vm2, %v3584_v34, 0.0 }
 0x1c6   : > { %v8284_v13 = vadd.f32 %v3279_v18, %v3278_v38  ;;  %v4128_v57 = vmul.f32 %v5585_v0, %v8213_v46  ;;  %v4129_v17 = vmul.f32 %v5586_v3, %v1471_v4  ;;  %v4362_v33 = vsel %vm2572_vm2, %v4126_v50, 0.0 }
 0x1c7   : > { %12024 = vst [vmem:[#allocation192_spill] sm:$0xff] %v8280_v63  ;;  %v3822_v14 = vadd.f32 %v3821_v11, %v3820_v23  ;;  %v3823_v29 = vsel %vm2578_vm3, %v3585_v10, 0.0  ;;  %v4363_v30 = vsel %vm2572_vm2, %v4127_v5, 0.0  ;;  %v8294_v41 = vmul.f32 %v8243_v40, %v8243_v40  ;;  %v1046_v18 = vpop.permute.xlu1 %1045  ;;  %v12036_v11 = vld [vmem:[#allocation98_spill] sm:$0xff]  ;;  %v12052_v40 = vld [vmem:[#allocation179_spill] sm:$0xff] }
 0x1c8   : > { %12025 = vst [vmem:[#allocation16_spill] sm:$0xff] %v8284_v13  ;;  %v4364_v1 = vadd.f32 %v4363_v30, %v4362_v33  ;;  %v8298_v46 = vmul.f32 %v8246_v54, %v8246_v54  ;;  %v4365_v4 = vsel %vm2572_vm2, %v4128_v57, 0.0  ;;  %v8304_v23 = vsub.f32 %v11952_v8, %v1014_v36  ;;  %v12061_v63 = vld [vmem:[#allocation54_spill] sm:$0xff] }
 0x1c9   : > { %12026 = vst [vmem:[#allocation75_spill] sm:$0xff] %v8294_v41  ;;  %v8300_v50 = vadd.f32 %v3823_v29, %v3822_v14  ;;  %v8307_v0 = vsub.f32 %v11954_v62, %v1014_v36  ;;  %v8310_v31 = vsub.f32 %v11957_v7, %v1014_v36  ;;  %v8313_v34 = vsub.f32 %v11959_v59, %v1014_v36  ;;  %v1294_v29 = vpop.permute.xlu0 %1293  ;;  %v12059_v41 = vld [vmem:[#allocation53_spill] sm:$0xff] }
 0x1ca   : > { %12027 = vst [vmem:[#allocation76_spill] sm:$0xff] %v8298_v46  ;;  %12029 = vst [vmem:[#allocation78_spill] sm:$0xff] %v8304_v23  ;;  %v4366_v3 = vadd.f32 %v4365_v4, %v4364_v1  ;;  %v8316_v10 = vsub.f32 %v11896_v6, %v1110_v42  ;;  %v4367_v55 = vsel %vm2578_vm3, %v4129_v17, 0.0  ;;  %v1704_v38 = vmul.f32 %v8304_v23, %v8304_v23  ;;  %v12038_v17 = vld [vmem:[#allocation99_spill] sm:$0xff]  ;;  %v12042_v1 = vld [vmem:[#allocation100_spill] sm:$0xff] }
 0x1cb   : > { %12028 = vst [vmem:[#allocation77_spill] sm:$0xff] %v8300_v50  ;;  %12030 = vst [vmem:[#allocation137_spill] sm:$0xff] %v8307_v0  ;;  %v1705_v8 = vmul.f32 %v8307_v0, %v8307_v0  ;;  %v8324_v62 = vsub.f32 %v11898_v44, %v1110_v42  ;;  %v8328_v7 = vmul.f32 %v8255_v16, %v8255_v16  ;;  %v12058_v46 = vld [vmem:[#allocation163_spill] sm:$0xff]  ;;  %v12065_v23 = vld [vmem:[#allocation26_spill] sm:$0xff] }
 0x1cc   : > { %12031 = vst [vmem:[#allocation138_spill] sm:$0xff] %v8310_v31  ;;  %12032 = vst [vmem:[#allocation122_spill] sm:$0xff] %v8313_v34  ;;  %v4368_v56 = vadd.f32 %v4367_v55, %v4366_v3  ;;  %v1706_v59 = vmul.f32 %v8310_v31, %v8310_v31  ;;  %v1707_v5 = vmul.f32 %v8313_v34, %v8313_v34  ;;  %v12064_v31 = vld [vmem:[#allocation25_spill] sm:$0xff] }
 0x1cd   : > { %12033 = vst [vmem:[#allocation123_spill] sm:$0xff] %v8316_v10  ;;  %12034 = vst [vmem:[#allocation248_spill] sm:$0xff] %v8324_v62  ;;  %v8335_v57 = vadd.f32 %v1704_v38, %v12036_v11  ;;  %v8338_v33 = vadd.f32 %v1705_v8, %v12038_v17  ;;  %v8341_v36 = vsub.f32 %v11900_v2, %v1110_v42  ;;  %v12046_v38 = vld [vmem:[#allocation108_spill] sm:$0xff] }
 0x1ce   : > { %12035 = vst [vmem:[#allocation249_spill] sm:$0xff] %v8328_v7  ;;  %v8344_v14 = vsub.f32 %v11902_v48, %v1110_v42  ;;  %v4369_v30 = vrot.slane %v4368_v56, 4  ;;  %v8347_v4 = vadd.f32 %v1706_v59, %v12042_v1  ;;  %v8351_v3 = vmul.f32 %v8316_v10, %v8316_v10  ;;  %v12057_v7 = vld [vmem:[#allocation52_spill] sm:$0xff] }
 0x1cf   : > { %12037 = vst [vmem:[#allocation98_spill] sm:$0xff] %v8335_v57  ;;  %12039 = vst [vmem:[#allocation99_spill] sm:$0xff] %v8338_v33  ;;  %v8355_v55 = vmul.f32 %v8324_v62, %v8324_v62  ;;  %v8358_v8 = vadd.f32 %v1707_v5, %v12046_v38  ;;  %v8361_v11 = vsub.f32 %v6673_v52, %v1046_v18  ;;  %v12067_v57 = vld [vmem:[#allocation148_spill] sm:$0xff] }
 0x1d0   : > { %12040 = vst [vmem:[#allocation250_spill] sm:$0xff] %v8341_v36  ;;  %12041 = vst [vmem:[#allocation251_spill] sm:$0xff] %v8344_v14  ;;  %v8364_v42 = vsub.f32 %v6859_v24, %v1046_v18  ;;  %v8367_v59 = vsub.f32 %v6737_v15, %v1046_v18  ;;  %v8369_v17 = vadd.f32 %v4369_v30, %v4368_v56 }
 0x1d1   : > { %12043 = vst [vmem:[#allocation100_spill] sm:$0xff] %v8347_v4  ;;  %12044 = vst [vmem:[#allocation252_spill] sm:$0xff] %v8351_v3  ;;  %v8372_v1 = vsub.f32 %v7142_v12, %v1046_v18  ;;  %v8375_v21 = vsub.f32 %v6798_v51, %v1294_v29  ;;  %v8378_v5 = vsub.f32 %v7069_v25, %v1294_v29  ;;  %v12066_v4 = vld [vmem:[#allocation145_spill] sm:$0xff] }
 0x1d2   : > { %12045 = vst [vmem:[#allocation253_spill] sm:$0xff] %v8355_v55  ;;  %12047 = vst [vmem:[#allocation108_spill] sm:$0xff] %v8358_v8  ;;  %v1736_v52 = vmul.f32 %v8361_v11, %v8361_v11  ;;  %v1737_v24 = vmul.f32 %v8364_v42, %v8364_v42  ;;  %v1738_v15 = vmul.f32 %v8367_v59, %v8367_v59  ;;  %v12056_v55 = vld [vmem:[#allocation162_spill] sm:$0xff] }
 0x1d3   : > { %12048 = vst [vmem:[#allocation254_spill] sm:$0xff] %v8372_v1  ;;  %v8387_v56 = vsub.f32 %v7277_v39, %v1294_v29  ;;  %v8391_v18 = vmul.f32 %v8341_v36, %v8341_v36  ;;  %v8395_v30 = vmul.f32 %v8344_v14, %v8344_v14  ;;  %v8398_v38 = vsub.f32 %v11817_v47, %v1294_v29  ;;  %v12053_v36 = vld [vmem:[#allocation185_spill] sm:$0xff]  ;;  %v1346_v14 = vpop.permute.xlu1 %1345  ;;  %v12055_v29 = vld [vmem:[#allocation51_spill] sm:$0xff] }
 0x1d4   : > { %v1679_v13 = vmul.f32 %v12051_v53, %v12051_v53  ;;  %v8405_v54 = vmul.f32 %v8372_v1, %v8372_v1  ;;  %v8408_v62 = vadd.f32 %v1736_v52, %v12052_v40  ;;  %v8411_v10 = vadd.f32 %v1737_v24, %v12053_v36 }
 0x1d5   : > { %12049 = vst [vmem:[#allocation255_spill] sm:$0xff] %v8391_v18  ;;  %12050 = vst [vmem:[#allocation256_spill] sm:$0xff] %v8395_v30  ;;  %v12054_v30 = vld [vmem:[#allocation186_spill] sm:$0xff]  ;;  %v1804_v3 = vadd.f32 %v12056_v55, %v12055_v29  ;;  %v1805_v16 = vadd.f32 %v12058_v46, %v12057_v7  ;;  %v1806_v20 = vadd.f32 %v12060_v32, %v12059_v41 }
 0x1d6   : > { %v8414_v18 = vadd.f32 %v1738_v15, %v12054_v30  ;;  %v1807_v27 = vadd.f32 %v1679_v13, %v12061_v63  ;;  %v1932_v40 = vmul.f32 %v8375_v21, %v8375_v21  ;;  %v1933_v36 = vmul.f32 %v8378_v5, %v8378_v5 }
 0x1d7   : > { %v1934_v52 = vmul.f32 %v8387_v56, %v8387_v56  ;;  %v1935_v55 = vmul.f32 %v8398_v38, %v8398_v38  ;;  %v8432_v24 = vsub.f32 %v6801_v22, %v1346_v14  ;;  %v8435_v46 = vsub.f32 %v7072_v45, %v1346_v14 }
 0x1d8   : > { %v8438_v32 = vsub.f32 %v7280_v26, %v1346_v14  ;;  %v2060_v63 = vadd.f32 %v1932_v40, %v1804_v3  ;;  %v2061_v13 = vadd.f32 %v1933_v36, %v1805_v16  ;;  %v8441_v7 = vsub.f32 %v11776_v37, %v1346_v14 }
 0x1d9   : > { %v2062_v41 = vadd.f32 %v1934_v52, %v1806_v20  ;;  %v2063_v15 = vadd.f32 %v1935_v55, %v1807_v27  ;;  %v1984_v30 = vmul.f32 %v8432_v24, %v8432_v24  ;;  %v1985_v29 = vmul.f32 %v8435_v46, %v8435_v46 }
 0x1da   : > { %v1986_v9 = vmul.f32 %v8438_v32, %v8438_v32  ;;  %vm2188_vm10 = vcmp.le.f32.partialorder %v2060_v63, 4.84  ;;  %vm2189_vm11 = vcmp.le.f32.partialorder %v2061_v13, 4.84  ;;  %v1987_v16 = vmul.f32 %v8441_v7, %v8441_v7  ;;  %v12062_v13 = vld [vmem:[#allocation23_spill] sm:$0xff] }
 0x1db   : > { %vm2190_vm12 = vcmp.le.f32.partialorder %v2062_v41, 4.84  ;;  %vm2191_vm13 = vcmp.le.f32.partialorder %v2063_v15, 4.84  ;;  %v5535_v20 = vsel %vm2188_vm10, 1.0, %v11767_v49  ;;  %v5536_v27 = vsel %vm2189_vm11, 1.0, %v11767_v49 }
 0x1dc   : > { %v5537_v14 = vsel %vm2190_vm12, 1.0, %v11767_v49  ;;  %v5538_v3 = vsel %vm2191_vm13, 1.0, %v11767_v49  ;;  %v2573_v40 = vsel %vm2572_vm2, %v5535_v20, 0.0  ;;  %v2574_v36 = vsel %vm2572_vm2, %v5536_v27, 0.0  ;;  %v12063_v15 = vld [vmem:[#allocation24_spill] sm:$0xff] }
 0x1dd   : > { %v2576_v52 = vsel %vm2572_vm2, %v5537_v14, 0.0  ;;  %v2575_v55 = vadd.f32 %v2574_v36, %v2573_v40  ;;  %v2579_v63 = vsel %vm2578_vm3, %v5538_v3, 0.0  ;;  %v2990_v41 = vmul.f32 %v5535_v20, %v12062_v13  ;;  %v12068_v40 = vld [vmem:[#allocation149_spill] sm:$0xff] }
 0x1de   : > { %v2991_v34 = vmul.f32 %v5536_v27, %v12063_v15  ;;  %v2992_v0 = vmul.f32 %v5537_v14, %v12064_v31  ;;  %v2993_v8 = vmul.f32 %v5538_v3, %v12065_v23  ;;  %v3534_v33 = vmul.f32 %v5535_v20, %v12066_v4 }
 0x1df   : > { %v3535_v50 = vmul.f32 %v5536_v27, %v12067_v57  ;;  %v2577_v1 = vadd.f32 %v2576_v52, %v2575_v55  ;;  %v3118_v48 = vsel %vm2572_vm2, %v2990_v41, 0.0  ;;  %v3536_v36 = vmul.f32 %v5537_v14, %v12068_v40 }
 0x1e0   : > { %v3119_v2 = vsel %vm2572_vm2, %v2991_v34, 0.0  ;;  %v3121_v13 = vsel %vm2572_vm2, %v2992_v0, 0.0  ;;  %v3123_v15 = vsel %vm2578_vm3, %v2993_v8, 0.0  ;;  %v3537_v31 = vmul.f32 %v5538_v3, %v12051_v53 }
 0x1e1   : > { %v3120_v44 = vadd.f32 %v3119_v2, %v3118_v48  ;;  %v2580_v6 = vadd.f32 %v2579_v63, %v2577_v1  ;;  %v3662_v23 = vsel %vm2572_vm2, %v3534_v33, 0.0  ;;  %v3663_v4 = vsel %vm2572_vm2, %v3535_v50, 0.0 }
 0x1e2   : > { %v3665_v57 = vsel %vm2572_vm2, %v3536_v36, 0.0  ;;  %v3664_v55 = vadd.f32 %v3663_v4, %v3662_v23  ;;  %v3667_v34 = vsel %vm2578_vm3, %v3537_v31, 0.0  ;;  %v4078_v41 = vmul.f32 %v5535_v20, %v8375_v21 }
 0x1e3   : > { %v3122_v52 = vadd.f32 %v3121_v13, %v3120_v44  ;;  %v2581_v2 = vrot.slane %v2580_v6, 4  ;;  %v4079_v48 = vmul.f32 %v5536_v27, %v8378_v5  ;;  %v4080_v0 = vmul.f32 %v5537_v14, %v8387_v56 }
 0x1e4   : > { %v4081_v53 = vmul.f32 %v5538_v3, %v8398_v38  ;;  %v3666_v1 = vadd.f32 %v3665_v57, %v3664_v55  ;;  %v4206_v33 = vsel %vm2572_vm2, %v4078_v41, 0.0  ;;  %v2112_v50 = vadd.f32 %v1984_v30, %v7848_v43 }
 0x1e5   : > { %v3124_v8 = vadd.f32 %v3123_v15, %v3122_v52  ;;  %v2582_v63 = vadd.f32 %v2581_v2, %v2580_v6  ;;  %v4207_v44 = vsel %vm2572_vm2, %v4079_v48, 0.0  ;;  %v4209_v40 = vsel %vm2572_vm2, %v4080_v0, 0.0  ;;  %v12074_v48 = vld [vmem:[#allocation124_spill] sm:$0xff] }
 0x1e6   : > { %v4211_v21 = vsel %vm2578_vm3, %v4081_v53, 0.0  ;;  %v3668_v36 = vadd.f32 %v3667_v34, %v3666_v1  ;;  %v4208_v5 = vadd.f32 %v4207_v44, %v4206_v33  ;;  %v2113_v56 = vadd.f32 %v1985_v29, %v7851_v60  ;;  %v12076_v33 = vld [vmem:[#allocation126_spill] sm:$0xff] }
 0x1e7   : > { %v3125_v20 = vrot.slane %v3124_v8, 4  ;;  %v2583_v27 = vrot.slane %v2582_v63, 2  ;;  %v2114_v38 = vadd.f32 %v1986_v9, %v7860_v19  ;;  %v2115_v14 = vadd.f32 %v1987_v16, %v7863_v58  ;;  %v12072_v9 = vld [vmem:[#allocation187_spill] sm:$0xff] }
 0x1e8   : > { %vm2240_vm14 = vcmp.le.f32.partialorder %v2112_v50, 4.84  ;;  %v3669_v43 = vrot.slane %v3668_v36, 4  ;;  %v4210_v6 = vadd.f32 %v4209_v40, %v4208_v5  ;;  %vm2241_vm15 = vcmp.le.f32.partialorder %v2113_v56, 4.84 }
 0x1e9   : > { %v3126_v3 = vadd.f32 %v3125_v20, %v3124_v8  ;;  %v8487_v30 = vadd.f32 %v2583_v27, %v2582_v63  ;;  %vm2242_vm0 = vcmp.le.f32.partialorder %v2114_v38, 4.84  ;;  %vm2243_vm4 = vcmp.le.f32.partialorder %v2115_v14, 4.84  ;;  %v12075_v8 = vld [vmem:[#allocation125_spill] sm:$0xff] }
 0x1ea   : > { %v5587_v13 = vsel %vm2240_vm14, 1.0, %v11767_v49  ;;  %v3670_v31 = vadd.f32 %v3669_v43, %v3668_v36  ;;  %v4212_v23 = vadd.f32 %v4211_v21, %v4210_v6  ;;  %v5588_v60 = vsel %vm2241_vm15, 1.0, %v11767_v49  ;;  %v12077_v36 = vld [vmem:[#allocation140_spill] sm:$0xff]  ;;  %v12079_v43 = vld [vmem:[#allocation63_spill] sm:$0xff] }
 0x1eb   : > { %12069 = vst [vmem:[#allocation230_spill] sm:$0xff] %v8487_v30  ;;  %v3127_v15 = vrot.slane %v3126_v3, 2  ;;  %v12070_v19 = vrot.slane %v8369_v17, 2  ;;  %v8498_v29 = vadd.f32 %v8405_v54, %v12072_v9  ;;  %v5589_v16 = vsel %vm2242_vm0, 1.0, %v11767_v49  ;;  %v12136_v30 = vld [vmem:[#allocation231_spill] sm:$0xff] }
 0x1ec   : > { %v2743_v4 = vsel %vm2572_vm2, %v5587_v13, 0.0  ;;  %v4213_v52 = vrot.slane %v4212_v23, 4  ;;  %v5590_v55 = vsel %vm2243_vm4, 1.0, %v11767_v49  ;;  %v2744_v34 = vsel %vm2572_vm2, %v5588_v60, 0.0 }
 0x1ed   : > { %v8494_v58 = vadd.f32 %v12070_v19, %v8369_v17  ;;  %v8505_v41 = vadd.f32 %v3127_v15, %v3126_v3  ;;  %v3671_v2 = vrot.slane %v3670_v31, 2  ;;  %v2745_v17 = vadd.f32 %v2744_v34, %v2743_v4  ;;  %v1330_v4 = vpop.permute.xlu0 %1329 }
 0x1ee   : > { %v3042_v0 = vmul.f32 %v5587_v13, %v12074_v48  ;;  %v4214_v53 = vadd.f32 %v4213_v52, %v4212_v23  ;;  %v2746_v54 = vsel %vm2572_vm2, %v5589_v16, 0.0  ;;  %v3043_v1 = vmul.f32 %v5588_v60, %v12075_v8  ;;  %v12080_v23 = vld [vmem:[#allocation58_spill] sm:$0xff] }
 0x1ef   : > { %12071 = vst [vmem:[#allocation179_spill] sm:$0xff] %v8494_v58  ;;  %12073 = vst [vmem:[#allocation185_spill] sm:$0xff] %v8505_v41  ;;  %v3044_v50 = vmul.f32 %v5589_v16, %v12076_v33  ;;  %v2747_v63 = vadd.f32 %v2746_v54, %v2745_v17  ;;  %v2748_v44 = vsel %vm2578_vm3, %v5590_v55, 0.0  ;;  %v3586_v21 = vmul.f32 %v5587_v13, %v7812_v28 }
 0x1f0   : > { %v3287_v40 = vsel %vm2572_vm2, %v3042_v0, 0.0  ;;  %v4215_v20 = vrot.slane %v4214_v53, 2  ;;  %v3045_v5 = vmul.f32 %v5590_v55, %v12077_v36  ;;  %v3288_v56 = vsel %vm2572_vm2, %v3043_v1, 0.0 }
 0x1f1   : > { %v3587_v27 = vmul.f32 %v5588_v60, %v7819_v35  ;;  %v8517_v38 = vadd.f32 %v2748_v44, %v2747_v63  ;;  %v3289_v14 = vadd.f32 %v3288_v56, %v3287_v40  ;;  %v3290_v3 = vsel %vm2572_vm2, %v3044_v50, 0.0  ;;  %v12083_v50 = vld [vmem:[#allocation139_spill] sm:$0xff]  ;;  %v12084_v40 = vld [vmem:[#allocation112_spill] sm:$0xff]  ;;  %v1314_v36 = vpop.permute.xlu0 %1313  ;;  %v12087_v56 = vld [vmem:[#allocation166_spill] sm:$0xff] }
 0x1f2   : > { %v3588_v6 = vmul.f32 %v5589_v16, %v12079_v43  ;;  %v8521_v15 = vadd.f32 %v4215_v20, %v4214_v53  ;;  %v3589_v19 = vmul.f32 %v5590_v55, %v12080_v23  ;;  %v3831_v28 = vsel %vm2572_vm2, %v3586_v21, 0.0  ;;  %v12085_v21 = vld [vmem:[#allocation165_spill] sm:$0xff]  ;;  %v12090_v23 = vld [vmem:[#allocation115_spill] sm:$0xff] }
 0x1f3   : > { %12078 = vst [vmem:[#allocation186_spill] sm:$0xff] %v8517_v38  ;;  %v3832_v9 = vsel %vm2572_vm2, %v3587_v27, 0.0  ;;  %v8526_v52 = vadd.f32 %v3671_v2, %v3670_v31  ;;  %v3291_v34 = vadd.f32 %v3290_v3, %v3289_v14  ;;  %v4130_v17 = vmul.f32 %v5587_v13, %v8432_v24  ;;  %v12088_v14 = vld [vmem:[#allocation114_spill] sm:$0xff]  ;;  %v12089_v3 = vld [vmem:[#allocation167_spill] sm:$0xff] }
 0x1f4   : > { %v3833_v35 = vadd.f32 %v3832_v9, %v3831_v28  ;;  %v3292_v48 = vsel %vm2578_vm3, %v3045_v5, 0.0  ;;  %v3834_v0 = vsel %vm2572_vm2, %v3588_v6, 0.0  ;;  %v4131_v53 = vmul.f32 %v5588_v60, %v8435_v46  ;;  %v12086_v5 = vld [vmem:[#allocation113_spill] sm:$0xff] }
 0x1f5   : > { %12081 = vst [vmem:[#allocation51_spill] sm:$0xff] %v8526_v52  ;;  %v4132_v54 = vmul.f32 %v5589_v16, %v8438_v32  ;;  %v8533_v8 = vadd.f32 %v3292_v48, %v3291_v34  ;;  %v4133_v33 = vmul.f32 %v5590_v55, %v8441_v7  ;;  %v4375_v31 = vsel %vm2572_vm2, %v4130_v17, 0.0  ;;  %v12151_v52 = vld [vmem:[#allocation150_spill] sm:$0xff] }
 0x1f6   : > { %v8535_v1 = vadd.f32 %v3834_v0, %v3833_v35  ;;  %v4376_v24 = vsel %vm2572_vm2, %v4131_v53, 0.0  ;;  %v1151_v63 = vsub.f32 %v7142_v12, %v12083_v50  ;;  %v1456_v60 = vsub.f32 %v6801_v22, %v1330_v4 }
 0x1f7   : > { %12082 = vst [vmem:[#allocation162_spill] sm:$0xff] %v8533_v8  ;;  %v4378_v13 = vsel %vm2572_vm2, %v4132_v54, 0.0  ;;  %v4377_v46 = vadd.f32 %v4376_v24, %v4375_v31  ;;  %v4380_v32 = vsel %vm2578_vm3, %v4133_v33, 0.0  ;;  %v8547_v16 = vsub.f32 %v7072_v45, %v1330_v4  ;;  %v12132_v8 = vld [vmem:[#allocation87_spill] sm:$0xff] }
 0x1f8   : > { %v8550_v7 = vsub.f32 %v7280_v26, %v1330_v4  ;;  %v8553_v55 = vsub.f32 %v11776_v37, %v1330_v4  ;;  %v1715_v44 = vmul.f32 %v1151_v63, %v1151_v63  ;;  %v1840_v20 = vadd.f32 %v12085_v21, %v12084_v40 }
 0x1f9   : > { %v4379_v12 = vadd.f32 %v4378_v13, %v4377_v46  ;;  %v1841_v27 = vadd.f32 %v12087_v56, %v12086_v5  ;;  %v1842_v43 = vadd.f32 %v12089_v3, %v12088_v14  ;;  %v1968_v6 = vmul.f32 %v1456_v60, %v1456_v60  ;;  %v12092_v3 = vld [vmem:[#allocation102_spill] sm:$0xff] }
 0x1fa   : > { %v1843_v28 = vadd.f32 %v1715_v44, %v12090_v23  ;;  %v1969_v9 = vmul.f32 %v8547_v16, %v8547_v16  ;;  %v1970_v4 = vmul.f32 %v8550_v7, %v8550_v7  ;;  %v1971_v34 = vmul.f32 %v8553_v55, %v8553_v55 }
 0x1fb   : > { %v8568_v35 = vadd.f32 %v4380_v32, %v4379_v12  ;;  %v2096_v17 = vadd.f32 %v1968_v6, %v1840_v20  ;;  %v8571_v48 = vsub.f32 %v6798_v51, %v1314_v36  ;;  %v8574_v0 = vsub.f32 %v7069_v25, %v1314_v36  ;;  %v12093_v6 = vld [vmem:[#allocation103_spill] sm:$0xff] }
 0x1fc   : > { %v8577_v53 = vsel %vm2578_vm3, %v3589_v19, 0.0  ;;  %v2097_v54 = vadd.f32 %v1969_v9, %v1841_v27  ;;  %v2098_v33 = vadd.f32 %v1970_v4, %v1842_v43  ;;  %v2099_v31 = vadd.f32 %v1971_v34, %v1843_v28  ;;  %v12091_v27 = vld [vmem:[#allocation101_spill] sm:$0xff]  ;;  %v12094_v28 = vld [vmem:[#allocation104_spill] sm:$0xff] }
 0x1fd   : > { %vm2224_vm5 = vcmp.le.f32.partialorder %v2096_v17, 4.84  ;;  %v8581_v13 = vsub.f32 %v7277_v39, %v1314_v36  ;;  %v8584_v50 = vsub.f32 %v11817_v47, %v1314_v36  ;;  %v1952_v46 = vmul.f32 %v8571_v48, %v8571_v48  ;;  %v12095_v4 = vld [vmem:[#allocation152_spill] sm:$0xff]  ;;  %v12096_v17 = vld [vmem:[#allocation155_spill] sm:$0xff] }
 0x1fe   : > { %vm2225_vm6 = vcmp.le.f32.partialorder %v2097_v54, 4.84  ;;  %vm2226_vm7 = vcmp.le.f32.partialorder %v2098_v33, 4.84  ;;  %vm2227_vm8 = vcmp.le.f32.partialorder %v2099_v31, 4.84  ;;  %v1953_v40 = vmul.f32 %v8574_v0, %v8574_v0 }
 0x1ff   : > { %v5571_v19 = vsel %vm2224_vm5, 1.0, %v11767_v49  ;;  %v5572_v32 = vsel %vm2225_vm6, 1.0, %v11767_v49  ;;  %v5573_v44 = vsel %vm2226_vm7, 1.0, %v11767_v49  ;;  %v5574_v21 = vsel %vm2227_vm8, 1.0, %v11767_v49 }
 0x200   : > { %v2691_v20 = vsel %vm2572_vm2, %v5571_v19, 0.0  ;;  %v2692_v36 = vsel %vm2572_vm2, %v5572_v32, 0.0  ;;  %v2694_v12 = vsel %vm2572_vm2, %v5573_v44, 0.0  ;;  %v2696_v56 = vsel %vm2578_vm3, %v5574_v21, 0.0 }
 0x201   : > { %v2693_v5 = vadd.f32 %v2692_v36, %v2691_v20  ;;  %v3026_v14 = vmul.f32 %v5571_v19, %v12091_v27  ;;  %v3027_v43 = vmul.f32 %v5572_v32, %v12092_v3  ;;  %v3028_v23 = vmul.f32 %v5573_v44, %v12093_v6  ;;  %v12097_v20 = vld [vmem:[#allocation156_spill] sm:$0xff] }
 0x202   : > { %v3029_v9 = vmul.f32 %v5574_v21, %v12094_v28  ;;  %v3570_v34 = vmul.f32 %v5571_v19, %v12095_v4  ;;  %v3571_v54 = vmul.f32 %v5572_v32, %v12096_v17  ;;  %v3572_v36 = vmul.f32 %v5573_v44, %v12097_v20 }
 0x203   : > { %v2695_v33 = vadd.f32 %v2694_v12, %v2693_v5  ;;  %v3235_v31 = vsel %vm2572_vm2, %v3026_v14, 0.0  ;;  %v3236_v57 = vsel %vm2572_vm2, %v3027_v43, 0.0  ;;  %v3238_v27 = vsel %vm2572_vm2, %v3028_v23, 0.0 }
 0x204   : > { %v3237_v24 = vadd.f32 %v3236_v57, %v3235_v31  ;;  %v3240_v3 = vsel %vm2578_vm3, %v3029_v9, 0.0  ;;  %v3573_v2 = vmul.f32 %v5574_v21, %v1151_v63  ;;  %v3779_v28 = vsel %vm2572_vm2, %v3570_v34, 0.0  ;;  %v12099_v31 = vld [vmem:[#allocation28_spill] sm:$0xff] }
 0x205   : > { %v2697_v6 = vadd.f32 %v2696_v56, %v2695_v33  ;;  %v3780_v4 = vsel %vm2572_vm2, %v3571_v54, 0.0  ;;  %v3782_v17 = vsel %vm2572_vm2, %v3572_v36, 0.0  ;;  %v4114_v43 = vmul.f32 %v5571_v19, %v1456_v60  ;;  %v12100_v36 = vld [vmem:[#allocation29_spill] sm:$0xff] }
 0x206   : > { %v3239_v12 = vadd.f32 %v3238_v27, %v3237_v24  ;;  %v3781_v5 = vadd.f32 %v3780_v4, %v3779_v28  ;;  %v3784_v14 = vsel %vm2578_vm3, %v3573_v2, 0.0  ;;  %v4115_v57 = vmul.f32 %v5572_v32, %v8547_v16  ;;  %v12101_v28 = vld [vmem:[#allocation176_spill] sm:$0xff] }
 0x207   : > { %v2698_v41 = vrot.slane %v2697_v6, 4  ;;  %v4116_v23 = vmul.f32 %v5573_v44, %v8550_v7  ;;  %v4117_v9 = vmul.f32 %v5574_v21, %v8553_v55  ;;  %v4323_v34 = vsel %vm2572_vm2, %v4114_v43, 0.0  ;;  %v12098_v44 = vld [vmem:[#allocation27_spill] sm:$0xff] }
 0x208   : > { %v3241_v63 = vadd.f32 %v3240_v3, %v3239_v12  ;;  %v3783_v56 = vadd.f32 %v3782_v17, %v3781_v5  ;;  %v1954_v54 = vmul.f32 %v8581_v13, %v8581_v13  ;;  %v4324_v24 = vsel %vm2572_vm2, %v4115_v57, 0.0 }
 0x209   : > { %v2699_v33 = vadd.f32 %v2698_v41, %v2697_v6  ;;  %v4326_v2 = vsel %vm2572_vm2, %v4116_v23, 0.0  ;;  %v4328_v60 = vsel %vm2578_vm3, %v4117_v9, 0.0  ;;  %v4325_v32 = vadd.f32 %v4324_v24, %v4323_v34  ;;  %v12108_v24 = vld [vmem:[#allocation71_spill] sm:$0xff] }
 0x20a   : > { %v3242_v19 = vrot.slane %v3241_v63, 4  ;;  %v3785_v16 = vadd.f32 %v3784_v14, %v3783_v56  ;;  %v1955_v7 = vmul.f32 %v8584_v50, %v8584_v50  ;;  %v2080_v21 = vadd.f32 %v1952_v46, %v12098_v44  ;;  %v12111_v44 = vld [vmem:[#allocation74_spill] sm:$0xff] }
 0x20b   : > { %v2700_v55 = vrot.slane %v2699_v33, 2  ;;  %v2081_v20 = vadd.f32 %v1953_v40, %v12099_v31  ;;  %v2082_v27 = vadd.f32 %v1954_v54, %v12100_v36  ;;  %v4327_v6 = vadd.f32 %v4326_v2, %v4325_v32  ;;  %v12109_v32 = vld [vmem:[#allocation72_spill] sm:$0xff] }
 0x20c   : > { %v3243_v41 = vadd.f32 %v3242_v19, %v3241_v63  ;;  %v3786_v3 = vrot.slane %v3785_v16, 4  ;;  %v2083_v4 = vadd.f32 %v1955_v7, %v12101_v28  ;;  %v12102_v17 = vrot.slane %v8521_v15, 1 }
 0x20d   : > { %vm2208_vm9 = vcmp.le.f32.partialorder %v2080_v21, 4.84  ;;  %vm2209_vm10 = vcmp.le.f32.partialorder %v2081_v20, 4.84  ;;  %vm2210_vm11 = vcmp.le.f32.partialorder %v2082_v27, 4.84  ;;  %v4329_v14 = vadd.f32 %v4328_v60, %v4327_v6 }
 0x20e   : > { %v8631_v12 = vadd.f32 %v12102_v17, %v8521_v15  ;;  %v12104_v46 = vrot.slane %v8568_v35, 4  ;;  %v3244_v40 = vrot.slane %v3243_v41, 2  ;;  %vm2211_vm12 = vcmp.le.f32.partialorder %v2083_v4, 4.84  ;;  %v12112_v20 = vld [vmem:[#allocation133_spill] sm:$0xff]  ;;  %v12113_v27 = vld [vmem:[#allocation191_spill] sm:$0xff] }
 0x20f   : > { %v8638_v43 = vadd.f32 %v2700_v55, %v2699_v33  ;;  %v5555_v57 = vsel %vm2208_vm9, 1.0, %v11767_v49  ;;  %v5556_v23 = vsel %vm2209_vm10, 1.0, %v11767_v49  ;;  %v5557_v15 = vsel %vm2210_vm11, 1.0, %v11767_v49  ;;  %v12110_v55 = vld [vmem:[#allocation73_spill] sm:$0xff] }
 0x210   : > { %12103 = vst [vmem:[#allocation52_spill] sm:$0xff] %v8631_v12  ;;  %v8636_v5 = vadd.f32 %v12104_v46, %v8568_v35  ;;  %v8643_v9 = vadd.f32 %v3786_v3, %v3785_v16  ;;  %v4330_v63 = vrot.slane %v4329_v14, 4  ;;  %v5558_v56 = vsel %vm2211_vm12, 1.0, %v11767_v49 }
 0x211   : > { %12106 = vst [vmem:[#allocation53_spill] sm:$0xff] %v8638_v43  ;;  %v2639_v34 = vsel %vm2572_vm2, %v5555_v57, 0.0  ;;  %v8647_v35 = vadd.f32 %v3244_v40, %v3243_v41  ;;  %v2640_v54 = vsel %vm2572_vm2, %v5556_v23, 0.0  ;;  %v2642_v33 = vsel %vm2572_vm2, %v5557_v15, 0.0  ;;  %v12114_v40 = vld [vmem:[#allocation134_spill] sm:$0xff] }
 0x212   : > { %12105 = vst [vmem:[#allocation163_spill] sm:$0xff] %v8636_v5  ;;  %v3010_v2 = vmul.f32 %v5555_v57, %v12108_v24  ;;  %v4331_v60 = vadd.f32 %v4330_v63, %v4329_v14  ;;  %v2641_v19 = vadd.f32 %v2640_v54, %v2639_v34  ;;  %v3011_v7 = vmul.f32 %v5556_v23, %v12109_v32  ;;  %v12115_v63 = vld [vmem:[#allocation198_spill] sm:$0xff] }
 0x213   : > { %12107 = vst [vmem:[#allocation164_spill] sm:$0xff] %v8647_v35  ;;  %v3012_v16 = vmul.f32 %v5557_v15, %v12110_v55  ;;  %v3013_v21 = vmul.f32 %v5558_v56, %v12111_v44  ;;  %v3554_v36 = vmul.f32 %v5555_v57, %v12112_v20  ;;  %v3555_v41 = vmul.f32 %v5556_v23, %v12113_v27  ;;  %v742_v44 = vpop.permute.xlu1 %741 }
 0x214   : > { %v3183_v31 = vsel %vm2572_vm2, %v3010_v2, 0.0  ;;  %v4332_v3 = vrot.slane %v4331_v60, 2  ;;  %v2643_v6 = vadd.f32 %v2642_v33, %v2641_v19  ;;  %v2644_v28 = vsel %vm2578_vm3, %v5558_v56, 0.0 }
 0x215   : > { %v3184_v4 = vsel %vm2572_vm2, %v3011_v7, 0.0  ;;  %v3186_v46 = vsel %vm2572_vm2, %v3012_v16, 0.0  ;;  %v3556_v14 = vmul.f32 %v5557_v15, %v12114_v40  ;;  %v3557_v34 = vmul.f32 %v5558_v56, %v12115_v63  ;;  %v12121_v40 = vld [vmem:[#allocation21_spill] sm:$0xff] }
 0x216   : > { %v3185_v17 = vadd.f32 %v3184_v4, %v3183_v31  ;;  %v4333_v54 = vadd.f32 %v4332_v3, %v4331_v60  ;;  %v8663_v24 = vadd.f32 %v2644_v28, %v2643_v6  ;;  %v3727_v2 = vsel %vm2572_vm2, %v3554_v36, 0.0  ;;  %v12118_v4 = vld [vmem:[#allocation19_spill] sm:$0xff] }
 0x217   : > { %v3728_v32 = vsel %vm2572_vm2, %v3555_v41, 0.0  ;;  %v3188_v55 = vsel %vm2578_vm3, %v3013_v21, 0.0  ;;  %v3730_v16 = vsel %vm2572_vm2, %v3556_v14, 0.0  ;;  %v3732_v31 = vsel %vm2578_vm3, %v3557_v34, 0.0 }
 0x218   : > { %12116 = vst [vmem:[#allocation54_spill] sm:$0xff] %v8663_v24  ;;  %v3187_v19 = vadd.f32 %v3186_v46, %v3185_v17  ;;  %v3729_v7 = vadd.f32 %v3728_v32, %v3727_v2  ;;  %v4098_v20 = vmul.f32 %v5555_v57, %v8571_v48  ;;  %v4099_v60 = vmul.f32 %v5556_v23, %v8574_v0  ;;  %v1350_v46 = vpop.permute.xlu0 %1349  ;;  %v12133_v24 = vld [vmem:[#allocation89_spill] sm:$0xff] }
 0x219   : > { %v4100_v41 = vmul.f32 %v5557_v15, %v8581_v13  ;;  %v4101_v3 = vmul.f32 %v5558_v56, %v8584_v50  ;;  %v4334_v6 = vrot.slane %v4333_v54, 1  ;;  %v8680_v17 = vsub.f32 %v12118_v4, %v742_v44  ;;  %v12123_v50 = vld [vmem:[#allocation39_spill] sm:$0xff]  ;;  %v12125_v56 = vld [vmem:[#allocation41_spill] sm:$0xff] }
 0x21a   : > { %v8673_v27 = vadd.f32 %v3188_v55, %v3187_v19  ;;  %v3731_v36 = vadd.f32 %v3730_v16, %v3729_v7  ;;  %v4271_v21 = vsel %vm2572_vm2, %v4098_v20, 0.0  ;;  %v4272_v28 = vsel %vm2572_vm2, %v4099_v60, 0.0 }
 0x21b   : > { %12119 = vst [vmem:[#allocation24_spill] sm:$0xff] %v8680_v17  ;;  %v4273_v0 = vadd.f32 %v4272_v28, %v4271_v21  ;;  %v4274_v23 = vsel %vm2572_vm2, %v4100_v41, 0.0  ;;  %v8687_v13 = vsub.f32 %v12121_v40, %v742_v44  ;;  %v8690_v15 = vsub.f32 %v12123_v50, %v742_v44  ;;  %v774_v41 = vpop.permute.xlu1 %773  ;;  %v12128_v28 = vld [vmem:[#allocation169_spill] sm:$0xff] }
 0x21c   : > { %12117 = vst [vmem:[#allocation23_spill] sm:$0xff] %v8673_v27  ;;  %v8683_v57 = vadd.f32 %v3732_v31, %v3731_v36  ;;  %v8693_v14 = vsub.f32 %v12125_v56, %v742_v44  ;;  %v1612_v63 = vmul.f32 %v8680_v17, %v8680_v17  ;;  %v1476_v2 = vsub.f32 %v6801_v22, %v1350_v46  ;;  %v12152_v17 = vld [vmem:[#allocation174_spill] sm:$0xff]  ;;  %v1354_v43 = vpop.permute.xlu0 %1353 }
 0x21d   : > { %12122 = vst [vmem:[#allocation26_spill] sm:$0xff] %v8687_v13  ;;  %12124 = vst [vmem:[#allocation145_spill] sm:$0xff] %v8690_v15  ;;  %v4275_v34 = vadd.f32 %v4274_v23, %v4273_v0  ;;  %v1477_v32 = vsub.f32 %v7072_v45, %v1350_v46  ;;  %v1478_v19 = vsub.f32 %v7280_v26, %v1350_v46  ;;  %v4276_v55 = vsel %vm2578_vm3, %v4101_v3, 0.0  ;;  %v12130_v3 = vld [vmem:[#allocation6_spill] sm:$0xff] }
 0x21e   : > { %12120 = vst [vmem:[#allocation25_spill] sm:$0xff] %v8683_v57  ;;  %12126 = vst [vmem:[#allocation148_spill] sm:$0xff] %v8693_v14  ;;  %v1613_v7 = vmul.f32 %v8687_v13, %v8687_v13  ;;  %v1614_v16 = vmul.f32 %v8690_v15, %v8690_v15  ;;  %v1615_v44 = vmul.f32 %v8693_v14, %v8693_v14 }
 0x21f   : > { %v4277_v31 = vadd.f32 %v4276_v55, %v4275_v34  ;;  %v1479_v20 = vsub.f32 %v11776_v37, %v1350_v46  ;;  %v1988_v60 = vmul.f32 %v1476_v2, %v1476_v2  ;;  %v1989_v36 = vmul.f32 %v1477_v32, %v1477_v32  ;;  %v12134_v55 = vld [vmem:[#allocation153_spill] sm:$0xff] }
 0x220   : > { %v8708_v21 = vadd.f32 %v4334_v6, %v4333_v54  ;;  %v8711_v0 = vadd.f32 %v12128_v28, %v1612_v63  ;;  %v8714_v23 = vadd.f32 %v12130_v3, %v1613_v7  ;;  %v1990_v48 = vmul.f32 %v1478_v19, %v1478_v19  ;;  %v12138_v54 = vld [vmem:[#allocation62_spill] sm:$0xff]  ;;  %v12139_v63 = vld [vmem:[#allocation20_spill] sm:$0xff] }
 0x221   : > { %v4278_v33 = vrot.slane %v4277_v31, 4  ;;  %v1991_v27 = vmul.f32 %v1479_v20, %v1479_v20  ;;  %v2116_v35 = vadd.f32 %v1988_v60, %v12132_v8  ;;  %v2117_v34 = vadd.f32 %v1989_v36, %v12133_v24  ;;  %v12142_v3 = vld [vmem:[#allocation64_spill] sm:$0xff] }
 0x222   : > { %12127 = vst [vmem:[#allocation149_spill] sm:$0xff] %v8708_v21  ;;  %12129 = vst [vmem:[#allocation187_spill] sm:$0xff] %v8711_v0  ;;  %v8719_v46 = vadd.f32 %v12134_v55, %v1614_v16  ;;  %v8722_v12 = vadd.f32 %v12136_v30, %v1615_v44  ;;  %v2118_v6 = vadd.f32 %v1990_v48, %v12138_v54  ;;  %v12143_v16 = vld [vmem:[#allocation22_spill] sm:$0xff]  ;;  %v12145_v44 = vld [vmem:[#allocation40_spill] sm:$0xff] }
 0x223   : > { %12131 = vst [vmem:[#allocation124_spill] sm:$0xff] %v8714_v23  ;;  %v8726_v28 = vsub.f32 %v12139_v63, %v774_v41  ;;  %v8728_v7 = vadd.f32 %v4278_v33, %v4277_v31  ;;  %v2119_v57 = vadd.f32 %v1991_v27, %v12142_v3  ;;  %vm2244_vm13 = vcmp.le.f32.partialorder %v2116_v35, 4.84  ;;  %v12147_v31 = vld [vmem:[#allocation146_spill] sm:$0xff]  ;;  %v12156_v54 = vld [vmem:[#allocation203_spill] sm:$0xff] }
 0x224   : > { %12135 = vst [vmem:[#allocation125_spill] sm:$0xff] %v8719_v46  ;;  %12137 = vst [vmem:[#allocation126_spill] sm:$0xff] %v8722_v12  ;;  %vm2245_vm14 = vcmp.le.f32.partialorder %v2117_v34, 4.84  ;;  %vm2246_vm15 = vcmp.le.f32.partialorder %v2118_v6, 4.84  ;;  %v8734_v60 = vsub.f32 %v12143_v16, %v774_v41  ;;  %v8739_v33 = vsub.f32 %v12145_v44, %v774_v41 }
 0x225   : > { %12140 = vst [vmem:[#allocation140_spill] sm:$0xff] %v8726_v28  ;;  %12141 = vst [vmem:[#allocation63_spill] sm:$0xff] %v8728_v7  ;;  %v5591_v8 = vsel %vm2244_vm13, 1.0, %v11767_v49  ;;  %v5592_v24 = vsel %vm2245_vm14, 1.0, %v11767_v49  ;;  %vm2247_vm0 = vcmp.le.f32.partialorder %v2119_v57, 4.84 }
 0x226   : > { %12144 = vst [vmem:[#allocation58_spill] sm:$0xff] %v8734_v60  ;;  %v5593_v30 = vsel %vm2246_vm15, 1.0, %v11767_v49  ;;  %v2756_v48 = vsel %vm2572_vm2, %v5591_v8, 0.0  ;;  %12146 = vst [vmem:[#allocation139_spill] sm:$0xff] %v8739_v33  ;;  %v5594_v27 = vsel %vm2247_vm0, 1.0, %v11767_v49  ;;  %v2757_v35 = vsel %vm2572_vm2, %v5592_v24, 0.0 }
 0x227   : > { %v3046_v36 = vmul.f32 %v5591_v8, %v12147_v31  ;;  %v12148_v34 = vld [vmem:[#allocation50_spill] sm:$0xff]  ;;  %v2758_v6 = vadd.f32 %v2757_v35, %v2756_v48  ;;  %v12150_v57 = vld [vmem:[#allocation147_spill] sm:$0xff]  ;;  %v3048_v14 = vmul.f32 %v5593_v30, %v12151_v52  ;;  %v2759_v15 = vsel %vm2572_vm2, %v5593_v30, 0.0 }
 0x228   : > { %v8745_v55 = vsub.f32 %v12148_v34, %v774_v41  ;;  %v3047_v3 = vmul.f32 %v5592_v24, %v12150_v57  ;;  %v3590_v12 = vmul.f32 %v5591_v8, %v12152_v17  ;;  %v12153_v46 = vld [vmem:[#allocation175_spill] sm:$0xff]  ;;  %v3592_v48 = vmul.f32 %v5593_v30, %v12156_v54  ;;  %v12158_v57 = vld [vmem:[#allocation8_spill] sm:$0xff] }
 0x229   : > { %v3300_v13 = vsel %vm2572_vm2, %v3046_v36, 0.0  ;;  %v3591_v23 = vmul.f32 %v5592_v24, %v12153_v46  ;;  %v8754_v0 = vadd.f32 %v2759_v15, %v2758_v6  ;;  %v12155_v31 = vld [vmem:[#allocation151_spill] sm:$0xff]  ;;  %v8760_v35 = vsel %vm2578_vm3, %v5594_v27, 0.0 }
 0x22a   : > { %12149 = vst [vmem:[#allocation112_spill] sm:$0xff] %v8745_v55  ;;  %v3049_v41 = vmul.f32 %v5594_v27, %v12155_v31  ;;  %v3301_v38 = vsel %vm2572_vm2, %v3047_v3, 0.0  ;;  %12157 = vst [vmem:[#allocation113_spill] sm:$0xff] %v8760_v35  ;;  %v8763_v7 = vmul.f32 %v5594_v27, %v12158_v57  ;;  %v3844_v36 = vsel %vm2572_vm2, %v3590_v12, 0.0 }
 0x22b   : > { %12154 = vst [vmem:[#allocation165_spill] sm:$0xff] %v8754_v0  ;;  %v3302_v52 = vadd.f32 %v3301_v38, %v3300_v13  ;;  %v3303_v17 = vsel %vm2572_vm2, %v3048_v14, 0.0  ;;  %v3845_v15 = vsel %vm2572_vm2, %v3591_v23, 0.0  ;;  %v4134_v46 = vmul.f32 %v5591_v8, %v1476_v2  ;;  %v778_v23 = vpop.permute.xlu1 %777 }
 0x22c   : > { %12159 = vst [vmem:[#allocation166_spill] sm:$0xff] %v8763_v7  ;;  %v4135_v6 = vmul.f32 %v5592_v24, %v1477_v32  ;;  %v8770_v3 = vadd.f32 %v3845_v15, %v3844_v36  ;;  %v4136_v54 = vmul.f32 %v5593_v30, %v1478_v19  ;;  %v4137_v0 = vmul.f32 %v5594_v27, %v1479_v20 }
 0x22d   : > { %v8768_v31 = vadd.f32 %v3303_v17, %v3302_v52  ;;  %v8773_v38 = vsel %vm2578_vm3, %v3049_v41, 0.0  ;;  %v8776_v13 = vsel %vm2572_vm2, %v3592_v48, 0.0  ;;  %v4388_v12 = vsel %vm2572_vm2, %v4134_v46, 0.0 }
 0x22e   : > { %12161 = vst [vmem:[#allocation167_spill] sm:$0xff] %v8773_v38  ;;  %v4389_v14 = vsel %vm2572_vm2, %v4135_v6, 0.0  ;;  %v4391_v32 = vsel %vm2572_vm2, %v4136_v54, 0.0  ;;  %v8783_v8 = vmul.f32 %v8726_v28, %v8726_v28  ;;  %v8787_v19 = vmul.f32 %v8734_v60, %v8734_v60  ;;  %v1362_v38 = vpop.permute.xlu0 %1361 }
 0x22f   : > { %12160 = vst [vmem:[#allocation114_spill] sm:$0xff] %v8768_v31  ;;  %v4390_v2 = vadd.f32 %v4389_v14, %v4388_v12  ;;  %v4393_v20 = vsel %vm2578_vm3, %v4137_v0, 0.0  ;;  %v1480_v24 = vsub.f32 %v6801_v22, %v1354_v43  ;;  %v1481_v30 = vsub.f32 %v7072_v45, %v1354_v43 }
 0x230   : > { %v1482_v27 = vsub.f32 %v7280_v26, %v1354_v43  ;;  %v1483_v48 = vsub.f32 %v11776_v37, %v1354_v43  ;;  %v8795_v52 = vsub.f32 %v12139_v63, %v778_v23  ;;  %v8798_v57 = vsub.f32 %v12143_v16, %v778_v23 }
 0x231   : > { %v4392_v41 = vadd.f32 %v4391_v32, %v4390_v2  ;;  %v1992_v36 = vmul.f32 %v1480_v24, %v1480_v24  ;;  %v1993_v17 = vmul.f32 %v1481_v30, %v1481_v30  ;;  %v8801_v0 = vsub.f32 %v12145_v44, %v778_v23 }
 0x232   : > { %12162 = vst [vmem:[#allocation115_spill] sm:$0xff] %v8795_v52  ;;  %12163 = vst [vmem:[#allocation101_spill] sm:$0xff] %v8798_v57  ;;  %v1994_v15 = vmul.f32 %v1482_v27, %v1482_v27  ;;  %v8807_v45 = vmul.f32 %v8739_v33, %v8739_v33  ;;  %v1995_v26 = vmul.f32 %v1483_v48, %v1483_v48  ;;  %v12197_v33 = vld [vmem:[#allocation18_spill] sm:$0xff]  ;;  %vm4654_vm0 = vcmask 1041409  }
 0x233   : > { %12164 = vst [vmem:[#allocation102_spill] sm:$0xff] %v8801_v0  ;;  %v8803_v22 = vadd.f32 %v4393_v20, %v4392_v41  ;;  %v8810_v37 = vsub.f32 %v12148_v34, %v778_v23  ;;  %v2120_v43 = vadd.f32 %v1992_v36, %v8408_v62  ;;  %v2121_v46 = vadd.f32 %v1993_v17, %v8411_v10  ;;  %v12169_v17 = vld [vmem:[#allocation232_spill] sm:$0xff] }
 0x234   : > { %v2122_v6 = vadd.f32 %v1994_v15, %v8414_v18  ;;  %v1648_v54 = vmul.f32 %v8795_v52, %v8795_v52  ;;  %v8820_v14 = vmul.f32 %v8745_v55, %v8745_v55  ;;  %v2123_v2 = vadd.f32 %v1995_v26, %v8498_v29  ;;  %v12168_v29 = vld [vmem:[#allocation157_spill] sm:$0xff] }
 0x235   : > { %12165 = vst [vmem:[#allocation103_spill] sm:$0xff] %v8803_v22  ;;  %12166 = vst [vmem:[#allocation104_spill] sm:$0xff] %v8810_v37  ;;  %v1649_v23 = vmul.f32 %v8798_v57, %v8798_v57  ;;  %vm2248_vm4 = vcmp.le.f32.partialorder %v2120_v43, 4.84  ;;  %vm2249_vm5 = vcmp.le.f32.partialorder %v2121_v46, 4.84  ;;  %v1650_v10 = vmul.f32 %v8801_v0, %v8801_v0 }
 0x236   : > { %vm2250_vm6 = vcmp.le.f32.partialorder %v2122_v6, 4.84  ;;  %vm2251_vm7 = vcmp.le.f32.partialorder %v2123_v2, 4.84  ;;  %v5595_v62 = vsel %vm2248_vm4, 1.0, %v11767_v49  ;;  %v5596_v18 = vsel %vm2249_vm5, 1.0, %v11767_v49 }
 0x237   : > { %v8830_v32 = vsel %vm2250_vm6, 1.0, %v11767_v49  ;;  %v8833_v20 = vsel %vm2251_vm7, 1.0, %v11767_v49  ;;  %v3050_v41 = vmul.f32 %v5595_v62, %v12168_v29  ;;  %v1651_v36 = vmul.f32 %v8810_v37, %v8810_v37  ;;  %v12172_v43 = vld [vmem:[#allocation158_spill] sm:$0xff]  ;;  %v12173_v6 = vld [vmem:[#allocation159_spill] sm:$0xff]  ;;  %v12177_v37 = vld [vmem:[#allocation160_spill] sm:$0xff] }
 0x238   : > { %12167 = vst [vmem:[#allocation152_spill] sm:$0xff] %v8830_v32  ;;  %v8839_v15 = vadd.f32 %v12169_v17, %v1648_v54  ;;  %v8842_v26 = vsel %vm2572_vm2, %v5595_v62, 0.0  ;;  %v3051_v46 = vmul.f32 %v5596_v18, %v12172_v43  ;;  %v3052_v2 = vmul.f32 %v8830_v32, %v12173_v6 }
 0x239   : > { %12171 = vst [vmem:[#allocation156_spill] sm:$0xff] %v8842_v26  ;;  %v8848_v12 = vmul.f32 %v5595_v62, %v8361_v11  ;;  %v8851_v29 = vsel %vm2572_vm2, %v5596_v18, 0.0  ;;  %v3313_v31 = vsel %vm2572_vm2, %v3050_v41, 0.0  ;;  %v8855_v54 = vmul.f32 %v5596_v18, %v8364_v42  ;;  %v12202_v26 = vld [vmem:[#allocation190_spill] sm:$0xff] }
 0x23a   : > { %12170 = vst [vmem:[#allocation155_spill] sm:$0xff] %v8839_v15  ;;  %12175 = vst [vmem:[#allocation28_spill] sm:$0xff] %v8851_v29  ;;  %v4138_v17 = vmul.f32 %v5595_v62, %v1480_v24  ;;  %v8859_v0 = vmul.f32 %v8833_v20, %v12177_v37  ;;  %v3314_v43 = vsel %vm2572_vm2, %v3051_v46, 0.0  ;;  %v4139_v6 = vmul.f32 %v5596_v18, %v1481_v30  ;;  %v1054_v24 = vpop.permute.xlu1 %1053  ;;  %v12182_v18 = vld [vmem:[#allocation233_spill] sm:$0xff]  ;;  %v12184_v46 = vld [vmem:[#allocation234_spill] sm:$0xff] }
 0x23b   : > { %12174 = vst [vmem:[#allocation27_spill] sm:$0xff] %v8848_v12  ;;  %12176 = vst [vmem:[#allocation29_spill] sm:$0xff] %v8855_v54  ;;  %v4140_v11 = vmul.f32 %v8830_v32, %v1482_v27  ;;  %v8863_v57 = vadd.f32 %v3314_v43, %v3313_v31  ;;  %v8867_v52 = vmul.f32 %v8830_v32, %v8367_v59  ;;  %v8872_v62 = vsel %vm2572_vm2, %v3052_v2, 0.0  ;;  %v12186_v59 = vld [vmem:[#allocation116_spill] sm:$0xff]  ;;  %v12201_v32 = vld [vmem:[#allocation189_spill] sm:$0xff] }
 0x23c   : > { %12178 = vst [vmem:[#allocation176_spill] sm:$0xff] %v8859_v0  ;;  %v4141_v41 = vmul.f32 %v8833_v20, %v1483_v48  ;;  %v4401_v42 = vsel %vm2572_vm2, %v4138_v17, 0.0  ;;  %12181 = vst [vmem:[#allocation73_spill] sm:$0xff] %v8872_v62  ;;  %v4402_v37 = vsel %vm2572_vm2, %v4139_v6, 0.0  ;;  %v8877_v27 = vadd.f32 %v12182_v18, %v1649_v23  ;;  %v12187_v48 = vld [vmem:[#allocation178_spill] sm:$0xff]  ;;  %v12188_v62 = vld [vmem:[#allocation237_spill] sm:$0xff]  ;;  %v1382_v18 = vpop.permute.xlu0 %1381 }
 0x23d   : > { %12179 = vst [vmem:[#allocation71_spill] sm:$0xff] %v8863_v57  ;;  %12180 = vst [vmem:[#allocation72_spill] sm:$0xff] %v8867_v52  ;;  %v4404_v30 = vsel %vm2572_vm2, %v4140_v11, 0.0  ;;  %v4403_v31 = vadd.f32 %v4402_v37, %v4401_v42  ;;  %v8880_v43 = vadd.f32 %v12184_v46, %v1650_v10  ;;  %v8883_v0 = vsub.f32 %v12186_v59, %v1362_v38  ;;  %v12190_v11 = vld [vmem:[#allocation154_spill] sm:$0xff]  ;;  %v12191_v37 = vld [vmem:[#allocation225_spill] sm:$0xff] }
 0x23e   : > { %12183 = vst [vmem:[#allocation74_spill] sm:$0xff] %v8877_v27  ;;  %v8886_v17 = vsub.f32 %v12187_v48, %v1362_v38  ;;  %v4406_v2 = vsel %vm2578_vm3, %v4141_v41, 0.0  ;;  %v8890_v57 = vadd.f32 %v12188_v62, %v1651_v36  ;;  %v1180_v6 = vsub.f32 %v11881_v61, %v1054_v24  ;;  %v12192_v46 = vld [vmem:[#allocation129_spill] sm:$0xff]  ;;  %v12193_v27 = vld [vmem:[#allocation106_spill] sm:$0xff]  ;;  %v1082_v29 = vpop.permute.xlu1 %1081 }
 0x23f   : > { %12185 = vst [vmem:[#allocation133_spill] sm:$0xff] %v8880_v43  ;;  %v1181_v23 = vsub.f32 %v12190_v11, %v1054_v24  ;;  %v4405_v42 = vadd.f32 %v4404_v30, %v4403_v31  ;;  %v8895_v10 = vsub.f32 %v12191_v37, %v1362_v38  ;;  %v8898_v43 = vsub.f32 %v12192_v46, %v1362_v38  ;;  %v12194_v62 = vld [vmem:[#allocation202_spill] sm:$0xff] }
 0x240   : > { %12189 = vst [vmem:[#allocation191_spill] sm:$0xff] %v8890_v57  ;;  %v1182_v15 = vsub.f32 %v12193_v27, %v1054_v24  ;;  %v2000_v41 = vmul.f32 %v8883_v0, %v8883_v0  ;;  %v2001_v36 = vmul.f32 %v8886_v17, %v8886_v17  ;;  %v1183_v61 = vsub.f32 %v12194_v62, %v1054_v24 }
 0x241   : > { %v1744_v57 = vmul.f32 %v1180_v6, %v1180_v6  ;;  %v8906_v11 = vadd.f32 %v4406_v2, %v4405_v42  ;;  %v1745_v30 = vmul.f32 %v1181_v23, %v1181_v23  ;;  %v8909_v55 = vsub.f32 %v12186_v59, %v1382_v18  ;;  %v12200_v42 = vld [vmem:[#allocation188_spill] sm:$0xff] }
 0x242   : > { %v1746_v31 = vmul.f32 %v1182_v15, %v1182_v15  ;;  %v1747_v38 = vmul.f32 %v1183_v61, %v1183_v61  ;;  %v8913_v27 = vsub.f32 %v12187_v48, %v1382_v18  ;;  %v8916_v28 = vsub.f32 %v12191_v37, %v1382_v18 }
 0x243   : > { %12195 = vst [vmem:[#allocation134_spill] sm:$0xff] %v8906_v11  ;;  %12196 = vst [vmem:[#allocation198_spill] sm:$0xff] %v8909_v55  ;;  %v1872_v60 = vadd.f32 %v1744_v57, %v12197_v33  ;;  %v2002_v24 = vmul.f32 %v8895_v10, %v8895_v10  ;;  %v2003_v2 = vmul.f32 %v8898_v43, %v8898_v43  ;;  %vm4656_vm4 = vcmask 1042434  }
 0x244   : > { %12198 = vst [vmem:[#allocation19_spill] sm:$0xff] %v8913_v27  ;;  %12199 = vst [vmem:[#allocation21_spill] sm:$0xff] %v8916_v28  ;;  %v1873_v62 = vadd.f32 %v1745_v30, %v12200_v42  ;;  %v1874_v59 = vadd.f32 %v1746_v31, %v12201_v32  ;;  %v1875_v35 = vadd.f32 %v1747_v38, %v12202_v26  ;;  %v12213_v42 = vld [vmem:[#allocation170_spill] sm:$0xff]  ;;  %vm4658_vm5 = vcmask 1043459  }
 0x245   : > { %v2128_v33 = vadd.f32 %v2000_v41, %v1872_v60  ;;  %v8926_v57 = vsub.f32 %v12192_v46, %v1382_v18  ;;  %v8930_v37 = vmul.f32 %v8909_v55, %v8909_v55  ;;  %v8934_v11 = vmul.f32 %v8913_v27, %v8913_v27  ;;  %v12207_v60 = vld [vmem:[#allocation92_spill] sm:$0xff]  ;;  %v12209_v18 = vld [vmem:[#allocation161_spill] sm:$0xff]  ;;  %v12216_v55 = vld [vmem:[#allocation171_spill] sm:$0xff] }
 0x246   : > { %v2129_v48 = vadd.f32 %v2001_v36, %v1873_v62  ;;  %v2130_v21 = vadd.f32 %v2002_v24, %v1874_v59  ;;  %v8938_v32 = vmul.f32 %v8916_v28, %v8916_v28  ;;  %v2131_v30 = vadd.f32 %v2003_v2, %v1875_v35  ;;  %v12211_v36 = vld [vmem:[#allocation107_spill] sm:$0xff] }
 0x247   : > { %12203 = vst [vmem:[#allocation39_spill] sm:$0xff] %v8926_v57  ;;  %12204 = vst [vmem:[#allocation41_spill] sm:$0xff] %v8930_v37  ;;  %vm2256_vm8 = vcmp.le.f32.partialorder %v2128_v33, 4.84  ;;  %v8941_v26 = vsub.f32 %v12207_v60, %v1082_v29  ;;  %v8944_v41 = vsub.f32 %v12209_v18, %v1082_v29  ;;  %v8948_v62 = vsub.f32 %v12211_v36, %v1082_v29  ;;  %v12218_v37 = vld [vmem:[#allocation173_spill] sm:$0xff] }
 0x248   : > { %12205 = vst [vmem:[#allocation169_spill] sm:$0xff] %v8934_v11  ;;  %12206 = vst [vmem:[#allocation6_spill] sm:$0xff] %v8938_v32  ;;  %vm2257_vm9 = vcmp.le.f32.partialorder %v2129_v48, 4.84  ;;  %vm2258_vm10 = vcmp.le.f32.partialorder %v2130_v21, 4.84 }
 0x249   : > { %12208 = vst [vmem:[#allocation87_spill] sm:$0xff] %v8941_v26  ;;  %12210 = vst [vmem:[#allocation89_spill] sm:$0xff] %v8944_v41  ;;  %v5603_v59 = vsel %vm2256_vm8, 1.0, %v11767_v49  ;;  %vm2259_vm11 = vcmp.le.f32.partialorder %v2131_v30, 4.84  ;;  %v5604_v31 = vsel %vm2257_vm9, 1.0, %v11767_v49 }
 0x24a   : > { %12212 = vst [vmem:[#allocation153_spill] sm:$0xff] %v8948_v62  ;;  %v5605_v38 = vsel %vm2258_vm10, 1.0, %v11767_v49  ;;  %v2795_v35 = vsel %vm2572_vm2, %v5603_v59, 0.0  ;;  %v5606_v24 = vsel %vm2259_vm11, 1.0, %v11767_v49  ;;  %v2796_v2 = vsel %vm2572_vm2, %v5604_v31, 0.0  ;;  %v12214_v48 = vld [vmem:[#allocation212_spill] sm:$0xff] }
 0x24b   : > { %v3058_v33 = vmul.f32 %v5603_v59, %v12213_v42  ;;  %v8957_v21 = vsub.f32 %v12214_v48, %v1082_v29  ;;  %v2797_v28 = vadd.f32 %v2796_v2, %v2795_v35  ;;  %v2798_v27 = vsel %vm2572_vm2, %v5605_v38, 0.0  ;;  %v12217_v32 = vld [vmem:[#allocation172_spill] sm:$0xff] }
 0x24c   : > { %v3059_v30 = vmul.f32 %v5604_v31, %v12216_v55  ;;  %v3060_v11 = vmul.f32 %v5605_v38, %v12217_v32  ;;  %v3061_v46 = vmul.f32 %v5606_v24, %v12218_v37  ;;  %v3602_v5 = vmul.f32 %v5603_v59, %v1180_v6 }
 0x24d   : > { %12215 = vst [vmem:[#allocation231_spill] sm:$0xff] %v8957_v21  ;;  %v3339_v22 = vsel %vm2572_vm2, %v3058_v33, 0.0  ;;  %v3603_v58 = vmul.f32 %v5604_v31, %v1181_v23  ;;  %v2799_v52 = vadd.f32 %v2798_v27, %v2797_v28  ;;  %v2800_v54 = vsel %vm2578_vm3, %v5606_v24, 0.0 }
 0x24e   : > { %v3340_v42 = vsel %vm2572_vm2, %v3059_v30, 0.0  ;;  %v3604_v29 = vmul.f32 %v5605_v38, %v1182_v15  ;;  %v3342_v35 = vsel %vm2572_vm2, %v3060_v11, 0.0  ;;  %v3605_v2 = vmul.f32 %v5606_v24, %v1183_v61 }
 0x24f   : > { %v3341_v12 = vadd.f32 %v3340_v42, %v3339_v22  ;;  %v3883_v55 = vsel %vm2572_vm2, %v3602_v5, 0.0  ;;  %v2801_v7 = vadd.f32 %v2800_v54, %v2799_v52  ;;  %v3344_v32 = vsel %vm2578_vm3, %v3061_v46, 0.0 }
 0x250   : > { %v3884_v37 = vsel %vm2572_vm2, %v3603_v58, 0.0  ;;  %v4146_v6 = vmul.f32 %v5603_v59, %v8883_v0  ;;  %v3886_v27 = vsel %vm2572_vm2, %v3604_v29, 0.0  ;;  %v4147_v33 = vmul.f32 %v5604_v31, %v8886_v17 }
 0x251   : > { %v3343_v23 = vadd.f32 %v3342_v35, %v3341_v12  ;;  %v3885_v28 = vadd.f32 %v3884_v37, %v3883_v55  ;;  %v2802_v15 = vrot.slane %v2801_v7, 4  ;;  %v4148_v22 = vmul.f32 %v5605_v38, %v8895_v10  ;;  %v1418_v38 = vpop.permute.xlu0 %1417 }
 0x252   : > { %v4149_v61 = vmul.f32 %v5606_v24, %v8898_v43  ;;  %v4427_v5 = vsel %vm2572_vm2, %v4146_v6, 0.0  ;;  %v4428_v11 = vsel %vm2572_vm2, %v4147_v33, 0.0  ;;  %v1772_v58 = vmul.f32 %v8941_v26, %v8941_v26  ;;  %v1318_v24 = vpop.permute.xlu1 %1317 }
 0x253   : > { %v3345_v52 = vadd.f32 %v3344_v32, %v3343_v23  ;;  %v3887_v54 = vadd.f32 %v3886_v27, %v3885_v28  ;;  %v2803_v0 = vadd.f32 %v2802_v15, %v2801_v7  ;;  %v3888_v12 = vsel %vm2578_vm3, %v3605_v2, 0.0  ;;  %v12221_v28 = vld [vmem:[#allocation117_spill] sm:$0xff] }
 0x254   : > { %v4429_v46 = vadd.f32 %v4428_v11, %v4427_v5  ;;  %v8982_v17 = vmul.f32 %v8926_v57, %v8926_v57  ;;  %v4430_v43 = vsel %vm2572_vm2, %v4148_v22, 0.0  ;;  %v1773_v31 = vmul.f32 %v8944_v41, %v8944_v41  ;;  %v12223_v22 = vld [vmem:[#allocation180_spill] sm:$0xff] }
 0x255   : > { %v3346_v10 = vrot.slane %v3345_v52, 4  ;;  %v3889_v59 = vadd.f32 %v3888_v12, %v3887_v54  ;;  %v2804_v30 = vrot.slane %v2803_v0, 2  ;;  %v1774_v7 = vmul.f32 %v8948_v62, %v8948_v62  ;;  %v12228_v12 = vld [vmem:[#allocation130_spill] sm:$0xff]  ;;  %v12251_v62 = vld [vmem:[#allocation105_spill] sm:$0xff] }
 0x256   : > { %12219 = vst [vmem:[#allocation62_spill] sm:$0xff] %v8982_v17  ;;  %v4431_v42 = vadd.f32 %v4430_v43, %v4429_v46  ;;  %v1775_v29 = vmul.f32 %v8957_v21, %v8957_v21  ;;  %v4432_v55 = vsel %vm2578_vm3, %v4149_v61, 0.0  ;;  %v8993_v32 = vadd.f32 %v1772_v58, %v8783_v8 }
 0x257   : > { %v3347_v35 = vadd.f32 %v3346_v10, %v3345_v52  ;;  %v3890_v2 = vrot.slane %v3889_v59, 4  ;;  %v8995_v37 = vadd.f32 %v2804_v30, %v2803_v0  ;;  %v8998_v23 = vadd.f32 %v1773_v31, %v8787_v19  ;;  %v12225_v52 = vld [vmem:[#allocation229_spill] sm:$0xff] }
 0x258   : > { %v4433_v6 = vadd.f32 %v4432_v55, %v4431_v42  ;;  %v9001_v27 = vsub.f32 %v12221_v28, %v1418_v38  ;;  %v9004_v5 = vsub.f32 %v12223_v22, %v1418_v38  ;;  %v9007_v54 = vsub.f32 %v12225_v52, %v1418_v38 }
 0x259   : > { %12220 = vst [vmem:[#allocation20_spill] sm:$0xff] %v8995_v37  ;;  %v3348_v33 = vrot.slane %v3347_v35, 2  ;;  %v3891_v15 = vadd.f32 %v3890_v2, %v3889_v59  ;;  %v9011_v11 = vadd.f32 %v1774_v7, %v8807_v45  ;;  %v9014_v19 = vadd.f32 %v1775_v29, %v8820_v14  ;;  %v750_v59 = vpop.permute.xlu1 %749 }
 0x25a   : > { %12222 = vst [vmem:[#allocation64_spill] sm:$0xff] %v9001_v27  ;;  %12224 = vst [vmem:[#allocation22_spill] sm:$0xff] %v9004_v5  ;;  %v4434_v61 = vrot.slane %v4433_v6, 4  ;;  %v9019_v46 = vsub.f32 %v12228_v12, %v1418_v38  ;;  %v9023_v10 = vmul.f32 %v9001_v27, %v9001_v27  ;;  %v9027_v31 = vmul.f32 %v9004_v5, %v9004_v5  ;;  %v12240_v27 = vld [vmem:[#allocation95_spill] sm:$0xff] }
 0x25b   : > { %12226 = vst [vmem:[#allocation40_spill] sm:$0xff] %v9007_v54  ;;  %v9016_v58 = vadd.f32 %v3348_v33, %v3347_v35  ;;  %v3892_v0 = vrot.slane %v3891_v15, 2  ;;  %v1444_v45 = vsub.f32 %v6798_v51, %v1318_v24  ;;  %v1445_v14 = vsub.f32 %v7069_v25, %v1318_v24 }
 0x25c   : > { %12229 = vst [vmem:[#allocation50_spill] sm:$0xff] %v9019_v46  ;;  %12230 = vst [vmem:[#allocation147_spill] sm:$0xff] %v9023_v10  ;;  %v4435_v43 = vadd.f32 %v4434_v61, %v4433_v6  ;;  %v9033_v42 = vmul.f32 %v9007_v54, %v9007_v54  ;;  %v1446_v38 = vsub.f32 %v7277_v39, %v1318_v24  ;;  %vm4660_vm6 = vcmask 1044484  }
 0x25d   : > { %12227 = vst [vmem:[#allocation146_spill] sm:$0xff] %v9016_v58  ;;  %12231 = vst [vmem:[#allocation150_spill] sm:$0xff] %v9027_v31  ;;  %v3893_v30 = vadd.f32 %v3892_v0, %v3891_v15  ;;  %v1447_v7 = vsub.f32 %v11817_v47, %v1318_v24  ;;  %v1956_v35 = vmul.f32 %v1444_v45, %v1444_v45  ;;  %v12235_v0 = vld [vmem:[#allocation93_spill] sm:$0xff]  ;;  %v12236_v58 = vld [vmem:[#allocation94_spill] sm:$0xff]  ;;  %v782_v17 = vpop.permute.xlu1 %781  ;;  %vm4662_vm7 = vcmask 1045509  }
 0x25e   : > { %12232 = vst [vmem:[#allocation174_spill] sm:$0xff] %v9033_v42  ;;  %v4436_v29 = vrot.slane %v4435_v43, 2  ;;  %v1957_v2 = vmul.f32 %v1445_v14, %v1445_v14  ;;  %v9038_v55 = vsub.f32 %v12118_v4, %v750_v59  ;;  %v9042_v33 = vmul.f32 %v9019_v46, %v9019_v46  ;;  %v12241_v31 = vld [vmem:[#allocation97_spill] sm:$0xff] }
 0x25f   : > { %v3894_v6 = vrot.slane %v3893_v30, 1  ;;  %v1958_v15 = vmul.f32 %v1446_v38, %v1446_v38  ;;  %v1959_v61 = vmul.f32 %v1447_v7, %v1447_v7  ;;  %v2084_v8 = vadd.f32 %v1956_v35, %v12235_v0  ;;  %v12247_v0 = vld [vmem:[#allocation38_spill] sm:$0xff] }
 0x260   : > { %12233 = vst [vmem:[#allocation175_spill] sm:$0xff] %v9038_v55  ;;  %12234 = vst [vmem:[#allocation151_spill] sm:$0xff] %v9042_v33  ;;  %v2085_v37 = vadd.f32 %v1957_v2, %v12236_v58  ;;  %v9047_v54 = vsub.f32 %v12121_v40, %v750_v59  ;;  %v9050_v24 = vsub.f32 %v12123_v50, %v750_v59  ;;  %vm4664_vm8 = vcmask 1046534  }
 0x261   : > { %v9052_v5 = vadd.f32 %v4436_v29, %v4435_v43  ;;  %v2086_v42 = vadd.f32 %v1958_v15, %v12240_v27  ;;  %v2087_v10 = vadd.f32 %v1959_v61, %v12241_v31  ;;  %v9057_v46 = vsub.f32 %v12125_v56, %v750_v59  ;;  %v12246_v15 = vld [vmem:[#allocation37_spill] sm:$0xff] }
 0x262   : > { %12237 = vst [vmem:[#allocation203_spill] sm:$0xff] %v9047_v54  ;;  %12238 = vst [vmem:[#allocation8_spill] sm:$0xff] %v9050_v24  ;;  %v9059_v33 = vadd.f32 %v3894_v6, %v3893_v30  ;;  %vm2212_vm12 = vcmp.le.f32.partialorder %v2084_v8, 4.84  ;;  %vm2213_vm13 = vcmp.le.f32.partialorder %v2085_v37, 4.84  ;;  %v1620_v58 = vmul.f32 %v9038_v55, %v9038_v55 }
 0x263   : > { %12239 = vst [vmem:[#allocation157_spill] sm:$0xff] %v9052_v5  ;;  %12242 = vst [vmem:[#allocation232_spill] sm:$0xff] %v9057_v46  ;;  %vm2214_vm14 = vcmp.le.f32.partialorder %v2086_v42, 4.84  ;;  %vm2215_vm15 = vcmp.le.f32.partialorder %v2087_v10, 4.84  ;;  %v1621_v10 = vmul.f32 %v9047_v54, %v9047_v54 }
 0x264   : > { %12243 = vst [vmem:[#allocation158_spill] sm:$0xff] %v9059_v33  ;;  %v5559_v35 = vsel %vm2212_vm12, 1.0, %v11767_v49  ;;  %v5560_v43 = vsel %vm2213_vm13, 1.0, %v11767_v49  ;;  %v5561_v27 = vsel %vm2214_vm14, 1.0, %v11767_v49  ;;  %v5562_v31 = vsel %vm2215_vm15, 1.0, %v11767_v49  ;;  %v12244_v8 = vld [vmem:[#allocation35_spill] sm:$0xff] }
 0x265   : > { %v2652_v59 = vsel %vm2572_vm2, %v5559_v35, 0.0  ;;  %v2653_v30 = vsel %vm2572_vm2, %v5560_v43, 0.0  ;;  %v2655_v37 = vsel %vm2572_vm2, %v5561_v27, 0.0  ;;  %v3014_v2 = vmul.f32 %v5559_v35, %v12244_v8  ;;  %v12245_v42 = vld [vmem:[#allocation36_spill] sm:$0xff]  ;;  %v12253_v54 = vld [vmem:[#allocation193_spill] sm:$0xff] }
 0x266   : > { %v2654_v29 = vadd.f32 %v2653_v30, %v2652_v59  ;;  %v3015_v6 = vmul.f32 %v5560_v43, %v12245_v42  ;;  %v3016_v61 = vmul.f32 %v5561_v27, %v12246_v15  ;;  %v3017_v5 = vmul.f32 %v5562_v31, %v12247_v0  ;;  %v12248_v33 = vld [vmem:[#allocation120_spill] sm:$0xff]  ;;  %v12250_v30 = vld [vmem:[#allocation90_spill] sm:$0xff] }
 0x267   : > { %v3558_v57 = vmul.f32 %v5559_v35, %v12248_v33  ;;  %v3196_v59 = vsel %vm2572_vm2, %v3014_v2, 0.0  ;;  %v3559_v21 = vmul.f32 %v5560_v43, %v12250_v30  ;;  %v3560_v8 = vmul.f32 %v5561_v27, %v12251_v62 }
 0x268   : > { %v9077_v55 = vadd.f32 %v2655_v37, %v2654_v29  ;;  %v9083_v41 = vsel %vm2578_vm3, %v5562_v31, 0.0  ;;  %v3197_v42 = vsel %vm2572_vm2, %v3015_v6, 0.0  ;;  %v9087_v15 = vmul.f32 %v5562_v31, %v12253_v54 }
 0x269   : > { %12252 = vst [vmem:[#allocation160_spill] sm:$0xff] %v9083_v41  ;;  %v1622_v33 = vmul.f32 %v9050_v24, %v9050_v24  ;;  %v3198_v0 = vadd.f32 %v3197_v42, %v3196_v59  ;;  %v3199_v29 = vsel %vm2572_vm2, %v3016_v61, 0.0  ;;  %v3740_v37 = vsel %vm2572_vm2, %v3558_v57, 0.0  ;;  %v12256_v42 = vld [vmem:[#allocation7_spill] sm:$0xff]  ;;  %v12282_v24 = vld [vmem:[#allocation77_spill] sm:$0xff] }
 0x26a   : > { %12249 = vst [vmem:[#allocation159_spill] sm:$0xff] %v9077_v55  ;;  %v3741_v2 = vsel %vm2572_vm2, %v3559_v21, 0.0  ;;  %v4102_v62 = vmul.f32 %v5559_v35, %v1444_v45  ;;  %v4103_v55 = vmul.f32 %v5560_v43, %v1445_v14  ;;  %v4104_v41 = vmul.f32 %v5561_v27, %v1446_v38  ;;  %v1090_v14 = vpop.permute.xlu1 %1089  ;;  %v12258_v43 = vld [vmem:[#allocation238_spill] sm:$0xff] }
 0x26b   : > { %v9094_v30 = vadd.f32 %v3741_v2, %v3740_v37  ;;  %v9096_v26 = vadd.f32 %v3199_v29, %v3198_v0  ;;  %v9099_v54 = vsel %vm2578_vm3, %v3017_v5, 0.0  ;;  %v9102_v6 = vsel %vm2572_vm2, %v3560_v8, 0.0  ;;  %v12267_v29 = vld [vmem:[#allocation55_spill] sm:$0xff]  ;;  %v12269_v2 = vld [vmem:[#allocation57_spill] sm:$0xff] }
 0x26c   : > { %12255 = vst [vmem:[#allocation234_spill] sm:$0xff] %v9099_v54  ;;  %v4105_v59 = vmul.f32 %v5562_v31, %v1447_v7  ;;  %v4284_v61 = vsel %vm2572_vm2, %v4102_v62, 0.0  ;;  %v4285_v57 = vsel %vm2572_vm2, %v4103_v55, 0.0  ;;  %v1623_v21 = vmul.f32 %v9057_v46, %v9057_v46  ;;  %v12274_v54 = vld [vmem:[#allocation254_spill] sm:$0xff] }
 0x26d   : > { %12254 = vst [vmem:[#allocation233_spill] sm:$0xff] %v9096_v26  ;;  %v9109_v45 = vadd.f32 %v12256_v42, %v1620_v58  ;;  %v4286_v38 = vadd.f32 %v4285_v57, %v4284_v61  ;;  %v4287_v35 = vsel %vm2572_vm2, %v4104_v41, 0.0  ;;  %v9114_v27 = vadd.f32 %v12258_v43, %v1621_v10 }
 0x26e   : > { %v4289_v5 = vsel %vm2578_vm3, %v4105_v59, 0.0  ;;  %v9117_v7 = vsub.f32 %v12139_v63, %v782_v17  ;;  %v9120_v55 = vsub.f32 %v12143_v16, %v782_v17  ;;  %v9123_v31 = vsub.f32 %v12145_v44, %v782_v17 }
 0x26f   : > { %12257 = vst [vmem:[#allocation237_spill] sm:$0xff] %v9109_v45  ;;  %12259 = vst [vmem:[#allocation18_spill] sm:$0xff] %v9114_v27  ;;  %v9126_v58 = vsub.f32 %v12148_v34, %v782_v17  ;;  %v4288_v8 = vadd.f32 %v4287_v35, %v4286_v38  ;;  %v9129_v41 = vsub.f32 %v12207_v60, %v1090_v14  ;;  %v12272_v35 = vld [vmem:[#allocation47_spill] sm:$0xff]  ;;  %vm4666_vm9 = vcmask 1047559  }
 0x270   : > { %12260 = vst [vmem:[#allocation188_spill] sm:$0xff] %v9117_v7  ;;  %12261 = vst [vmem:[#allocation189_spill] sm:$0xff] %v9120_v55  ;;  %v9132_v0 = vsub.f32 %v12209_v18, %v1090_v14  ;;  %v9135_v10 = vsub.f32 %v12211_v36, %v1090_v14  ;;  %v9138_v37 = vadd.f32 %v12267_v29, %v1622_v33  ;;  %v3775_v43 = vrot.slane %v12272_v35, 2  ;;  %v12363_v27 = vld [vmem:[#allocation59_spill] sm:$0xff] }
 0x271   : > { %12262 = vst [vmem:[#allocation190_spill] sm:$0xff] %v9123_v31  ;;  %12263 = vst [vmem:[#allocation92_spill] sm:$0xff] %v9126_v58  ;;  %v9141_v62 = vadd.f32 %v12269_v2, %v1623_v21  ;;  %v1652_v17 = vmul.f32 %v9117_v7, %v9117_v7  ;;  %v1653_v59 = vmul.f32 %v9120_v55, %v9120_v55 }
 0x272   : > { %12264 = vst [vmem:[#allocation161_spill] sm:$0xff] %v9129_v41  ;;  %12265 = vst [vmem:[#allocation107_spill] sm:$0xff] %v9132_v0  ;;  %v4290_v61 = vadd.f32 %v4289_v5, %v4288_v8  ;;  %v9148_v57 = vsub.f32 %v12214_v48, %v1090_v14  ;;  %v1780_v42 = vmul.f32 %v9129_v41, %v9129_v41  ;;  %v12273_v5 = vrot.slane %v8643_v9, 2 }
 0x273   : > { %12266 = vst [vmem:[#allocation170_spill] sm:$0xff] %v9135_v10  ;;  %12268 = vst [vmem:[#allocation212_spill] sm:$0xff] %v9138_v37  ;;  %v1781_v33 = vmul.f32 %v9132_v0, %v9132_v0  ;;  %v1654_v21 = vmul.f32 %v9123_v31, %v9123_v31  ;;  %v1782_v38 = vmul.f32 %v9135_v10, %v9135_v10  ;;  %v12277_v31 = vld [vmem:[#allocation17_spill] sm:$0xff] }
 0x274   : > { %12270 = vst [vmem:[#allocation171_spill] sm:$0xff] %v9141_v62  ;;  %12271 = vst [vmem:[#allocation172_spill] sm:$0xff] %v9148_v57  ;;  %v3789_v8 = vadd.f32 %v12273_v5, %v8643_v9  ;;  %v4291_v14 = vrot.slane %v4290_v61, 4  ;;  %v1655_v29 = vmul.f32 %v9126_v58, %v9126_v58  ;;  %v1783_v2 = vmul.f32 %v9148_v57, %v9148_v57  ;;  %v12280_v58 = vld [vmem:[#allocation45_spill] sm:$0xff] }
 0x275   : > { %v3597_v26 = vmul.f32 %v8833_v20, %v12274_v54  ;;  %v9168_v0 = vadd.f32 %v1780_v42, %v1652_v17  ;;  %v9170_v41 = vadd.f32 %v1781_v33, %v1653_v59  ;;  %v3776_v10 = vadd.f32 %v3775_v43, %v12272_v35 }
 0x276   : > { %v12278_v55 = vrot.slane %v12277_v31, 4  ;;  %v9176_v5 = vadd.f32 %v1782_v38, %v1654_v21  ;;  %v3790_v7 = vrot.slane %v3789_v8, 1  ;;  %v12281_v46 = vrot.slane %v12280_v58, 4 }
 0x277   : > { %12275 = vst [vmem:[#allocation173_spill] sm:$0xff] %v9168_v0  ;;  %12276 = vst [vmem:[#allocation117_spill] sm:$0xff] %v9170_v41  ;;  %v3825_v62 = vrot.slane %v12282_v24, 4  ;;  %v9182_v54 = vadd.f32 %v4291_v14, %v4290_v61  ;;  %v9184_v17 = vadd.f32 %v1783_v2, %v1655_v29  ;;  %v3837_v42 = vadd.f32 %v8577_v53, %v8535_v1  ;;  %v12285_v61 = vld [vmem:[#allocation27_spill] sm:$0xff] }
 0x278   : > { %v3800_v9 = vadd.f32 %v12278_v55, %v12277_v31  ;;  %12279 = vst [vmem:[#allocation180_spill] sm:$0xff] %v9176_v5  ;;  %v3813_v57 = vadd.f32 %v12281_v46, %v12280_v58  ;;  %v3777_v33 = vrot.slane %v3776_v10, 1  ;;  %v3848_v31 = vadd.f32 %v8776_v13, %v8770_v3  ;;  %v12284_v46 = vld [vmem:[#allocation166_spill] sm:$0xff] }
 0x279   : > { %12283 = vst [vmem:[#allocation93_spill] sm:$0xff] %v9184_v17  ;;  %v3826_v55 = vadd.f32 %v3825_v62, %v12282_v24  ;;  %v3838_v38 = vrot.slane %v3837_v42, 4  ;;  %v3849_v58 = vsel %vm2578_vm3, %v12284_v46, 0.0  ;;  %v3857_v43 = vsel %vm2572_vm2, %v12285_v61, 0.0  ;;  %v12286_v17 = vld [vmem:[#allocation29_spill] sm:$0xff] }
 0x27a   : > { %v3801_v59 = vrot.slane %v3800_v9, 2  ;;  %v3814_v35 = vrot.slane %v3813_v57, 2  ;;  %v3850_v2 = vadd.f32 %v3849_v58, %v3848_v31  ;;  %v3858_v1 = vsel %vm2572_vm2, %v12286_v17, 0.0 }
 0x27b   : > { %v3827_v29 = vrot.slane %v3826_v55, 2  ;;  %v3791_v53 = vadd.f32 %v3790_v7, %v3789_v8  ;;  %v3839_v24 = vadd.f32 %v3838_v38, %v3837_v42  ;;  %v3859_v62 = vadd.f32 %v3858_v1, %v3857_v43  ;;  %v1322_v42 = vpop.permute.xlu1 %1321 }
 0x27c   : > { %v3802_v21 = vadd.f32 %v3801_v59, %v3800_v9  ;;  %v3815_v14 = vadd.f32 %v3814_v35, %v3813_v57  ;;  %v3851_v13 = vrot.slane %v3850_v2, 4  ;;  %v12287_v9 = vld [vmem:[#allocation72_spill] sm:$0xff]  ;;  %v3778_v46 = vadd.f32 %v3777_v33, %v3776_v10 }
 0x27d   : > { %v3828_v3 = vadd.f32 %v3827_v29, %v3826_v55  ;;  %v3860_v59 = vsel %vm2572_vm2, %v12287_v9, 0.0  ;;  %v3840_v0 = vrot.slane %v3839_v24, 2  ;;  %v3862_v57 = vsel %vm2578_vm3, %v3597_v26, 0.0  ;;  %v12288_v9 = vld [vmem:[#allocation98_spill] sm:$0xff] }
 0x27e   : > { %v3803_v5 = vrot.slane %v3802_v21, 1  ;;  %v3816_v41 = vrot.slane %v3815_v14, 1  ;;  %v3861_v37 = vadd.f32 %v3860_v59, %v3859_v62  ;;  %v3852_v58 = vadd.f32 %v3851_v13, %v3850_v2 }
 0x27f   : > { %v3829_v31 = vrot.slane %v3828_v3, 1  ;;  %v3841_v7 = vadd.f32 %v3840_v0, %v3839_v24  ;;  %v4732_v33 = vsel %vm4654_vm0, %v3791_v53, %v3778_v46  ;;  %v292_v0 = vld [vmem:[%s6317_s13 + $0x10] sm:$0xff]  ;;  %v1450_v29 = vsub.f32 %v7277_v39, %v1322_v42 }
 0x280   : > { %v3804_v35 = vadd.f32 %v3803_v5, %v3802_v21  ;;  %v3817_v17 = vadd.f32 %v3816_v41, %v3815_v14  ;;  %v3863_v8 = vadd.f32 %v3862_v57, %v3861_v37  ;;  %v3853_v38 = vrot.slane %v3852_v58, 2  ;;  %5667 = vmatmul.mubr.msk.f32.gmra.mrb[4].mxu0 %vm4927_vm1, %v292_v0  ;;  %5673 = vmatmul.mubr.msk.f32.gmra.mrb[4].mxu1 %vm4927_vm1, %v292_v0 }
 0x281   : > { %v3830_v55 = vadd.f32 %v3829_v31, %v3828_v3  ;;  %v3842_v61 = vrot.slane %v3841_v7, 1  ;;  %v1448_v21 = vsub.f32 %v6798_v51, %v1322_v42  ;;  %v1449_v41 = vsub.f32 %v7069_v25, %v1322_v42  ;;  %5031 = vmatprep.mubr.f32.mxu0 %v11767_v49  ;;  %5120 = vmatprep.mubr.f32.mxu1 %v11767_v49 }
 0x282   : > { %v3864_v10 = vrot.slane %v3863_v8, 4  ;;  %v3854_v26 = vadd.f32 %v3853_v38, %v3852_v58  ;;  %v4733_v5 = vsel %vm4656_vm4, %v3804_v35, %v4732_v33  ;;  %v1451_v53 = vsub.f32 %v11817_v47, %v1322_v42  ;;  %v12289_v47 = vld [vmem:[#allocation99_spill] sm:$0xff]  ;;  %v12290_v35 = vld [vmem:[#allocation100_spill] sm:$0xff] }
 0x283   : > { %v3843_v37 = vadd.f32 %v3842_v61, %v3841_v7  ;;  %v4734_v14 = vsel %vm4658_vm5, %v3817_v17, %v4733_v5  ;;  %v1960_v24 = vmul.f32 %v1448_v21, %v1448_v21  ;;  %v1961_v62 = vmul.f32 %v1449_v41, %v1449_v41  ;;  %v12291_v17 = vld [vmem:[#allocation108_spill] sm:$0xff] }
 0x284   : > { %v3865_v43 = vadd.f32 %v3864_v10, %v3863_v8  ;;  %v3855_v2 = vrot.slane %v3854_v26, 1  ;;  %v4735_v1 = vsel %vm4660_vm6, %v3830_v55, %v4734_v14  ;;  %v1962_v3 = vmul.f32 %v1450_v29, %v1450_v29  ;;  %v12292_v8 = vld [vmem:[#allocation68_spill] sm:$0xff] }
 0x285   : > { %v4736_v25 = vsel %vm4662_vm7, %v3843_v37, %v4735_v1  ;;  %v1963_v13 = vmul.f32 %v1451_v53, %v1451_v53  ;;  %v2088_v59 = vadd.f32 %v1960_v24, %v12288_v9  ;;  %v2089_v57 = vadd.f32 %v1961_v62, %v12289_v47  ;;  %v12294_v37 = vld [vmem:[#allocation121_spill] sm:$0xff]  ;;  %v12297_v1 = vld [vmem:[#allocation83_spill] sm:$0xff] }
 0x286   : > { %v3866_v51 = vrot.slane %v3865_v43, 2  ;;  %v3856_v39 = vadd.f32 %v3855_v2, %v3854_v26  ;;  %v2090_v31 = vadd.f32 %v1962_v3, %v12290_v35  ;;  %v4347_v42 = vrot.slane %v12292_v8, 1  ;;  %v12299_v62 = vld [vmem:[#allocation85_spill] sm:$0xff] }
 0x287   : > { %v2091_v7 = vadd.f32 %v1963_v13, %v12291_v17  ;;  %vm2216_vm10 = vcmp.le.f32.partialorder %v2088_v59, 4.84  ;;  %vm2217_vm11 = vcmp.le.f32.partialorder %v2089_v57, 4.84  ;;  %v12300_v13 = vld [vmem:[#allocation78_spill] sm:$0xff]  ;;  %v12301_v59 = vld [vmem:[#allocation137_spill] sm:$0xff] }
 0x288   : > { %v3867_v46 = vadd.f32 %v3866_v51, %v3865_v43  ;;  %v4737_v58 = vsel %vm4664_vm8, %v3856_v39, %v4736_v25  ;;  %vm2218_vm12 = vcmp.le.f32.partialorder %v2090_v31, 4.84  ;;  %v5563_v38 = vsel %vm2216_vm10, 1.0, %v11767_v49  ;;  %v12298_v51 = vld [vmem:[#allocation84_spill] sm:$0xff]  ;;  %v12303_v17 = vld [vmem:[#allocation138_spill] sm:$0xff] }
 0x289   : > { %vm2219_vm13 = vcmp.le.f32.partialorder %v2091_v7, 4.84  ;;  %v5564_v61 = vsel %vm2217_vm11, 1.0, %v11767_v49  ;;  %v5565_v10 = vsel %vm2218_vm12, 1.0, %v11767_v49  ;;  %v2665_v33 = vsel %vm2572_vm2, %v5563_v38, 0.0 }
 0x28a   : > { %v3868_v55 = vrot.slane %v3867_v46, 1  ;;  %v9225_v5 = vsel %vm2219_vm13, 1.0, %v11767_v49  ;;  %v2666_v0 = vsel %vm2572_vm2, %v5564_v61, 0.0  ;;  %v12295_v43 = vrot.slane %v12294_v37, 1 }
 0x28b   : > { %12293 = vst [vmem:[#allocation94_spill] sm:$0xff] %v9225_v5  ;;  %v9231_v2 = vadd.f32 %v2666_v0, %v2665_v33  ;;  %v3018_v24 = vmul.f32 %v5563_v38, %v12297_v1  ;;  %v3019_v25 = vmul.f32 %v5564_v61, %v12298_v51  ;;  %v3020_v3 = vmul.f32 %v5565_v10, %v12299_v62 }
 0x28c   : > { %v3869_v26 = vadd.f32 %v3868_v55, %v3867_v46  ;;  %v4361_v14 = vadd.f32 %v12295_v43, %v12294_v37  ;;  %v3562_v9 = vmul.f32 %v5563_v38, %v12300_v13  ;;  %v3563_v46 = vmul.f32 %v5564_v61, %v12301_v59 }
 0x28d   : > { %12296 = vst [vmem:[#allocation95_spill] sm:$0xff] %v9231_v2  ;;  %v4348_v47 = vadd.f32 %v4347_v42, %v12292_v8  ;;  %v9242_v57 = vsel %vm2572_vm2, %v5565_v10, 0.0  ;;  %v3209_v35 = vsel %vm2572_vm2, %v3018_v24, 0.0  ;;  %v3210_v31 = vsel %vm2572_vm2, %v3019_v25, 0.0  ;;  %v12308_v42 = vld [vmem:[#allocation122_spill] sm:$0xff]  ;;  %v12309_v24 = vld [vmem:[#allocation179_spill] sm:$0xff] }
 0x28e   : > { %v4738_v39 = vsel %vm4666_vm9, %v3869_v26, %v4737_v58  ;;  %12302 = vst [vmem:[#allocation97_spill] sm:$0xff] %v9242_v57  ;;  %v9247_v7 = vmul.f32 %v5565_v10, %v12303_v17  ;;  %v12304_v58 = vld [vmem:[#allocation96_spill] sm:$0xff]  ;;  %v9253_v33 = vadd.f32 %v3210_v31, %v3209_v35  ;;  %v9256_v8 = vsel %vm2572_vm2, %v3020_v3, 0.0  ;;  %v12310_v25 = vld [vmem:[#allocation163_spill] sm:$0xff]  ;;  %v12313_v35 = vld [vmem:[#allocation134_spill] sm:$0xff]  ;;  %v754_v31 = vpop.permute.xlu1 %753 }
 0x28f   : > { %4755 = vrot.lane.b32.xlu0 %v4738_v39, %s5938_s9  ;;  %v9251_v55 = vmul.f32 %v9225_v5, %v12304_v58  ;;  %12307 = vst [vmem:[#allocation37_spill] sm:$0xff] %v9256_v8  ;;  %v9260_v26 = vmul.f32 %v9225_v5, %v12308_v42  ;;  %v4106_v0 = vmul.f32 %v5563_v38, %v1448_v21  ;;  %v4373_v51 = vrot.slane %v12309_v24, 1  ;;  %v12311_v39 = vld [vmem:[#allocation103_spill] sm:$0xff]  ;;  %v12333_v8 = vld [vmem:[#allocation113_spill] sm:$0xff]  ;;  %v12366_v57 = vld [vmem:[#allocation168_spill] sm:$0xff] }
 0x290   : > { %12306 = vst [vmem:[#allocation36_spill] sm:$0xff] %v9253_v33  ;;  %v4107_v37 = vmul.f32 %v5564_v61, %v1449_v41  ;;  %v4108_v43 = vmul.f32 %v5565_v10, %v1450_v29  ;;  %v4109_v1 = vmul.f32 %v9225_v5, %v1451_v53  ;;  %v4384_v62 = vrot.slane %v12310_v25, 2  ;;  %v293_v29 = vld [vmem:[%s6317_s13 + $0x18] sm:$0xff]  ;;  %s5873_s13 = sshll.u32 %s5943_s22, 4  ;;  %s5874_s13 = int_to_ptr.vmem [resolvable:$false] %s5873_s13 }
 0x291   : > { %12305 = vst [vmem:[#allocation35_spill] sm:$0xff] %v9251_v55  ;;  %v12312_v13 = vrot.slane %v12311_v39, 4  ;;  %v4408_v3 = vrot.slane %v12313_v35, 4  ;;  %v4297_v17 = vsel %vm2572_vm2, %v4106_v0, 0.0  ;;  %v4374_v38 = vadd.f32 %v4373_v51, %v12309_v24  ;;  %5668 = vmatmul.mubr.msk.f32.gmra.mrb[6].mxu0 %vm4927_vm1, %v293_v29  ;;  %5674 = vmatmul.mubr.msk.f32.gmra.mrb[6].mxu1 %vm4927_vm1, %v293_v29  ;;  %v12314_v0 = vld [vmem:[#allocation67_spill] sm:$0xff]  ;;  %s5875_s15 = scalar_lea.vmem %s5874_s13, 1024  ;;  %p5876_p0 = scmp.lt.s32.totalorder %s11022_s30, %s5874_s13 }
 0x292   : > { %v4298_v58 = vsel %vm2572_vm2, %v4107_v37, 0.0  ;;  %v4300_v21 = vsel %vm2572_vm2, %v4108_v43, 0.0  ;;  %v4302_v41 = vsel %vm2578_vm3, %v4109_v1, 0.0  ;;  %v4385_v61 = vadd.f32 %v4384_v62, %v12310_v25  ;;  %p5877_p1 = scmp.lt.s32.totalorder %s5875_s15, %s5869_s12 }
 0x293   : > { %v4396_v59 = vadd.f32 %v12312_v13, %v12311_v39  ;;  %v4299_v53 = vadd.f32 %v4298_v58, %v4297_v17  ;;  %v4409_v42 = vadd.f32 %v4408_v3, %v12313_v35  ;;  %v12315_v39 = vld [vmem:[#allocation149_spill] sm:$0xff]  ;;  %v9283_v43 = vsub.f32 %v12118_v4, %v754_v31 }
 0x294   : > { %v4804_v37 = vsel %vm4654_vm0, %v12315_v39, %v12314_v0  ;;  %v9286_v1 = vsub.f32 %v12121_v40, %v754_v31  ;;  %v4386_v51 = vrot.slane %v4385_v61, 1  ;;  %v9291_v35 = vsub.f32 %v12123_v50, %v754_v31  ;;  %p5878_p2 = por %p5877_p1, %p5876_p0 }
 0x295   : > { %v4397_v10 = vrot.slane %v4396_v59, 2  ;;  %12316 = vst [vmem:[#allocation38_spill] sm:$0xff] %v9283_v43  ;;  %v4301_v24 = vadd.f32 %v4300_v21, %v4299_v53  ;;  %v4805_v62 = vsel %vm4656_vm4, %v4348_v47, %v4804_v37  ;;  %v4410_v13 = vrot.slane %v4409_v42, 2  ;;  %v786_v53 = vpop.permute.xlu1 %785  ;;  %v12324_v37 = vld [vmem:[#allocation128_spill] sm:$0xff] }
 0x296   : > { %12317 = vst [vmem:[#allocation120_spill] sm:$0xff] %v9286_v1  ;;  %v4806_v17 = vsel %vm4658_vm5, %v4361_v14, %v4805_v62  ;;  %12318 = vst [vmem:[#allocation90_spill] sm:$0xff] %v9291_v35  ;;  %v9294_v3 = vsub.f32 %v12125_v56, %v754_v31  ;;  %v4387_v4 = vadd.f32 %v4386_v51, %v4385_v61  ;;  %v9300_v21 = vsel %vm2572_vm2, %v3562_v9, 0.0  ;;  %v12329_v9 = vld [vmem:[#allocation127_spill] sm:$0xff]  ;;  %p5879_p3 = pnand %p5878_p2, %p5872_p13 }
 0x297   : > { %v4398_v25 = vadd.f32 %v4397_v10, %v4396_v59  ;;  %v9296_v58 = vadd.f32 %v4302_v41, %v4301_v24  ;;  %v4807_v40 = vsel %vm4660_vm6, %v4374_v38, %v4806_v17  ;;  %v4411_v59 = vadd.f32 %v4410_v13, %v4409_v42  ;;  %v12320_v10 = vld [vmem:[#allocation119_spill] sm:$0xff]  ;;  %v12327_v17 = vld [vmem:[#allocation88_spill] sm:$0xff] }
 0x298   : > { %12319 = vst [vmem:[#allocation105_spill] sm:$0xff] %v9294_v3  ;;  %v1624_v47 = vmul.f32 %v9283_v43, %v9283_v43  ;;  %v1625_v50 = vmul.f32 %v9286_v1, %v9286_v1  ;;  %v9307_v14 = vsel %vm2572_vm2, %v3563_v46, 0.0  ;;  %v4808_v31 = vsel %vm4662_vm7, %v4387_v4, %v4807_v40  ;;  %v12322_v46 = vld [vmem:[#allocation13_spill] sm:$0xff] }
 0x299   : > { %v4399_v29 = vrot.slane %v4398_v25, 1  ;;  %v1626_v41 = vmul.f32 %v9291_v35, %v9291_v35  ;;  %v4412_v38 = vrot.slane %v4411_v59, 1  ;;  %v1627_v61 = vmul.f32 %v9294_v3, %v9294_v3  ;;  %v1094_v1 = vpop.permute.xlu1 %1093 }
 0x29a   : > { %v9316_v42 = vadd.f32 %v12320_v10, %v1624_v47  ;;  %v9320_v39 = vadd.f32 %v12322_v46, %v1625_v50  ;;  %v12325_v24 = vrot.slane %v12324_v37, 2  ;;  %v2713_v4 = vrot.slane %v12327_v17, 2  ;;  %v12331_v50 = vld [vmem:[#allocation186_spill] sm:$0xff]  ;;  %v12332_v46 = vld [vmem:[#allocation165_spill] sm:$0xff] }
 0x29b   : > { %v4400_v56 = vadd.f32 %v4399_v29, %v4398_v25  ;;  %v12326_v25 = vld [vmem:[#allocation53_spill] sm:$0xff]  ;;  %v4413_v13 = vadd.f32 %v4412_v38, %v4411_v59  ;;  %v12328_v29 = vld [vmem:[#allocation111_spill] sm:$0xff]  ;;  %v12330_v47 = vrot.slane %v12329_v9, 4  ;;  %v2762_v33 = vadd.f32 %v12333_v8, %v12332_v46 }
 0x29c   : > { %12321 = vst [vmem:[#allocation193_spill] sm:$0xff] %v9316_v42  ;;  %12323 = vst [vmem:[#allocation7_spill] sm:$0xff] %v9320_v39  ;;  %v2688_v51 = vadd.f32 %v12325_v24, %v12324_v37  ;;  %v2702_v62 = vrot.slane %v12326_v25, 1  ;;  %v2726_v40 = vrot.slane %v12328_v29, 2  ;;  %v2714_v59 = vadd.f32 %v2713_v4, %v12327_v17 }
 0x29d   : > { %v4809_v0 = vsel %vm4664_vm8, %v4400_v56, %v4808_v31  ;;  %v2738_v10 = vadd.f32 %v12330_v47, %v12329_v9  ;;  %v2750_v31 = vrot.slane %v12331_v50, 4  ;;  %v2763_v47 = vrot.slane %v2762_v33, 4 }
 0x29e   : > { %v2689_v55 = vrot.slane %v2688_v51, 1  ;;  %v2703_v56 = vadd.f32 %v2702_v62, %v12326_v25  ;;  %v4810_v37 = vsel %vm4666_vm9, %v4413_v13, %v4809_v0  ;;  %v2727_v38 = vadd.f32 %v2726_v40, %v12328_v29  ;;  %v12334_v25 = vld [vmem:[#allocation156_spill] sm:$0xff] }
 0x29f   : > { %v2739_v24 = vrot.slane %v2738_v10, 2  ;;  %4827 = vrot.lane.b32.xlu0 %v4810_v37, %s5939_s14  ;;  %v2751_v9 = vadd.f32 %v2750_v31, %v12331_v50  ;;  %v12335_v62 = vld [vmem:[#allocation28_spill] sm:$0xff]  ;;  %v2715_v43 = vrot.slane %v2714_v59, 1  ;;  %v2764_v4 = vadd.f32 %v2763_v47, %v2762_v33 }
 0x2a0   : > { %v2690_v3 = vadd.f32 %v2689_v55, %v2688_v51  ;;  %v2771_v35 = vadd.f32 %v12335_v62, %v12334_v25  ;;  %v2728_v8 = vrot.slane %v2727_v38, 1  ;;  %v12336_v0 = vld [vmem:[#allocation152_spill] sm:$0xff]  ;;  %v2774_v40 = vsel %vm2578_vm3, %v8833_v20, 0.0 }
 0x2a1   : > { %v2740_v46 = vadd.f32 %v2739_v24, %v2738_v10  ;;  %v2772_v13 = vsel %vm2572_vm2, %v12336_v0, 0.0  ;;  %v2752_v17 = vrot.slane %v2751_v9, 2  ;;  %v2716_v55 = vadd.f32 %v2715_v43, %v2714_v59  ;;  %v12338_v10 = vld [vmem:[#allocation118_spill] sm:$0xff] }
 0x2a2   : > { %v2773_v29 = vadd.f32 %v2772_v13, %v2771_v35  ;;  %v2729_v51 = vadd.f32 %v2728_v8, %v2727_v38  ;;  %v4876_v31 = vsel %vm4654_vm0, %v2703_v56, %v2690_v3  ;;  %v2765_v25 = vrot.slane %v2764_v4, 2  ;;  %v1358_v56 = vpop.permute.xlu1 %1357  ;;  %v12341_v38 = vld [vmem:[#allocation242_spill] sm:$0xff] }
 0x2a3   : > { %v2741_v50 = vrot.slane %v2740_v46, 1  ;;  %v2753_v37 = vadd.f32 %v2752_v17, %v2751_v9  ;;  %v9348_v39 = vsub.f32 %v12139_v63, %v786_v53  ;;  %v9351_v24 = vadd.f32 %v12338_v10, %v1626_v41 }
 0x2a4   : > { %v2775_v62 = vadd.f32 %v2774_v40, %v2773_v29  ;;  %v4877_v33 = vsel %vm4656_vm4, %v2716_v55, %v4876_v31  ;;  %v9355_v35 = vsub.f32 %v12143_v16, %v786_v53  ;;  %v2766_v43 = vadd.f32 %v2765_v25, %v2764_v4  ;;  %v12349_v25 = vld [vmem:[#allocation116_spill] sm:$0xff] }
 0x2a5   : > { %12337 = vst [vmem:[#allocation238_spill] sm:$0xff] %v9348_v39  ;;  %12339 = vst [vmem:[#allocation55_spill] sm:$0xff] %v9351_v24  ;;  %v2742_v0 = vadd.f32 %v2741_v50, %v2740_v46  ;;  %v2754_v20 = vrot.slane %v2753_v37, 1  ;;  %v4878_v3 = vsel %vm4658_vm5, %v2729_v51, %v4877_v33  ;;  %v9359_v9 = vadd.f32 %v12341_v38, %v1627_v61 }
 0x2a6   : > { %12340 = vst [vmem:[#allocation57_spill] sm:$0xff] %v9355_v35  ;;  %v2776_v59 = vrot.slane %v2775_v62, 4  ;;  %v9363_v41 = vsub.f32 %v12145_v44, %v786_v53  ;;  %v9366_v8 = vsub.f32 %v12148_v34, %v786_v53  ;;  %v2767_v13 = vrot.slane %v2766_v43, 1  ;;  %v1390_v33 = vpop.permute.xlu1 %1389 }
 0x2a7   : > { %12342 = vst [vmem:[#allocation47_spill] sm:$0xff] %v9359_v9  ;;  %v4879_v47 = vsel %vm4660_vm6, %v2742_v0, %v4878_v3  ;;  %v2755_v46 = vadd.f32 %v2754_v20, %v2753_v37  ;;  %v1656_v4 = vmul.f32 %v9348_v39, %v9348_v39  ;;  %v1657_v29 = vmul.f32 %v9355_v35, %v9355_v35  ;;  %v12352_v3 = vld [vmem:[#allocation225_spill] sm:$0xff]  ;;  %v12362_v9 = vld [vmem:[#allocation148_spill] sm:$0xff] }
 0x2a8   : > { %12343 = vst [vmem:[#allocation254_spill] sm:$0xff] %v9363_v41  ;;  %12344 = vst [vmem:[#allocation17_spill] sm:$0xff] %v9366_v8  ;;  %v2777_v17 = vadd.f32 %v2776_v59, %v2775_v62  ;;  %v9373_v61 = vsub.f32 %v12207_v60, %v1094_v1  ;;  %v9376_v40 = vsub.f32 %v12209_v18, %v1094_v1 }
 0x2a9   : > { %v9379_v55 = vsub.f32 %v12211_v36, %v1094_v1  ;;  %v2768_v53 = vadd.f32 %v2767_v13, %v2766_v43  ;;  %v4880_v50 = vsel %vm4662_vm7, %v2755_v46, %v4879_v47  ;;  %v9383_v31 = vsub.f32 %v12214_v48, %v1094_v1  ;;  %v12350_v1 = vld [vmem:[#allocation178_spill] sm:$0xff]  ;;  %v12354_v13 = vld [vmem:[#allocation129_spill] sm:$0xff] }
 0x2aa   : > { %12345 = vst [vmem:[#allocation45_spill] sm:$0xff] %v9373_v61  ;;  %12346 = vst [vmem:[#allocation77_spill] sm:$0xff] %v9376_v40  ;;  %v2778_v51 = vrot.slane %v2777_v17, 2  ;;  %v9387_v37 = vmul.f32 %v9363_v41, %v9363_v41  ;;  %v1784_v60 = vmul.f32 %v9373_v61, %v9373_v61  ;;  %v1785_v18 = vmul.f32 %v9376_v40, %v9376_v40  ;;  %v12357_v61 = vld [vmem:[#allocation125_spill] sm:$0xff] }
 0x2ab   : > { %12347 = vst [vmem:[#allocation166_spill] sm:$0xff] %v9379_v55  ;;  %12348 = vst [vmem:[#allocation27_spill] sm:$0xff] %v9383_v31  ;;  %v9394_v36 = vsub.f32 %v12349_v25, %v1358_v56  ;;  %v4881_v10 = vsel %vm4664_vm8, %v2768_v53, %v4880_v50  ;;  %v9399_v48 = vmul.f32 %v9366_v8, %v9366_v8  ;;  %v12355_v8 = vld [vmem:[#allocation187_spill] sm:$0xff] }
 0x2ac   : > { %v2779_v62 = vadd.f32 %v2778_v51, %v2777_v17  ;;  %v9402_v0 = vsub.f32 %v12350_v1, %v1358_v56  ;;  %v9406_v20 = vmul.f32 %v9379_v55, %v9379_v55  ;;  %v9410_v43 = vmul.f32 %v9383_v31, %v9383_v31 }
 0x2ad   : > { %v9412_v59 = vadd.f32 %v1784_v60, %v1656_v4  ;;  %v1486_v38 = vsub.f32 %v12352_v3, %v1358_v56  ;;  %v9415_v46 = vadd.f32 %v1785_v18, %v1657_v29  ;;  %v1487_v17 = vsub.f32 %v12354_v13, %v1358_v56  ;;  %v12356_v56 = vld [vmem:[#allocation124_spill] sm:$0xff] }
 0x2ae   : > { %v2780_v47 = vrot.slane %v2779_v62, 1  ;;  %v1996_v53 = vmul.f32 %v9394_v36, %v9394_v36  ;;  %v1997_v51 = vmul.f32 %v9402_v0, %v9402_v0  ;;  %v9423_v55 = vsub.f32 %v12221_v28, %v1390_v33  ;;  %v12364_v13 = vld [vmem:[#allocation60_spill] sm:$0xff] }
 0x2af   : > { %12351 = vst [vmem:[#allocation29_spill] sm:$0xff] %v9412_v59  ;;  %12353 = vst [vmem:[#allocation72_spill] sm:$0xff] %v9415_v46  ;;  %v1998_v50 = vmul.f32 %v1486_v38, %v1486_v38  ;;  %v9426_v4 = vsub.f32 %v12223_v22, %v1390_v33  ;;  %v1999_v31 = vmul.f32 %v1487_v17, %v1487_v17  ;;  %v12358_v59 = vld [vmem:[#allocation126_spill] sm:$0xff] }
 0x2b0   : > { %v2781_v60 = vadd.f32 %v2780_v47, %v2779_v62  ;;  %v2124_v29 = vadd.f32 %v1996_v53, %v12355_v8  ;;  %v9430_v18 = vsub.f32 %v12225_v52, %v1390_v33  ;;  %v2125_v40 = vadd.f32 %v1997_v51, %v12356_v56  ;;  %v12361_v56 = vld [vmem:[#allocation145_spill] sm:$0xff] }
 0x2b1   : > { %v2126_v41 = vadd.f32 %v1998_v50, %v12357_v61  ;;  %v9435_v35 = vsub.f32 %v12228_v12, %v1390_v33  ;;  %v2028_v39 = vmul.f32 %v9423_v55, %v9423_v55  ;;  %v2127_v62 = vadd.f32 %v1999_v31, %v12358_v59 }
 0x2b2   : > { %v4882_v46 = vsel %vm4666_vm9, %v2781_v60, %v4881_v10  ;;  %vm2252_vm1 = vcmp.le.f32.partialorder %v2124_v29, 4.84  ;;  %v2029_v8 = vmul.f32 %v9426_v4, %v9426_v4  ;;  %vm2253_vm14 = vcmp.le.f32.partialorder %v2125_v40, 4.84  ;;  %v12359_v40 = vld [vmem:[#allocation24_spill] sm:$0xff]  ;;  %v12360_v60 = vld [vmem:[#allocation26_spill] sm:$0xff] }
 0x2b3   : > { %4899 = vrot.lane.b32.xlu0 %v4882_v46, %s5940_s17  ;;  %vm2254_vm15 = vcmp.le.f32.partialorder %v2126_v41, 4.84  ;;  %v5599_v61 = vsel %vm2252_vm1, 1.0, %v11767_v49  ;;  %v2030_v33 = vmul.f32 %v9430_v18, %v9430_v18  ;;  %vm2255_vm10 = vcmp.le.f32.partialorder %v2127_v62, 4.84 }
 0x2b4   : > { %v5600_v47 = vsel %vm2253_vm14, 1.0, %v11767_v49  ;;  %v5601_v10 = vsel %vm2254_vm15, 1.0, %v11767_v49  ;;  %v2782_v31 = vsel %vm2572_vm2, %v5599_v61, 0.0  ;;  %v5602_v59 = vsel %vm2255_vm10, 1.0, %v11767_v49 }
 0x2b5   : > { %v2783_v53 = vsel %vm2572_vm2, %v5600_v47, 0.0  ;;  %v2785_v46 = vsel %vm2572_vm2, %v5601_v10, 0.0  ;;  %v3054_v41 = vmul.f32 %v5599_v61, %v12359_v40  ;;  %v2787_v50 = vsel %vm2578_vm3, %v5602_v59, 0.0 }
 0x2b6   : > { %v2784_v51 = vadd.f32 %v2783_v53, %v2782_v31  ;;  %v3055_v29 = vmul.f32 %v5600_v47, %v12360_v60  ;;  %v3056_v62 = vmul.f32 %v5601_v10, %v12361_v56  ;;  %v3057_v24 = vmul.f32 %v5602_v59, %v12362_v9  ;;  %v12365_v31 = vld [vmem:[#allocation61_spill] sm:$0xff] }
 0x2b7   : > { %v3326_v42 = vsel %vm2572_vm2, %v3054_v41, 0.0  ;;  %v3598_v45 = vmul.f32 %v5599_v61, %v12363_v27  ;;  %v3599_v3 = vmul.f32 %v5600_v47, %v12364_v13  ;;  %v3600_v53 = vmul.f32 %v5601_v10, %v12365_v31 }
 0x2b8   : > { %v2786_v1 = vadd.f32 %v2785_v46, %v2784_v51  ;;  %v3327_v25 = vsel %vm2572_vm2, %v3055_v29, 0.0  ;;  %v3329_v40 = vsel %vm2572_vm2, %v3056_v62, 0.0  ;;  %v3331_v60 = vsel %vm2578_vm3, %v3057_v24, 0.0 }
 0x2b9   : > { %v3328_v5 = vadd.f32 %v3327_v25, %v3326_v42  ;;  %v3601_v56 = vmul.f32 %v5602_v59, %v12366_v57  ;;  %v3870_v9 = vsel %vm2572_vm2, %v3598_v45, 0.0  ;;  %v3871_v41 = vsel %vm2572_vm2, %v3599_v3, 0.0 }
 0x2ba   : > { %v2788_v2 = vadd.f32 %v2787_v50, %v2786_v1  ;;  %v3873_v27 = vsel %vm2572_vm2, %v3600_v53, 0.0  ;;  %v4142_v13 = vmul.f32 %v5599_v61, %v9394_v36  ;;  %v3872_v51 = vadd.f32 %v3871_v41, %v3870_v9 }
 0x2bb   : > { %v3330_v46 = vadd.f32 %v3329_v40, %v3328_v5  ;;  %v3875_v29 = vsel %vm2578_vm3, %v3601_v56, 0.0  ;;  %v4143_v62 = vmul.f32 %v5600_v47, %v9402_v0  ;;  %v4144_v25 = vmul.f32 %v5601_v10, %v1486_v38 }
 0x2bc   : > { %v2789_v42 = vrot.slane %v2788_v2, 4  ;;  %v4145_v24 = vmul.f32 %v5602_v59, %v1487_v17  ;;  %v4414_v57 = vsel %vm2572_vm2, %v4142_v13, 0.0  ;;  %v3874_v45 = vadd.f32 %v3873_v27, %v3872_v51 }
 0x2bd   : > { %v3332_v31 = vadd.f32 %v3331_v60, %v3330_v46  ;;  %v4415_v1 = vsel %vm2572_vm2, %v4143_v62, 0.0  ;;  %v2031_v3 = vmul.f32 %v9435_v35, %v9435_v35  ;;  %v4417_v5 = vsel %vm2572_vm2, %v4144_v25, 0.0  ;;  %v12370_v25 = vld [vmem:[#allocation58_spill] sm:$0xff] }
 0x2be   : > { %v2790_v50 = vadd.f32 %v2789_v42, %v2788_v2  ;;  %v4416_v36 = vadd.f32 %v4415_v1, %v4414_v57  ;;  %v4419_v61 = vsel %vm2578_vm3, %v4145_v24, 0.0  ;;  %v3876_v0 = vadd.f32 %v3875_v29, %v3874_v45  ;;  %v12371_v57 = vld [vmem:[#allocation139_spill] sm:$0xff] }
 0x2bf   : > { %v3333_v40 = vrot.slane %v3332_v31, 4  ;;  %v2156_v38 = vadd.f32 %v2028_v39, %v8993_v32  ;;  %v2157_v17 = vadd.f32 %v2029_v8, %v8998_v23  ;;  %v2158_v59 = vadd.f32 %v2030_v33, %v9011_v11 }
 0x2c0   : > { %v2791_v47 = vrot.slane %v2790_v50, 2  ;;  %v4418_v10 = vadd.f32 %v4417_v5, %v4416_v36  ;;  %v2159_v53 = vadd.f32 %v2031_v3, %v9014_v19  ;;  %v3877_v56 = vrot.slane %v3876_v0, 4  ;;  %v12373_v5 = vld [vmem:[#allocation112_spill] sm:$0xff] }
 0x2c1   : > { %v3334_v60 = vadd.f32 %v3333_v40, %v3332_v31  ;;  %vm2284_vm11 = vcmp.le.f32.partialorder %v2156_v38, 4.84  ;;  %vm2285_vm12 = vcmp.le.f32.partialorder %v2157_v17, 4.84  ;;  %vm2286_vm13 = vcmp.le.f32.partialorder %v2158_v59, 4.84 }
 0x2c2   : > { %v9482_v2 = vadd.f32 %v2791_v47, %v2790_v50  ;;  %v4420_v9 = vadd.f32 %v4419_v61, %v4418_v10  ;;  %vm2287_vm1 = vcmp.le.f32.partialorder %v2159_v53, 4.84  ;;  %v3878_v27 = vadd.f32 %v3877_v56, %v3876_v0  ;;  %v12372_v50 = vld [vmem:[#allocation87_spill] sm:$0xff]  ;;  %v12374_v38 = vld [vmem:[#allocation89_spill] sm:$0xff] }
 0x2c3   : > { %v3335_v41 = vrot.slane %v3334_v60, 2  ;;  %v5631_v32 = vsel %vm2284_vm11, 1.0, %v11767_v49  ;;  %v5632_v23 = vsel %vm2285_vm12, 1.0, %v11767_v49  ;;  %v9488_v11 = vadd.f32 %v9406_v20, %v9387_v37 }
 0x2c4   : > { %12367 = vst [vmem:[#allocation98_spill] sm:$0xff] %v9482_v2  ;;  %v9492_v19 = vadd.f32 %v9410_v43, %v9399_v48  ;;  %v4421_v39 = vrot.slane %v4420_v9, 4  ;;  %v5633_v8 = vsel %vm2286_vm13, 1.0, %v11767_v49  ;;  %v5634_v13 = vsel %vm2287_vm1, 1.0, %v11767_v49  ;;  %v12369_v48 = vld [vmem:[#allocation140_spill] sm:$0xff] }
 0x2c5   : > { %v2886_v46 = vsel %vm2572_vm2, %v5631_v32, 0.0  ;;  %v2887_v51 = vsel %vm2572_vm2, %v5632_v23, 0.0  ;;  %v9499_v29 = vadd.f32 %v3335_v41, %v3334_v60  ;;  %v3879_v62 = vrot.slane %v3878_v27, 2  ;;  %v12376_v60 = vld [vmem:[#allocation153_spill] sm:$0xff] }
 0x2c6   : > { %v4422_v37 = vadd.f32 %v4421_v39, %v4420_v9  ;;  %v2888_v20 = vadd.f32 %v2887_v51, %v2886_v46  ;;  %v2889_v42 = vsel %vm2572_vm2, %v5633_v8, 0.0  ;;  %v3086_v43 = vmul.f32 %v5631_v32, %v12369_v48  ;;  %v12377_v9 = vld [vmem:[#allocation231_spill] sm:$0xff] }
 0x2c7   : > { %12368 = vst [vmem:[#allocation99_spill] sm:$0xff] %v9499_v29  ;;  %v3087_v24 = vmul.f32 %v5632_v23, %v12370_v25  ;;  %v3088_v31 = vmul.f32 %v5633_v8, %v12371_v57  ;;  %v2891_v3 = vsel %vm2578_vm3, %v5634_v13, 0.0  ;;  %v3630_v36 = vmul.f32 %v5631_v32, %v12372_v50 }
 0x2c8   : > { %v4423_v45 = vrot.slane %v4422_v37, 2  ;;  %v2890_v1 = vadd.f32 %v2889_v42, %v2888_v20  ;;  %v3089_v61 = vmul.f32 %v5634_v13, %v12373_v5  ;;  %v3430_v40 = vsel %vm2572_vm2, %v3086_v43, 0.0 }
 0x2c9   : > { %v3431_v0 = vsel %vm2572_vm2, %v3087_v24, 0.0  ;;  %v3631_v17 = vmul.f32 %v5632_v23, %v12374_v38  ;;  %v9511_v47 = vadd.f32 %v3879_v62, %v3878_v27  ;;  %v3433_v53 = vsel %vm2572_vm2, %v3088_v31, 0.0 }
 0x2ca   : > { %v2892_v10 = vadd.f32 %v2891_v3, %v2890_v1  ;;  %v3432_v59 = vadd.f32 %v3431_v0, %v3430_v40  ;;  %v3632_v56 = vmul.f32 %v5633_v8, %v12376_v60  ;;  %v3633_v41 = vmul.f32 %v5634_v13, %v12377_v9  ;;  %v1394_v3 = vpop.permute.xlu1 %1393 }
 0x2cb   : > { %12375 = vst [vmem:[#allocation100_spill] sm:$0xff] %v9511_v47  ;;  %v3974_v39 = vsel %vm2572_vm2, %v3630_v36, 0.0  ;;  %v3975_v46 = vsel %vm2572_vm2, %v3631_v17, 0.0  ;;  %v4424_v51 = vadd.f32 %v4423_v45, %v4422_v37  ;;  %v3435_v43 = vsel %vm2578_vm3, %v3089_v61, 0.0 }
 0x2cc   : > { %v2893_v20 = vrot.slane %v2892_v10, 4  ;;  %v3434_v42 = vadd.f32 %v3433_v53, %v3432_v59  ;;  %v3976_v48 = vadd.f32 %v3975_v46, %v3974_v39  ;;  %v3977_v27 = vsel %vm2572_vm2, %v3632_v56, 0.0  ;;  %v12380_v46 = vld [vmem:[#allocation155_spill] sm:$0xff] }
 0x2cd   : > { %v4174_v62 = vmul.f32 %v5631_v32, %v9423_v55  ;;  %v4175_v25 = vmul.f32 %v5632_v23, %v9426_v4  ;;  %v3979_v1 = vsel %vm2578_vm3, %v3633_v41, 0.0  ;;  %v4176_v50 = vmul.f32 %v5633_v8, %v9430_v18 }
 0x2ce   : > { %v2894_v24 = vadd.f32 %v2893_v20, %v2892_v10  ;;  %v3436_v57 = vadd.f32 %v3435_v43, %v3434_v42  ;;  %v3978_v31 = vadd.f32 %v3977_v27, %v3976_v48  ;;  %v4177_v37 = vmul.f32 %v5634_v13, %v9435_v35  ;;  %v12381_v42 = vld [vmem:[#allocation74_spill] sm:$0xff] }
 0x2cf   : > { %v4518_v45 = vsel %vm2572_vm2, %v4174_v62, 0.0  ;;  %v4519_v36 = vsel %vm2572_vm2, %v4175_v25, 0.0  ;;  %v4425_v5 = vrot.slane %v4424_v51, 1  ;;  %v4521_v4 = vsel %vm2572_vm2, %v4176_v50, 0.0  ;;  %v12384_v62 = vld [vmem:[#allocation51_spill] sm:$0xff] }
 0x2d0   : > { %v3437_v61 = vrot.slane %v3436_v57, 4  ;;  %v3980_v40 = vadd.f32 %v3979_v1, %v3978_v31  ;;  %v4520_v55 = vadd.f32 %v4519_v36, %v4518_v45  ;;  %v2895_v32 = vrot.slane %v2894_v24, 2  ;;  %v12386_v1 = vld [vmem:[#allocation191_spill] sm:$0xff] }
 0x2d1   : > { %v9529_v23 = vsub.f32 %v12221_v28, %v1394_v3  ;;  %v9532_v0 = vsub.f32 %v12223_v22, %v1394_v3  ;;  %v4523_v13 = vsel %vm2578_vm3, %v4177_v37, 0.0  ;;  %v9536_v38 = vsub.f32 %v12225_v52, %v1394_v3 }
 0x2d2   : > { %v3438_v18 = vadd.f32 %v3437_v61, %v3436_v57  ;;  %v3981_v8 = vrot.slane %v3980_v40, 4  ;;  %v4522_v35 = vadd.f32 %v4521_v4, %v4520_v55  ;;  %v9539_v17 = vsub.f32 %v12228_v12, %v1394_v3  ;;  %v12385_v57 = vld [vmem:[#allocation133_spill] sm:$0xff] }
 0x2d3   : > { %v2032_v10 = vmul.f32 %v9529_v23, %v9529_v23  ;;  %v2033_v59 = vmul.f32 %v9532_v0, %v9532_v0  ;;  %v9545_v53 = vadd.f32 %v4425_v5, %v4424_v51  ;;  %v2034_v41 = vmul.f32 %v9536_v38, %v9536_v38 }
 0x2d4   : > { %v3439_v60 = vrot.slane %v3438_v18, 2  ;;  %v9547_v56 = vadd.f32 %v3981_v8, %v3980_v40  ;;  %v4524_v9 = vadd.f32 %v4523_v13, %v4522_v35  ;;  %v2035_v39 = vmul.f32 %v9539_v17, %v9539_v17  ;;  %v12387_v8 = vld [vmem:[#allocation115_spill] sm:$0xff]  ;;  %v12388_v13 = vld [vmem:[#allocation101_spill] sm:$0xff] }
 0x2d5   : > { %12378 = vst [vmem:[#allocation108_spill] sm:$0xff] %v9545_v53  ;;  %v2160_v20 = vadd.f32 %v2032_v10, %v12380_v46  ;;  %v2161_v48 = vadd.f32 %v2033_v59, %v12381_v42  ;;  %v9555_v43 = vadd.f32 %v2895_v32, %v2894_v24  ;;  %v3673_v25 = vrot.slane %v12384_v62, 1  ;;  %v12450_v53 = vld [vmem:[#allocation178_spill] sm:$0xff] }
 0x2d6   : > { %12379 = vst [vmem:[#allocation68_spill] sm:$0xff] %v9547_v56  ;;  %v9557_v27 = vadd.f32 %v3439_v60, %v3438_v18  ;;  %v4525_v51 = vrot.slane %v4524_v9, 4  ;;  %v2162_v31 = vadd.f32 %v2034_v41, %v12385_v57  ;;  %v2163_v3 = vadd.f32 %v2035_v39, %v12386_v1  ;;  %v12390_v39 = vld [vmem:[#allocation104_spill] sm:$0xff]  ;;  %v12392_v57 = vld [vmem:[#allocation141_spill] sm:$0xff] }
 0x2d7   : > { %12382 = vst [vmem:[#allocation121_spill] sm:$0xff] %v9555_v43  ;;  %vm2288_vm14 = vcmp.le.f32.partialorder %v2160_v20, 4.84  ;;  %vm2289_vm15 = vcmp.le.f32.partialorder %v2161_v48, 4.84  ;;  %v12391_v48 = vld [vmem:[#allocation177_spill] sm:$0xff] }
 0x2d8   : > { %12383 = vst [vmem:[#allocation83_spill] sm:$0xff] %v9557_v27  ;;  %v4526_v37 = vadd.f32 %v4525_v51, %v4524_v9  ;;  %v5635_v45 = vsel %vm2288_vm14, 1.0, %v11767_v49  ;;  %v5636_v36 = vsel %vm2289_vm15, 1.0, %v11767_v49  ;;  %vm2290_vm10 = vcmp.le.f32.partialorder %v2162_v31, 4.84  ;;  %v12389_v9 = vld [vmem:[#allocation102_spill] sm:$0xff] }
 0x2d9   : > { %vm2291_vm11 = vcmp.le.f32.partialorder %v2163_v3, 4.84  ;;  %v2899_v24 = vsel %vm2572_vm2, %v5635_v45, 0.0  ;;  %v2900_v5 = vsel %vm2572_vm2, %v5636_v36, 0.0  ;;  %v5637_v40 = vsel %vm2290_vm10, 1.0, %v11767_v49 }
 0x2da   : > { %v4527_v61 = vrot.slane %v4526_v37, 2  ;;  %v5638_v55 = vsel %vm2291_vm11, 1.0, %v11767_v49  ;;  %v2901_v32 = vadd.f32 %v2900_v5, %v2899_v24  ;;  %v2902_v4 = vsel %vm2572_vm2, %v5637_v40, 0.0 }
 0x2db   : > { %v2904_v18 = vsel %vm2578_vm3, %v5638_v55, 0.0  ;;  %v3090_v35 = vmul.f32 %v5635_v45, %v12387_v8  ;;  %v3091_v10 = vmul.f32 %v5636_v36, %v12388_v13  ;;  %v3092_v41 = vmul.f32 %v5637_v40, %v12389_v9 }
 0x2dc   : > { %v4528_v59 = vadd.f32 %v4527_v61, %v4526_v37  ;;  %v2903_v60 = vadd.f32 %v2902_v4, %v2901_v32  ;;  %v3093_v46 = vmul.f32 %v5638_v55, %v12390_v39  ;;  %v3634_v51 = vmul.f32 %v5635_v45, %v12391_v48  ;;  %v12393_v61 = vld [vmem:[#allocation142_spill] sm:$0xff]  ;;  %v12394_v4 = vld [vmem:[#allocation144_spill] sm:$0xff] }
 0x2dd   : > { %v3443_v20 = vsel %vm2572_vm2, %v3090_v35, 0.0  ;;  %v3444_v42 = vsel %vm2572_vm2, %v3091_v10, 0.0  ;;  %v3635_v31 = vmul.f32 %v5636_v36, %v12392_v57  ;;  %v9580_v5 = vadd.f32 %v3673_v25, %v12384_v62  ;;  %v12395_v39 = vld [vmem:[#allocation44_spill] sm:$0xff] }
 0x2de   : > { %v4529_v1 = vrot.slane %v4528_v59, 1  ;;  %v2905_v3 = vadd.f32 %v2904_v18, %v2903_v60  ;;  %v3445_v24 = vadd.f32 %v3444_v42, %v3443_v20  ;;  %v3446_v37 = vsel %vm2572_vm2, %v3092_v41, 0.0 }
 0x2df   : > { %v3636_v32 = vmul.f32 %v5637_v40, %v12393_v61  ;;  %v3637_v8 = vmul.f32 %v5638_v55, %v12394_v4  ;;  %v3987_v35 = vsel %vm2572_vm2, %v3634_v51, 0.0  ;;  %v3988_v9 = vsel %vm2572_vm2, %v3635_v31, 0.0 }
 0x2e0   : > { %v2906_v13 = vrot.slane %v2905_v3, 4  ;;  %v3447_v10 = vadd.f32 %v3446_v37, %v3445_v24  ;;  %v12396_v48 = vrot.slane %v12395_v39, 2  ;;  %v3448_v60 = vsel %vm2578_vm3, %v3093_v46, 0.0 }
 0x2e1   : > { %v3989_v62 = vadd.f32 %v3988_v9, %v3987_v35  ;;  %v3990_v25 = vsel %vm2572_vm2, %v3636_v32, 0.0  ;;  %v4178_v41 = vmul.f32 %v5635_v45, %v9529_v23  ;;  %v4179_v57 = vmul.f32 %v5636_v36, %v9532_v0 }
 0x2e2   : > { %v3685_v18 = vadd.f32 %v12396_v48, %v12395_v39  ;;  %v2907_v20 = vadd.f32 %v2906_v13, %v2905_v3  ;;  %v3449_v42 = vadd.f32 %v3448_v60, %v3447_v10  ;;  %v4180_v51 = vmul.f32 %v5637_v40, %v9536_v38  ;;  %v12398_v40 = vld [vmem:[#allocation11_spill] sm:$0xff]  ;;  %v12400_v10 = vld [vmem:[#allocation34_spill] sm:$0xff]  ;;  %v12402_v39 = vld [vmem:[#allocation25_spill] sm:$0xff] }
 0x2e3   : > { %v9595_v24 = vadd.f32 %v4529_v1, %v4528_v59  ;;  %v3991_v31 = vadd.f32 %v3990_v25, %v3989_v62  ;;  %v4181_v37 = vmul.f32 %v5638_v55, %v9539_v17  ;;  %v4531_v61 = vsel %vm2572_vm2, %v4178_v41, 0.0  ;;  %v12399_v1 = vld [vmem:[#allocation204_spill] sm:$0xff] }
 0x2e4   : > { %v3450_v4 = vrot.slane %v3449_v42, 4  ;;  %v3992_v46 = vsel %vm2578_vm3, %v3637_v8, 0.0  ;;  %v4532_v32 = vsel %vm2572_vm2, %v4179_v57, 0.0  ;;  %v3686_v35 = vrot.slane %v3685_v18, 1 }
 0x2e5   : > { %12397 = vst [vmem:[#allocation84_spill] sm:$0xff] %v9595_v24  ;;  %v2908_v23 = vrot.slane %v2907_v20, 2  ;;  %v3993_v45 = vadd.f32 %v3992_v46, %v3991_v31  ;;  %v4533_v3 = vadd.f32 %v4532_v32, %v4531_v61  ;;  %v4534_v0 = vsel %vm2572_vm2, %v4180_v51, 0.0 }
 0x2e6   : > { %v3451_v36 = vadd.f32 %v3450_v4, %v3449_v42  ;;  %v4536_v38 = vsel %vm2578_vm3, %v4181_v37, 0.0  ;;  %v3697_v59 = vrot.slane %v12398_v40, 2  ;;  %v3710_v17 = vrot.slane %v12399_v1, 2 }
 0x2e7   : > { %v3994_v55 = vrot.slane %v3993_v45, 4  ;;  %v4535_v13 = vadd.f32 %v4534_v0, %v4533_v3  ;;  %v12401_v8 = vrot.slane %v12400_v10, 4  ;;  %v3734_v48 = vrot.slane %v12402_v39, 4 }
 0x2e8   : > { %v3687_v60 = vadd.f32 %v3686_v35, %v3685_v18  ;;  %v3698_v62 = vadd.f32 %v3697_v59, %v12398_v40  ;;  %v3711_v25 = vadd.f32 %v3710_v17, %v12399_v1  ;;  %v3744_v41 = vadd.f32 %v9102_v6, %v9094_v30  ;;  %v790_v59 = vpop.permute.xlu1 %789 }
 0x2e9   : > { %v3722_v9 = vadd.f32 %v12401_v8, %v12400_v10  ;;  %v9613_v42 = vadd.f32 %v2908_v23, %v2907_v20  ;;  %v4537_v57 = vadd.f32 %v4536_v38, %v4535_v13  ;;  %v3735_v31 = vadd.f32 %v3734_v48, %v12402_v39 }
 0x2ea   : > { %v3452_v37 = vrot.slane %v3451_v36, 2  ;;  %v9616_v61 = vadd.f32 %v3994_v55, %v3993_v45  ;;  %v3699_v4 = vrot.slane %v3698_v62, 1  ;;  %v3712_v46 = vrot.slane %v3711_v25, 1 }
 0x2eb   : > { %12403 = vst [vmem:[#allocation85_spill] sm:$0xff] %v9613_v42  ;;  %v3723_v51 = vrot.slane %v3722_v9, 2  ;;  %v4538_v32 = vrot.slane %v4537_v57, 4  ;;  %v3736_v35 = vrot.slane %v3735_v31, 2  ;;  %v3745_v3 = vsel %vm2578_vm3, %v9087_v15, 0.0  ;;  %v12449_v42 = vld [vmem:[#allocation116_spill] sm:$0xff] }
 0x2ec   : > { %12404 = vst [vmem:[#allocation78_spill] sm:$0xff] %v9616_v61  ;;  %v3700_v0 = vadd.f32 %v3699_v4, %v3698_v62  ;;  %v3713_v40 = vadd.f32 %v3712_v46, %v3711_v25  ;;  %v3746_v30 = vadd.f32 %v3745_v3, %v3744_v41  ;;  %v3755_v6 = vadd.f32 %v9307_v14, %v9300_v21 }
 0x2ed   : > { %v3724_v18 = vadd.f32 %v3723_v51, %v3722_v9  ;;  %v4539_v20 = vadd.f32 %v4538_v32, %v4537_v57  ;;  %v3737_v38 = vadd.f32 %v3736_v35, %v3735_v31  ;;  %v3756_v45 = vsel %vm2572_vm2, %v9247_v7, 0.0 }
 0x2ee   : > { %v3747_v1 = vrot.slane %v3746_v30, 4  ;;  %v3757_v17 = vadd.f32 %v3756_v45, %v3755_v6  ;;  %v3758_v55 = vsel %vm2578_vm3, %v9260_v26, 0.0  ;;  %v4725_v15 = vsel %vm4654_vm0, %v3687_v60, %v9580_v5  ;;  %v12411_v6 = vld [vmem:[#allocation244_spill] sm:$0xff] }
 0x2ef   : > { %v3725_v23 = vrot.slane %v3724_v18, 1  ;;  %v4540_v13 = vrot.slane %v4539_v20, 2  ;;  %v3738_v8 = vrot.slane %v3737_v38, 1  ;;  %v4726_v21 = vsel %vm4656_vm4, %v3700_v0, %v4725_v15 }
 0x2f0   : > { %v3748_v14 = vadd.f32 %v3747_v1, %v3746_v30  ;;  %v3759_v9 = vadd.f32 %v3758_v55, %v3757_v17  ;;  %v4727_v39 = vsel %vm4658_vm5, %v3713_v40, %v4726_v21  ;;  %v9631_v7 = vsub.f32 %v12139_v63, %v790_v59  ;;  %v12417_v55 = vld [vmem:[#allocation192_spill] sm:$0xff] }
 0x2f1   : > { %v3726_v10 = vadd.f32 %v3725_v23, %v3724_v18  ;;  %v4541_v48 = vadd.f32 %v4540_v13, %v4539_v20  ;;  %v3739_v62 = vadd.f32 %v3738_v8, %v3737_v38  ;;  %v9635_v26 = vsub.f32 %v12143_v16, %v790_v59  ;;  %v1066_v23 = vpop.permute.xlu1 %1065  ;;  %v12418_v13 = vld [vmem:[#allocation63_spill] sm:$0xff]  ;;  %v12445_v18 = vld [vmem:[#allocation160_spill] sm:$0xff] }
 0x2f2   : > { %12405 = vst [vmem:[#allocation137_spill] sm:$0xff] %v9631_v7  ;;  %v3749_v5 = vrot.slane %v3748_v14, 2  ;;  %v3760_v60 = vrot.slane %v3759_v9, 4  ;;  %v9638_v41 = vsub.f32 %v12145_v44, %v790_v59  ;;  %v9641_v57 = vsub.f32 %v12148_v34, %v790_v59  ;;  %v12415_v59 = vld [vmem:[#allocation86_spill] sm:$0xff] }
 0x2f3   : > { %v4728_v25 = vsel %vm4660_vm6, %v3726_v10, %v4727_v39  ;;  %12406 = vst [vmem:[#allocation138_spill] sm:$0xff] %v9635_v26  ;;  %v4542_v51 = vrot.slane %v4541_v48, 1  ;;  %v1660_v4 = vmul.f32 %v9631_v7, %v9631_v7  ;;  %v1661_v46 = vmul.f32 %v9635_v26, %v9635_v26 }
 0x2f4   : > { %12407 = vst [vmem:[#allocation96_spill] sm:$0xff] %v9638_v41  ;;  %12408 = vst [vmem:[#allocation122_spill] sm:$0xff] %v9641_v57  ;;  %v4729_v31 = vsel %vm4662_vm7, %v3739_v62, %v4728_v25  ;;  %v9648_v32 = vadd.f32 %v3452_v37, %v3451_v36  ;;  %v3750_v35 = vadd.f32 %v3749_v5, %v3748_v14  ;;  %v12413_v36 = vld [vmem:[#allocation245_spill] sm:$0xff]  ;;  %v12416_v1 = vrot.slane %v12415_v59, 1  ;;  %v12421_v62 = vld [vmem:[#allocation52_spill] sm:$0xff] }
 0x2f5   : > { %v3761_v3 = vadd.f32 %v3760_v60, %v3759_v9  ;;  %v9651_v0 = vadd.f32 %v4542_v51, %v4541_v48  ;;  %v1662_v40 = vmul.f32 %v9638_v41, %v9638_v41  ;;  %v1663_v30 = vmul.f32 %v9641_v57, %v9641_v57  ;;  %v12422_v25 = vld [vmem:[#allocation12_spill] sm:$0xff]  ;;  %v12423_v60 = vld [vmem:[#allocation91_spill] sm:$0xff] }
 0x2f6   : > { %12409 = vst [vmem:[#allocation179_spill] sm:$0xff] %v9648_v32  ;;  %v9658_v20 = vadd.f32 %v12411_v6, %v1660_v4  ;;  %v3751_v38 = vrot.slane %v3750_v35, 1  ;;  %v9661_v37 = vadd.f32 %v12413_v36, %v1661_v46  ;;  %v4244_v17 = vadd.f32 %v12416_v1, %v12415_v59  ;;  %v1366_v32 = vpop.permute.xlu1 %1365 }
 0x2f7   : > { %12410 = vst [vmem:[#allocation163_spill] sm:$0xff] %v9651_v0  ;;  %v3762_v45 = vrot.slane %v3761_v3, 2  ;;  %v4269_v15 = vrot.slane %v12417_v55, 1  ;;  %v12419_v10 = vrot.slane %v12418_v13, 2  ;;  %v4293_v21 = vrot.slane %v9182_v54, 2 }
 0x2f8   : > { %12412 = vst [vmem:[#allocation103_spill] sm:$0xff] %v9658_v20  ;;  %12414 = vst [vmem:[#allocation134_spill] sm:$0xff] %v9661_v37  ;;  %v12420_v14 = vrot.slane %v9296_v58, 4  ;;  %v3752_v39 = vadd.f32 %v3751_v38, %v3750_v35  ;;  %v4797_v5 = vsel %vm4654_vm0, %v12422_v25, %v12421_v62  ;;  %v9678_v51 = vsub.f32 %v12423_v60, %v1066_v23  ;;  %v12424_v35 = vld [vmem:[#allocation154_spill] sm:$0xff] }
 0x2f9   : > { %v4281_v8 = vadd.f32 %v12419_v10, %v12418_v13  ;;  %v3763_v48 = vadd.f32 %v3762_v45, %v3761_v3  ;;  %v4270_v4 = vadd.f32 %v4269_v15, %v12417_v55  ;;  %v4294_v6 = vadd.f32 %v4293_v21, %v9182_v54  ;;  %v12425_v10 = vld [vmem:[#allocation110_spill] sm:$0xff] }
 0x2fa   : > { %v4305_v9 = vadd.f32 %v12420_v14, %v9296_v58  ;;  %v4730_v1 = vsel %vm4664_vm8, %v3752_v39, %v4729_v31  ;;  %v4798_v58 = vsel %vm4656_vm4, %v4244_v17, %v4797_v5  ;;  %v9685_v3 = vsub.f32 %v12424_v35, %v1066_v23  ;;  %v12426_v15 = vld [vmem:[#allocation106_spill] sm:$0xff] }
 0x2fb   : > { %v4282_v46 = vrot.slane %v4281_v8, 1  ;;  %v3764_v59 = vrot.slane %v3763_v48, 1  ;;  %v4295_v45 = vrot.slane %v4294_v6, 1  ;;  %v4799_v14 = vsel %vm4658_vm5, %v12425_v10, %v4798_v58  ;;  %v12427_v21 = vld [vmem:[#allocation202_spill] sm:$0xff] }
 0x2fc   : > { %v4306_v36 = vrot.slane %v4305_v9, 2  ;;  %v4800_v55 = vsel %vm4660_vm6, %v4270_v4, %v4799_v14  ;;  %v9691_v54 = vsub.f32 %v12426_v15, %v1066_v23  ;;  %v9694_v25 = vsub.f32 %v12427_v21, %v1066_v23  ;;  %v12428_v5 = vld [vmem:[#allocation246_spill] sm:$0xff] }
 0x2fd   : > { %v4283_v38 = vadd.f32 %v4282_v46, %v4281_v8  ;;  %v3765_v62 = vadd.f32 %v3764_v59, %v3763_v48  ;;  %v4296_v31 = vadd.f32 %v4295_v45, %v4294_v6  ;;  %v1756_v8 = vmul.f32 %v9678_v51, %v9678_v51  ;;  %v12430_v48 = vld [vmem:[#allocation81_spill] sm:$0xff]  ;;  %v12434_v45 = vld [vmem:[#allocation230_spill] sm:$0xff] }
 0x2fe   : > { %v4307_v13 = vadd.f32 %v4306_v36, %v4305_v9  ;;  %v9701_v46 = vadd.f32 %v12428_v5, %v1662_v40  ;;  %v9704_v4 = vadd.f32 %v12430_v48, %v1663_v30  ;;  %v1757_v36 = vmul.f32 %v9685_v3, %v9685_v3  ;;  %v12432_v40 = vld [vmem:[#allocation199_spill] sm:$0xff]  ;;  %v12433_v30 = vld [vmem:[#allocation200_spill] sm:$0xff] }
 0x2ff   : > { %v4801_v39 = vsel %vm4662_vm7, %v4283_v38, %v4800_v55  ;;  %v4731_v9 = vsel %vm4666_vm9, %v3765_v62, %v4730_v1  ;;  %v1758_v59 = vmul.f32 %v9691_v54, %v9691_v54  ;;  %v9714_v1 = vmul.f32 %v9694_v25, %v9694_v25  ;;  %v12441_v48 = vld [vmem:[#allocation32_spill] sm:$0xff] }
 0x300   : > { %v4308_v17 = vrot.slane %v4307_v13, 1  ;;  %12429 = vst [vmem:[#allocation67_spill] sm:$0xff] %v9701_v46  ;;  %12431 = vst [vmem:[#allocation149_spill] sm:$0xff] %v9704_v4  ;;  %4753 = vrot.lane.b32.xlu1 %v4731_v9, %s5938_s9  ;;  %v4802_v6 = vsel %vm4664_vm8, %v4296_v31, %v4801_v39  ;;  %v9717_v58 = vadd.f32 %v1756_v8, %v12432_v40  ;;  %v12435_v10 = vrot.slane %v12434_v45, 1  ;;  %v12437_v31 = vld [vmem:[#allocation135_spill] sm:$0xff]  ;;  %v12439_v9 = vld [vmem:[#allocation56_spill] sm:$0xff] }
 0x301   : > { %v9720_v38 = vadd.f32 %v1757_v36, %v12433_v30  ;;  %v12440_v5 = vrot.slane %v12439_v9, 2  ;;  %v2635_v40 = vrot.slane %v12441_v48, 2  ;;  %v12442_v30 = vld [vmem:[#allocation54_spill] sm:$0xff]  ;;  %v9751_v0 = vsub.f32 %v12450_v53, %v1366_v32  ;;  %v12482_v46 = vld [vmem:[#allocation172_spill] sm:$0xff] }
 0x302   : > { %v4309_v23 = vadd.f32 %v4308_v17, %v4307_v13  ;;  %v2586_v14 = vadd.f32 %v12435_v10, %v12434_v45  ;;  %v12436_v13 = vld [vmem:[#allocation43_spill] sm:$0xff]  ;;  %v12438_v17 = vrot.slane %v12437_v31, 2  ;;  %v12443_v33 = vrot.slane %v12442_v30, 4  ;;  %v12481_v4 = vld [vmem:[#allocation170_spill] sm:$0xff] }
 0x303   : > { %v2598_v62 = vrot.slane %v12436_v13, 1  ;;  %v2623_v8 = vadd.f32 %v12440_v5, %v12439_v9  ;;  %v12444_v10 = vld [vmem:[#allocation159_spill] sm:$0xff]  ;;  %v2636_v9 = vadd.f32 %v2635_v40, %v12441_v48  ;;  %v12448_v5 = vld [vmem:[#allocation94_spill] sm:$0xff] }
 0x304   : > { %v4803_v55 = vsel %vm4666_vm9, %v4309_v23, %v4802_v6  ;;  %v2610_v39 = vadd.f32 %v12438_v17, %v12437_v31  ;;  %v2647_v45 = vadd.f32 %v12443_v33, %v12442_v30  ;;  %v2658_v50 = vadd.f32 %v12445_v18, %v12444_v10  ;;  %v12446_v23 = vld [vmem:[#allocation95_spill] sm:$0xff]  ;;  %v12447_v6 = vld [vmem:[#allocation97_spill] sm:$0xff] }
 0x305   : > { %v2599_v36 = vadd.f32 %v2598_v62, %v12436_v13  ;;  %v2669_v29 = vadd.f32 %v12447_v6, %v12446_v23  ;;  %4825 = vrot.lane.b32.xlu1 %v4803_v55, %s5939_s14  ;;  %v2624_v17 = vrot.slane %v2623_v8, 1  ;;  %v2670_v13 = vsel %vm2578_vm3, %v12448_v5, 0.0  ;;  %v12451_v5 = vld [vmem:[#allocation225_spill] sm:$0xff] }
 0x306   : > { %v2611_v31 = vrot.slane %v2610_v39, 1  ;;  %v2648_v62 = vrot.slane %v2647_v45, 2  ;;  %v2659_v27 = vrot.slane %v2658_v50, 4  ;;  %v2637_v10 = vrot.slane %v2636_v9, 1 }
 0x307   : > { %v2671_v2 = vadd.f32 %v2670_v13, %v2669_v29  ;;  %v4869_v33 = vsel %vm4654_vm0, %v2599_v36, %v2586_v14  ;;  %v2625_v18 = vadd.f32 %v2624_v17, %v2623_v8  ;;  %v9748_v23 = vsub.f32 %v12449_v42, %v1366_v32  ;;  %v12452_v29 = vld [vmem:[#allocation129_spill] sm:$0xff] }
 0x308   : > { %v2612_v30 = vadd.f32 %v2611_v31, %v2610_v39  ;;  %v2649_v6 = vadd.f32 %v2648_v62, %v2647_v45  ;;  %v2660_v55 = vadd.f32 %v2659_v27, %v2658_v50  ;;  %v2638_v48 = vadd.f32 %v2637_v10, %v2636_v9  ;;  %v12455_v10 = vld [vmem:[#allocation18_spill] sm:$0xff] }
 0x309   : > { %v2672_v43 = vrot.slane %v2671_v2, 4  ;;  %v9755_v24 = vsub.f32 %v12451_v5, %v1366_v32  ;;  %v9758_v14 = vsub.f32 %v12452_v29, %v1366_v32  ;;  %v2004_v50 = vmul.f32 %v9748_v23, %v9748_v23 }
 0x30a   : > { %v4870_v40 = vsel %vm4656_vm4, %v2612_v30, %v4869_v33  ;;  %v2650_v39 = vrot.slane %v2649_v6, 1  ;;  %v2661_v8 = vrot.slane %v2660_v55, 2  ;;  %v2005_v45 = vmul.f32 %v9751_v0, %v9751_v0  ;;  %v12454_v30 = vld [vmem:[#allocation237_spill] sm:$0xff] }
 0x30b   : > { %v2673_v36 = vadd.f32 %v2672_v43, %v2671_v2  ;;  %v4871_v31 = vsel %vm4658_vm5, %v2625_v18, %v4870_v40  ;;  %v2006_v17 = vmul.f32 %v9755_v24, %v9755_v24  ;;  %v2007_v62 = vmul.f32 %v9758_v14, %v9758_v14  ;;  %v9770_v2 = vpop.permute.xlu1 %1397  ;;  %v12453_v43 = vld [vmem:[#allocation201_spill] sm:$0xff]  ;;  %v12456_v40 = vld [vmem:[#allocation212_spill] sm:$0xff] }
 0x30c   : > { %v4872_v27 = vsel %vm4660_vm6, %v2638_v48, %v4871_v31  ;;  %v2651_v9 = vadd.f32 %v2650_v39, %v2649_v6  ;;  %v2662_v13 = vadd.f32 %v2661_v8, %v2660_v55  ;;  %v9773_v33 = vadd.f32 %v1758_v59, %v12453_v43  ;;  %v12457_v55 = vld [vmem:[#allocation171_spill] sm:$0xff] }
 0x30d   : > { %v2674_v32 = vrot.slane %v2673_v36, 2  ;;  %v2132_v18 = vadd.f32 %v2004_v50, %v12454_v30  ;;  %v2133_v48 = vadd.f32 %v2005_v45, %v12455_v10  ;;  %v2134_v31 = vadd.f32 %v2006_v17, %v12456_v40 }
 0x30e   : > { %v2663_v47 = vrot.slane %v2662_v13, 1  ;;  %v4873_v6 = vsel %vm4662_vm7, %v2651_v9, %v4872_v27  ;;  %v2135_v39 = vadd.f32 %v2007_v62, %v12457_v55  ;;  %v9782_v8 = vsub.f32 %v12221_v28, %v9770_v2  ;;  %v12460_v55 = vld [vmem:[#allocation8_spill] sm:$0xff] }
 0x30f   : > { %v2675_v61 = vadd.f32 %v2674_v32, %v2673_v36  ;;  %vm2260_vm12 = vcmp.le.f32.partialorder %v2132_v18, 4.84  ;;  %vm2261_vm13 = vcmp.le.f32.partialorder %v2133_v48, 4.84  ;;  %vm2262_vm1 = vcmp.le.f32.partialorder %v2134_v31, 4.84 }
 0x310   : > { %v2664_v59 = vadd.f32 %v2663_v47, %v2662_v13  ;;  %vm2263_vm14 = vcmp.le.f32.partialorder %v2135_v39, 4.84  ;;  %v5607_v50 = vsel %vm2260_vm12, 1.0, %v11767_v49  ;;  %v5608_v45 = vsel %vm2261_vm13, 1.0, %v11767_v49  ;;  %v12458_v18 = vld [vmem:[#allocation175_spill] sm:$0xff] }
 0x311   : > { %v2676_v43 = vrot.slane %v2675_v61, 1  ;;  %v5609_v36 = vsel %vm2262_vm1, 1.0, %v11767_v49  ;;  %v5610_v27 = vsel %vm2263_vm14, 1.0, %v11767_v49  ;;  %v2808_v17 = vsel %vm2572_vm2, %v5607_v50, 0.0  ;;  %v12459_v48 = vld [vmem:[#allocation203_spill] sm:$0xff] }
 0x312   : > { %v4874_v32 = vsel %vm4664_vm8, %v2664_v59, %v4873_v6  ;;  %v2809_v62 = vsel %vm2572_vm2, %v5608_v45, 0.0  ;;  %v9793_v47 = vsub.f32 %v12223_v22, %v9770_v2  ;;  %v2811_v30 = vsel %vm2572_vm2, %v5609_v36, 0.0  ;;  %v12462_v6 = vld [vmem:[#allocation235_spill] sm:$0xff] }
 0x313   : > { %v2677_v9 = vadd.f32 %v2676_v43, %v2675_v61  ;;  %v2810_v13 = vadd.f32 %v2809_v62, %v2808_v17  ;;  %v3062_v10 = vmul.f32 %v5607_v50, %v12458_v18  ;;  %v3063_v40 = vmul.f32 %v5608_v45, %v12459_v48  ;;  %v12461_v61 = vld [vmem:[#allocation232_spill] sm:$0xff] }
 0x314   : > { %v3064_v39 = vmul.f32 %v5609_v36, %v12460_v55  ;;  %v3065_v43 = vmul.f32 %v5610_v27, %v12461_v61  ;;  %v3606_v59 = vmul.f32 %v5607_v50, %v12462_v6  ;;  %v12463_v62 = vld [vmem:[#allocation236_spill] sm:$0xff]  ;;  %v2813_v18 = vsel %vm2578_vm3, %v5610_v27, 0.0  ;;  %v12465_v61 = vld [vmem:[#allocation70_spill] sm:$0xff] }
 0x315   : > { %v4875_v31 = vsel %vm4666_vm9, %v2677_v9, %v4874_v32  ;;  %v2812_v56 = vadd.f32 %v2811_v30, %v2810_v13  ;;  %v3352_v57 = vsel %vm2572_vm2, %v3062_v10, 0.0  ;;  %v3353_v17 = vsel %vm2572_vm2, %v3063_v40, 0.0  ;;  %v12464_v32 = vld [vmem:[#allocation69_spill] sm:$0xff] }
 0x316   : > { %4897 = vrot.lane.b32.xlu1 %v4875_v31, %s5940_s17  ;;  %v3607_v41 = vmul.f32 %v5608_v45, %v12463_v62  ;;  %v3354_v48 = vadd.f32 %v3353_v17, %v3352_v57  ;;  %v3355_v9 = vsel %vm2572_vm2, %v3064_v39, 0.0  ;;  %v3608_v55 = vmul.f32 %v5609_v36, %v12464_v32 }
 0x317   : > { %v2814_v26 = vadd.f32 %v2813_v18, %v2812_v56  ;;  %v3609_v7 = vmul.f32 %v5610_v27, %v12465_v61  ;;  %v3896_v6 = vsel %vm2572_vm2, %v3606_v59, 0.0  ;;  %v3357_v10 = vsel %vm2578_vm3, %v3065_v43, 0.0 }
 0x318   : > { %v3897_v13 = vsel %vm2572_vm2, %v3607_v41, 0.0  ;;  %v3356_v30 = vadd.f32 %v3355_v9, %v3354_v48  ;;  %v4150_v31 = vmul.f32 %v5607_v50, %v9748_v23  ;;  %v3899_v57 = vsel %vm2572_vm2, %v3608_v55, 0.0 }
 0x319   : > { %v3898_v40 = vadd.f32 %v3897_v13, %v3896_v6  ;;  %v2815_v62 = vrot.slane %v2814_v26, 4  ;;  %v4151_v39 = vmul.f32 %v5608_v45, %v9751_v0  ;;  %v4152_v17 = vmul.f32 %v5609_v36, %v9755_v24 }
 0x31a   : > { %v3358_v56 = vadd.f32 %v3357_v10, %v3356_v30  ;;  %v4153_v32 = vmul.f32 %v5610_v27, %v9758_v14  ;;  %v4440_v59 = vsel %vm2572_vm2, %v4150_v31, 0.0  ;;  %v3901_v48 = vsel %vm2578_vm3, %v3609_v7, 0.0  ;;  %v12468_v10 = vld [vmem:[#allocation117_spill] sm:$0xff]  ;;  %v12469_v31 = vld [vmem:[#allocation15_spill] sm:$0xff] }
 0x31b   : > { %v3900_v18 = vadd.f32 %v3899_v57, %v3898_v40  ;;  %v2816_v41 = vadd.f32 %v2815_v62, %v2814_v26  ;;  %v4441_v43 = vsel %vm2572_vm2, %v4151_v39, 0.0  ;;  %v9823_v23 = vsub.f32 %v12225_v52, %v9770_v2 }
 0x31c   : > { %v3359_v50 = vrot.slane %v3358_v56, 4  ;;  %v4442_v0 = vadd.f32 %v4441_v43, %v4440_v59  ;;  %v4443_v24 = vsel %vm2572_vm2, %v4152_v17, 0.0  ;;  %v9828_v14 = vsub.f32 %v12228_v12, %v9770_v2  ;;  %v12467_v2 = vld [vmem:[#allocation173_spill] sm:$0xff]  ;;  %v12471_v17 = vld [vmem:[#allocation180_spill] sm:$0xff] }
 0x31d   : > { %v3902_v9 = vadd.f32 %v3901_v48, %v3900_v18  ;;  %v2817_v45 = vrot.slane %v2816_v41, 2  ;;  %v2036_v26 = vmul.f32 %v9782_v8, %v9782_v8  ;;  %v2037_v7 = vmul.f32 %v9793_v47, %v9793_v47  ;;  %v12472_v59 = vld [vmem:[#allocation93_spill] sm:$0xff]  ;;  %v794_v48 = vpop.permute.xlu1 %793  ;;  %v12480_v18 = vld [vmem:[#allocation107_spill] sm:$0xff] }
 0x31e   : > { %v9834_v36 = vadd.f32 %v3359_v50, %v3358_v56  ;;  %v4444_v55 = vadd.f32 %v4443_v24, %v4442_v0  ;;  %v2038_v61 = vmul.f32 %v9823_v23, %v9823_v23  ;;  %v4445_v6 = vsel %vm2578_vm3, %v4153_v32, 0.0 }
 0x31f   : > { %v3903_v27 = vrot.slane %v3902_v9, 4  ;;  %v2039_v13 = vmul.f32 %v9828_v14, %v9828_v14  ;;  %v2164_v30 = vadd.f32 %v2036_v26, %v12467_v2  ;;  %v2165_v40 = vadd.f32 %v2037_v7, %v12468_v10  ;;  %v12477_v10 = vld [vmem:[#allocation190_spill] sm:$0xff] }
 0x320   : > { %12466 = vst [vmem:[#allocation119_spill] sm:$0xff] %v9834_v36  ;;  %v9845_v62 = vadd.f32 %v9714_v1, %v12469_v31  ;;  %v9847_v57 = vadd.f32 %v2817_v45, %v2816_v41  ;;  %v4446_v39 = vadd.f32 %v4445_v6, %v4444_v55  ;;  %v2166_v56 = vadd.f32 %v2038_v61, %v12471_v17  ;;  %v12475_v61 = vld [vmem:[#allocation188_spill] sm:$0xff] }
 0x321   : > { %v2167_v32 = vadd.f32 %v2039_v13, %v12472_v59  ;;  %vm2292_vm15 = vcmp.le.f32.partialorder %v2164_v30, 4.84  ;;  %vm2293_vm10 = vcmp.le.f32.partialorder %v2165_v40, 4.84  ;;  %v9852_v43 = vadd.f32 %v3903_v27, %v3902_v9  ;;  %v12476_v13 = vld [vmem:[#allocation189_spill] sm:$0xff]  ;;  %v12478_v31 = vld [vmem:[#allocation92_spill] sm:$0xff] }
 0x322   : > { %12470 = vst [vmem:[#allocation13_spill] sm:$0xff] %v9847_v57  ;;  %v4447_v50 = vrot.slane %v4446_v39, 4  ;;  %vm2294_vm11 = vcmp.le.f32.partialorder %v2166_v56, 4.84  ;;  %v5639_v0 = vsel %vm2292_vm15, 1.0, %v11767_v49  ;;  %v5640_v1 = vsel %vm2293_vm10, 1.0, %v11767_v49 }
 0x323   : > { %12473 = vst [vmem:[#allocation128_spill] sm:$0xff] %v9852_v43  ;;  %vm2295_vm12 = vcmp.le.f32.partialorder %v2167_v32, 4.84  ;;  %v5641_v41 = vsel %vm2294_vm11, 1.0, %v11767_v49  ;;  %v2912_v24 = vsel %vm2572_vm2, %v5639_v0, 0.0  ;;  %v2913_v7 = vsel %vm2572_vm2, %v5640_v1, 0.0 }
 0x324   : > { %v4448_v45 = vadd.f32 %v4447_v50, %v4446_v39  ;;  %v5642_v26 = vsel %vm2295_vm12, 1.0, %v11767_v49  ;;  %v9861_v55 = vsub.f32 %v12139_v63, %v794_v48  ;;  %v2914_v9 = vadd.f32 %v2913_v7, %v2912_v24  ;;  %v12479_v39 = vld [vmem:[#allocation161_spill] sm:$0xff] }
 0x325   : > { %v2915_v27 = vsel %vm2572_vm2, %v5641_v41, 0.0  ;;  %v3094_v6 = vmul.f32 %v5639_v0, %v12475_v61  ;;  %v3095_v2 = vmul.f32 %v5640_v1, %v12476_v13  ;;  %v3096_v40 = vmul.f32 %v5641_v41, %v12477_v10 }
 0x326   : > { %12474 = vst [vmem:[#allocation53_spill] sm:$0xff] %v9861_v55  ;;  %v4449_v30 = vrot.slane %v4448_v45, 2  ;;  %v3097_v17 = vmul.f32 %v5642_v26, %v12478_v31  ;;  %v3638_v56 = vmul.f32 %v5639_v0, %v12479_v39  ;;  %v2916_v59 = vadd.f32 %v2915_v27, %v2914_v9  ;;  %v12502_v9 = vld [vmem:[#allocation213_spill] sm:$0xff] }
 0x327   : > { %v3456_v32 = vsel %vm2572_vm2, %v3094_v6, 0.0  ;;  %v3457_v50 = vsel %vm2572_vm2, %v3095_v2, 0.0  ;;  %v3639_v24 = vmul.f32 %v5640_v1, %v12480_v18  ;;  %v2917_v36 = vsel %vm2578_vm3, %v5642_v26, 0.0 }
 0x328   : > { %v4450_v7 = vadd.f32 %v4449_v30, %v4448_v45  ;;  %v3458_v61 = vadd.f32 %v3457_v50, %v3456_v32  ;;  %v3459_v13 = vsel %vm2572_vm2, %v3096_v40, 0.0  ;;  %v2918_v57 = vadd.f32 %v2917_v36, %v2916_v59  ;;  %v1070_v45 = vpop.permute.xlu1 %1069 }
 0x329   : > { %v3640_v10 = vmul.f32 %v5641_v41, %v12481_v4  ;;  %v3641_v31 = vmul.f32 %v5642_v26, %v12482_v46  ;;  %v4000_v39 = vsel %vm2572_vm2, %v3638_v56, 0.0  ;;  %v4001_v6 = vsel %vm2572_vm2, %v3639_v24, 0.0 }
 0x32a   : > { %v3460_v27 = vadd.f32 %v3459_v13, %v3458_v61  ;;  %v4182_v18 = vmul.f32 %v5639_v0, %v9782_v8  ;;  %v4451_v2 = vrot.slane %v4450_v7, 1  ;;  %v2919_v30 = vrot.slane %v2918_v57, 4 }
 0x32b   : > { %v3461_v32 = vsel %vm2578_vm3, %v3097_v17, 0.0  ;;  %v4002_v40 = vadd.f32 %v4001_v6, %v4000_v39  ;;  %v4003_v4 = vsel %vm2572_vm2, %v3640_v10, 0.0  ;;  %v4183_v46 = vmul.f32 %v5640_v1, %v9793_v47 }
 0x32c   : > { %v3462_v36 = vadd.f32 %v3461_v32, %v3460_v27  ;;  %v4184_v56 = vmul.f32 %v5641_v41, %v9823_v23  ;;  %v4005_v50 = vsel %vm2578_vm3, %v3641_v31, 0.0  ;;  %v4185_v24 = vmul.f32 %v5642_v26, %v9828_v14  ;;  %v1370_v31 = vpop.permute.xlu1 %1369 }
 0x32d   : > { %v4004_v59 = vadd.f32 %v4003_v4, %v4002_v40  ;;  %v4544_v8 = vsel %vm2572_vm2, %v4182_v18, 0.0  ;;  %v9887_v0 = vadd.f32 %v2919_v30, %v2918_v57  ;;  %v4545_v17 = vsel %vm2572_vm2, %v4183_v46, 0.0 }
 0x32e   : > { %v3463_v61 = vrot.slane %v3462_v36, 4  ;;  %v9891_v13 = vsub.f32 %v12143_v16, %v794_v48  ;;  %v9893_v10 = vadd.f32 %v4451_v2, %v4450_v7  ;;  %v4546_v1 = vadd.f32 %v4545_v17, %v4544_v8 }
 0x32f   : > { %12483 = vst [vmem:[#allocation88_spill] sm:$0xff] %v9887_v0  ;;  %v4006_v47 = vadd.f32 %v4005_v50, %v4004_v59  ;;  %v4547_v23 = vsel %vm2572_vm2, %v4184_v56, 0.0  ;;  %v9899_v14 = vsub.f32 %v12145_v44, %v794_v48  ;;  %v9902_v57 = vsub.f32 %v12148_v34, %v794_v48  ;;  %v12494_v59 = vld [vmem:[#allocation10_spill] sm:$0xff] }
 0x330   : > { %12484 = vst [vmem:[#allocation111_spill] sm:$0xff] %v9891_v13  ;;  %12485 = vst [vmem:[#allocation127_spill] sm:$0xff] %v9893_v10  ;;  %v9896_v41 = vadd.f32 %v3463_v61, %v3462_v36  ;;  %v1664_v26 = vmul.f32 %v9861_v55, %v9861_v55  ;;  %v4548_v27 = vadd.f32 %v4547_v23, %v4546_v1  ;;  %v4549_v30 = vsel %vm2578_vm3, %v4185_v24, 0.0  ;;  %v12490_v36 = vld [vmem:[#allocation82_spill] sm:$0xff] }
 0x331   : > { %12487 = vst [vmem:[#allocation165_spill] sm:$0xff] %v9899_v14  ;;  %12488 = vst [vmem:[#allocation113_spill] sm:$0xff] %v9902_v57  ;;  %v4007_v39 = vrot.slane %v4006_v47, 4  ;;  %v1665_v7 = vmul.f32 %v9891_v13, %v9891_v13  ;;  %v9909_v6 = vsub.f32 %v12423_v60, %v1070_v45  ;;  %v1666_v48 = vmul.f32 %v9899_v14, %v9899_v14  ;;  %v12504_v0 = vld [vmem:[#allocation214_spill] sm:$0xff]  ;;  %v12512_v13 = vld [vmem:[#allocation55_spill] sm:$0xff] }
 0x332   : > { %12486 = vst [vmem:[#allocation186_spill] sm:$0xff] %v9896_v41  ;;  %v4550_v32 = vadd.f32 %v4549_v30, %v4548_v27  ;;  %v1667_v40 = vmul.f32 %v9902_v57, %v9902_v57  ;;  %v9919_v4 = vadd.f32 %v12490_v36, %v1664_v26  ;;  %v9922_v46 = vsub.f32 %v12424_v35, %v1070_v45  ;;  %v1402_v27 = vpop.permute.xlu1 %1401  ;;  %v12498_v30 = vld [vmem:[#allocation247_spill] sm:$0xff] }
 0x333   : > { %12489 = vst [vmem:[#allocation156_spill] sm:$0xff] %v9909_v6  ;;  %v9924_v56 = vadd.f32 %v4007_v39, %v4006_v47  ;;  %v9927_v50 = vadd.f32 %v12494_v59, %v1665_v7  ;;  %v9930_v24 = vsub.f32 %v12426_v15, %v1070_v45  ;;  %v9933_v8 = vsub.f32 %v12427_v21, %v1070_v45  ;;  %v12500_v59 = vld [vmem:[#allocation33_spill] sm:$0xff] }
 0x334   : > { %12491 = vst [vmem:[#allocation28_spill] sm:$0xff] %v9919_v4  ;;  %12492 = vst [vmem:[#allocation152_spill] sm:$0xff] %v9922_v46  ;;  %v4551_v61 = vrot.slane %v4550_v32, 4  ;;  %v1760_v17 = vmul.f32 %v9909_v6, %v9909_v6  ;;  %v1761_v1 = vmul.f32 %v9922_v46, %v9922_v46  ;;  %v1496_v23 = vsub.f32 %v12449_v42, %v1370_v31  ;;  %v12517_v4 = vld [vmem:[#allocation105_spill] sm:$0xff]  ;;  %v12519_v6 = vld [vmem:[#allocation206_spill] sm:$0xff] }
 0x335   : > { %12493 = vst [vmem:[#allocation118_spill] sm:$0xff] %v9924_v56  ;;  %12495 = vst [vmem:[#allocation242_spill] sm:$0xff] %v9927_v50  ;;  %v1762_v47 = vmul.f32 %v9930_v24, %v9930_v24  ;;  %v1763_v26 = vmul.f32 %v9933_v8, %v9933_v8  ;;  %v9945_v39 = vsub.f32 %v12450_v53, %v1370_v31 }
 0x336   : > { %12496 = vst [vmem:[#allocation187_spill] sm:$0xff] %v9930_v24  ;;  %12497 = vst [vmem:[#allocation124_spill] sm:$0xff] %v9933_v8  ;;  %v9948_v45 = vsub.f32 %v12451_v5, %v1370_v31  ;;  %v4552_v7 = vadd.f32 %v4551_v61, %v4550_v32  ;;  %v9951_v36 = vadd.f32 %v12498_v30, %v1666_v48  ;;  %v12506_v61 = vld [vmem:[#allocation215_spill] sm:$0xff]  ;;  %v12518_v24 = vld [vmem:[#allocation205_spill] sm:$0xff] }
 0x337   : > { %v9954_v2 = vadd.f32 %v12500_v59, %v1667_v40  ;;  %v1499_v18 = vsub.f32 %v12452_v29, %v1370_v31  ;;  %v9958_v41 = vadd.f32 %v1760_v17, %v12502_v9  ;;  %v9961_v10 = vadd.f32 %v1761_v1, %v12504_v0  ;;  %v12508_v9 = vld [vmem:[#allocation216_spill] sm:$0xff]  ;;  %v12510_v0 = vld [vmem:[#allocation193_spill] sm:$0xff]  ;;  %v12511_v30 = vld [vmem:[#allocation7_spill] sm:$0xff] }
 0x338   : > { %12499 = vst [vmem:[#allocation125_spill] sm:$0xff] %v9951_v36  ;;  %v2008_v43 = vmul.f32 %v1496_v23, %v1496_v23  ;;  %v2009_v56 = vmul.f32 %v9945_v39, %v9945_v39  ;;  %v4553_v57 = vrot.slane %v4552_v7, 2  ;;  %v2010_v48 = vmul.f32 %v9948_v45, %v9948_v45 }
 0x339   : > { %12501 = vst [vmem:[#allocation126_spill] sm:$0xff] %v9954_v2  ;;  %12503 = vst [vmem:[#allocation24_spill] sm:$0xff] %v9958_v41  ;;  %v2011_v32 = vmul.f32 %v1499_v18, %v1499_v18  ;;  %v9968_v40 = vsub.f32 %v12221_v28, %v1402_v27  ;;  %v9971_v31 = vadd.f32 %v1762_v47, %v12506_v61  ;;  %v12513_v2 = vld [vmem:[#allocation47_spill] sm:$0xff]  ;;  %v12514_v61 = vld [vmem:[#allocation38_spill] sm:$0xff] }
 0x33a   : > { %12505 = vst [vmem:[#allocation26_spill] sm:$0xff] %v9961_v10  ;;  %v9974_v17 = vadd.f32 %v1763_v26, %v12508_v9  ;;  %v2136_v1 = vadd.f32 %v2008_v43, %v12510_v0  ;;  %v2137_v59 = vadd.f32 %v2009_v56, %v12511_v30  ;;  %v9978_v14 = vadd.f32 %v4553_v57, %v4552_v7  ;;  %v12515_v0 = vld [vmem:[#allocation120_spill] sm:$0xff]  ;;  %v12516_v30 = vld [vmem:[#allocation90_spill] sm:$0xff] }
 0x33b   : > { %12507 = vst [vmem:[#allocation145_spill] sm:$0xff] %v9971_v31  ;;  %v2138_v55 = vadd.f32 %v2010_v48, %v12512_v13  ;;  %v2139_v36 = vadd.f32 %v2011_v32, %v12513_v2  ;;  %v9983_v50 = vsub.f32 %v12223_v22, %v1402_v27  ;;  %v9986_v47 = vsub.f32 %v12225_v52, %v1402_v27  ;;  %v12520_v31 = vld [vmem:[#allocation207_spill] sm:$0xff] }
 0x33c   : > { %12509 = vst [vmem:[#allocation148_spill] sm:$0xff] %v9974_v17  ;;  %vm2264_vm13 = vcmp.le.f32.partialorder %v2136_v1, 4.84  ;;  %vm2265_vm1 = vcmp.le.f32.partialorder %v2137_v59, 4.84  ;;  %v9989_v26 = vsub.f32 %v12228_v12, %v1402_v27  ;;  %v2040_v13 = vmul.f32 %v9968_v40, %v9968_v40  ;;  %v10016_v12 = vpop.f32.mrb[0].mxu0 }
 0x33d   : > { %vm2266_vm14 = vcmp.le.f32.partialorder %v2138_v55, 4.84  ;;  %vm2267_vm15 = vcmp.le.f32.partialorder %v2139_v36, 4.84  ;;  %v5611_v43 = vsel %vm2264_vm13, 1.0, %v11767_v49  ;;  %v5612_v57 = vsel %vm2265_vm1, 1.0, %v11767_v49 }
 0x33e   : > { %v5613_v2 = vsel %vm2266_vm14, 1.0, %v11767_v49  ;;  %v5614_v56 = vsel %vm2267_vm15, 1.0, %v11767_v49  ;;  %v2821_v7 = vsel %vm2572_vm2, %v5611_v43, 0.0  ;;  %v4555_v48 = vrot.slane %v9978_v14, 1 }
 0x33f   : > { %v2822_v27 = vsel %vm2572_vm2, %v5612_v57, 0.0  ;;  %v2824_v55 = vsel %vm2572_vm2, %v5613_v2, 0.0  ;;  %v2041_v36 = vmul.f32 %v9983_v50, %v9983_v50  ;;  %v3066_v9 = vmul.f32 %v5611_v43, %v12514_v61 }
 0x340   : > { %v2823_v32 = vadd.f32 %v2822_v27, %v2821_v7  ;;  %v3067_v1 = vmul.f32 %v5612_v57, %v12515_v0  ;;  %v3068_v59 = vmul.f32 %v5613_v2, %v12516_v30  ;;  %v3069_v8 = vmul.f32 %v5614_v56, %v12517_v4  ;;  %v12521_v0 = vld [vmem:[#allocation109_spill] sm:$0xff] }
 0x341   : > { %v3610_v46 = vmul.f32 %v5611_v43, %v12518_v24  ;;  %v3611_v17 = vmul.f32 %v5612_v57, %v12519_v6  ;;  %v3612_v10 = vmul.f32 %v5613_v2, %v12520_v31  ;;  %v2826_v37 = vsel %vm2578_vm3, %v5614_v56, 0.0 }
 0x342   : > { %v2825_v41 = vadd.f32 %v2824_v55, %v2823_v32  ;;  %v3365_v20 = vsel %vm2572_vm2, %v3066_v9, 0.0  ;;  %v3366_v7 = vsel %vm2572_vm2, %v3067_v1, 0.0  ;;  %v3368_v61 = vsel %vm2572_vm2, %v3068_v59, 0.0  ;;  %v10020_v32 = vpop.f32.mrb[1].mxu0 }
 0x343   : > { %v3367_v27 = vadd.f32 %v3366_v7, %v3365_v20  ;;  %v3613_v30 = vmul.f32 %v5614_v56, %v12521_v0  ;;  %v3909_v4 = vsel %vm2572_vm2, %v3610_v46, 0.0  ;;  %v3370_v6 = vsel %vm2578_vm3, %v3069_v8, 0.0  ;;  %v10024_v59 = vpop.f32.mrb[2].mxu0 }
 0x344   : > { %v2827_v24 = vadd.f32 %v2826_v37, %v2825_v41  ;;  %v3910_v31 = vsel %vm2572_vm2, %v3611_v17, 0.0  ;;  %v4154_v55 = vmul.f32 %v5611_v43, %v1496_v23  ;;  %v3912_v20 = vsel %vm2572_vm2, %v3612_v10, 0.0  ;;  %12522 = vst [vmem:[#allocation59_spill] sm:$0xff] %v10024_v59 }
 0x345   : > { %v3369_v9 = vadd.f32 %v3368_v61, %v3367_v27  ;;  %v3911_v52 = vadd.f32 %v3910_v31, %v3909_v4  ;;  %v4155_v1 = vmul.f32 %v5612_v57, %v9945_v39  ;;  %v4156_v46 = vmul.f32 %v5613_v2, %v9948_v45  ;;  %v12524_v45 = vld [vmem:[#allocation29_spill] sm:$0xff]  ;;  %v12526_v4 = vld [vmem:[#allocation72_spill] sm:$0xff] }
 0x346   : > { %v2828_v7 = vrot.slane %v2827_v24, 4  ;;  %v4157_v0 = vmul.f32 %v5614_v56, %v1499_v18  ;;  %v4453_v37 = vsel %vm2572_vm2, %v4154_v55, 0.0  ;;  %v2042_v17 = vmul.f32 %v9986_v47, %v9986_v47 }
 0x347   : > { %v3371_v41 = vadd.f32 %v3370_v6, %v3369_v9  ;;  %v3913_v8 = vadd.f32 %v3912_v20, %v3911_v52  ;;  %v4454_v23 = vsel %vm2572_vm2, %v4155_v1, 0.0  ;;  %v3914_v10 = vsel %vm2578_vm3, %v3613_v30, 0.0 }
 0x348   : > { %v10031_v43 = vadd.f32 %v2828_v7, %v2827_v24  ;;  %v4455_v39 = vadd.f32 %v4454_v23, %v4453_v37  ;;  %v4456_v57 = vsel %vm2572_vm2, %v4156_v46, 0.0  ;;  %v2043_v18 = vmul.f32 %v9989_v26, %v9989_v26 }
 0x349   : > { %v3372_v27 = vrot.slane %v3371_v41, 4  ;;  %v3915_v61 = vadd.f32 %v3914_v10, %v3913_v8  ;;  %v2168_v2 = vadd.f32 %v2040_v13, %v12524_v45  ;;  %v10039_v52 = vadd.f32 %v4555_v48, %v9978_v14  ;;  %v12530_v10 = vld [vmem:[#allocation57_spill] sm:$0xff] }
 0x34a   : > { %12523 = vst [vmem:[#allocation60_spill] sm:$0xff] %v10031_v43  ;;  %v4457_v56 = vadd.f32 %v4456_v57, %v4455_v39  ;;  %v2169_v6 = vadd.f32 %v2041_v36, %v12526_v4  ;;  %v2170_v24 = vadd.f32 %v2042_v17, %v9488_v11  ;;  %v4458_v31 = vsel %vm2578_vm3, %v4157_v0, 0.0  ;;  %v10051_v11 = vpop.f32.mrb[3].mxu0  ;;  %v12531_v57 = vld [vmem:[#allocation254_spill] sm:$0xff]  ;;  %v12533_v4 = vld [vmem:[#allocation77_spill] sm:$0xff] }
 0x34b   : > { %12525 = vst [vmem:[#allocation61_spill] sm:$0xff] %v10039_v52  ;;  %v2171_v55 = vadd.f32 %v2043_v18, %v9492_v19  ;;  %vm2296_vm10 = vcmp.le.f32.partialorder %v2168_v2, 4.84  ;;  %v10047_v20 = vadd.f32 %v3372_v27, %v3371_v41  ;;  %12528 = vst [vmem:[#allocation140_spill] sm:$0xff] %v10051_v11  ;;  %v3916_v46 = vrot.slane %v3915_v61, 4  ;;  %v12529_v41 = vld [vmem:[#allocation238_spill] sm:$0xff] }
 0x34c   : > { %v4459_v9 = vadd.f32 %v4458_v31, %v4457_v56  ;;  %vm2297_vm11 = vcmp.le.f32.partialorder %v2169_v6, 4.84  ;;  %vm2298_vm12 = vcmp.le.f32.partialorder %v2170_v24, 4.84  ;;  %v5643_v13 = vsel %vm2296_vm10, 1.0, %v11767_v49  ;;  %v12532_v2 = vld [vmem:[#allocation45_spill] sm:$0xff]  ;;  %v798_v24 = vpop.permute.xlu1 %797 }
 0x34d   : > { %12527 = vst [vmem:[#allocation168_spill] sm:$0xff] %v10047_v20  ;;  %vm2299_vm13 = vcmp.le.f32.partialorder %v2171_v55, 4.84  ;;  %v5644_v14 = vsel %vm2297_vm11, 1.0, %v11767_v49  ;;  %v5645_v48 = vsel %vm2298_vm12, 1.0, %v11767_v49  ;;  %v2925_v19 = vsel %vm2572_vm2, %v5643_v13, 0.0 }
 0x34e   : > { %v4460_v36 = vrot.slane %v4459_v9, 4  ;;  %v5646_v1 = vsel %vm2299_vm13, 1.0, %v11767_v49  ;;  %v2926_v7 = vsel %vm2572_vm2, %v5644_v14, 0.0  ;;  %v2928_v37 = vsel %vm2572_vm2, %v5645_v48, 0.0  ;;  %v12534_v55 = vld [vmem:[#allocation17_spill] sm:$0xff] }
 0x34f   : > { %v2927_v0 = vadd.f32 %v2926_v7, %v2925_v19  ;;  %v3098_v8 = vmul.f32 %v5643_v13, %v12529_v41  ;;  %v2930_v17 = vsel %vm2578_vm3, %v5646_v1, 0.0  ;;  %v3099_v39 = vmul.f32 %v5644_v14, %v12530_v10  ;;  %v12535_v10 = vld [vmem:[#allocation166_spill] sm:$0xff] }
 0x350   : > { %v4461_v23 = vadd.f32 %v4460_v36, %v4459_v9  ;;  %v3100_v27 = vmul.f32 %v5645_v48, %v12531_v57  ;;  %v3642_v56 = vmul.f32 %v5643_v13, %v12532_v2  ;;  %v3643_v6 = vmul.f32 %v5644_v14, %v12533_v4  ;;  %v12536_v57 = vld [vmem:[#allocation27_spill] sm:$0xff] }
 0x351   : > { %v2929_v18 = vadd.f32 %v2928_v37, %v2927_v0  ;;  %v3469_v45 = vsel %vm2572_vm2, %v3098_v8, 0.0  ;;  %v3101_v19 = vmul.f32 %v5646_v1, %v12534_v55  ;;  %v3470_v7 = vsel %vm2572_vm2, %v3099_v39, 0.0 }
 0x352   : > { %v4462_v31 = vrot.slane %v4461_v23, 2  ;;  %v3472_v9 = vsel %vm2572_vm2, %v3100_v27, 0.0  ;;  %v3471_v41 = vadd.f32 %v3470_v7, %v3469_v45  ;;  %v3644_v30 = vmul.f32 %v5645_v48, %v12535_v10  ;;  %v1074_v7 = vpop.permute.xlu1 %1073 }
 0x353   : > { %v2931_v36 = vadd.f32 %v2930_v17, %v2929_v18  ;;  %v3645_v0 = vmul.f32 %v5646_v1, %v12536_v57  ;;  %v4013_v8 = vsel %vm2572_vm2, %v3642_v56, 0.0  ;;  %v4014_v2 = vsel %vm2572_vm2, %v3643_v6, 0.0 }
 0x354   : > { %v4463_v37 = vadd.f32 %v4462_v31, %v4461_v23  ;;  %v4186_v4 = vmul.f32 %v5643_v13, %v9968_v40  ;;  %v10072_v20 = vadd.f32 %v3916_v46, %v3915_v61  ;;  %v3473_v43 = vadd.f32 %v3472_v9, %v3471_v41 }
 0x355   : > { %v2932_v55 = vrot.slane %v2931_v36, 4  ;;  %v4015_v39 = vadd.f32 %v4014_v2, %v4013_v8  ;;  %v3474_v27 = vsel %vm2578_vm3, %v3101_v19, 0.0  ;;  %v4016_v17 = vsel %vm2572_vm2, %v3644_v30, 0.0 }
 0x356   : > { %12537 = vst [vmem:[#allocation58_spill] sm:$0xff] %v10072_v20  ;;  %v4187_v18 = vmul.f32 %v5644_v14, %v9983_v50  ;;  %v4188_v45 = vmul.f32 %v5645_v48, %v9986_v47  ;;  %v4464_v23 = vrot.slane %v4463_v37, 1  ;;  %v3475_v31 = vadd.f32 %v3474_v27, %v3473_v43  ;;  %v12552_v20 = vld [vmem:[#allocation41_spill] sm:$0xff] }
 0x357   : > { %v4017_v56 = vadd.f32 %v4016_v17, %v4015_v39  ;;  %v4189_v6 = vmul.f32 %v5646_v1, %v9989_v26  ;;  %v10079_v40 = vadd.f32 %v2932_v55, %v2931_v36  ;;  %v4018_v61 = vsel %vm2578_vm3, %v3645_v0, 0.0  ;;  %v1374_v55 = vpop.permute.xlu1 %1373  ;;  %v12544_v17 = vld [vmem:[#allocation132_spill] sm:$0xff]  ;;  %v12550_v39 = vld [vmem:[#allocation249_spill] sm:$0xff] }
 0x358   : > { %v4557_v13 = vsel %vm2572_vm2, %v4186_v4, 0.0  ;;  %v4558_v46 = vsel %vm2572_vm2, %v4187_v18, 0.0  ;;  %v3476_v19 = vrot.slane %v3475_v31, 4  ;;  %v4560_v47 = vsel %vm2572_vm2, %v4188_v45, 0.0  ;;  %v12545_v45 = vld [vmem:[#allocation75_spill] sm:$0xff] }
 0x359   : > { %12538 = vst [vmem:[#allocation139_spill] sm:$0xff] %v10079_v40  ;;  %v10084_v30 = vadd.f32 %v4018_v61, %v4017_v56  ;;  %v4559_v50 = vadd.f32 %v4558_v46, %v4557_v13  ;;  %v10088_v43 = vsub.f32 %v12139_v63, %v798_v24  ;;  %v10091_v26 = vsub.f32 %v12143_v16, %v798_v24  ;;  %v12546_v13 = vld [vmem:[#allocation76_spill] sm:$0xff] }
 0x35a   : > { %v10094_v14 = vsub.f32 %v12145_v44, %v798_v24  ;;  %v10097_v48 = vsub.f32 %v12148_v34, %v798_v24  ;;  %v10099_v1 = vadd.f32 %v4464_v23, %v4463_v37  ;;  %v4562_v36 = vsel %vm2578_vm3, %v4189_v6, 0.0  ;;  %v12551_v40 = vld [vmem:[#allocation224_spill] sm:$0xff] }
 0x35b   : > { %12539 = vst [vmem:[#allocation87_spill] sm:$0xff] %v10084_v30  ;;  %v4561_v9 = vadd.f32 %v4560_v47, %v4559_v50  ;;  %v1200_v41 = vsub.f32 %v12423_v60, %v1074_v7  ;;  %v10103_v10 = vadd.f32 %v3476_v19, %v3475_v31  ;;  %v1668_v57 = vmul.f32 %v10088_v43, %v10088_v43 }
 0x35c   : > { %12540 = vst [vmem:[#allocation112_spill] sm:$0xff] %v10094_v14  ;;  %12541 = vst [vmem:[#allocation89_spill] sm:$0xff] %v10097_v48  ;;  %v1669_v0 = vmul.f32 %v10091_v26, %v10091_v26  ;;  %v1670_v8 = vmul.f32 %v10094_v14, %v10094_v14  ;;  %v1201_v37 = vsub.f32 %v12424_v35, %v1074_v7  ;;  %v12563_v14 = vld [vmem:[#allocation211_spill] sm:$0xff] }
 0x35d   : > { %12542 = vst [vmem:[#allocation153_spill] sm:$0xff] %v10099_v1  ;;  %12543 = vst [vmem:[#allocation231_spill] sm:$0xff] %v10103_v10  ;;  %v4563_v24 = vadd.f32 %v4562_v36, %v4561_v9  ;;  %v1202_v2 = vsub.f32 %v12426_v15, %v1074_v7  ;;  %v1203_v4 = vsub.f32 %v12427_v21, %v1074_v7  ;;  %v12547_v9 = vld [vmem:[#allocation217_spill] sm:$0xff] }
 0x35e   : > { %v1671_v27 = vmul.f32 %v10097_v48, %v10097_v48  ;;  %v10118_v18 = vadd.f32 %v12544_v17, %v1668_v57  ;;  %v10121_v23 = vadd.f32 %v12545_v45, %v1669_v0  ;;  %v1764_v56 = vmul.f32 %v1200_v41, %v1200_v41  ;;  %v12548_v57 = vld [vmem:[#allocation222_spill] sm:$0xff]  ;;  %v12549_v17 = vld [vmem:[#allocation223_spill] sm:$0xff]  ;;  %v10179_v48 = vpop.f32.mrb[0].mxu1 }
 0x35f   : > { %v4564_v31 = vrot.slane %v4563_v24, 4  ;;  %v1765_v6 = vmul.f32 %v1201_v37, %v1201_v37  ;;  %v1766_v61 = vmul.f32 %v1202_v2, %v1202_v2  ;;  %v10124_v46 = vadd.f32 %v12546_v13, %v1670_v8  ;;  %12562 = vst [vmem:[#allocation133_spill] sm:$0xff] %v10179_v48  ;;  %v12569_v48 = vld [vmem:[#allocation39_spill] sm:$0xff] }
 0x360   : > { %v1767_v7 = vmul.f32 %v1203_v4, %v1203_v4  ;;  %v10127_v19 = vsub.f32 %v12449_v42, %v1374_v55  ;;  %v10130_v50 = vsub.f32 %v12450_v53, %v1374_v55  ;;  %v1892_v36 = vadd.f32 %v1764_v56, %v12547_v9  ;;  %v12554_v9 = vld [vmem:[#allocation6_spill] sm:$0xff] }
 0x361   : > { %v4565_v47 = vadd.f32 %v4564_v31, %v4563_v24  ;;  %v1893_v0 = vadd.f32 %v1765_v6, %v12548_v57  ;;  %v1894_v45 = vadd.f32 %v1766_v61, %v12549_v17  ;;  %v10136_v10 = vadd.f32 %v12550_v39, %v1671_v27  ;;  %v12553_v31 = vld [vmem:[#allocation169_spill] sm:$0xff]  ;;  %v12555_v57 = vld [vmem:[#allocation62_spill] sm:$0xff] }
 0x362   : > { %v1895_v8 = vadd.f32 %v1767_v7, %v12551_v40  ;;  %v10140_v13 = vsub.f32 %v12451_v5, %v1374_v55  ;;  %v2012_v1 = vmul.f32 %v10127_v19, %v10127_v19  ;;  %v2148_v24 = vadd.f32 %v12552_v20, %v1892_v36 }
 0x363   : > { %v4566_v52 = vrot.slane %v4565_v47, 2  ;;  %v2149_v56 = vadd.f32 %v12553_v31, %v1893_v0  ;;  %v2150_v6 = vadd.f32 %v12554_v9, %v1894_v45  ;;  %v10149_v39 = vsub.f32 %v12452_v29, %v1374_v55  ;;  %v12559_v9 = vld [vmem:[#allocation209_spill] sm:$0xff] }
 0x364   : > { %v2151_v61 = vadd.f32 %v12555_v57, %v1895_v8  ;;  %v2013_v40 = vmul.f32 %v10130_v50, %v10130_v50  ;;  %v2140_v27 = vadd.f32 %v2012_v1, %v9717_v58  ;;  %vm2276_vm1 = vcmp.le.f32.partialorder %v2148_v24, 4.84 }
 0x365   : > { %v10154_v7 = vadd.f32 %v4566_v52, %v4565_v47  ;;  %vm2277_vm14 = vcmp.le.f32.partialorder %v2149_v56, 4.84  ;;  %vm2278_vm15 = vcmp.le.f32.partialorder %v2150_v6, 4.84  ;;  %v5623_v20 = vsel %vm2276_vm1, 1.0, %v11767_v49  ;;  %v12557_v47 = vld [vmem:[#allocation208_spill] sm:$0xff] }
 0x366   : > { %vm2279_vm10 = vcmp.le.f32.partialorder %v2151_v61, 4.84  ;;  %v5624_v36 = vsel %vm2277_vm14, 1.0, %v11767_v49  ;;  %v5625_v0 = vsel %vm2278_vm15, 1.0, %v11767_v49  ;;  %v2860_v17 = vsel %vm2572_vm2, %v5623_v20, 0.0 }
 0x367   : > { %12556 = vst [vmem:[#allocation155_spill] sm:$0xff] %v10154_v7  ;;  %v5626_v55 = vsel %vm2279_vm10, 1.0, %v11767_v49  ;;  %v2861_v45 = vsel %vm2572_vm2, %v5624_v36, 0.0  ;;  %v2014_v58 = vmul.f32 %v10140_v13, %v10140_v13  ;;  %v3078_v8 = vmul.f32 %v5623_v20, %v12557_v47 }
 0x368   : > { %v2862_v1 = vadd.f32 %v2861_v45, %v2860_v17  ;;  %v2015_v24 = vmul.f32 %v10149_v39, %v10149_v39  ;;  %v2863_v31 = vsel %vm2572_vm2, %v5625_v0, 0.0  ;;  %v10170_v56 = vsel %vm2578_vm3, %v5626_v55, 0.0  ;;  %v12561_v17 = vld [vmem:[#allocation210_spill] sm:$0xff] }
 0x369   : > { %12558 = vst [vmem:[#allocation74_spill] sm:$0xff] %v10170_v56  ;;  %v3079_v6 = vmul.f32 %v5624_v36, %v12559_v9  ;;  %v3622_v57 = vmul.f32 %v5623_v20, %v1200_v41  ;;  %v3404_v30 = vsel %vm2572_vm2, %v3078_v8, 0.0  ;;  %v3623_v11 = vmul.f32 %v5624_v36, %v1201_v37  ;;  %v10188_v37 = vpop.f32.mrb[1].mxu1 }
 0x36a   : > { %v10173_v61 = vadd.f32 %v2863_v31, %v2862_v1  ;;  %v3624_v52 = vmul.f32 %v5625_v0, %v1202_v2  ;;  %v3080_v45 = vmul.f32 %v5625_v0, %v12561_v17  ;;  %v3625_v7 = vmul.f32 %v5626_v55, %v1203_v4  ;;  %v12566_v1 = vld [vmem:[#allocation198_spill] sm:$0xff]  ;;  %v12568_v17 = vld [vmem:[#allocation21_spill] sm:$0xff] }
 0x36b   : > { %v3405_v47 = vsel %vm2572_vm2, %v3079_v6, 0.0  ;;  %v3948_v59 = vsel %vm2572_vm2, %v3622_v57, 0.0  ;;  %v10182_v56 = vmul.f32 %v5626_v55, %v12563_v14  ;;  %v3949_v41 = vsel %vm2572_vm2, %v3623_v11, 0.0  ;;  %v12567_v6 = vld [vmem:[#allocation19_spill] sm:$0xff] }
 0x36c   : > { %12560 = vst [vmem:[#allocation51_spill] sm:$0xff] %v10173_v61  ;;  %v10184_v9 = vadd.f32 %v3405_v47, %v3404_v30  ;;  %v4166_v8 = vmul.f32 %v5623_v20, %v12566_v1  ;;  %v3950_v2 = vadd.f32 %v3949_v41, %v3948_v59  ;;  %v3951_v31 = vsel %vm2572_vm2, %v3624_v52, 0.0  ;;  %v10193_v61 = vpop.f32.mrb[2].mxu1 }
 0x36d   : > { %12564 = vst [vmem:[#allocation191_spill] sm:$0xff] %v10182_v56  ;;  %v4167_v4 = vmul.f32 %v5624_v36, %v12567_v6  ;;  %v4168_v57 = vmul.f32 %v5625_v0, %v12568_v17  ;;  %v10196_v14 = vmul.f32 %v5626_v55, %v12569_v48  ;;  %v2141_v11 = vadd.f32 %v2013_v40, %v9720_v38  ;;  %v10201_v47 = vpop.f32.mrb[3].mxu1  ;;  %v12575_v6 = vld [vmem:[#allocation182_spill] sm:$0xff]  ;;  %v12576_v17 = vld [vmem:[#allocation183_spill] sm:$0xff] }
 0x36e   : > { %12565 = vst [vmem:[#allocation115_spill] sm:$0xff] %v10184_v9  ;;  %v4492_v30 = vsel %vm2572_vm2, %v4166_v8, 0.0  ;;  %v2142_v20 = vadd.f32 %v2014_v58, %v9773_v33  ;;  %v3952_v59 = vadd.f32 %v3951_v31, %v3950_v2  ;;  %v3953_v52 = vsel %vm2578_vm3, %v3625_v7, 0.0  ;;  %v12574_v2 = vld [vmem:[#allocation181_spill] sm:$0xff] }
 0x36f   : > { %12570 = vst [vmem:[#allocation101_spill] sm:$0xff] %v10196_v14  ;;  %v4493_v36 = vsel %vm2572_vm2, %v4167_v4, 0.0  ;;  %v2143_v0 = vadd.f32 %v2015_v24, %v9845_v62  ;;  %vm2268_vm11 = vcmp.le.f32.partialorder %v2140_v27, 4.84  ;;  %vm2269_vm12 = vcmp.le.f32.partialorder %v2141_v11, 4.84 }
 0x370   : > { %v10206_v41 = vadd.f32 %v4493_v36, %v4492_v30  ;;  %vm2270_vm13 = vcmp.le.f32.partialorder %v2142_v20, 4.84  ;;  %v3954_v48 = vadd.f32 %v3953_v52, %v3952_v59  ;;  %v5615_v38 = vsel %vm2268_vm11, 1.0, %v11767_v49  ;;  %v12577_v20 = vld [vmem:[#allocation184_spill] sm:$0xff]  ;;  %v12595_v14 = vld [vmem:[#allocation241_spill] sm:$0xff] }
 0x371   : > { %vm2271_vm1 = vcmp.le.f32.partialorder %v2143_v0, 4.84  ;;  %v5616_v33 = vsel %vm2269_vm12, 1.0, %v11767_v49  ;;  %v5617_v40 = vsel %vm2270_vm13, 1.0, %v11767_v49  ;;  %v2834_v7 = vsel %vm2572_vm2, %v5615_v38, 0.0 }
 0x372   : > { %12571 = vst [vmem:[#allocation102_spill] sm:$0xff] %v10206_v41  ;;  %v5618_v55 = vsel %vm2271_vm1, 1.0, %v11767_v49  ;;  %v2835_v58 = vsel %vm2572_vm2, %v5616_v33, 0.0  ;;  %v10215_v62 = vsel %vm2572_vm2, %v3080_v45, 0.0  ;;  %v3955_v27 = vrot.slane %v3954_v48, 4  ;;  %v12597_v41 = vld [vmem:[#allocation243_spill] sm:$0xff] }
 0x373   : > { %12572 = vst [vmem:[#allocation104_spill] sm:$0xff] %v10215_v62  ;;  %v10218_v24 = vsel %vm2572_vm2, %v4168_v57, 0.0  ;;  %v2836_v1 = vadd.f32 %v2835_v58, %v2834_v7  ;;  %v2837_v8 = vsel %vm2572_vm2, %v5617_v40, 0.0  ;;  %v3070_v31 = vmul.f32 %v5615_v38, %v12574_v2  ;;  %v1406_v58 = vpop.permute.xlu1 %1405 }
 0x374   : > { %12573 = vst [vmem:[#allocation177_spill] sm:$0xff] %v10218_v24  ;;  %v3071_v4 = vmul.f32 %v5616_v33, %v12575_v6  ;;  %v3072_v30 = vmul.f32 %v5617_v40, %v12576_v17  ;;  %v3073_v59 = vmul.f32 %v5618_v55, %v12577_v20  ;;  %v3614_v52 = vmul.f32 %v5615_v38, %v9678_v51 }
 0x375   : > { %v2838_v11 = vadd.f32 %v2837_v8, %v2836_v1  ;;  %v3615_v45 = vmul.f32 %v5616_v33, %v9685_v3  ;;  %v2839_v36 = vsel %vm2578_vm3, %v5618_v55, 0.0  ;;  %v3378_v57 = vsel %vm2572_vm2, %v3070_v31, 0.0 }
 0x376   : > { %v3379_v0 = vsel %vm2572_vm2, %v3071_v4, 0.0  ;;  %v3381_v7 = vsel %vm2572_vm2, %v3072_v30, 0.0  ;;  %v3616_v17 = vmul.f32 %v5617_v40, %v9691_v54  ;;  %v3617_v1 = vmul.f32 %v5618_v55, %v9694_v25 }
 0x377   : > { %v2840_v2 = vadd.f32 %v2839_v36, %v2838_v11  ;;  %v3380_v6 = vadd.f32 %v3379_v0, %v3378_v57  ;;  %v3922_v8 = vsel %vm2572_vm2, %v3614_v52, 0.0  ;;  %v3923_v51 = vsel %vm2572_vm2, %v3615_v45, 0.0  ;;  %v802_v0 = vpop.permute.xlu1 %801 }
 0x378   : > { %v4158_v3 = vmul.f32 %v5615_v38, %v10127_v19  ;;  %v4159_v20 = vmul.f32 %v5616_v33, %v10130_v50  ;;  %v3383_v4 = vsel %vm2578_vm3, %v3073_v59, 0.0  ;;  %v3924_v30 = vadd.f32 %v3923_v51, %v3922_v8 }
 0x379   : > { %v2841_v31 = vrot.slane %v2840_v2, 4  ;;  %v3382_v56 = vadd.f32 %v3381_v7, %v3380_v6  ;;  %v3925_v11 = vsel %vm2572_vm2, %v3616_v17, 0.0  ;;  %v4160_v36 = vmul.f32 %v5617_v40, %v10140_v13  ;;  %v12582_v40 = vld [vmem:[#allocation229_spill] sm:$0xff]  ;;  %v12583_v7 = vld [vmem:[#allocation130_spill] sm:$0xff] }
 0x37a   : > { %v4161_v54 = vmul.f32 %v5618_v55, %v10149_v39  ;;  %v4466_v25 = vsel %vm2572_vm2, %v4158_v3, 0.0  ;;  %v10242_v52 = vadd.f32 %v3955_v27, %v3954_v48  ;;  %v3926_v19 = vadd.f32 %v3925_v11, %v3924_v30  ;;  %v12585_v11 = vld [vmem:[#allocation134_spill] sm:$0xff] }
 0x37b   : > { %v10244_v45 = vadd.f32 %v3383_v4, %v3382_v56  ;;  %v4467_v50 = vsel %vm2572_vm2, %v4159_v20, 0.0  ;;  %v10247_v38 = vadd.f32 %v2841_v31, %v2840_v2  ;;  %v3927_v33 = vsel %vm2578_vm3, %v3617_v1, 0.0  ;;  %v12584_v4 = vld [vmem:[#allocation103_spill] sm:$0xff]  ;;  %v12592_v3 = vld [vmem:[#allocation122_spill] sm:$0xff] }
 0x37c   : > { %12578 = vst [vmem:[#allocation141_spill] sm:$0xff] %v10242_v52  ;;  %v4468_v59 = vadd.f32 %v4467_v50, %v4466_v25  ;;  %v1532_v57 = vsub.f32 %v12221_v28, %v1406_v58  ;;  %v10251_v13 = vadd.f32 %v3927_v33, %v3926_v19  ;;  %v4469_v39 = vsel %vm2572_vm2, %v4160_v36, 0.0  ;;  %v12586_v25 = vld [vmem:[#allocation67_spill] sm:$0xff]  ;;  %v12587_v33 = vld [vmem:[#allocation149_spill] sm:$0xff] }
 0x37d   : > { %12579 = vst [vmem:[#allocation142_spill] sm:$0xff] %v10244_v45  ;;  %12580 = vst [vmem:[#allocation144_spill] sm:$0xff] %v10247_v38  ;;  %v1533_v48 = vsub.f32 %v12223_v22, %v1406_v58  ;;  %v1534_v56 = vsub.f32 %v12582_v40, %v1406_v58  ;;  %v4471_v27 = vsel %vm2578_vm3, %v4161_v54, 0.0  ;;  %v1535_v2 = vsub.f32 %v12583_v7, %v1406_v58  ;;  %v12593_v45 = vld [vmem:[#allocation240_spill] sm:$0xff] }
 0x37e   : > { %12581 = vst [vmem:[#allocation44_spill] sm:$0xff] %v10251_v13  ;;  %v4470_v55 = vadd.f32 %v4469_v39, %v4468_v59  ;;  %v2044_v6 = vmul.f32 %v1532_v57, %v1532_v57  ;;  %v10260_v51 = vsub.f32 %v12139_v63, %v802_v0  ;;  %v10267_v58 = vsub.f32 %v12143_v16, %v802_v0 }
 0x37f   : > { %v2045_v1 = vmul.f32 %v1533_v48, %v1533_v48  ;;  %v2046_v8 = vmul.f32 %v1534_v56, %v1534_v56  ;;  %v2047_v31 = vmul.f32 %v1535_v2, %v1535_v2  ;;  %v10270_v19 = vsub.f32 %v12145_v44, %v802_v0 }
 0x380   : > { %v4472_v20 = vadd.f32 %v4471_v27, %v4470_v55  ;;  %v2172_v30 = vadd.f32 %v2044_v6, %v12584_v4  ;;  %v10274_v59 = vsub.f32 %v12148_v34, %v802_v0  ;;  %v1672_v55 = vmul.f32 %v10260_v51, %v10260_v51  ;;  %v12588_v4 = vld [vmem:[#allocation137_spill] sm:$0xff] }
 0x381   : > { %v2173_v36 = vadd.f32 %v2045_v1, %v12585_v11  ;;  %v2174_v54 = vadd.f32 %v2046_v8, %v12586_v25  ;;  %v2175_v63 = vadd.f32 %v2047_v31, %v12587_v33  ;;  %v1673_v0 = vmul.f32 %v10267_v58, %v10267_v58  ;;  %v12591_v33 = vld [vmem:[#allocation239_spill] sm:$0xff] }
 0x382   : > { %v4473_v50 = vrot.slane %v4472_v20, 4  ;;  %vm2300_vm14 = vcmp.le.f32.partialorder %v2172_v30, 4.84 }
 0x383   : > { %vm2301_vm15 = vcmp.le.f32.partialorder %v2173_v36, 4.84  ;;  %vm2302_vm10 = vcmp.le.f32.partialorder %v2174_v54, 4.84  ;;  %v5647_v39 = vsel %vm2300_vm14, 1.0, %v11767_v49  ;;  %v12589_v36 = vld [vmem:[#allocation138_spill] sm:$0xff] }
 0x384   : > { %v4474_v27 = vadd.f32 %v4473_v50, %v4472_v20  ;;  %vm2303_vm11 = vcmp.le.f32.partialorder %v2175_v63, 4.84  ;;  %v5648_v16 = vsel %vm2301_vm15, 1.0, %v11767_v49  ;;  %v5649_v44 = vsel %vm2302_vm10, 1.0, %v11767_v49  ;;  %v12590_v54 = vld [vmem:[#allocation96_spill] sm:$0xff] }
 0x385   : > { %v5650_v6 = vsel %vm2303_vm11, 1.0, %v11767_v49  ;;  %v2938_v1 = vsel %vm2572_vm2, %v5647_v39, 0.0  ;;  %v2939_v34 = vsel %vm2572_vm2, %v5648_v16, 0.0  ;;  %v3102_v30 = vmul.f32 %v5647_v39, %v12588_v4 }
 0x386   : > { %v4475_v8 = vrot.slane %v4474_v27, 2  ;;  %v2940_v31 = vadd.f32 %v2939_v34, %v2938_v1  ;;  %v1674_v20 = vmul.f32 %v10270_v19, %v10270_v19  ;;  %v2941_v11 = vsel %vm2572_vm2, %v5649_v44, 0.0 }
 0x387   : > { %v3103_v25 = vmul.f32 %v5648_v16, %v12589_v36  ;;  %v3104_v50 = vmul.f32 %v5649_v44, %v12590_v54  ;;  %v3646_v63 = vmul.f32 %v5647_v39, %v12591_v33  ;;  %v3105_v62 = vmul.f32 %v5650_v6, %v12592_v3 }
 0x388   : > { %v2942_v17 = vadd.f32 %v2941_v11, %v2940_v31  ;;  %v3482_v9 = vsel %vm2572_vm2, %v3102_v30, 0.0  ;;  %v3647_v1 = vmul.f32 %v5648_v16, %v12593_v45  ;;  %v10296_v34 = vadd.f32 %v4475_v8, %v4474_v27 }
 0x389   : > { %v2943_v4 = vsel %vm2578_vm3, %v5650_v6, 0.0  ;;  %v3483_v38 = vsel %vm2572_vm2, %v3103_v25, 0.0  ;;  %v3648_v24 = vmul.f32 %v5649_v44, %v12595_v14  ;;  %v3649_v33 = vmul.f32 %v5650_v6, %v12597_v41 }
 0x38a   : > { %12594 = vst [vmem:[#allocation11_spill] sm:$0xff] %v10296_v34  ;;  %v10301_v36 = vadd.f32 %v2943_v4, %v2942_v17  ;;  %v3484_v54 = vadd.f32 %v3483_v38, %v3482_v9  ;;  %v4026_v31 = vsel %vm2572_vm2, %v3646_v63, 0.0  ;;  %v3485_v3 = vsel %vm2572_vm2, %v3104_v50, 0.0  ;;  %v12602_v4 = vld [vmem:[#allocation255_spill] sm:$0xff] }
 0x38b   : > { %v4027_v30 = vsel %vm2572_vm2, %v3647_v1, 0.0  ;;  %v4190_v45 = vmul.f32 %v5647_v39, %v1532_v57  ;;  %v4191_v27 = vmul.f32 %v5648_v16, %v1533_v48  ;;  %v3487_v11 = vsel %vm2578_vm3, %v3105_v62, 0.0  ;;  %v12599_v39 = vld [vmem:[#allocation252_spill] sm:$0xff] }
 0x38c   : > { %12596 = vst [vmem:[#allocation204_spill] sm:$0xff] %v10301_v36  ;;  %v3486_v8 = vadd.f32 %v3485_v3, %v3484_v54  ;;  %v4028_v34 = vadd.f32 %v4027_v30, %v4026_v31  ;;  %v4029_v25 = vsel %vm2572_vm2, %v3648_v24, 0.0  ;;  %v4192_v14 = vmul.f32 %v5649_v44, %v1534_v56  ;;  %v12600_v24 = vld [vmem:[#allocation253_spill] sm:$0xff]  ;;  %v12603_v31 = vld [vmem:[#allocation256_spill] sm:$0xff]  ;;  %v12604_v30 = vld [vmem:[#allocation147_spill] sm:$0xff] }
 0x38d   : > { %v4193_v17 = vmul.f32 %v5650_v6, %v1535_v2  ;;  %v4570_v9 = vsel %vm2572_vm2, %v4190_v45, 0.0  ;;  %v4571_v41 = vsel %vm2572_vm2, %v4191_v27, 0.0  ;;  %v1675_v57 = vmul.f32 %v10274_v59, %v10274_v59  ;;  %v1078_v2 = vpop.permute.xlu1 %1077  ;;  %v12605_v45 = vld [vmem:[#allocation150_spill] sm:$0xff]  ;;  %v12631_v44 = vld [vmem:[#allocation145_spill] sm:$0xff]  ;;  %v12633_v36 = vld [vmem:[#allocation148_spill] sm:$0xff] }
 0x38e   : > { %v10311_v38 = vadd.f32 %v3487_v11, %v3486_v8  ;;  %v4030_v63 = vadd.f32 %v4029_v25, %v4028_v34  ;;  %v4572_v50 = vadd.f32 %v4571_v41, %v4570_v9  ;;  %v4031_v48 = vsel %vm2578_vm3, %v3649_v33, 0.0 }
 0x38f   : > { %v4573_v62 = vsel %vm2572_vm2, %v4192_v14, 0.0  ;;  %v1928_v16 = vadd.f32 %v12599_v39, %v1672_v55  ;;  %v1929_v56 = vadd.f32 %v12600_v24, %v1673_v0  ;;  %v1930_v34 = vadd.f32 %v12602_v4, %v1674_v20  ;;  %v12606_v0 = vld [vmem:[#allocation174_spill] sm:$0xff]  ;;  %v12607_v14 = vld [vmem:[#allocation151_spill] sm:$0xff] }
 0x390   : > { %12598 = vst [vmem:[#allocation34_spill] sm:$0xff] %v10311_v38  ;;  %v10320_v6 = vadd.f32 %v4031_v48, %v4030_v63  ;;  %v4574_v1 = vadd.f32 %v4573_v62, %v4572_v50  ;;  %v4575_v54 = vsel %vm2578_vm3, %v4193_v17, 0.0  ;;  %v1931_v3 = vadd.f32 %v12603_v31, %v1675_v57  ;;  %v12616_v31 = vld [vmem:[#allocation250_spill] sm:$0xff] }
 0x391   : > { %v2184_v33 = vadd.f32 %v12604_v30, %v1928_v16  ;;  %v2185_v27 = vadd.f32 %v12605_v45, %v1929_v56  ;;  %v2186_v11 = vadd.f32 %v12606_v0, %v1930_v34  ;;  %v10330_v25 = vsub.f32 %v12423_v60, %v1078_v2  ;;  %v1378_v16 = vpop.permute.xlu1 %1377  ;;  %v12630_v55 = vld [vmem:[#allocation26_spill] sm:$0xff] }
 0x392   : > { %12601 = vst [vmem:[#allocation25_spill] sm:$0xff] %v10320_v6  ;;  %v4576_v8 = vadd.f32 %v4575_v54, %v4574_v1  ;;  %v2187_v9 = vadd.f32 %v12607_v14, %v1931_v3  ;;  %v10334_v20 = vsub.f32 %v12424_v35, %v1078_v2  ;;  %v10342_v60 = vsub.f32 %v12426_v15, %v1078_v2  ;;  %v12610_v15 = vld [vmem:[#allocation123_spill] sm:$0xff]  ;;  %v12618_v3 = vld [vmem:[#allocation64_spill] sm:$0xff] }
 0x393   : > { %vm2312_vm12 = vcmp.le.f32.partialorder %v2184_v33, 4.84  ;;  %vm2313_vm13 = vcmp.le.f32.partialorder %v2185_v27, 4.84  ;;  %vm2314_vm1 = vcmp.le.f32.partialorder %v2186_v11, 4.84  ;;  %v10345_v57 = vsub.f32 %v12427_v21, %v1078_v2 }
 0x394   : > { %v4577_v17 = vrot.slane %v4576_v8, 4  ;;  %v5659_v41 = vsel %vm2312_vm12, 1.0, %v11767_v49  ;;  %v5660_v63 = vsel %vm2313_vm13, 1.0, %v11767_v49  ;;  %vm2315_vm14 = vcmp.le.f32.partialorder %v2187_v9, 4.84  ;;  %v12612_v21 = vld [vmem:[#allocation248_spill] sm:$0xff] }
 0x395   : > { %v10339_v50 = vsel %vm2314_vm1, 1.0, %v11767_v49  ;;  %v10348_v35 = vsel %vm2315_vm14, 1.0, %v11767_v49  ;;  %v3114_v62 = vmul.f32 %v5659_v41, %v10260_v51  ;;  %v3115_v39 = vmul.f32 %v5660_v63, %v10267_v58  ;;  %v12620_v27 = vld [vmem:[#allocation22_spill] sm:$0xff] }
 0x396   : > { %12608 = vst [vmem:[#allocation244_spill] sm:$0xff] %v10339_v50  ;;  %v4578_v48 = vadd.f32 %v4577_v17, %v4576_v8  ;;  %12609 = vst [vmem:[#allocation245_spill] sm:$0xff] %v10348_v35  ;;  %v3116_v24 = vmul.f32 %v10339_v50, %v10270_v19  ;;  %v3117_v56 = vmul.f32 %v10348_v35, %v10274_v59  ;;  %v10363_v34 = vsel %vm2572_vm2, %v5659_v41, 0.0 }
 0x397   : > { %v10357_v1 = vmul.f32 %v5659_v41, %v12610_v15  ;;  %v10360_v2 = vmul.f32 %v5660_v63, %v12612_v21  ;;  %12614 = vst [vmem:[#allocation63_spill] sm:$0xff] %v10363_v34  ;;  %v3521_v51 = vsel %vm2572_vm2, %v3114_v62, 0.0  ;;  %v3522_v58 = vsel %vm2572_vm2, %v3115_v39, 0.0  ;;  %v12626_v21 = vld [vmem:[#allocation226_spill] sm:$0xff] }
 0x398   : > { %v4579_v4 = vrot.slane %v4578_v48, 2  ;;  %v10368_v54 = vsel %vm2572_vm2, %v5660_v63, 0.0  ;;  %v3523_v19 = vadd.f32 %v3522_v58, %v3521_v51  ;;  %v10372_v59 = vmul.f32 %v10339_v50, %v12616_v31  ;;  %v12627_v51 = vld [vmem:[#allocation227_spill] sm:$0xff] }
 0x399   : > { %12611 = vst [vmem:[#allocation86_spill] sm:$0xff] %v10357_v1  ;;  %12613 = vst [vmem:[#allocation192_spill] sm:$0xff] %v10360_v2  ;;  %v10375_v30 = vmul.f32 %v5659_v41, %v12618_v3  ;;  %v3524_v33 = vsel %vm2572_vm2, %v3116_v24, 0.0  ;;  %v3526_v45 = vsel %vm2578_vm3, %v3117_v56, 0.0  ;;  %v10380_v8 = vmul.f32 %v5660_v63, %v12620_v27  ;;  %v12623_v41 = vld [vmem:[#allocation40_spill] sm:$0xff]  ;;  %v1410_v56 = vpop.permute.xlu1 %1409 }
 0x39a   : > { %12615 = vst [vmem:[#allocation52_spill] sm:$0xff] %v10368_v54  ;;  %12617 = vst [vmem:[#allocation12_spill] sm:$0xff] %v10372_v59  ;;  %v1768_v0 = vmul.f32 %v10330_v25, %v10330_v25  ;;  %v10384_v11 = vadd.f32 %v4579_v4, %v4578_v48  ;;  %v3525_v14 = vadd.f32 %v3524_v33, %v3523_v19  ;;  %v12628_v27 = vld [vmem:[#allocation228_spill] sm:$0xff] }
 0x39b   : > { %12619 = vst [vmem:[#allocation91_spill] sm:$0xff] %v10375_v30  ;;  %12621 = vst [vmem:[#allocation154_spill] sm:$0xff] %v10380_v8  ;;  %v1769_v9 = vmul.f32 %v10334_v20, %v10334_v20  ;;  %v1770_v17 = vmul.f32 %v10342_v60, %v10342_v60  ;;  %v10392_v62 = vmul.f32 %v10339_v50, %v12623_v41  ;;  %v12636_v50 = vld [vmem:[#allocation196_spill] sm:$0xff]  ;;  %v12637_v8 = vld [vmem:[#allocation197_spill] sm:$0xff] }
 0x39c   : > { %12622 = vst [vmem:[#allocation110_spill] sm:$0xff] %v10384_v11  ;;  %v1504_v39 = vsub.f32 %v12449_v42, %v1378_v16  ;;  %v1505_v63 = vsub.f32 %v12450_v53, %v1378_v16  ;;  %v1506_v24 = vsub.f32 %v12451_v5, %v1378_v16  ;;  %v10397_v48 = vadd.f32 %v3526_v45, %v3525_v14  ;;  %v12638_v30 = vld [vmem:[#allocation156_spill] sm:$0xff] }
 0x39d   : > { %12624 = vst [vmem:[#allocation106_spill] sm:$0xff] %v10392_v62  ;;  %v1771_v15 = vmul.f32 %v10345_v57, %v10345_v57  ;;  %v10402_v4 = vadd.f32 %v1768_v0, %v12626_v21  ;;  %v10405_v58 = vadd.f32 %v1769_v9, %v12627_v51  ;;  %v1507_v19 = vsub.f32 %v12452_v29, %v1378_v16  ;;  %v12629_v9 = vld [vmem:[#allocation24_spill] sm:$0xff] }
 0x39e   : > { %12625 = vst [vmem:[#allocation202_spill] sm:$0xff] %v10397_v48  ;;  %v2016_v31 = vmul.f32 %v1504_v39, %v1504_v39  ;;  %v2017_v3 = vmul.f32 %v1505_v63, %v1505_v63  ;;  %v2018_v33 = vmul.f32 %v1506_v24, %v1506_v24  ;;  %v10409_v41 = vadd.f32 %v1770_v17, %v12628_v27  ;;  %v12632_v17 = vld [vmem:[#allocation5_spill] sm:$0xff]  ;;  %v12639_v2 = vld [vmem:[#allocation152_spill] sm:$0xff] }
 0x39f   : > { %v10412_v45 = vsub.f32 %v12221_v28, %v1410_v56  ;;  %v10415_v14 = vsub.f32 %v12223_v22, %v1410_v56  ;;  %v10418_v0 = vsub.f32 %v12582_v40, %v1410_v56  ;;  %v2019_v21 = vmul.f32 %v1507_v19, %v1507_v19 }
 0x3a0   : > { %v2144_v51 = vadd.f32 %v2016_v31, %v12629_v9  ;;  %v2145_v16 = vadd.f32 %v2017_v3, %v12630_v55  ;;  %v2146_v38 = vadd.f32 %v2018_v33, %v12631_v44  ;;  %v10425_v27 = vadd.f32 %v1771_v15, %v12632_v17 }
 0x3a1   : > { %v10428_v54 = vsub.f32 %v12583_v7, %v1410_v56  ;;  %v2048_v34 = vmul.f32 %v10412_v45, %v10412_v45  ;;  %v2147_v62 = vadd.f32 %v2019_v21, %v12633_v36  ;;  %v2049_v15 = vmul.f32 %v10415_v14, %v10415_v14  ;;  %v12634_v21 = vld [vmem:[#allocation194_spill] sm:$0xff] }
 0x3a2   : > { %vm2272_vm15 = vcmp.le.f32.partialorder %v2144_v51, 4.84  ;;  %vm2273_vm10 = vcmp.le.f32.partialorder %v2145_v16, 4.84  ;;  %vm2274_vm11 = vcmp.le.f32.partialorder %v2146_v38, 4.84  ;;  %v2050_v36 = vmul.f32 %v10418_v0, %v10418_v0 }
 0x3a3   : > { %v5619_v55 = vsel %vm2272_vm15, 1.0, %v11767_v49  ;;  %v5620_v44 = vsel %vm2273_vm10, 1.0, %v11767_v49  ;;  %v5621_v31 = vsel %vm2274_vm11, 1.0, %v11767_v49  ;;  %vm2275_vm12 = vcmp.le.f32.partialorder %v2147_v62, 4.84  ;;  %v12635_v51 = vld [vmem:[#allocation195_spill] sm:$0xff] }
 0x3a4   : > { %v2847_v56 = vsel %vm2572_vm2, %v5619_v55, 0.0  ;;  %v2848_v3 = vsel %vm2572_vm2, %v5620_v44, 0.0  ;;  %v5622_v33 = vsel %vm2275_vm12, 1.0, %v11767_v49  ;;  %v3074_v9 = vmul.f32 %v5619_v55, %v12634_v21 }
 0x3a5   : > { %v2849_v38 = vadd.f32 %v2848_v3, %v2847_v56  ;;  %v3075_v16 = vmul.f32 %v5620_v44, %v12635_v51  ;;  %v2850_v17 = vsel %vm2572_vm2, %v5621_v31, 0.0  ;;  %v3076_v48 = vmul.f32 %v5621_v31, %v12636_v50  ;;  %v12640_v51 = vld [vmem:[#allocation187_spill] sm:$0xff]  ;;  %v12641_v50 = vld [vmem:[#allocation124_spill] sm:$0xff] }
 0x3a6   : > { %v3077_v62 = vmul.f32 %v5622_v33, %v12637_v8  ;;  %v3618_v11 = vmul.f32 %v5619_v55, %v12638_v30  ;;  %v3391_v13 = vsel %vm2572_vm2, %v3074_v9, 0.0  ;;  %v3619_v1 = vmul.f32 %v5620_v44, %v12639_v2 }
 0x3a7   : > { %v2851_v52 = vadd.f32 %v2850_v17, %v2849_v38  ;;  %v3392_v59 = vsel %vm2572_vm2, %v3075_v16, 0.0  ;;  %v2852_v56 = vsel %vm2578_vm3, %v5622_v33, 0.0  ;;  %v3394_v21 = vsel %vm2572_vm2, %v3076_v48, 0.0 }
 0x3a8   : > { %v3393_v3 = vadd.f32 %v3392_v59, %v3391_v13  ;;  %v3620_v6 = vmul.f32 %v5621_v31, %v12640_v51  ;;  %v3621_v8 = vmul.f32 %v5622_v33, %v12641_v50  ;;  %v3935_v30 = vsel %vm2572_vm2, %v3618_v11, 0.0 }
 0x3a9   : > { %v10455_v35 = vadd.f32 %v2852_v56, %v2851_v52  ;;  %v3936_v38 = vsel %vm2572_vm2, %v3619_v1, 0.0  ;;  %v4162_v16 = vmul.f32 %v5619_v55, %v1504_v39  ;;  %v2051_v2 = vmul.f32 %v10428_v54, %v10428_v54  ;;  %v12642_v39 = vld [vmem:[#allocation28_spill] sm:$0xff] }
 0x3aa   : > { %v3395_v9 = vadd.f32 %v3394_v21, %v3393_v3  ;;  %v3937_v17 = vadd.f32 %v3936_v38, %v3935_v30  ;;  %v3396_v13 = vsel %vm2578_vm3, %v3077_v62, 0.0  ;;  %v3938_v59 = vsel %vm2572_vm2, %v3620_v6, 0.0  ;;  %v12643_v21 = vld [vmem:[#allocation242_spill] sm:$0xff] }
 0x3ab   : > { %v4163_v48 = vmul.f32 %v5620_v44, %v1505_v63  ;;  %v4164_v51 = vmul.f32 %v5621_v31, %v1506_v24  ;;  %v4165_v50 = vmul.f32 %v5622_v33, %v1507_v19  ;;  %v4479_v11 = vsel %vm2572_vm2, %v4162_v16, 0.0  ;;  %v12644_v63 = vld [vmem:[#allocation125_spill] sm:$0xff]  ;;  %v12645_v19 = vld [vmem:[#allocation126_spill] sm:$0xff] }
 0x3ac   : > { %v10464_v52 = vadd.f32 %v3396_v13, %v3395_v9  ;;  %v3939_v56 = vadd.f32 %v3938_v59, %v3937_v17  ;;  %v3940_v1 = vsel %vm2578_vm3, %v3621_v8, 0.0  ;;  %v2176_v55 = vadd.f32 %v2048_v34, %v12642_v39 }
 0x3ad   : > { %v4480_v3 = vsel %vm2572_vm2, %v4163_v48, 0.0  ;;  %v2177_v30 = vadd.f32 %v2049_v15, %v12643_v21  ;;  %v4482_v6 = vsel %vm2572_vm2, %v4164_v51, 0.0  ;;  %v2178_v24 = vadd.f32 %v2050_v36, %v12644_v63  ;;  %v12646_v48 = vld [vmem:[#allocation53_spill] sm:$0xff]  ;;  %v12649_v21 = vld [vmem:[#allocation79_spill] sm:$0xff] }
 0x3ae   : > { %v10471_v38 = vadd.f32 %v3940_v1, %v3939_v56  ;;  %v4481_v62 = vadd.f32 %v4480_v3, %v4479_v11  ;;  %v4484_v44 = vsel %vm2578_vm3, %v4165_v50, 0.0  ;;  %v2179_v31 = vadd.f32 %v2051_v2, %v12645_v19  ;;  %v12647_v56 = vld [vmem:[#allocation111_spill] sm:$0xff]  ;;  %v12648_v11 = vld [vmem:[#allocation165_spill] sm:$0xff] }
 0x3af   : > { %vm2304_vm13 = vcmp.le.f32.partialorder %v2176_v55, 4.84  ;;  %vm2305_vm1 = vcmp.le.f32.partialorder %v2177_v30, 4.84  ;;  %vm2306_vm14 = vcmp.le.f32.partialorder %v2178_v24, 4.84 }
 0x3b0   : > { %v4483_v33 = vadd.f32 %v4482_v6, %v4481_v62  ;;  %v5651_v8 = vsel %vm2304_vm13, 1.0, %v11767_v49  ;;  %v5652_v34 = vsel %vm2305_vm1, 1.0, %v11767_v49  ;;  %vm2307_vm15 = vcmp.le.f32.partialorder %v2179_v31, 4.84  ;;  %v12650_v62 = vld [vmem:[#allocation113_spill] sm:$0xff]  ;;  %v1414_v31 = vpop.permute.xlu1 %1413 }
 0x3b1   : > { %v5653_v15 = vsel %vm2306_vm14, 1.0, %v11767_v49  ;;  %v2951_v9 = vsel %vm2572_vm2, %v5651_v8, 0.0  ;;  %v2952_v17 = vsel %vm2572_vm2, %v5652_v34, 0.0  ;;  %v5654_v2 = vsel %vm2307_vm15, 1.0, %v11767_v49 }
 0x3b2   : > { %v4485_v16 = vadd.f32 %v4484_v44, %v4483_v33  ;;  %v2953_v13 = vadd.f32 %v2952_v17, %v2951_v9  ;;  %v2954_v59 = vsel %vm2572_vm2, %v5653_v15, 0.0  ;;  %v3106_v51 = vmul.f32 %v5651_v8, %v12646_v48  ;;  %v12651_v44 = vld [vmem:[#allocation14_spill] sm:$0xff] }
 0x3b3   : > { %v3107_v50 = vmul.f32 %v5652_v34, %v12647_v56  ;;  %v3108_v1 = vmul.f32 %v5653_v15, %v12648_v11  ;;  %v2956_v55 = vsel %vm2578_vm3, %v5654_v2, 0.0  ;;  %v3650_v30 = vmul.f32 %v5651_v8, %v12649_v21  ;;  %v12653_v56 = vld [vmem:[#allocation131_spill] sm:$0xff] }
 0x3b4   : > { %v4486_v3 = vrot.slane %v4485_v16, 4  ;;  %v2955_v39 = vadd.f32 %v2954_v59, %v2953_v13  ;;  %v3109_v6 = vmul.f32 %v5654_v2, %v12650_v62  ;;  %v3495_v63 = vsel %vm2572_vm2, %v3106_v51, 0.0  ;;  %v12652_v59 = vld [vmem:[#allocation80_spill] sm:$0xff] }
 0x3b5   : > { %v3496_v24 = vsel %vm2572_vm2, %v3107_v50, 0.0  ;;  %v3651_v19 = vmul.f32 %v5652_v34, %v12651_v44  ;;  %v3498_v13 = vsel %vm2572_vm2, %v3108_v1, 0.0  ;;  %v3652_v48 = vmul.f32 %v5653_v15, %v12652_v59 }
 0x3b6   : > { %v10494_v33 = vadd.f32 %v4486_v3, %v4485_v16  ;;  %v10496_v9 = vadd.f32 %v2956_v55, %v2955_v39  ;;  %v3497_v17 = vadd.f32 %v3496_v24, %v3495_v63  ;;  %v3653_v11 = vmul.f32 %v5654_v2, %v12653_v56  ;;  %v10511_v63 = vpop.f32.mrb[4].mxu0 }
 0x3b7   : > { %v4039_v21 = vsel %vm2572_vm2, %v3650_v30, 0.0  ;;  %v4040_v51 = vsel %vm2572_vm2, %v3651_v19, 0.0  ;;  %v4194_v44 = vmul.f32 %v5651_v8, %v10412_v45  ;;  %v10505_v16 = vsub.f32 %v12221_v28, %v1414_v31  ;;  %v10519_v28 = vpop.f32.mrb[5].mxu0 }
 0x3b8   : > { %v3499_v62 = vadd.f32 %v3498_v13, %v3497_v17  ;;  %v4041_v50 = vadd.f32 %v4040_v51, %v4039_v21  ;;  %v3500_v3 = vsel %vm2578_vm3, %v3109_v6, 0.0  ;;  %v4042_v39 = vsel %vm2572_vm2, %v3652_v48, 0.0  ;;  %v1386_v13 = vpop.permute.xlu1 %1385 }
 0x3b9   : > { %v4195_v1 = vmul.f32 %v5652_v34, %v10415_v14  ;;  %v4196_v55 = vmul.f32 %v5653_v15, %v10418_v0  ;;  %v4197_v19 = vmul.f32 %v5654_v2, %v10428_v54  ;;  %v4583_v45 = vsel %vm2572_vm2, %v4194_v44, 0.0  ;;  %v10525_v34 = vpop.f32.mrb[6].mxu0 }
 0x3ba   : > { %v10513_v30 = vadd.f32 %v3500_v3, %v3499_v62  ;;  %v10515_v24 = vadd.f32 %v4042_v39, %v4041_v50  ;;  %v1541_v14 = vsub.f32 %v12223_v22, %v1414_v31  ;;  %v1542_v0 = vsub.f32 %v12582_v40, %v1414_v31  ;;  %v10533_v59 = vpop.f32.mrb[7].mxu0 }
 0x3bb   : > { %v4584_v6 = vsel %vm2572_vm2, %v4195_v1, 0.0  ;;  %v10528_v15 = vsel %vm2578_vm3, %v3653_v11, 0.0  ;;  %v1543_v54 = vsub.f32 %v12583_v7, %v1414_v31  ;;  %v2052_v2 = vmul.f32 %v10505_v16, %v10505_v16 }
 0x3bc   : > { %v4585_v17 = vadd.f32 %v4584_v6, %v4583_v45  ;;  %v4586_v48 = vsel %vm2572_vm2, %v4196_v55, 0.0  ;;  %v2053_v56 = vmul.f32 %v1541_v14, %v1541_v14  ;;  %v2054_v22 = vmul.f32 %v1542_v0, %v1542_v0 }
 0x3bd   : > { %v4588_v11 = vsel %vm2578_vm3, %v4197_v19, 0.0  ;;  %v2055_v51 = vmul.f32 %v1543_v54, %v1543_v54  ;;  %v2180_v62 = vadd.f32 %v2052_v2, %v10118_v18  ;;  %v10543_v50 = vsub.f32 %v12449_v42, %v1386_v13 }
 0x3be   : > { %v4587_v21 = vadd.f32 %v4586_v48, %v4585_v17  ;;  %v2181_v7 = vadd.f32 %v2053_v56, %v10121_v23  ;;  %v2182_v31 = vadd.f32 %v2054_v22, %v10124_v46  ;;  %v10546_v44 = vsub.f32 %v12450_v53, %v1386_v13  ;;  %v12654_v48 = vld [vmem:[#allocation112_spill] sm:$0xff]  ;;  %v12655_v22 = vld [vmem:[#allocation46_spill] sm:$0xff] }
 0x3bf   : > { %v2183_v39 = vadd.f32 %v2055_v51, %v10136_v10  ;;  %vm2308_vm10 = vcmp.le.f32.partialorder %v2180_v62, 4.84  ;;  %v10550_v1 = vsub.f32 %v12451_v5, %v1386_v13  ;;  %v10554_v23 = vsub.f32 %v12452_v29, %v1386_v13  ;;  %v12656_v62 = vld [vmem:[#allocation48_spill] sm:$0xff] }
 0x3c0   : > { %v4589_v3 = vadd.f32 %v4588_v11, %v4587_v21  ;;  %vm2309_vm11 = vcmp.le.f32.partialorder %v2181_v7, 4.84  ;;  %vm2310_vm12 = vcmp.le.f32.partialorder %v2182_v31, 4.84  ;;  %v5655_v18 = vsel %vm2308_vm10, 1.0, %v11767_v49  ;;  %v12657_v31 = vld [vmem:[#allocation49_spill] sm:$0xff] }
 0x3c1   : > { %vm2311_vm13 = vcmp.le.f32.partialorder %v2183_v39, 4.84  ;;  %v5656_v42 = vsel %vm2309_vm11, 1.0, %v11767_v49  ;;  %v5657_v53 = vsel %vm2310_vm12, 1.0, %v11767_v49  ;;  %v2964_v55 = vsel %vm2572_vm2, %v5655_v18, 0.0 }
 0x3c2   : > { %v4590_v46 = vrot.slane %v4589_v3, 4  ;;  %v2965_v10 = vsel %vm2572_vm2, %v5656_v42, 0.0  ;;  %v2024_v5 = vmul.f32 %v10543_v50, %v10543_v50  ;;  %v2025_v19 = vmul.f32 %v10546_v44, %v10546_v44 }
 0x3c3   : > { %v5658_v45 = vsel %vm2311_vm13, 1.0, %v11767_v49  ;;  %v2966_v29 = vadd.f32 %v2965_v10, %v2964_v55  ;;  %v2967_v6 = vsel %vm2572_vm2, %v5657_v53, 0.0  ;;  %v3110_v17 = vmul.f32 %v5655_v18, %v10088_v43  ;;  %v12658_v43 = vld [vmem:[#allocation89_spill] sm:$0xff] }
 0x3c4   : > { %v10567_v2 = vadd.f32 %v4590_v46, %v4589_v3  ;;  %v3111_v13 = vmul.f32 %v5656_v42, %v10091_v26  ;;  %v3112_v56 = vmul.f32 %v5657_v53, %v12654_v48  ;;  %v3654_v21 = vmul.f32 %v5655_v18, %v12655_v22  ;;  %v12659_v26 = vld [vmem:[#allocation136_spill] sm:$0xff] }
 0x3c5   : > { %v10572_v11 = vadd.f32 %v2967_v6, %v2966_v29  ;;  %v3508_v51 = vsel %vm2572_vm2, %v3110_v17, 0.0  ;;  %v3655_v7 = vmul.f32 %v5656_v42, %v12656_v62  ;;  %v3656_v39 = vmul.f32 %v5657_v53, %v12657_v31 }
 0x3c6   : > { %v10578_v55 = vsel %vm2578_vm3, %v5658_v45, 0.0  ;;  %v3113_v3 = vmul.f32 %v5658_v45, %v12658_v43  ;;  %v3509_v46 = vsel %vm2572_vm2, %v3111_v13, 0.0  ;;  %v10583_v10 = vmul.f32 %v5658_v45, %v12659_v26 }
 0x3c7   : > { %v3510_v48 = vadd.f32 %v3509_v46, %v3508_v51  ;;  %v3511_v29 = vsel %vm2572_vm2, %v3112_v56, 0.0  ;;  %v4052_v6 = vsel %vm2572_vm2, %v3654_v21, 0.0  ;;  %v4053_v17 = vsel %vm2572_vm2, %v3655_v7, 0.0  ;;  %v12676_v46 = vld [vmem:[#allocation114_spill] sm:$0xff] }
 0x3c8   : > { %v10588_v22 = vadd.f32 %v4053_v17, %v4052_v6  ;;  %v4198_v62 = vmul.f32 %v5655_v18, %v10505_v16  ;;  %v4199_v31 = vmul.f32 %v5656_v42, %v1541_v14  ;;  %v4200_v36 = vmul.f32 %v5657_v53, %v1542_v0  ;;  %v12662_v6 = vld [vmem:[#allocation218_spill] sm:$0xff] }
 0x3c9   : > { %v10591_v8 = vadd.f32 %v3511_v29, %v3510_v48  ;;  %v4201_v43 = vmul.f32 %v5658_v45, %v1543_v54  ;;  %v2026_v13 = vmul.f32 %v10550_v1, %v10550_v1  ;;  %v2027_v51 = vmul.f32 %v10554_v23, %v10554_v23  ;;  %v12660_v45 = vld [vmem:[#allocation59_spill] sm:$0xff] }
 0x3ca   : > { %v10598_v56 = vsel %vm2578_vm3, %v3113_v3, 0.0  ;;  %v4596_v21 = vsel %vm2572_vm2, %v4198_v62, 0.0  ;;  %v4597_v7 = vsel %vm2572_vm2, %v4199_v31, 0.0  ;;  %v2152_v16 = vadd.f32 %v2024_v5, %v10402_v4  ;;  %v12661_v3 = vld [vmem:[#allocation140_spill] sm:$0xff]  ;;  %v12663_v62 = vld [vmem:[#allocation219_spill] sm:$0xff] }
 0x3cb   : > { %v4598_v14 = vadd.f32 %v4597_v7, %v4596_v21  ;;  %v4599_v0 = vsel %vm2572_vm2, %v4200_v36, 0.0  ;;  %v2153_v54 = vadd.f32 %v2025_v19, %v10405_v58  ;;  %v2154_v18 = vadd.f32 %v2026_v13, %v10409_v41  ;;  %v12665_v7 = vld [vmem:[#allocation9_spill] sm:$0xff] }
 0x3cc   : > { %v4601_v42 = vsel %vm2578_vm3, %v4201_v43, 0.0  ;;  %v2155_v53 = vadd.f32 %v2027_v51, %v10425_v27  ;;  %vm2280_vm1 = vcmp.le.f32.partialorder %v2152_v16, 4.84  ;;  %v10615_v5 = vsel %vm2572_vm2, %v3656_v39, 0.0  ;;  %v12664_v43 = vld [vmem:[#allocation220_spill] sm:$0xff] }
 0x3cd   : > { %v4600_v26 = vadd.f32 %v4599_v0, %v4598_v14  ;;  %vm2281_vm14 = vcmp.le.f32.partialorder %v2153_v54, 4.84  ;;  %vm2282_vm15 = vcmp.le.f32.partialorder %v2154_v18, 4.84  ;;  %v5627_v4 = vsel %vm2280_vm1, 1.0, %v11767_v49 }
 0x3ce   : > { %vm2283_vm10 = vcmp.le.f32.partialorder %v2155_v53, 4.84  ;;  %v5628_v36 = vsel %vm2281_vm14, 1.0, %v11767_v49  ;;  %v5629_v58 = vsel %vm2282_vm15, 1.0, %v11767_v49  ;;  %v2873_v41 = vsel %vm2572_vm2, %v5627_v4, 0.0  ;;  %v12667_v53 = vld [vmem:[#allocation221_spill] sm:$0xff] }
 0x3cf   : > { %v10617_v27 = vadd.f32 %v4601_v42, %v4600_v26  ;;  %v10620_v19 = vsel %vm2283_vm10, 1.0, %v11767_v49  ;;  %v2874_v48 = vsel %vm2572_vm2, %v5628_v36, 0.0  ;;  %v3082_v17 = vmul.f32 %v5627_v4, %v12662_v6 }
 0x3d0   : > { %v10623_v29 = vadd.f32 %v2874_v48, %v2873_v41  ;;  %v3083_v31 = vmul.f32 %v5628_v36, %v12663_v62  ;;  %v3084_v13 = vmul.f32 %v5629_v58, %v12664_v43  ;;  %v10629_v51 = vsel %vm2572_vm2, %v5629_v58, 0.0 }
 0x3d1   : > { %v3626_v39 = vmul.f32 %v5627_v4, %v10330_v25  ;;  %v3627_v21 = vmul.f32 %v5628_v36, %v10334_v20  ;;  %v12666_v16 = vrot.slane %v12665_v7, 2  ;;  %v3417_v54 = vsel %vm2572_vm2, %v3082_v17, 0.0 }
 0x3d2   : > { %v3418_v18 = vsel %vm2572_vm2, %v3083_v31, 0.0  ;;  %v10640_v42 = vmul.f32 %v5629_v58, %v10342_v60  ;;  %v10644_v26 = vmul.f32 %v10620_v19, %v12667_v53  ;;  %v10649_v20 = vsel %vm2572_vm2, %v3084_v13, 0.0  ;;  %v12671_v31 = vld [vmem:[#allocation164_spill] sm:$0xff]  ;;  %v12673_v13 = vld [vmem:[#allocation143_spill] sm:$0xff] }
 0x3d3   : > { %v3232_v14 = vadd.f32 %v12666_v16, %v12665_v7  ;;  %v10646_v25 = vadd.f32 %v3418_v18, %v3417_v54  ;;  %12670 = vst [vmem:[#allocation199_spill] sm:$0xff] %v10649_v20  ;;  %v10653_v41 = vmul.f32 %v10620_v19, %v10345_v57  ;;  %v4170_v48 = vmul.f32 %v5627_v4, %v10543_v50  ;;  %v12672_v7 = vld [vmem:[#allocation65_spill] sm:$0xff]  ;;  %v12674_v53 = vld [vmem:[#allocation16_spill] sm:$0xff] }
 0x3d4   : > { %12668 = vst [vmem:[#allocation246_spill] sm:$0xff] %v10644_v26  ;;  %v4171_v6 = vmul.f32 %v5628_v36, %v10546_v44  ;;  %v4172_v60 = vmul.f32 %v5629_v58, %v10550_v1  ;;  %v4173_v17 = vmul.f32 %v10620_v19, %v10554_v23  ;;  %v3246_v43 = vrot.slane %v12671_v31, 1  ;;  %v12679_v20 = vld [vmem:[#allocation73_spill] sm:$0xff] }
 0x3d5   : > { %12669 = vst [vmem:[#allocation81_spill] sm:$0xff] %v10646_v25  ;;  %v3233_v62 = vrot.slane %v3232_v14, 1  ;;  %v3257_v16 = vrot.slane %v12672_v7, 2  ;;  %v3270_v54 = vrot.slane %v12673_v13, 2  ;;  %v4505_v18 = vsel %vm2572_vm2, %v4170_v48, 0.0  ;;  %v12677_v48 = vld [vmem:[#allocation167_spill] sm:$0xff] }
 0x3d6   : > { %v4506_v57 = vsel %vm2572_vm2, %v4171_v6, 0.0  ;;  %v4508_v50 = vsel %vm2572_vm2, %v4172_v60, 0.0  ;;  %v4510_v44 = vsel %vm2578_vm3, %v4173_v17, 0.0  ;;  %v3247_v36 = vadd.f32 %v3246_v43, %v12671_v31  ;;  %v12678_v6 = vld [vmem:[#allocation71_spill] sm:$0xff] }
 0x3d7   : > { %v4507_v4 = vadd.f32 %v4506_v57, %v4505_v18  ;;  %v3234_v1 = vadd.f32 %v3233_v62, %v3232_v14  ;;  %v3258_v23 = vadd.f32 %v3257_v16, %v12672_v7  ;;  %v3271_v58 = vadd.f32 %v3270_v54, %v12673_v13  ;;  %v12680_v18 = vld [vmem:[#allocation176_spill] sm:$0xff]  ;;  %v12681_v54 = vld [vmem:[#allocation162_spill] sm:$0xff] }
 0x3d8   : > { %v12675_v0 = vrot.slane %v12674_v53, 4  ;;  %v3306_v26 = vadd.f32 %v12677_v48, %v12676_v46  ;;  %v3317_v60 = vadd.f32 %v12679_v20, %v12678_v6  ;;  %v3318_v14 = vsel %vm2578_vm3, %v12680_v18, 0.0  ;;  %v12682_v46 = vld [vmem:[#allocation133_spill] sm:$0xff] }
 0x3d9   : > { %v4509_v25 = vadd.f32 %v4508_v50, %v4507_v4  ;;  %v3259_v17 = vrot.slane %v3258_v23, 1  ;;  %v4668_v62 = vsel %vm4654_vm0, %v3247_v36, %v3234_v1  ;;  %v3272_v31 = vrot.slane %v3271_v58, 1  ;;  %v10689_v36 = vpop.permute.xlu0 %4755 }
 0x3da   : > { %v3282_v40 = vadd.f32 %v12675_v0, %v12674_v53  ;;  %v3307_v7 = vrot.slane %v3306_v26, 4  ;;  %v3319_v16 = vadd.f32 %v3318_v14, %v3317_v60  ;;  %v3294_v57 = vrot.slane %v12681_v54, 4 }
 0x3db   : > { %v10680_v13 = vadd.f32 %v4510_v44, %v4509_v25  ;;  %v3260_v0 = vadd.f32 %v3259_v17, %v3258_v23  ;;  %v5753_v53 = vpack.c.bf16 %v10188_v37, %v12682_v46  ;;  %v3273_v20 = vadd.f32 %v3272_v31, %v3271_v58 }
 0x3dc   : > { %v3283_v43 = vrot.slane %v3282_v40, 2  ;;  %v3308_v4 = vadd.f32 %v3307_v7, %v3306_v26  ;;  %v3320_v48 = vrot.slane %v3319_v16, 4  ;;  %v10686_v6 = vsel %vm2572_vm2, %v3626_v39, 0.0 }
 0x3dd   : > { %v4669_v1 = vsel %vm4656_vm4, %v3260_v0, %v4668_v62  ;;  %v3295_v25 = vadd.f32 %v3294_v57, %v12681_v54  ;;  %v5941_v18 = vmov 0.0|0.0   ;;  %v10696_v37 = vsel %vm2572_vm2, %v3627_v21, 0.0  ;;  %v12689_v54 = vld [vmem:[#allocation78_spill] sm:$0xff] }
 0x3de   : > { %v3284_v50 = vadd.f32 %v3283_v43, %v3282_v40  ;;  %v3309_v23 = vrot.slane %v3308_v4, 2  ;;  %v3321_v60 = vadd.f32 %v3320_v48, %v3319_v16  ;;  %v4670_v17 = vsel %vm4658_vm5, %v3273_v20, %v4669_v1  ;;  %5755 = vmatprep.subr.bf16.mxu1 %v5941_v18  ;;  %5749 = vmatprep.subr.bf16.mxu0 %v5941_v18  ;;  %v12691_v48 = vld [vmem:[#allocation118_spill] sm:$0xff] }
 0x3df   : > { %v4512_v40 = vrot.slane %v10680_v13, 4  ;;  %v3296_v39 = vrot.slane %v3295_v25, 2  ;;  %v12683_v26 = vpack.c.bf16 %v12661_v3, %v12660_v45  ;;  %v5759_v58 = vpack.c.bf16 %v10201_v47, %v10193_v61  ;;  %v12685_v45 = vld [vmem:[#allocation251_spill] sm:$0xff]  ;;  %v12686_v61 = vld [vmem:[#allocation245_spill] sm:$0xff]  ;;  %v12687_v3 = vld [vmem:[#allocation68_spill] sm:$0xff] }
 0x3e0   : > { %v3285_v44 = vrot.slane %v3284_v50, 1  ;;  %v12684_v14 = vpack.c.bf16 %v10020_v32, %v10016_v12  ;;  %v3310_v31 = vadd.f32 %v3309_v23, %v3308_v4  ;;  %v3322_v43 = vrot.slane %v3321_v60, 2 }
 0x3e1   : > { %5757 = vmatpush3.bf16.msra.mxu1 %v12683_v26  ;;  %vm4913_vm11 = vcmask 130048   ;;  %v3297_v21 = vadd.f32 %v3296_v39, %v3295_v25  ;;  %vm4918_vm12 = vcmask 195584   ;;  %vm5942_vm13 = vmmov 0   ;;  %v12692_v25 = vld [vmem:[#allocation87_spill] sm:$0xff] }
 0x3e2   : > { %5751 = vmatpush3.bf16.msra.mxu0 %v12684_v14  ;;  %v3286_v62 = vadd.f32 %v3285_v44, %v3284_v50  ;;  %5758 = vmatprep.subr.bf16.mxu1 %v5941_v18  ;;  %v3661_v47 = vmul.f32 %v12686_v61, %v12685_v45  ;;  %v12688_v12 = vrot.slane %v12687_v3, 2  ;;  %v3311_v7 = vrot.slane %v3310_v31, 1  ;;  %v4828_v50 = vpop.permute.xlu0 %4827 }
 0x3e3   : > { %5752 = vmatprep.subr.bf16.mxu0 %v5941_v18  ;;  %5724 = vmatprep.mubr.msk.f32.mxu1 %vm5942_vm13, %v11767_v49  ;;  %v3323_v16 = vadd.f32 %v3322_v43, %v3321_v60  ;;  %vm5127_vm1 = vcmask 261120   ;;  %v12690_v57 = vrot.slane %v12689_v54, 2  ;;  %v3298_v20 = vrot.slane %v3297_v21, 1 }
 0x3e4   : > { %v3984_v32 = vadd.f32 %v12688_v12, %v12687_v3  ;;  %5713 = vmatprep.mubr.msk.f32.mxu0 %vm5942_vm13, %v11767_v49  ;;  %v4671_v0 = vsel %vm4660_vm6, %v3286_v62, %v4670_v17  ;;  %v4009_v1 = vrot.slane %v12691_v48, 2  ;;  %v12693_v44 = vrot.slane %v12692_v25, 4  ;;  %v12694_v17 = vld [vmem:[#allocation25_spill] sm:$0xff] }
 0x3e5   : > { %v3997_v46 = vadd.f32 %v12690_v57, %v12689_v54  ;;  %5760 = vmatpush3.bf16.msra.mxu1 %v5759_v58  ;;  %v3312_v39 = vadd.f32 %v3311_v7, %v3310_v31  ;;  %v3324_v60 = vrot.slane %v3323_v16, 1  ;;  %v4033_v14 = vrot.slane %v12694_v17, 4 }
 0x3e6   : > { %v3985_v4 = vrot.slane %v3984_v32, 1  ;;  %v4021_v23 = vadd.f32 %v12693_v44, %v12692_v25  ;;  %5754 = vmatpush3.bf16.msra.mxu0 %v5753_v53  ;;  %5767 = vmatprep.subr.bf16.mxu1 %v5941_v18  ;;  %v3299_v62 = vadd.f32 %v3298_v20, %v3297_v21  ;;  %v4010_v58 = vadd.f32 %v4009_v1, %v12691_v48 }
 0x3e7   : > { %v3998_v26 = vrot.slane %v3997_v46, 1  ;;  %5761 = vmatprep.subr.bf16.mxu0 %v5941_v18  ;;  %v3325_v3 = vadd.f32 %v3324_v60, %v3323_v16  ;;  %v4034_v54 = vadd.f32 %v4033_v14, %v12694_v17  ;;  %v4045_v53 = vadd.f32 %v10528_v15, %v10515_v24 }
 0x3e8   : > { %v3986_v43 = vadd.f32 %v3985_v4, %v3984_v32  ;;  %v4022_v45 = vrot.slane %v4021_v23, 2  ;;  %v4672_v31 = vsel %vm4662_vm7, %v3299_v62, %v4671_v0  ;;  %v4011_v7 = vrot.slane %v4010_v58, 1  ;;  %v4900_v4 = vpop.permute.xlu0 %4899 }
 0x3e9   : > { %v3999_v12 = vadd.f32 %v3998_v26, %v3997_v46  ;;  %v4056_v25 = vadd.f32 %v10615_v5, %v10588_v22  ;;  %v4673_v21 = vsel %vm4664_vm8, %v3312_v39, %v4672_v31  ;;  %v4035_v32 = vrot.slane %v4034_v54, 2  ;;  %v12696_v26 = vld [vmem:[#allocation192_spill] sm:$0xff] }
 0x3ea   : > { %v4023_v57 = vadd.f32 %v4022_v45, %v4021_v23  ;;  %v4046_v20 = vrot.slane %v4045_v53, 4  ;;  %v4057_v16 = vsel %vm2578_vm3, %v10583_v10, 0.0  ;;  %v4674_v46 = vsel %vm4666_vm9, %v3325_v3, %v4673_v21  ;;  %v12695_v23 = vld [vmem:[#allocation86_spill] sm:$0xff]  ;;  %v12697_v45 = vld [vmem:[#allocation12_spill] sm:$0xff] }
 0x3eb   : > { %v4012_v48 = vadd.f32 %v4011_v7, %v4010_v58  ;;  %v4058_v24 = vadd.f32 %v4057_v16, %v4056_v25  ;;  %v4910_v15 = vsel %vm2572_vm2, %v4674_v46, %v10689_v36  ;;  %v4036_v0 = vadd.f32 %v4035_v32, %v4034_v54  ;;  %v12698_v32 = vld [vmem:[#allocation100_spill] sm:$0xff] }
 0x3ec   : > { %v4024_v1 = vrot.slane %v4023_v57, 1  ;;  %v4047_v44 = vadd.f32 %v4046_v20, %v4045_v53  ;;  %v4065_v22 = vsel %vm2572_vm2, %v12695_v23, 0.0  ;;  %v4915_v5 = vsel %vm4913_vm11, %v4910_v15, %v4828_v50  ;;  %v12699_v16 = vld [vmem:[#allocation128_spill] sm:$0xff] }
 0x3ed   : > { %v4059_v60 = vrot.slane %v4058_v24, 4  ;;  %v4066_v10 = vsel %vm2572_vm2, %v12696_v26, 0.0  ;;  %v4920_v17 = vsel %vm4918_vm12, %v4915_v5, %v4900_v4  ;;  %v4037_v14 = vrot.slane %v4036_v0, 1 }
 0x3ee   : > { %v4025_v39 = vadd.f32 %v4024_v1, %v4023_v57  ;;  %v4048_v62 = vrot.slane %v4047_v44, 2  ;;  %v4067_v58 = vadd.f32 %v4066_v10, %v4065_v22  ;;  %5725 = vmatmul.mubr.msk.f32.vlgmr.msra.gmra.mrb[8].mxu1 %vm5127_vm1, %v4920_v17  ;;  %v4068_v3 = vsel %vm2572_vm2, %v12697_v45, 0.0  ;;  %v10769_v10 = vpop.f32.mrb[4].mxu1 }
 0x3ef   : > { %v4060_v36 = vadd.f32 %v4059_v60, %v4058_v24  ;;  %v4070_v54 = vsel %vm2578_vm3, %v3661_v47, 0.0  ;;  %v4746_v50 = vsel %vm4654_vm0, %v3999_v12, %v3986_v43  ;;  %v4038_v53 = vadd.f32 %v4037_v14, %v4036_v0  ;;  %5746 = vmatprep.mubr.msk.f32.mxu1 %vm5942_vm13, %v11767_v49  ;;  %v12701_v12 = vld [vmem:[#allocation58_spill] sm:$0xff]  ;;  %v10772_v45 = vpop.f32.mrb[5].mxu1 }
 0x3f0   : > { %v4049_v31 = vadd.f32 %v4048_v62, %v4047_v44  ;;  %v4069_v7 = vadd.f32 %v4068_v3, %v4067_v58  ;;  %v4747_v57 = vsel %vm4656_vm4, %v4012_v48, %v4746_v50  ;;  %v3881_v20 = vrot.slane %v12698_v32, 1  ;;  %v12702_v44 = vld [vmem:[#allocation44_spill] sm:$0xff]  ;;  %v12704_v58 = vld [vmem:[#allocation141_spill] sm:$0xff] }
 0x3f1   : > { %v4061_v25 = vrot.slane %v4060_v36, 2  ;;  %v4748_v21 = vsel %vm4658_vm5, %v4025_v39, %v4747_v57  ;;  %v12700_v46 = vrot.slane %v12699_v16, 2  ;;  %v3918_v24 = vrot.slane %v12701_v12, 2 }
 0x3f2   : > { %v4050_v47 = vrot.slane %v4049_v31, 1  ;;  %v4071_v1 = vadd.f32 %v4070_v54, %v4069_v7  ;;  %v4749_v43 = vsel %vm4660_vm6, %v4038_v53, %v4748_v21  ;;  %v3882_v48 = vadd.f32 %v3881_v20, %v12698_v32 }
 0x3f3   : > { %v3906_v4 = vadd.f32 %v12700_v46, %v12699_v16  ;;  %v4062_v15 = vadd.f32 %v4061_v25, %v4060_v36  ;;  %v12703_v23 = vrot.slane %v12702_v44, 4  ;;  %v3919_v60 = vadd.f32 %v3918_v24, %v12701_v12 }
 0x3f4   : > { %v4051_v5 = vadd.f32 %v4050_v47, %v4049_v31  ;;  %v4072_v39 = vrot.slane %v4071_v1, 4  ;;  %v3942_v26 = vrot.slane %v10471_v38, 4  ;;  %v3957_v36 = vrot.slane %v12704_v58, 2  ;;  %v10776_v31 = vpop.f32.mrb[6].mxu1 }
 0x3f5   : > { %v3907_v0 = vrot.slane %v3906_v4, 1  ;;  %v3930_v22 = vadd.f32 %v12703_v23, %v12702_v44  ;;  %v4063_v17 = vrot.slane %v4062_v15, 1  ;;  %v3920_v50 = vrot.slane %v3919_v60, 1 }
 0x3f6   : > { %v4073_v3 = vadd.f32 %v4072_v39, %v4071_v1  ;;  %v4750_v54 = vsel %vm4662_vm7, %v4051_v5, %v4749_v43  ;;  %v3943_v53 = vadd.f32 %v3942_v26, %v10471_v38  ;;  %v3958_v25 = vadd.f32 %v3957_v36, %v12704_v58  ;;  %v12706_v39 = vld [vmem:[#allocation50_spill] sm:$0xff] }
 0x3f7   : > { %v3908_v14 = vadd.f32 %v3907_v0, %v3906_v4  ;;  %v3931_v62 = vrot.slane %v3930_v22, 2  ;;  %v4064_v7 = vadd.f32 %v4063_v17, %v4062_v15  ;;  %v3963_v21 = vadd.f32 %v10696_v37, %v10686_v6  ;;  %v12705_v15 = vld [vmem:[#allocation158_spill] sm:$0xff] }
 0x3f8   : > { %v4074_v32 = vrot.slane %v4073_v3, 2  ;;  %v3921_v20 = vadd.f32 %v3920_v50, %v3919_v60  ;;  %v3944_v16 = vrot.slane %v3943_v53, 2  ;;  %v3964_v46 = vsel %vm2572_vm2, %v10640_v42, 0.0 }
 0x3f9   : > { %v3932_v57 = vadd.f32 %v3931_v62, %v3930_v22  ;;  %v4751_v4 = vsel %vm4664_vm8, %v4064_v7, %v4750_v54  ;;  %v3959_v1 = vrot.slane %v3958_v25, 1  ;;  %v3965_v38 = vadd.f32 %v3964_v46, %v3963_v21  ;;  %v12707_v62 = vld [vmem:[#allocation155_spill] sm:$0xff] }
 0x3fa   : > { %v4075_v43 = vadd.f32 %v4074_v32, %v4073_v3  ;;  %v3945_v12 = vadd.f32 %v3944_v16, %v3943_v53  ;;  %v3966_v24 = vsel %vm2578_vm3, %v10653_v41, 0.0  ;;  %v4739_v0 = vsel %vm4654_vm0, %v12705_v15, %v3882_v48  ;;  %v12709_v48 = vld [vmem:[#allocation110_spill] sm:$0xff]  ;;  %v10797_v3 = vpop.f32.mrb[7].mxu1  ;;  %v12711_v21 = vld [vmem:[#allocation91_spill] sm:$0xff] }
 0x3fb   : > { %v3933_v47 = vrot.slane %v3932_v57, 1  ;;  %v3960_v37 = vadd.f32 %v3959_v1, %v3958_v25  ;;  %v3967_v44 = vadd.f32 %v3966_v24, %v3965_v38  ;;  %v4740_v23 = vsel %vm4656_vm4, %v3908_v14, %v4739_v0  ;;  %v12713_v24 = vld [vmem:[#allocation106_spill] sm:$0xff] }
 0x3fc   : > { %v4076_v22 = vrot.slane %v4075_v43, 1  ;;  %v3946_v42 = vrot.slane %v3945_v12, 1  ;;  %v4741_v5 = vsel %vm4658_vm5, %v3921_v20, %v4740_v23  ;;  %v4205_v60 = vmul.f32 %v12686_v61, %v12706_v39  ;;  %v12712_v20 = vld [vmem:[#allocation154_spill] sm:$0xff]  ;;  %v12714_v23 = vld [vmem:[#allocation84_spill] sm:$0xff] }
 0x3fd   : > { %v3934_v6 = vadd.f32 %v3933_v47, %v3932_v57  ;;  %v3968_v26 = vrot.slane %v3967_v44, 4  ;;  %v12708_v41 = vrot.slane %v12707_v62, 1  ;;  %v4581_v36 = vrot.slane %v12709_v48, 1 }
 0x3fe   : > { %v4077_v54 = vadd.f32 %v4076_v22, %v4075_v43  ;;  %v3947_v14 = vadd.f32 %v3946_v42, %v3945_v12  ;;  %v4592_v50 = vrot.slane %v10567_v2, 2  ;;  %v12710_v53 = vrot.slane %v10617_v27, 4 }
 0x3ff   : > { %v4742_v17 = vsel %vm4660_vm6, %v3934_v6, %v4741_v5  ;;  %v4569_v58 = vadd.f32 %v12708_v41, %v12707_v62  ;;  %v3969_v57 = vadd.f32 %v3968_v26, %v3967_v44  ;;  %v4582_v25 = vadd.f32 %v4581_v36, %v12709_v48  ;;  %v12716_v5 = vld [vmem:[#allocation61_spill] sm:$0xff]  ;;  %v12718_v48 = vld [vmem:[#allocation42_spill] sm:$0xff] }
 0x400   : > { %v4604_v7 = vadd.f32 %v12710_v53, %v10617_v27  ;;  %v4609_v32 = vsel %vm2572_vm2, %v12711_v21, 0.0  ;;  %v4610_v16 = vsel %vm2572_vm2, %v12712_v20, 0.0  ;;  %v4752_v46 = vsel %vm4666_vm9, %v4077_v54, %v4751_v4  ;;  %v12715_v4 = vld [vmem:[#allocation163_spill] sm:$0xff]  ;;  %v12717_v26 = vld [vmem:[#allocation185_spill] sm:$0xff] }
 0x401   : > { %v4743_v47 = vsel %vm4662_vm7, %v3947_v14, %v4742_v17  ;;  %v4593_v1 = vadd.f32 %v4592_v50, %v10567_v2  ;;  %4759 = vrot.lane.b32.xlu0 %v4752_v46, %s5938_s9  ;;  %v3970_v43 = vrot.slane %v3969_v57, 2  ;;  %v4611_v12 = vadd.f32 %v4610_v16, %v4609_v32  ;;  %v12720_v32 = vld [vmem:[#allocation30_spill] sm:$0xff] }
 0x402   : > { %v4605_v38 = vrot.slane %v4604_v7, 2  ;;  %v4744_v27 = vsel %vm4664_vm8, %v3960_v37, %v4743_v47  ;;  %v4612_v15 = vsel %vm2572_vm2, %v12713_v24, 0.0  ;;  %v4614_v44 = vsel %vm2578_vm3, %v4205_v60, 0.0  ;;  %v12721_v47 = vld [vmem:[#allocation66_spill] sm:$0xff] }
 0x403   : > { %v4594_v0 = vrot.slane %v4593_v1, 1  ;;  %v4818_v22 = vsel %vm4654_vm0, %v12715_v4, %v12714_v23  ;;  %v3971_v42 = vadd.f32 %v3970_v43, %v3969_v57  ;;  %v4613_v2 = vadd.f32 %v4612_v15, %v4611_v12  ;;  %v12724_v15 = vld [vmem:[#allocation23_spill] sm:$0xff] }
 0x404   : > { %v4606_v6 = vadd.f32 %v4605_v38, %v4604_v7  ;;  %v4819_v39 = vsel %vm4656_vm4, %v12716_v5, %v4818_v22  ;;  %v3129_v17 = vrot.slane %v12717_v26, 1  ;;  %v12719_v36 = vrot.slane %v12718_v48, 2  ;;  %v12726_v5 = vld [vmem:[#allocation234_spill] sm:$0xff] }
 0x405   : > { %v4595_v37 = vadd.f32 %v4594_v0, %v4593_v1  ;;  %v4820_v41 = vsel %vm4658_vm5, %v4569_v58, %v4819_v39  ;;  %v3972_v60 = vrot.slane %v3971_v42, 1  ;;  %v4615_v14 = vadd.f32 %v4614_v44, %v4613_v2  ;;  %v12722_v1 = vld [vmem:[#allocation31_spill] sm:$0xff]  ;;  %v12725_v2 = vld [vmem:[#allocation233_spill] sm:$0xff] }
 0x406   : > { %v4607_v62 = vrot.slane %v4606_v6, 1  ;;  %v3141_v54 = vadd.f32 %v12719_v36, %v12718_v48  ;;  %v4821_v50 = vsel %vm4660_vm6, %v4582_v25, %v4820_v41  ;;  %v3130_v53 = vadd.f32 %v3129_v17, %v12717_v26  ;;  %v12727_v26 = vld [vmem:[#allocation36_spill] sm:$0xff]  ;;  %v12728_v17 = vld [vmem:[#allocation37_spill] sm:$0xff]  ;;  %v12729_v36 = vld [vmem:[#allocation35_spill] sm:$0xff] }
 0x407   : > { %v4822_v57 = vsel %vm4662_vm7, %v4595_v37, %v4821_v50  ;;  %v3153_v20 = vrot.slane %v12720_v32, 2  ;;  %v3973_v16 = vadd.f32 %v3972_v60, %v3971_v42  ;;  %v4616_v46 = vrot.slane %v4615_v14, 4 }
 0x408   : > { %v4608_v7 = vadd.f32 %v4607_v62, %v4606_v6  ;;  %v3142_v21 = vrot.slane %v3141_v54, 1  ;;  %v3166_v58 = vrot.slane %v12721_v47, 2  ;;  %v12723_v38 = vrot.slane %v12722_v1, 4 }
 0x409   : > { %v3154_v25 = vadd.f32 %v3153_v20, %v12720_v32  ;;  %v3190_v0 = vrot.slane %v12724_v15, 4  ;;  %v4745_v6 = vsel %vm4666_vm9, %v3973_v16, %v4744_v27  ;;  %v4617_v44 = vadd.f32 %v4616_v46, %v4615_v14 }
 0x40a   : > { %v3178_v43 = vadd.f32 %v12723_v38, %v12722_v1  ;;  %v4823_v12 = vsel %vm4664_vm8, %v4608_v7, %v4822_v57  ;;  %v3143_v24 = vadd.f32 %v3142_v21, %v3141_v54  ;;  %v3167_v23 = vadd.f32 %v3166_v58, %v12721_v47  ;;  %4757 = vrot.lane.b32.xlu1 %v4745_v6, %s5938_s9 }
 0x40b   : > { %v3155_v22 = vrot.slane %v3154_v25, 1  ;;  %v3191_v42 = vadd.f32 %v3190_v0, %v12724_v15  ;;  %v3202_v39 = vadd.f32 %v12726_v5, %v12725_v2  ;;  %v3213_v37 = vadd.f32 %v12728_v17, %v12727_v26 }
 0x40c   : > { %v3179_v4 = vrot.slane %v3178_v43, 2  ;;  %v4618_v62 = vrot.slane %v4617_v44, 2  ;;  %v3168_v41 = vrot.slane %v3167_v23, 1  ;;  %v3214_v27 = vsel %vm2578_vm3, %v12729_v36, 0.0  ;;  %v12735_v36 = vld [vmem:[#allocation101_spill] sm:$0xff] }
 0x40d   : > { %v3156_v54 = vadd.f32 %v3155_v22, %v3154_v25  ;;  %v3192_v60 = vrot.slane %v3191_v42, 2  ;;  %v3203_v14 = vrot.slane %v3202_v39, 4  ;;  %v3215_v50 = vadd.f32 %v3214_v27, %v3213_v37 }
 0x40e   : > { %v3180_v48 = vadd.f32 %v3179_v4, %v3178_v43  ;;  %v4619_v7 = vadd.f32 %v4618_v62, %v4617_v44  ;;  %v3169_v57 = vadd.f32 %v3168_v41, %v3167_v23  ;;  %v4655_v32 = vsel %vm4654_vm0, %v3143_v24, %v3130_v53  ;;  %v12730_v43 = vld [vmem:[#allocation157_spill] sm:$0xff]  ;;  %v12731_v4 = vld [vmem:[#allocation11_spill] sm:$0xff]  ;;  %v12733_v62 = vld [vmem:[#allocation102_spill] sm:$0xff] }
 0x40f   : > { %v3193_v20 = vadd.f32 %v3192_v60, %v3191_v42  ;;  %v3204_v16 = vadd.f32 %v3203_v14, %v3202_v39  ;;  %v3216_v46 = vrot.slane %v3215_v50, 4  ;;  %v4657_v47 = vsel %vm4656_vm4, %v3156_v54, %v4655_v32  ;;  %v12734_v41 = vld [vmem:[#allocation177_spill] sm:$0xff] }
 0x410   : > { %v3181_v21 = vrot.slane %v3180_v48, 1  ;;  %v4620_v58 = vrot.slane %v4619_v7, 1  ;;  %v4659_v38 = vsel %vm4658_vm5, %v3169_v57, %v4657_v47  ;;  %v4438_v15 = vrot.slane %v12730_v43, 1  ;;  %v12738_v47 = vld [vmem:[#allocation127_spill] sm:$0xff] }
 0x411   : > { %v3194_v25 = vrot.slane %v3193_v20, 1  ;;  %v3205_v0 = vrot.slane %v3204_v16, 2  ;;  %v3217_v6 = vadd.f32 %v3216_v46, %v3215_v50  ;;  %v4477_v44 = vrot.slane %v12731_v4, 1 }
 0x412   : > { %v3182_v1 = vadd.f32 %v3181_v21, %v3180_v48  ;;  %v4621_v23 = vadd.f32 %v4620_v58, %v4619_v7  ;;  %v4439_v53 = vadd.f32 %v4438_v15, %v12730_v43  ;;  %v12732_v24 = vrot.slane %v10494_v33, 2  ;;  %v12737_v21 = vld [vmem:[#allocation121_spill] sm:$0xff] }
 0x413   : > { %v3195_v2 = vadd.f32 %v3194_v25, %v3193_v20  ;;  %v3206_v5 = vadd.f32 %v3205_v0, %v3204_v16  ;;  %v3218_v39 = vrot.slane %v3217_v6, 2  ;;  %v4478_v26 = vadd.f32 %v4477_v44, %v12731_v4 }
 0x414   : > { %v4661_v22 = vsel %vm4660_vm6, %v3182_v1, %v4659_v38  ;;  %v4489_v42 = vadd.f32 %v12732_v24, %v10494_v33  ;;  %v4824_v17 = vsel %vm4666_vm9, %v4621_v23, %v4823_v12  ;;  %v4496_v48 = vadd.f32 %v12734_v41, %v12733_v62  ;;  %v12736_v12 = vld [vmem:[#allocation108_spill] sm:$0xff]  ;;  %v12739_v38 = vld [vmem:[#allocation153_spill] sm:$0xff] }
 0x415   : > { %v4497_v27 = vsel %vm2578_vm3, %v12735_v36, 0.0  ;;  %4831 = vrot.lane.b32.xlu0 %v4824_v17, %s5939_s14  ;;  %v3207_v54 = vrot.slane %v3206_v5, 1  ;;  %v3219_v60 = vadd.f32 %v3218_v39, %v3217_v6  ;;  %v4663_v33 = vsel %vm4662_vm7, %v3195_v2, %v4661_v22  ;;  %v4754_v6 = vpop.permute.xlu1 %4753  ;;  %v12741_v24 = vld [vmem:[#allocation88_spill] sm:$0xff]  ;;  %v12743_v17 = vld [vmem:[#allocation139_spill] sm:$0xff] }
 0x416   : > { %v4490_v37 = vrot.slane %v4489_v42, 1  ;;  %v4513_v14 = vadd.f32 %v4512_v40, %v10680_v13  ;;  %v4498_v7 = vadd.f32 %v4497_v27, %v4496_v48  ;;  %v4811_v57 = vsel %vm4654_vm0, %v4439_v53, %v12736_v12  ;;  %v12740_v13 = vld [vmem:[#allocation85_spill] sm:$0xff]  ;;  %v12744_v62 = vld [vmem:[#allocation204_spill] sm:$0xff] }
 0x417   : > { %v2897_v32 = vrot.slane %v12737_v21, 1  ;;  %v3208_v20 = vadd.f32 %v3207_v54, %v3206_v5  ;;  %v3220_v16 = vrot.slane %v3219_v60, 1  ;;  %v4812_v58 = vsel %vm4656_vm4, %v12738_v47, %v4811_v57 }
 0x418   : > { %v4491_v50 = vadd.f32 %v4490_v37, %v4489_v42  ;;  %v4514_v46 = vrot.slane %v4513_v14, 2  ;;  %v4499_v1 = vrot.slane %v4498_v7, 4  ;;  %v4813_v43 = vsel %vm4658_vm5, %v12739_v38, %v4812_v58  ;;  %v12748_v58 = vld [vmem:[#allocation244_spill] sm:$0xff] }
 0x419   : > { %v2898_v15 = vadd.f32 %v2897_v32, %v12737_v21  ;;  %v2910_v40 = vrot.slane %v12740_v13, 1  ;;  %v3221_v25 = vadd.f32 %v3220_v16, %v3219_v60  ;;  %v4665_v0 = vsel %vm4664_vm8, %v3208_v20, %v4663_v33  ;;  %v12746_v21 = vld [vmem:[#allocation63_spill] sm:$0xff]  ;;  %v12747_v32 = vld [vmem:[#allocation52_spill] sm:$0xff] }
 0x41a   : > { %v4515_v4 = vadd.f32 %v4514_v46, %v4513_v14  ;;  %v4814_v44 = vsel %vm4660_vm6, %v4478_v26, %v4813_v43  ;;  %v4500_v23 = vadd.f32 %v4499_v1, %v4498_v7  ;;  %v12742_v42 = vrot.slane %v12741_v24, 2 }
 0x41b   : > { %v4815_v22 = vsel %vm4662_vm7, %v4491_v50, %v4814_v44  ;;  %v2911_v53 = vadd.f32 %v2910_v40, %v12740_v13  ;;  %v4667_v5 = vsel %vm4666_vm9, %v3221_v25, %v4665_v0  ;;  %v2934_v37 = vrot.slane %v12743_v17, 2 }
 0x41c   : > { %v2922_v2 = vadd.f32 %v12742_v42, %v12741_v24  ;;  %v4516_v39 = vrot.slane %v4515_v4, 1  ;;  %v12745_v41 = vrot.slane %v12744_v62, 4  ;;  %v4909_v26 = vsel %vm2572_vm2, %v4667_v5, %v4754_v6 }
 0x41d   : > { %v4501_v36 = vrot.slane %v4500_v23, 2  ;;  %v2958_v54 = vrot.slane %v10496_v9, 4  ;;  %v2935_v33 = vadd.f32 %v2934_v37, %v12743_v17  ;;  %v2970_v50 = vadd.f32 %v10578_v55, %v10572_v11  ;;  %v4826_v11 = vpop.permute.xlu1 %4825  ;;  %v12749_v37 = vld [vmem:[#allocation98_spill] sm:$0xff] }
 0x41e   : > { %v2946_v48 = vadd.f32 %v12745_v41, %v12744_v62  ;;  %v2923_v27 = vrot.slane %v2922_v2, 1  ;;  %v4517_v60 = vadd.f32 %v4516_v39, %v4515_v4  ;;  %v2979_v20 = vadd.f32 %v12747_v32, %v12746_v21  ;;  %v12756_v21 = vld [vmem:[#allocation144_spill] sm:$0xff] }
 0x41f   : > { %v4502_v7 = vadd.f32 %v4501_v36, %v4500_v23  ;;  %v2959_v57 = vadd.f32 %v2958_v54, %v10496_v9  ;;  %v2936_v16 = vrot.slane %v2935_v33, 1  ;;  %v2971_v47 = vrot.slane %v2970_v50, 4  ;;  %v12751_v36 = vld [vmem:[#allocation20_spill] sm:$0xff] }
 0x420   : > { %v2947_v14 = vrot.slane %v2946_v48, 2  ;;  %v2924_v12 = vadd.f32 %v2923_v27, %v2922_v2  ;;  %v2980_v1 = vsel %vm2572_vm2, %v12748_v58, 0.0  ;;  %v2982_v40 = vsel %vm2578_vm3, %v12686_v61, 0.0 }
 0x421   : > { %v4503_v38 = vrot.slane %v4502_v7, 1  ;;  %v2960_v43 = vrot.slane %v2959_v57, 2  ;;  %v2981_v13 = vadd.f32 %v2980_v1, %v2979_v20  ;;  %v2937_v55 = vadd.f32 %v2936_v16, %v2935_v33  ;;  %v12758_v16 = vld [vmem:[#allocation51_spill] sm:$0xff] }
 0x422   : > { %v2948_v46 = vadd.f32 %v2947_v14, %v2946_v48  ;;  %v2972_v0 = vadd.f32 %v2971_v47, %v2970_v50  ;;  %v4890_v9 = vsel %vm4654_vm0, %v2911_v53, %v2898_v15  ;;  %v4914_v5 = vsel %vm4913_vm11, %v4909_v26, %v4826_v11  ;;  %v12754_v50 = vld [vmem:[#allocation60_spill] sm:$0xff] }
 0x423   : > { %v4504_v6 = vadd.f32 %v4503_v38, %v4502_v7  ;;  %v2961_v4 = vadd.f32 %v2960_v43, %v2959_v57  ;;  %v2983_v44 = vadd.f32 %v2982_v40, %v2981_v13  ;;  %v4891_v23 = vsel %vm4656_vm4, %v2924_v12, %v4890_v9 }
 0x424   : > { %v2949_v25 = vrot.slane %v2948_v46, 1  ;;  %v2973_v42 = vrot.slane %v2972_v0, 2  ;;  %v4892_v2 = vsel %vm4658_vm5, %v2937_v55, %v4891_v23  ;;  %v12750_v62 = vrot.slane %v12749_v37, 1 }
 0x425   : > { %v4816_v39 = vsel %vm4664_vm8, %v4504_v6, %v4815_v22  ;;  %v2962_v61 = vrot.slane %v2961_v4, 1  ;;  %v2984_v17 = vrot.slane %v2983_v44, 4  ;;  %v12752_v27 = vrot.slane %v12751_v36, 1  ;;  %v12753_v22 = vld [vmem:[#allocation13_spill] sm:$0xff] }
 0x426   : > { %v2950_v24 = vadd.f32 %v2949_v25, %v2948_v46  ;;  %v2794_v41 = vadd.f32 %v12750_v62, %v12749_v37  ;;  %v4817_v15 = vsel %vm4666_vm9, %v4517_v60, %v4816_v39  ;;  %v2974_v53 = vadd.f32 %v2973_v42, %v2972_v0  ;;  %v12759_v46 = vld [vmem:[#allocation74_spill] sm:$0xff]  ;;  %v4898_v25 = vpop.permute.xlu1 %4897 }
 0x427   : > { %v2807_v54 = vadd.f32 %v12752_v27, %v12751_v36  ;;  %4829 = vrot.lane.b32.xlu1 %v4817_v15, %s5939_s14  ;;  %v2963_v26 = vadd.f32 %v2962_v61, %v2961_v4  ;;  %v2985_v33 = vadd.f32 %v2984_v17, %v2983_v44  ;;  %v2819_v14 = vrot.slane %v12753_v22, 1 }
 0x428   : > { %v4893_v48 = vsel %vm4660_vm6, %v2950_v24, %v4892_v2  ;;  %v12755_v7 = vrot.slane %v12754_v50, 2  ;;  %v2975_v57 = vrot.slane %v2974_v53, 1  ;;  %v2843_v60 = vrot.slane %v12756_v21, 2 }
 0x429   : > { %v12757_v32 = vrot.slane %v10455_v35, 4  ;;  %v2866_v47 = vadd.f32 %v12759_v46, %v12758_v16  ;;  %v2986_v58 = vrot.slane %v2985_v33, 2  ;;  %v4894_v1 = vsel %vm4662_vm7, %v2963_v26, %v4893_v48  ;;  %v12760_v26 = vld [vmem:[#allocation83_spill] sm:$0xff] }
 0x42a   : > { %v2831_v12 = vadd.f32 %v12755_v7, %v12754_v50  ;;  %v2820_v38 = vadd.f32 %v2819_v14, %v12753_v22  ;;  %v2976_v13 = vadd.f32 %v2975_v57, %v2974_v53  ;;  %v2844_v40 = vadd.f32 %v2843_v60, %v12756_v21  ;;  %v12761_v22 = vld [vmem:[#allocation179_spill] sm:$0xff]  ;;  %v12765_v60 = vld [vmem:[#allocation34_spill] sm:$0xff] }
 0x42b   : > { %v2855_v20 = vadd.f32 %v12757_v32, %v10455_v35  ;;  %v2867_v55 = vrot.slane %v2866_v47, 4  ;;  %v2987_v0 = vadd.f32 %v2986_v58, %v2985_v33  ;;  %v2877_v35 = vadd.f32 %v10629_v51, %v10623_v29 }
 0x42c   : > { %v2832_v43 = vrot.slane %v2831_v12, 1  ;;  %v2878_v6 = vsel %vm2578_vm3, %v10620_v19, 0.0  ;;  %v4895_v4 = vsel %vm4664_vm8, %v2976_v13, %v4894_v1  ;;  %v2845_v44 = vrot.slane %v2844_v40, 1 }
 0x42d   : > { %v2856_v11 = vrot.slane %v2855_v20, 2  ;;  %v2868_v24 = vadd.f32 %v2867_v55, %v2866_v47  ;;  %v2988_v42 = vrot.slane %v2987_v0, 1  ;;  %v2879_v2 = vadd.f32 %v2878_v6, %v2877_v35 }
 0x42e   : > { %v2833_v9 = vadd.f32 %v2832_v43, %v2831_v12  ;;  %v4883_v39 = vsel %vm4654_vm0, %v2807_v54, %v2794_v41  ;;  %v4919_v61 = vsel %vm4918_vm12, %v4914_v5, %v4898_v25  ;;  %v2846_v17 = vadd.f32 %v2845_v44, %v2844_v40  ;;  %v12764_v12 = vld [vmem:[#allocation231_spill] sm:$0xff]  ;;  %v12767_v43 = vld [vmem:[#allocation202_spill] sm:$0xff] }
 0x42f   : > { %v2857_v23 = vadd.f32 %v2856_v11, %v2855_v20  ;;  %v2869_v62 = vrot.slane %v2868_v24, 2  ;;  %v4884_v15 = vsel %vm4656_vm4, %v2820_v38, %v4883_v39  ;;  %5714 = vmatmul.mubr.msk.f32.vlgmr.msra.gmra.mrb[8].mxu0 %vm5127_vm1, %v4919_v61  ;;  %v2989_v29 = vadd.f32 %v2988_v42, %v2987_v0 }
 0x430   : > { %v2880_v19 = vrot.slane %v2879_v2, 4  ;;  %v4885_v51 = vsel %vm4658_vm5, %v2833_v9, %v4884_v15  ;;  %v5762_v53 = vpack.c.bf16 %v10519_v28, %v10511_v63  ;;  %5735 = vmatprep.mubr.msk.f32.mxu0 %vm5942_vm13, %v11767_v49  ;;  %v5768_v36 = vpack.c.bf16 %v10533_v59, %v10525_v34  ;;  %v12762_v28 = vld [vmem:[#allocation186_spill] sm:$0xff] }
 0x431   : > { %v2858_v37 = vrot.slane %v2857_v23, 1  ;;  %v2870_v48 = vadd.f32 %v2869_v62, %v2868_v24  ;;  %v4886_v5 = vsel %vm4660_vm6, %v2846_v17, %v4885_v51  ;;  %v4896_v27 = vsel %vm4666_vm9, %v2989_v29, %v4895_v4  ;;  %v12769_v62 = vld [vmem:[#allocation99_spill] sm:$0xff]  ;;  %v12770_v29 = vld [vmem:[#allocation146_spill] sm:$0xff] }
 0x432   : > { %v2881_v54 = vadd.f32 %v2880_v19, %v2879_v2  ;;  %v3441_v33 = vrot.slane %v12760_v26, 1  ;;  %v3454_v14 = vrot.slane %v12761_v22, 1  ;;  %5763 = vmatpush3.bf16.msra.mxu0 %v5762_v53  ;;  %4903 = vrot.lane.b32.xlu0 %v4896_v27, %s5940_s17  ;;  %v12763_v50 = vrot.slane %v12762_v28, 2 }
 0x433   : > { %v2859_v41 = vadd.f32 %v2858_v37, %v2857_v23  ;;  %v2871_v63 = vrot.slane %v2870_v48, 1  ;;  %v3478_v57 = vrot.slane %v12764_v12, 2  ;;  %5769 = vmatpush3.bf16.msra.mxu1 %v5768_v36  ;;  %v12766_v32 = vrot.slane %v12765_v60, 4  ;;  %5764 = vmatprep.subr.bf16.mxu0 %v5941_v18 }
 0x434   : > { %v3466_v7 = vadd.f32 %v12763_v50, %v12762_v28  ;;  %v2882_v34 = vrot.slane %v2881_v54, 2  ;;  %v3442_v59 = vadd.f32 %v3441_v33, %v12760_v26  ;;  %v3455_v21 = vadd.f32 %v3454_v14, %v12761_v22  ;;  %5770 = vmatprep.subr.bf16.mxu1 %v5941_v18  ;;  %v12773_v33 = vld [vmem:[#allocation168_spill] sm:$0xff] }
 0x435   : > { %v4887_v49 = vsel %vm4662_vm7, %v2859_v41, %v4886_v5  ;;  %v3490_v20 = vadd.f32 %v12766_v32, %v12765_v60  ;;  %v2872_v16 = vadd.f32 %v2871_v63, %v2870_v48  ;;  %v3479_v47 = vadd.f32 %v3478_v57, %v12764_v12  ;;  %v12771_v48 = vld [vmem:[#allocation119_spill] sm:$0xff] }
 0x436   : > { %v3467_v46 = vrot.slane %v3466_v7, 1  ;;  %v3502_v58 = vrot.slane %v10513_v30, 4  ;;  %v2883_v1 = vadd.f32 %v2882_v34, %v2881_v54  ;;  %v12768_v13 = vrot.slane %v12767_v43, 4  ;;  %v12776_v34 = vld [vmem:[#allocation115_spill] sm:$0xff] }
 0x437   : > { %v3491_v38 = vrot.slane %v3490_v20, 2  ;;  %v4682_v11 = vsel %vm4654_vm0, %v3455_v21, %v3442_v59  ;;  %v4888_v55 = vsel %vm4664_vm8, %v2872_v16, %v4887_v49  ;;  %v3480_v0 = vrot.slane %v3479_v47, 1  ;;  %v12774_v49 = vld [vmem:[#allocation142_spill] sm:$0xff]  ;;  %v12777_v59 = vld [vmem:[#allocation104_spill] sm:$0xff]  ;;  %v12778_v60 = vld [vmem:[#allocation191_spill] sm:$0xff] }
 0x438   : > { %v3529_v40 = vadd.f32 %v12768_v13, %v12767_v43  ;;  %v3468_v25 = vadd.f32 %v3467_v46, %v3466_v7  ;;  %v3503_v18 = vadd.f32 %v3502_v58, %v10513_v30  ;;  %v2884_v9 = vrot.slane %v2883_v1, 1  ;;  %v12779_v43 = vld [vmem:[#allocation81_spill] sm:$0xff]  ;;  %v12780_v13 = vld [vmem:[#allocation199_spill] sm:$0xff] }
 0x439   : > { %v3492_v35 = vadd.f32 %v3491_v38, %v3490_v20  ;;  %v3514_v4 = vadd.f32 %v10598_v56, %v10591_v8  ;;  %v3481_v44 = vadd.f32 %v3480_v0, %v3479_v47  ;;  %v5765_v42 = vpack.c.bf16 %v10772_v45, %v10769_v10 }
 0x43a   : > { %v3530_v6 = vrot.slane %v3529_v40, 2  ;;  %v3504_v23 = vrot.slane %v3503_v18, 2  ;;  %v4683_v24 = vsel %vm4656_vm4, %v3468_v25, %v4682_v11  ;;  %v2885_v2 = vadd.f32 %v2884_v9, %v2883_v1  ;;  %v12781_v25 = vld [vmem:[#allocation246_spill] sm:$0xff] }
 0x43b   : > { %v3493_v39 = vrot.slane %v3492_v35, 1  ;;  %v3515_v17 = vrot.slane %v3514_v4, 4  ;;  %v4684_v30 = vsel %vm4658_vm5, %v3481_v44, %v4683_v24  ;;  %v3337_v15 = vrot.slane %v12769_v62, 1  ;;  %5766 = vmatpush3.bf16.msra.mxu0 %v5765_v42 }
 0x43c   : > { %v3531_v61 = vadd.f32 %v3530_v6, %v3529_v40  ;;  %v3505_v37 = vadd.f32 %v3504_v23, %v3503_v18  ;;  %v3350_v19 = vrot.slane %v12770_v29, 1  ;;  %v4889_v8 = vsel %vm4666_vm9, %v2885_v2, %v4888_v55 }
 0x43d   : > { %v3494_v56 = vadd.f32 %v3493_v39, %v3492_v35  ;;  %v3516_v53 = vadd.f32 %v3515_v17, %v3514_v4  ;;  %4901 = vrot.lane.b32.xlu1 %v4889_v8, %s5940_s17  ;;  %v3338_v45 = vadd.f32 %v3337_v15, %v12769_v62  ;;  %v12772_v5 = vrot.slane %v12771_v48, 2 }
 0x43e   : > { %v3532_v51 = vrot.slane %v3531_v61, 1  ;;  %v3506_v10 = vrot.slane %v3505_v37, 1  ;;  %v3351_v41 = vadd.f32 %v3350_v19, %v12770_v29  ;;  %v3374_v22 = vrot.slane %v12773_v33, 2 }
 0x43f   : > { %v3362_v36 = vadd.f32 %v12772_v5, %v12771_v48  ;;  %v4685_v54 = vsel %vm4660_vm6, %v3494_v56, %v4684_v30  ;;  %v3517_v26 = vrot.slane %v3516_v53, 2  ;;  %v12775_v28 = vrot.slane %v12774_v49, 4 }
 0x440   : > { %v3533_v27 = vadd.f32 %v3532_v51, %v3531_v61  ;;  %v3507_v14 = vadd.f32 %v3506_v10, %v3505_v37  ;;  %v3398_v7 = vrot.slane %v10464_v52, 4  ;;  %v3375_v57 = vadd.f32 %v3374_v22, %v12773_v33 }
 0x441   : > { %v3363_v63 = vrot.slane %v3362_v36, 1  ;;  %v3386_v50 = vadd.f32 %v12775_v28, %v12774_v49  ;;  %v3518_v12 = vadd.f32 %v3517_v26, %v3516_v53  ;;  %v3408_v21 = vadd.f32 %v12777_v59, %v12776_v34 }
 0x442   : > { %v3409_v32 = vsel %vm2578_vm3, %v12778_v60, 0.0  ;;  %v4686_v20 = vsel %vm4662_vm7, %v3507_v14, %v4685_v54  ;;  %v3399_v47 = vadd.f32 %v3398_v7, %v10464_v52  ;;  %v3376_v1 = vrot.slane %v3375_v57, 1 }
 0x443   : > { %v3364_v16 = vadd.f32 %v3363_v63, %v3362_v36  ;;  %v3387_v46 = vrot.slane %v3386_v50, 2  ;;  %v3519_v58 = vrot.slane %v3518_v12, 1  ;;  %v3410_v38 = vadd.f32 %v3409_v32, %v3408_v21 }
 0x444   : > { %v3421_v40 = vadd.f32 %v12780_v13, %v12779_v43  ;;  %v3400_v55 = vrot.slane %v3399_v47, 2  ;;  %v3422_v0 = vsel %vm2578_vm3, %v12781_v25, 0.0  ;;  %v4675_v18 = vsel %vm4654_vm0, %v3351_v41, %v3338_v45 }
 0x445   : > { %v3388_v11 = vadd.f32 %v3387_v46, %v3386_v50  ;;  %v3520_v9 = vadd.f32 %v3519_v58, %v3518_v12  ;;  %v3377_v35 = vadd.f32 %v3376_v1, %v3375_v57  ;;  %v3411_v6 = vrot.slane %v3410_v38, 4 }
 0x446   : > { %v3423_v4 = vadd.f32 %v3422_v0, %v3421_v40  ;;  %v3401_v23 = vadd.f32 %v3400_v55, %v3399_v47  ;;  %v4676_v52 = vsel %vm4656_vm4, %v3364_v16, %v4675_v18  ;;  %v5771_v24 = vpack.c.bf16 %v10797_v3, %v10776_v31 }
 0x447   : > { %v3389_v44 = vrot.slane %v3388_v11, 1  ;;  %v4687_v42 = vsel %vm4664_vm8, %v3520_v9, %v4686_v20  ;;  %v3412_v2 = vadd.f32 %v3411_v6, %v3410_v38  ;;  %v4677_v61 = vsel %vm4658_vm5, %v3377_v35, %v4676_v52 }
 0x448   : > { %v3424_v39 = vrot.slane %v3423_v4, 4  ;;  %v4688_v17 = vsel %vm4666_vm9, %v3533_v27, %v4687_v42  ;;  %v3402_v30 = vrot.slane %v3401_v23, 1  ;;  %5772 = vmatpush3.bf16.msra.mxu1 %v5771_v24 }
 0x449   : > { %v3390_v37 = vadd.f32 %v3389_v44, %v3388_v11  ;;  %v3413_v62 = vrot.slane %v3412_v2, 2 }
 0x44a   : > { %v3425_v15 = vadd.f32 %v3424_v39, %v3423_v4  ;;  %v3403_v29 = vadd.f32 %v3402_v30, %v3401_v23 }
 0x44b   : > { %v4678_v19 = vsel %vm4660_vm6, %v3390_v37, %v4677_v61  ;;  %v3414_v8 = vadd.f32 %v3413_v62, %v3412_v2 }
 0x44c   : > { %v3426_v56 = vrot.slane %v3425_v15, 2  ;;  %v4679_v31 = vsel %vm4662_vm7, %v3403_v29, %v4678_v19 }
 0x44d   : > { %v3415_v3 = vrot.slane %v3414_v8, 1 }
 0x44e   : > { %v3427_v51 = vadd.f32 %v3426_v56, %v3425_v15 }
 0x44f   : > { %v3416_v53 = vadd.f32 %v3415_v3, %v3414_v8 }
 0x450   : > { %v3428_v10 = vrot.slane %v3427_v51, 1 }
 0x451   : > { %v4680_v41 = vsel %vm4664_vm8, %v3416_v53, %v4679_v31 }
 0x452   : > { %v3429_v45 = vadd.f32 %v3428_v10, %v3427_v51 }
 0x454   : > { %v4681_v48 = vsel %vm4666_vm9, %v3429_v45, %v4680_v41 }
 0x473   : > { %v4760_v5 = vpop.permute.xlu0 %4759 }
 0x474   : > { %v4912_v54 = vsel %vm2572_vm2, %v4688_v17, %v4760_v5 }
 0x47c   : > { %v4758_v27 = vpop.permute.xlu1 %4757 }
 0x47d   : > { %v4911_v63 = vsel %vm2572_vm2, %v4681_v48, %v4758_v27 }
 0x487   : > { %v4832_v36 = vpop.permute.xlu0 %4831 }
 0x488   : > { %v4917_v26 = vsel %vm4913_vm11, %v4912_v54, %v4832_v36 }
 0x499   : > { %v4830_v14 = vpop.permute.xlu1 %4829 }
 0x49a   : > { %v4916_v49 = vsel %vm4913_vm11, %v4911_v63, %v4830_v14 }
 0x4a4   : > { %v4904_v33 = vpop.permute.xlu0 %4903 }
 0x4a5   : > { %v4922_v22 = vsel %vm4918_vm12, %v4917_v26, %v4904_v33 }
 0x4a6   : > { %5747 = vmatmul.mubr.msk.f32.vlgmr.msra.gmra.mrb[10].mxu1 %vm5127_vm1, %v4922_v22 }
 0x4af   : > { %v4902_v28 = vpop.permute.xlu1 %4901 }
 0x4b0   : > { %v4921_v50 = vsel %vm4918_vm12, %v4916_v49, %v4902_v28 }
 0x4b1   : > { %5736 = vmatmul.mubr.msk.f32.vlgmr.msra.gmra.mrb[10].mxu0 %vm5127_vm1, %v4921_v50 }
 0x4c1   : > { %v5270_v7 = vpop.f32.mrb[8].mxu1 }
 0x4c2   : > { %5421 = vst [vmem:[%s250_s26 + $0x8] sm:$0xff] %v5270_v7  ;;  %v5726_v12 = vpop.f32.mrb[9].mxu1 }
 0x502   : > { %v5197_v57 = vpop.f32.mrb[8].mxu0 }
 0x503   : > { %5420 = vst [vmem:[%s250_s26] sm:$0xff] %v5197_v57  ;;  %v5715_v34 = vpop.f32.mrb[9].mxu0 }
 0x579   : > { %v5416_v59 = vpop.f32.mrb[10].mxu1 }
 0x57a   : > { %5423 = vst [vmem:[%s250_s26 + $0x18] sm:$0xff] %v5416_v59  ;;  %v5748_v21 = vpop.f32.mrb[11].mxu1 }
 0x584   : > { %v5343_v60 = vpop.f32.mrb[10].mxu0 }
 0x585   : > { %5422 = vst [vmem:[%s250_s26 + $0x10] sm:$0xff] %v5343_v60  ;;  %v5737_v32 = vpop.f32.mrb[11].mxu0 }
 0x586   : > { %5882 = shalt.err (!%p5879_p3)
}
 0x587   : > { %s5883_s16 = scalar_lea.hbm %s11027_s10, 512  ;;  %s5887_s23 = scalar_lea.hbm %s11076_s5, 1024 }
 0x588   : > { %p5884_p4 = scmp.ne.s32.totalorder %s11027_s10, %s5883_s16  ;;  %p5888_p9 = scmp.lt.u32.totalorder %s11027_s10, %s11076_s5 }
 0x589   : > { %p5889_p10 = scmp.lt.u32.totalorder %s5887_s23, %s5883_s16  ;;  %p5891_p12 = scmp.lt.u32.totalorder %s5883_s16, %s11027_s10 }
 0x58a   : > { %p5885_p7 = pnand %p5884_p4, %p6013_p5 }
 0x58b   : > { %p5890_p11 = por %p5889_p10, %p5888_p9 }
 0x58c   : > { %p5886_p8 = pneg %p5885_p7 }
 0x58d   : > { %p5892_p13 = por %p5891_p12, %p5890_p11 }
 0x58f   : > { %p5893_p0 = pnand %p5892_p13, %p5886_p8 }
 0x591   : > { %5896 = shalt.err (!%p5893_p0)
}
 0x592   : > { %s5944_s6 = smov 128  }
 0x593   : > { %5773 = dma.vmem_to_hbm [thread:$0]  (%p6013_p5), %s11022_s30, 512, %s11027_s10, %s11029_s11, %s5944_s6, %s5944_s6, %s5938_s9  }
 0x594 PF: > { %p5779_p1 = scmp.ge.s32.totalorder %s5931_s21, 2  ;;  %s5453_s7 = sand.u32 1, %s5919_s18  }
 0x595   : > { %s5454_s8 = scalar_lea.sflag [#allocation3], %s5453_s7 }
 0x596   : > { %p5776_p2 = pnand %p5779_p1, %p6017_p6 }
 0x598   : > { %5914 = dma.done.wait (!%p5776_p2), %s5454_s8, 512  }
 0x599   : > { %5916 = vsyncadd (!%p5776_p2), %s5454_s8, 4294966784  ;;  %p15_p3 = scmp.ge.s32.totalorder %s6000_s24, 4   ;;  %s12782_s18 = smov %s5923_s19 }
 0x59a   : > { %s12783_s19 = smov %s5927_s20  ;;  %s12784_s20 = smov %s6011_s27 }
 0x59b   : > { %s12785_s21 = smov %s6000_s24  ;;  %17 = sbr.rel (!%p15_p3) target bundleno = 3 (0x3), region = 81 }
 0x5a2   :  { %5459 = vsyncpa [#allocation3], 1 }
 0x5a3   :  { %5461 = vsyncpa [#allocation3 + $0x1], 1 }

</bundles_post_ra>
